<compile_context>
chip_gen: v7x
topology: tpu7x:2x2x1
jax: 0.10.0
libtpu: 0.0.40
codegen_flags: <defaults>
</compile_context>

<pallas_src>
import functools

import jax
import jax.numpy as jnp
from jax import lax
from jax.experimental import pallas as pl
from jax.experimental.pallas import tpu as pltpu

NEG_SLOPE = 0.2   # nn.LeakyReLU(negative_slope=0.2)
EPS = 1e-5        # nn.InstanceNorm2d default eps


def _round_up(x, m):
    return (x + m - 1) // m * m


def _convblock_kernel(xb_ref, w1_ref, w2_ref, out_ref, hb_ref, xe_ref, *,
                      H, W, Wq, Cp, residual):
    """One batch element per grid step.

    Slab layout: pixel (y, x) of the (unpadded) image lives at flat row
    r0 + y*Wq + x with r0 = 2*Wq; rows [0, 2*Wq) and [r0 + H*Wq, Rb) are zero
    halos, columns x in [W, Wq) of each row are zero pad.

    xb_ref : (Rb, Cp)      f32  - input slab (channels on lanes, padded)
    w1_ref : (3, 3*Cp, Cp) bf16 - conv1 per-ky (kx-fused) weight matrices
    w2_ref : (3, 3*Cp, Cp) bf16 - conv2 per-ky (kx-fused) weight matrices
    out_ref: (P, Cp)       f32  - output slab (P = H*Wq)
    hb_ref : (Rb, Cp)      f32  - intermediate activation slab (scratch)
    xe_ref : (L, 3*Cp)     bf16 - kx-expanded MXU LHS (scratch), L = 2*Wq + P
    """
    P = H * Wq
    L = 2 * Wq + P
    Rb = xb_ref.shape[0]
    r0 = 2 * Wq
    f32 = jnp.float32
    bf16 = jnp.bfloat16
    inv_hw = 1.0 / float(H * W)

    # Valid-pixel mask (1 where x < W inside each Wq-pitch row), f32, (P, 1).
    col = lax.broadcasted_iota(jnp.int32, (P, 1), 0) % Wq
    mask = (col < W).astype(f32)

    # Zero the halo rows of the intermediate slab.  Small aligned stores; done
    # every step because scratch is per-core under megacore partitioning.
    hb_ref[0:r0, :] = jnp.zeros((r0, Cp), f32)
    hb_ref[r0 + P:Rb, :] = jnp.zeros((Rb - r0 - P, Cp), f32)

    def build_xe(src_ref):
        # Lane group g (lanes [g*Cp, (g+1)*Cp)) holds src shifted by (g-1)
        # flat rows == the kx column shift of the 3x3 stencil.
        # xe row r corresponds to slab row (Wq + r).
        xe_ref[:, 0:Cp] = src_ref[Wq - 1:Wq - 1 + L, :].astype(bf16)
        xe_ref[:, Cp:2 * Cp] = src_ref[Wq:Wq + L, :].astype(bf16)
        xe_ref[:, 2 * Cp:3 * Cp] = src_ref[Wq + 1:Wq + 1 + L, :].astype(bf16)

    def conv3x3(w_ref):
        # 3 matmuls (one per ky), K = 3*Cp, bf16 MXU operands, f32 accumulation.
        acc = jnp.zeros((P, Cp), f32)
        for ky in range(3):
            lhs = xe_ref[ky * Wq:ky * Wq + P, :]          # aligned slice, bf16
            acc = acc + jnp.dot(lhs, w_ref[ky], preferred_element_type=f32)
        return acc

    def inorm_lrelu(acc):
        # InstanceNorm2d: per-channel (lane-parallel) masked single-pass stats.
        s1 = jnp.sum(acc * mask, axis=0, keepdims=True)
        s2 = jnp.sum(acc * acc * mask, axis=0, keepdims=True)
        mean = s1 * inv_hw
        var = jnp.maximum(s2 * inv_hw - mean * mean, 0.0)
        h = (acc - mean) * lax.rsqrt(var + EPS)
        # LeakyReLU(0.2)
        return jnp.where(h > 0, h, NEG_SLOPE * h)

    # ---------------- conv1 -> InstanceNorm -> LeakyReLU ----------------
    build_xe(xb_ref)
    h1 = inorm_lrelu(conv3x3(w1_ref)) * mask       # mask zeroes the pad columns
    # Dropout2d(p=0) is the identity.
    hb_ref[r0:r0 + P, :] = h1                      # aligned, full-width store

    # ---------- conv2 -> InstanceNorm -> LeakyReLU (+ residual) ----------
    build_xe(hb_ref)
    h2 = inorm_lrelu(conv3x3(w2_ref))
    if residual:
        h2 = h2 + xb_ref[r0:r0 + P, :]             # aligned f32 slab add
    out_ref[:, :] = h2.astype(out_ref.dtype)


def _taps_to_mats(w, cp):
    """OIHW (cout, cin, 3, 3) -> (3, 3*cp, cp) bf16 per-ky, kx-fused matrices."""
    cout, cin, _, _ = w.shape
    wt = jnp.transpose(w, (2, 3, 1, 0))                               # (3,3,ci,co)
    wt = jnp.pad(wt, ((0, 0), (0, 0), (0, cp - cin), (0, cp - cout)))
    return wt.reshape(3, 3 * cp, cp).astype(jnp.bfloat16)


def conv_block(x_nchw, w1, w2):
    """ConvBlock forward. x: (N, Cin, H, W); w1: (Cout, Cin, 3, 3); w2: (Cout, Cout, 3, 3)."""
    N, Cin, H, W = x_nchw.shape
    Cout = w1.shape[0]
    residual = (Cin == Cout)

    Cp = _round_up(max(Cin, Cout), 128)   # lane-dense channel dim
    Wq = _round_up(W + 2, 16)             # row pitch, bf16 sublane-tile aligned
    P = H * Wq                             # output rows per image
    Rb = (H + 4) * Wq                      # 2*Wq zero halo rows top and bottom
    L = 2 * Wq + P                         # rows of the expanded MXU LHS

    # NCHW -> channels-last slab layout, f32 (bf16 casts happen at the MXU
    # boundary inside the kernel).
    xs = jnp.transpose(x_nchw, (0, 2, 3, 1)).astype(jnp.float32)      # (N,H,W,Ci)
    xs = jnp.pad(xs, ((0, 0), (0, 0), (0, Wq - W), (0, Cp - Cin)))    # (N,H,Wq,Cp)
    xs = xs.reshape(N, P, Cp)
    xs = jnp.pad(xs, ((0, 0), (2 * Wq, 2 * Wq), (0, 0)))              # (N,Rb,Cp)

    w1m = _taps_to_mats(w1, Cp)   # (3, 3*Cp, Cp) bf16
    w2m = _taps_to_mats(w2, Cp)

    kernel = functools.partial(_convblock_kernel, H=H, W=W, Wq=Wq, Cp=Cp,
                               residual=residual)

    cost = pl.CostEstimate(
        flops=2 * N * P * (3 * Cp) * Cp * 3 * 2,      # 2 convs x 3 matmuls each
        transcendentals=2 * N * Cp,
        bytes_accessed=int(xs.size * 4 + (w1m.size + w2m.size) * 2
                           + N * P * Cp * 4),
    )

    # VMEM budget from the actual working set (double-buffered blocks +
    # scratch + in-flight f32 values), clamped so it is valid on v7x (64 MiB).
    vmem_need = (2 * Rb * Cp * 4 + 2 * P * Cp * 4
                 + 2 * (w1m.size + w2m.size) * 2
                 + Rb * Cp * 4 + L * 3 * Cp * 2
                 + 8 * P * Cp * 4)
    vmem_limit = int(min(max(2 * vmem_need, 32 * 2**20), 64 * 2**20))

    out = pl.pallas_call(
        kernel,
        out_shape=jax.ShapeDtypeStruct((N, P, Cp), jnp.float32),
        grid_spec=pltpu.PrefetchScalarGridSpec(
            num_scalar_prefetch=0,
            grid=(N,),
            in_specs=[
                pl.BlockSpec((None, Rb, Cp), lambda b: (b, 0, 0)),
                pl.BlockSpec((3, 3 * Cp, Cp), lambda b: (0, 0, 0)),
                pl.BlockSpec((3, 3 * Cp, Cp), lambda b: (0, 0, 0)),
            ],
            out_specs=pl.BlockSpec((None, P, Cp), lambda b: (b, 0, 0)),
            scratch_shapes=[
                pltpu.VMEM((Rb, Cp), jnp.float32),       # intermediate slab
                pltpu.VMEM((L, 3 * Cp), jnp.bfloat16),   # kx-expanded MXU LHS
            ],
        ),
        compiler_params=pltpu.CompilerParams(
            dimension_semantics=("parallel",),           # batch -> v7x megacore
            vmem_limit_bytes=vmem_limit,
        ),
        cost_estimate=cost,
    )(xs, w1m, w2m)

    # (N, P, Cp) slab -> un-pad -> NCHW (wrapper-side layout plumbing).
    out = out.reshape(N, H, Wq, Cp)[:, :, :W, :Cout]
    return jnp.transpose(out, (0, 3, 1, 2)).astype(x_nchw.dtype)


def _reference(x, w1, w2):
    """Pure-JAX f32 reference replicating the PyTorch ConvBlock forward."""
    def conv(x, w):
        return lax.conv_general_dilated(
            x, w, window_strides=(1, 1), padding=((1, 1), (1, 1)),
            dimension_numbers=("NCHW", "OIHW", "NCHW"),
            precision=lax.Precision.HIGHEST)

    def inorm(x):
        mean = jnp.mean(x, axis=(2, 3), keepdims=True)
        var = jnp.mean((x - mean) ** 2, axis=(2, 3), keepdims=True)
        return (x - mean) * lax.rsqrt(var + EPS)

    def lrelu(x):
        return jnp.where(x > 0, x, NEG_SLOPE * x)

    h = lrelu(inorm(conv(x, w1)))
    h = lrelu(inorm(conv(h, w2)))
    if x.shape[1] == w1.shape[0]:
        h = h + x
    return h


if __name__ == "__main__":
    N, Cin, Cout, H, W = 2, 4, 4, 16, 16

    key = jax.random.PRNGKey(0)
    kx, k1, k2 = jax.random.split(key, 3)
    x = jax.random.normal(kx, (N, Cin, H, W), jnp.float32)
    # Deterministic synthetic weights (conv bias=False in the module).
    w1 = jax.random.normal(k1, (Cout, Cin, 3, 3), jnp.float32) * 0.1
    w2 = jax.random.normal(k2, (Cout, Cout, 3, 3), jnp.float32) * 0.1

    out = jax.jit(conv_block)(x, w1, w2)
    out = jax.block_until_ready(out)

    ref = _reference(x, w1, w2)
    assert out.shape == (N, Cout, H, W), out.shape
    max_err = float(jnp.max(jnp.abs(out - ref)))
    # Tolerance reflects bf16 MXU operands (~2^-8 relative); InstanceNorm
    # outputs are O(1), accumulation and statistics are f32.
    assert jnp.allclose(out, ref, atol=5e-2, rtol=5e-2), f"max_err={max_err}"

    print("KERNEL_OK")
</pallas_src>

<mosaic_0001>
module attributes {stable_mosaic.version = 11 : i64} {
  func.func @_convblock_kernel(%arg0: i32, %arg1: memref<1x640x128xf32, #tpu.memory_space<vmem>>, %arg2: memref<3x384x128xbf16, #tpu.memory_space<vmem>>, %arg3: memref<3x384x128xbf16, #tpu.memory_space<vmem>>, %arg4: memref<1x512x128xf32, #tpu.memory_space<vmem>>, %arg5: memref<640x128xf32, #tpu.memory_space<vmem>>, %arg6: memref<576x384xbf16, #tpu.memory_space<vmem>>) attributes {dimension_semantics = [#tpu.dimension_semantics<parallel>], iteration_bounds = array<i64: 2>, scalar_prefetch = 0 : i64, scratch_operands = 2 : i64, tpu.core_type = #tpu.core_type<tc>, window_params = [{transform_indices = @transform_0, window_bounds = array<i64: 1, 640, 128>}, {pipeline_mode = #tpu.pipeline_mode<synchronous>, transform_indices = @transform_1, window_bounds = array<i64: 3, 384, 128>}, {pipeline_mode = #tpu.pipeline_mode<synchronous>, transform_indices = @transform_2, window_bounds = array<i64: 3, 384, 128>}, {transform_indices = @transform_3, window_bounds = array<i64: 1, 512, 128>}]} {
    %0 = tpu.iota {dimensions = array<i32: 0>} : vector<512x1xi32>
    %c32_i32 = arith.constant 32 : i32
    %c0_i32 = arith.constant 0 : i32
    %1 = arith.cmpi eq, %c32_i32, %c0_i32 : i32
    %c1_i32 = arith.constant 1 : i32
    %2 = arith.select %1, %c1_i32, %c32_i32 : i32
    %3 = vector.broadcast %2 : i32 to vector<512x1xi32>
    %4 = arith.remsi %0, %3 : vector<512x1xi32>
    %c0_i32_0 = arith.constant 0 : i32
    %5 = vector.broadcast %c0_i32_0 : i32 to vector<512x1xi32>
    %6 = arith.cmpi ne, %4, %5 : vector<512x1xi32>
    %c0_i32_1 = arith.constant 0 : i32
    %7 = vector.broadcast %c0_i32_1 : i32 to vector<512x1xi32>
    %8 = arith.cmpi slt, %4, %7 : vector<512x1xi32>
    %c0_i32_2 = arith.constant 0 : i32
    %9 = arith.cmpi slt, %2, %c0_i32_2 : i32
    %10 = vector.broadcast %9 : i1 to vector<512x1xi1>
    %11 = vector.broadcast %10 : vector<512x1xi1> to vector<512x1xi1>
    %12 = arith.xori %8, %11 : vector<512x1xi1>
    %13 = arith.andi %12, %6 : vector<512x1xi1>
    %14 = vector.broadcast %2 : i32 to vector<512x1xi32>
    %15 = arith.addi %4, %14 : vector<512x1xi32>
    %16 = arith.select %13, %15, %4 : vector<512x1xi1>, vector<512x1xi32>
    %c16_i32 = arith.constant 16 : i32
    %17 = vector.broadcast %c16_i32 : i32 to vector<512x1xi32>
    %18 = arith.cmpi slt, %16, %17 : vector<512x1xi32>
    %19 = arith.extui %18 : vector<512x1xi1> to vector<512x1xi32>
    %20 = arith.sitofp %19 : vector<512x1xi32> to vector<512x1xf32>
    %cst = arith.constant 0.000000e+00 : f32
    %21 = vector.broadcast %cst : f32 to vector<64x128xf32>
    %c0 = arith.constant 0 : index
    %c0_3 = arith.constant 0 : index
    %22 = vector.load %arg5[%c0, %c0_3] : memref<640x128xf32, #tpu.memory_space<vmem>>, vector<64x128xf32>
    tpu.vector_store %arg5[%c0, %c0_3], %21 {strides = array<i32>} : memref<640x128xf32, #tpu.memory_space<vmem>>, vector<64x128xf32>,
    %cst_4 = arith.constant 0.000000e+00 : f32
    %23 = vector.broadcast %cst_4 : f32 to vector<64x128xf32>
    %c576 = arith.constant 576 : index
    %c0_5 = arith.constant 0 : index
    %24 = vector.load %arg5[%c576, %c0_5] : memref<640x128xf32, #tpu.memory_space<vmem>>, vector<64x128xf32>
    tpu.vector_store %arg5[%c576, %c0_5], %23 {strides = array<i32>} : memref<640x128xf32, #tpu.memory_space<vmem>>, vector<64x128xf32>,
    %c0_6 = arith.constant 0 : index
    %c31 = arith.constant 31 : index
    %c0_7 = arith.constant 0 : index
    %25 = vector.load %arg1[%c0_6, %c31, %c0_7] : memref<1x640x128xf32, #tpu.memory_space<vmem>>, vector<1x576x128xf32>
    %26 = vector.shape_cast %25 : vector<1x576x128xf32> to vector<576x128xf32>
    %27 = arith.truncf %26 : vector<576x128xf32> to vector<576x128xbf16>
    %c0_8 = arith.constant 0 : index
    %c0_9 = arith.constant 0 : index
    %28 = vector.load %arg6[%c0_8, %c0_9] : memref<576x384xbf16, #tpu.memory_space<vmem>>, vector<576x128xbf16>
    tpu.vector_store %arg6[%c0_8, %c0_9], %27 {strides = array<i32>} : memref<576x384xbf16, #tpu.memory_space<vmem>>, vector<576x128xbf16>,
    %c0_10 = arith.constant 0 : index
    %c32 = arith.constant 32 : index
    %c0_11 = arith.constant 0 : index
    %29 = vector.load %arg1[%c0_10, %c32, %c0_11] : memref<1x640x128xf32, #tpu.memory_space<vmem>>, vector<1x576x128xf32>
    %30 = vector.shape_cast %29 : vector<1x576x128xf32> to vector<576x128xf32>
    %31 = arith.truncf %30 : vector<576x128xf32> to vector<576x128xbf16>
    %c0_12 = arith.constant 0 : index
    %c128 = arith.constant 128 : index
    %32 = vector.load %arg6[%c0_12, %c128] : memref<576x384xbf16, #tpu.memory_space<vmem>>, vector<576x128xbf16>
    tpu.vector_store %arg6[%c0_12, %c128], %31 {strides = array<i32>} : memref<576x384xbf16, #tpu.memory_space<vmem>>, vector<576x128xbf16>,
    %c0_13 = arith.constant 0 : index
    %c33 = arith.constant 33 : index
    %c0_14 = arith.constant 0 : index
    %33 = vector.load %arg1[%c0_13, %c33, %c0_14] : memref<1x640x128xf32, #tpu.memory_space<vmem>>, vector<1x576x128xf32>
    %34 = vector.shape_cast %33 : vector<1x576x128xf32> to vector<576x128xf32>
    %35 = arith.truncf %34 : vector<576x128xf32> to vector<576x128xbf16>
    %c0_15 = arith.constant 0 : index
    %c256 = arith.constant 256 : index
    %36 = vector.load %arg6[%c0_15, %c256] : memref<576x384xbf16, #tpu.memory_space<vmem>>, vector<576x128xbf16>
    tpu.vector_store %arg6[%c0_15, %c256], %35 {strides = array<i32>} : memref<576x384xbf16, #tpu.memory_space<vmem>>, vector<576x128xbf16>,
    %cst_16 = arith.constant 0.000000e+00 : f32
    %37 = vector.broadcast %cst_16 : f32 to vector<512x128xf32>
    %c0_17 = arith.constant 0 : index
    %c0_18 = arith.constant 0 : index
    %38 = vector.load %arg6[%c0_17, %c0_18] : memref<576x384xbf16, #tpu.memory_space<vmem>>, vector<512x384xbf16>
    %c0_19 = arith.constant 0 : index
    %c0_20 = arith.constant 0 : index
    %c0_21 = arith.constant 0 : index
    %39 = vector.load %arg2[%c0_19, %c0_20, %c0_21] : memref<3x384x128xbf16, #tpu.memory_space<vmem>>, vector<1x384x128xbf16>
    %40 = vector.shape_cast %39 : vector<1x384x128xbf16> to vector<384x128xbf16>
    %cst_22 = arith.constant dense<0.000000e+00> : vector<512x128xf32>
    %41 = tpu.matmul %38, %40, %cst_22 {dimension_numbers = #tpu.dot_dimension_numbers<[1], [0], [0], [1], [0, 0, 1, 1], [], []>} : vector<512x384xbf16>, vector<384x128xbf16>, vector<512x128xf32> -> vector<512x128xf32>
    %42 = arith.addf %37, %41 : vector<512x128xf32>
    %c32_23 = arith.constant 32 : index
    %c0_24 = arith.constant 0 : index
    %43 = vector.load %arg6[%c32_23, %c0_24] : memref<576x384xbf16, #tpu.memory_space<vmem>>, vector<512x384xbf16>
    %c1 = arith.constant 1 : index
    %c0_25 = arith.constant 0 : index
    %c0_26 = arith.constant 0 : index
    %44 = vector.load %arg2[%c1, %c0_25, %c0_26] : memref<3x384x128xbf16, #tpu.memory_space<vmem>>, vector<1x384x128xbf16>
    %45 = vector.shape_cast %44 : vector<1x384x128xbf16> to vector<384x128xbf16>
    %cst_27 = arith.constant dense<0.000000e+00> : vector<512x128xf32>
    %46 = tpu.matmul %43, %45, %cst_27 {dimension_numbers = #tpu.dot_dimension_numbers<[1], [0], [0], [1], [0, 0, 1, 1], [], []>} : vector<512x384xbf16>, vector<384x128xbf16>, vector<512x128xf32> -> vector<512x128xf32>
    %47 = arith.addf %42, %46 : vector<512x128xf32>
    %c64 = arith.constant 64 : index
    %c0_28 = arith.constant 0 : index
    %48 = vector.load %arg6[%c64, %c0_28] : memref<576x384xbf16, #tpu.memory_space<vmem>>, vector<512x384xbf16>
    %c2 = arith.constant 2 : index
    %c0_29 = arith.constant 0 : index
    %c0_30 = arith.constant 0 : index
    %49 = vector.load %arg2[%c2, %c0_29, %c0_30] : memref<3x384x128xbf16, #tpu.memory_space<vmem>>, vector<1x384x128xbf16>
    %50 = vector.shape_cast %49 : vector<1x384x128xbf16> to vector<384x128xbf16>
    %cst_31 = arith.constant dense<0.000000e+00> : vector<512x128xf32>
    %51 = tpu.matmul %48, %50, %cst_31 {dimension_numbers = #tpu.dot_dimension_numbers<[1], [0], [0], [1], [0, 0, 1, 1], [], []>} : vector<512x384xbf16>, vector<384x128xbf16>, vector<512x128xf32> -> vector<512x128xf32>
    %52 = arith.addf %47, %51 : vector<512x128xf32>
    %53 = vector.broadcast %20 : vector<512x1xf32> to vector<512x128xf32>
    %54 = arith.mulf %52, %53 : vector<512x128xf32>
    %cst_32 = arith.constant dense<0.000000e+00> : vector<128xf32>
    %55 = vector.multi_reduction <add>, %54, %cst_32 [0] : vector<512x128xf32> to vector<128xf32>
    %56 = vector.shape_cast %55 : vector<128xf32> to vector<1x128xf32>
    %57 = arith.mulf %52, %52 : vector<512x128xf32>
    %58 = vector.broadcast %20 : vector<512x1xf32> to vector<512x128xf32>
    %59 = arith.mulf %57, %58 : vector<512x128xf32>
    %cst_33 = arith.constant dense<0.000000e+00> : vector<128xf32>
    %60 = vector.multi_reduction <add>, %59, %cst_33 [0] : vector<512x128xf32> to vector<128xf32>
    %61 = vector.shape_cast %60 : vector<128xf32> to vector<1x128xf32>
    %cst_34 = arith.constant 3.906250e-03 : f32
    %62 = vector.broadcast %cst_34 : f32 to vector<1x128xf32>
    %63 = arith.mulf %56, %62 : vector<1x128xf32>
    %cst_35 = arith.constant 3.906250e-03 : f32
    %64 = vector.broadcast %cst_35 : f32 to vector<1x128xf32>
    %65 = arith.mulf %61, %64 : vector<1x128xf32>
    %66 = arith.mulf %63, %63 : vector<1x128xf32>
    %67 = arith.subf %65, %66 : vector<1x128xf32>
    %cst_36 = arith.constant 0.000000e+00 : f32
    %68 = vector.broadcast %cst_36 : f32 to vector<1x128xf32>
    %69 = arith.maximumf %67, %68 : vector<1x128xf32>
    %70 = vector.broadcast %63 : vector<1x128xf32> to vector<512x128xf32>
    %71 = arith.subf %52, %70 : vector<512x128xf32>
    %cst_37 = arith.constant 9.99999974E-6 : f32
    %72 = vector.broadcast %cst_37 : f32 to vector<1x128xf32>
    %73 = arith.addf %69, %72 : vector<1x128xf32>
    %74 = math.rsqrt %73 : vector<1x128xf32>
    %75 = vector.broadcast %74 : vector<1x128xf32> to vector<512x128xf32>
    %76 = arith.mulf %71, %75 : vector<512x128xf32>
    %cst_38 = arith.constant 0.000000e+00 : f32
    %77 = vector.broadcast %cst_38 : f32 to vector<512x128xf32>
    %78 = arith.cmpf ogt, %76, %77 : vector<512x128xf32>
    %cst_39 = arith.constant 2.000000e-01 : f32
    %79 = vector.broadcast %cst_39 : f32 to vector<512x128xf32>
    %80 = arith.mulf %79, %76 : vector<512x128xf32>
    %81 = arith.select %78, %76, %80 : vector<512x128xi1>, vector<512x128xf32>
    %82 = vector.broadcast %20 : vector<512x1xf32> to vector<512x128xf32>
    %83 = arith.mulf %81, %82 : vector<512x128xf32>
    %c64_40 = arith.constant 64 : index
    %c0_41 = arith.constant 0 : index
    %84 = vector.load %arg5[%c64_40, %c0_41] : memref<640x128xf32, #tpu.memory_space<vmem>>, vector<512x128xf32>
    tpu.vector_store %arg5[%c64_40, %c0_41], %83 {strides = array<i32>} : memref<640x128xf32, #tpu.memory_space<vmem>>, vector<512x128xf32>,
    %c31_42 = arith.constant 31 : index
    %c0_43 = arith.constant 0 : index
    %85 = vector.load %arg5[%c31_42, %c0_43] : memref<640x128xf32, #tpu.memory_space<vmem>>, vector<576x128xf32>
    %86 = arith.truncf %85 : vector<576x128xf32> to vector<576x128xbf16>
    %c0_44 = arith.constant 0 : index
    %c0_45 = arith.constant 0 : index
    %87 = vector.load %arg6[%c0_44, %c0_45] : memref<576x384xbf16, #tpu.memory_space<vmem>>, vector<576x128xbf16>
    tpu.vector_store %arg6[%c0_44, %c0_45], %86 {strides = array<i32>} : memref<576x384xbf16, #tpu.memory_space<vmem>>, vector<576x128xbf16>,
    %c32_46 = arith.constant 32 : index
    %c0_47 = arith.constant 0 : index
    %88 = vector.load %arg5[%c32_46, %c0_47] : memref<640x128xf32, #tpu.memory_space<vmem>>, vector<576x128xf32>
    %89 = arith.truncf %88 : vector<576x128xf32> to vector<576x128xbf16>
    %c0_48 = arith.constant 0 : index
    %c128_49 = arith.constant 128 : index
    %90 = vector.load %arg6[%c0_48, %c128_49] : memref<576x384xbf16, #tpu.memory_space<vmem>>, vector<576x128xbf16>
    tpu.vector_store %arg6[%c0_48, %c128_49], %89 {strides = array<i32>} : memref<576x384xbf16, #tpu.memory_space<vmem>>, vector<576x128xbf16>,
    %c33_50 = arith.constant 33 : index
    %c0_51 = arith.constant 0 : index
    %91 = vector.load %arg5[%c33_50, %c0_51] : memref<640x128xf32, #tpu.memory_space<vmem>>, vector<576x128xf32>
    %92 = arith.truncf %91 : vector<576x128xf32> to vector<576x128xbf16>
    %c0_52 = arith.constant 0 : index
    %c256_53 = arith.constant 256 : index
    %93 = vector.load %arg6[%c0_52, %c256_53] : memref<576x384xbf16, #tpu.memory_space<vmem>>, vector<576x128xbf16>
    tpu.vector_store %arg6[%c0_52, %c256_53], %92 {strides = array<i32>} : memref<576x384xbf16, #tpu.memory_space<vmem>>, vector<576x128xbf16>,
    %cst_54 = arith.constant 0.000000e+00 : f32
    %94 = vector.broadcast %cst_54 : f32 to vector<512x128xf32>
    %c0_55 = arith.constant 0 : index
    %c0_56 = arith.constant 0 : index
    %95 = vector.load %arg6[%c0_55, %c0_56] : memref<576x384xbf16, #tpu.memory_space<vmem>>, vector<512x384xbf16>
    %c0_57 = arith.constant 0 : index
    %c0_58 = arith.constant 0 : index
    %c0_59 = arith.constant 0 : index
    %96 = vector.load %arg3[%c0_57, %c0_58, %c0_59] : memref<3x384x128xbf16, #tpu.memory_space<vmem>>, vector<1x384x128xbf16>
    %97 = vector.shape_cast %96 : vector<1x384x128xbf16> to vector<384x128xbf16>
    %cst_60 = arith.constant dense<0.000000e+00> : vector<512x128xf32>
    %98 = tpu.matmul %95, %97, %cst_60 {dimension_numbers = #tpu.dot_dimension_numbers<[1], [0], [0], [1], [0, 0, 1, 1], [], []>} : vector<512x384xbf16>, vector<384x128xbf16>, vector<512x128xf32> -> vector<512x128xf32>
    %99 = arith.addf %94, %98 : vector<512x128xf32>
    %c32_61 = arith.constant 32 : index
    %c0_62 = arith.constant 0 : index
    %100 = vector.load %arg6[%c32_61, %c0_62] : memref<576x384xbf16, #tpu.memory_space<vmem>>, vector<512x384xbf16>
    %c1_63 = arith.constant 1 : index
    %c0_64 = arith.constant 0 : index
    %c0_65 = arith.constant 0 : index
    %101 = vector.load %arg3[%c1_63, %c0_64, %c0_65] : memref<3x384x128xbf16, #tpu.memory_space<vmem>>, vector<1x384x128xbf16>
    %102 = vector.shape_cast %101 : vector<1x384x128xbf16> to vector<384x128xbf16>
    %cst_66 = arith.constant dense<0.000000e+00> : vector<512x128xf32>
    %103 = tpu.matmul %100, %102, %cst_66 {dimension_numbers = #tpu.dot_dimension_numbers<[1], [0], [0], [1], [0, 0, 1, 1], [], []>} : vector<512x384xbf16>, vector<384x128xbf16>, vector<512x128xf32> -> vector<512x128xf32>
    %104 = arith.addf %99, %103 : vector<512x128xf32>
    %c64_67 = arith.constant 64 : index
    %c0_68 = arith.constant 0 : index
    %105 = vector.load %arg6[%c64_67, %c0_68] : memref<576x384xbf16, #tpu.memory_space<vmem>>, vector<512x384xbf16>
    %c2_69 = arith.constant 2 : index
    %c0_70 = arith.constant 0 : index
    %c0_71 = arith.constant 0 : index
    %106 = vector.load %arg3[%c2_69, %c0_70, %c0_71] : memref<3x384x128xbf16, #tpu.memory_space<vmem>>, vector<1x384x128xbf16>
    %107 = vector.shape_cast %106 : vector<1x384x128xbf16> to vector<384x128xbf16>
    %cst_72 = arith.constant dense<0.000000e+00> : vector<512x128xf32>
    %108 = tpu.matmul %105, %107, %cst_72 {dimension_numbers = #tpu.dot_dimension_numbers<[1], [0], [0], [1], [0, 0, 1, 1], [], []>} : vector<512x384xbf16>, vector<384x128xbf16>, vector<512x128xf32> -> vector<512x128xf32>
    %109 = arith.addf %104, %108 : vector<512x128xf32>
    %110 = vector.broadcast %20 : vector<512x1xf32> to vector<512x128xf32>
    %111 = arith.mulf %109, %110 : vector<512x128xf32>
    %cst_73 = arith.constant dense<0.000000e+00> : vector<128xf32>
    %112 = vector.multi_reduction <add>, %111, %cst_73 [0] : vector<512x128xf32> to vector<128xf32>
    %113 = vector.shape_cast %112 : vector<128xf32> to vector<1x128xf32>
    %114 = arith.mulf %109, %109 : vector<512x128xf32>
    %115 = vector.broadcast %20 : vector<512x1xf32> to vector<512x128xf32>
    %116 = arith.mulf %114, %115 : vector<512x128xf32>
    %cst_74 = arith.constant dense<0.000000e+00> : vector<128xf32>
    %117 = vector.multi_reduction <add>, %116, %cst_74 [0] : vector<512x128xf32> to vector<128xf32>
    %118 = vector.shape_cast %117 : vector<128xf32> to vector<1x128xf32>
    %cst_75 = arith.constant 3.906250e-03 : f32
    %119 = vector.broadcast %cst_75 : f32 to vector<1x128xf32>
    %120 = arith.mulf %113, %119 : vector<1x128xf32>
    %cst_76 = arith.constant 3.906250e-03 : f32
    %121 = vector.broadcast %cst_76 : f32 to vector<1x128xf32>
    %122 = arith.mulf %118, %121 : vector<1x128xf32>
    %123 = arith.mulf %120, %120 : vector<1x128xf32>
    %124 = arith.subf %122, %123 : vector<1x128xf32>
    %cst_77 = arith.constant 0.000000e+00 : f32
    %125 = vector.broadcast %cst_77 : f32 to vector<1x128xf32>
    %126 = arith.maximumf %124, %125 : vector<1x128xf32>
    %127 = vector.broadcast %120 : vector<1x128xf32> to vector<512x128xf32>
    %128 = arith.subf %109, %127 : vector<512x128xf32>
    %cst_78 = arith.constant 9.99999974E-6 : f32
    %129 = vector.broadcast %cst_78 : f32 to vector<1x128xf32>
    %130 = arith.addf %126, %129 : vector<1x128xf32>
    %131 = math.rsqrt %130 : vector<1x128xf32>
    %132 = vector.broadcast %131 : vector<1x128xf32> to vector<512x128xf32>
    %133 = arith.mulf %128, %132 : vector<512x128xf32>
    %cst_79 = arith.constant 0.000000e+00 : f32
    %134 = vector.broadcast %cst_79 : f32 to vector<512x128xf32>
    %135 = arith.cmpf ogt, %133, %134 : vector<512x128xf32>
    %cst_80 = arith.constant 2.000000e-01 : f32
    %136 = vector.broadcast %cst_80 : f32 to vector<512x128xf32>
    %137 = arith.mulf %136, %133 : vector<512x128xf32>
    %138 = arith.select %135, %133, %137 : vector<512x128xi1>, vector<512x128xf32>
    %c0_81 = arith.constant 0 : index
    %c64_82 = arith.constant 64 : index
    %c0_83 = arith.constant 0 : index
    %139 = vector.load %arg1[%c0_81, %c64_82, %c0_83] : memref<1x640x128xf32, #tpu.memory_space<vmem>>, vector<1x512x128xf32>
    %140 = vector.shape_cast %139 : vector<1x512x128xf32> to vector<512x128xf32>
    %141 = arith.addf %138, %140 : vector<512x128xf32>
    %c0_84 = arith.constant 0 : index
    %c0_85 = arith.constant 0 : index
    %c0_86 = arith.constant 0 : index
    %142 = vector.load %arg4[%c0_84, %c0_85, %c0_86] : memref<1x512x128xf32, #tpu.memory_space<vmem>>, vector<1x512x128xf32>
    %143 = vector.shape_cast %142 : vector<1x512x128xf32> to vector<512x128xf32>
    %144 = vector.shape_cast %141 : vector<512x128xf32> to vector<1x512x128xf32>
    tpu.vector_store %arg4[%c0_84, %c0_85, %c0_86], %144 {strides = array<i32>} : memref<1x512x128xf32, #tpu.memory_space<vmem>>, vector<1x512x128xf32>,
    return
  }
  func.func @transform_0(%arg0: i32) -> (i32, i32, i32) {
    %c0_i32 = arith.constant 0 : i32
    %c0_i32_0 = arith.constant 0 : i32
    %c0_i32_1 = arith.constant 0 : i32
    return %arg0, %c0_i32, %c0_i32_0 : i32, i32, i32
  }
  func.func @transform_1(%arg0: i32) -> (i32, i32, i32) {
    %c0_i32 = arith.constant 0 : i32
    %c0_i32_0 = arith.constant 0 : i32
    %c0_i32_1 = arith.constant 0 : i32
    %c0_i32_2 = arith.constant 0 : i32
    return %c0_i32, %c0_i32_0, %c0_i32_1 : i32, i32, i32
  }
  func.func @transform_2(%arg0: i32) -> (i32, i32, i32) {
    %c0_i32 = arith.constant 0 : i32
    %c0_i32_0 = arith.constant 0 : i32
    %c0_i32_1 = arith.constant 0 : i32
    %c0_i32_2 = arith.constant 0 : i32
    return %c0_i32, %c0_i32_0, %c0_i32_1 : i32, i32, i32
  }
  func.func @transform_3(%arg0: i32) -> (i32, i32, i32) {
    %c0_i32 = arith.constant 0 : i32
    %c0_i32_0 = arith.constant 0 : i32
    %c0_i32_1 = arith.constant 0 : i32
    return %arg0, %c0_i32, %c0_i32_0 : i32, i32, i32
  }
}

</mosaic_0001>

<bundles_post_ra>
// kernel: conv_block.1
= control target key start
LH: loop header
LB: loop body
LE: loop exit
PB: predicated region body
PF: predicated region fallthrough
CT: control target
= control target key end

     0   :  { %s10172_s12 = smov 0   ;;  %s16608_s0 = inlined_call_operand.vmem [shape: f32[2,640,128], index: 0, kind: input, shape index: {}]   ;;  %s16609_s1 = inlined_call_operand.vmem [shape: bf16[3,384,128], index: 1, kind: input, shape index: {}]   ;;  %s16610_s2 = inlined_call_operand.vmem [shape: bf16[3,384,128], index: 2, kind: input, shape index: {}]   ;;  %s16611_s3 = inlined_call_operand.vmem [shape: f32[2,512,128], index: 3, kind: output, shape index: {}]  }
   0x1 LB: > { %s8914_s13 = sadd.s32 4294967295, %s10148_s12   ;;  %p8918_p0 = scmp.ge.s32.totalorder %s10148_s12, 1  ;;  %s10148_s12 = sphi %s10172_s12, %s13_s12  }
   0x2   : > { %p137_p1 = scmp.lt.s32.totalorder %s10148_s12, 3 }
   0x4   : > { %p138_p2 = pnand %p8918_p0, %p137_p1 }
   0x6   : > { %141 = sbr.rel (%p138_p2) target bundleno = 2052 (0x804), region = 32 }
   0xd   : > { %v9992_v0 = vld [vmem:[%s16609_s1 + $0xc0] sm:$0xff]   ;;  %v16612_v1 = vmov 0   ;;  %p161_p3 = scmp.lt.s32.totalorder %s8914_s13, 1  ;;  %v9994_v3 = vld [vmem:[%s16609_s1 + $0xc8] sm:$0xff]   ;;  %v9997_v5 = vld [vmem:[%s16609_s1 + $0x150] sm:$0xff]  }
   0xe   : > { %1988 = vmatprep.subr.bf16.mxu0 %v16612_v1  ;;  %v9993_v2 = vld [vmem:[%s16609_s1 + $0x140] sm:$0xff]   ;;  %v9995_v4 = vld [vmem:[%s16609_s1 + $0x148] sm:$0xff]   ;;  %v9996_v6 = vld [vmem:[%s16609_s1 + $0xd0] sm:$0xff]  }
   0xf   : > { %1989 = vmatpush1.bf16.msra.mxu0 %v9992_v0  ;;  %9501 = vmatprep.subr.bf16.mxu1 %v9993_v2  ;;  %s18275_s13 = smov (!%p161_p3, %s8914_s13), 1  ;;  %v9999_v7 = vld [vmem:[%s16609_s1 + $0x158] sm:$0xff]   ;;  %v10001_v9 = vld [vmem:[%s16609_s1 + $0x160] sm:$0xff]   ;;  %v10003_v13 = vld [vmem:[%s16609_s1 + $0x168] sm:$0xff]  }
  0x10   : > { %1990 = vmatprep.subr.bf16.mxu0 %v16612_v1  ;;  %9502 = vmatpush3.bf16.msra.mxu1 %v9993_v2  ;;  %s9981_s28 = smul.u32 640, %s18275_s13  ;;  %v9998_v8 = vld [vmem:[%s16609_s1 + $0xd8] sm:$0xff]   ;;  %v10000_v10 = vld [vmem:[%s16609_s1 + $0xe0] sm:$0xff]   ;;  %v10002_v15 = vld [vmem:[%s16609_s1 + $0xe8] sm:$0xff]   ;;  %s9260_s17 = sshll.u32 %s18275_s13, 9 }
  0x11   : > { %9503 = vmatprep.subr.bf16.mxu1 %v9995_v4  ;;  %v10005_v16 = vld [vmem:[%s16609_s1 + $0x170] sm:$0xff]   ;;  %v10007_v18 = vld [vmem:[%s16609_s1 + $0x178] sm:$0xff]   ;;  %v10008_v24 = vld [vmem:[%s16609_s1 + $0x100] sm:$0xff]   ;;  %s16389_s19 = scalar_lea.vmem %s16611_s3, %s9260_s17 }
  0x12   : > { %s10217_s8 = scalar_lea.vmem %s16608_s0, %s9981_s28  ;;  %v10004_v17 = vld [vmem:[%s16609_s1 + $0xf0] sm:$0xff]   ;;  %v10006_v19 = vld [vmem:[%s16609_s1 + $0xf8] sm:$0xff]   ;;  %v10009_v26 = vld [vmem:[%s16609_s1] sm:$0xff]  }
  0x13   : > { %1991 = vmatpush1.bf16.msra.mxu0 %v9994_v3  ;;  %v1505_v11 = vld [vmem:[%s10217_s8 + $0x41] sm:$0xff]  ;;  %v1506_v12 = vld [vmem:[%s10217_s8 + $0x49] sm:$0xff]  ;;  %v1507_v20 = vld [vmem:[%s10217_s8 + $0x51] sm:$0xff] }
  0x14   : > { %1992 = vmatprep.subr.bf16.mxu0 %v16612_v1  ;;  %9504 = vmatpush3.bf16.msra.mxu1 %v9995_v4  ;;  %v10228_v14 = vpack.c.bf16 %v1506_v12, %v1505_v11  ;;  %v1508_v21 = vld [vmem:[%s10217_s8 + $0x59] sm:$0xff]  ;;  %v1509_v22 = vld [vmem:[%s10217_s8 + $0x61] sm:$0xff]  ;;  %v1510_v23 = vld [vmem:[%s10217_s8 + $0x69] sm:$0xff] }
  0x15   : > { %9505 = vmatprep.subr.bf16.mxu1 %v9997_v5  ;;  %v10257_v25 = vpack.c.bf16 %v1508_v21, %v1507_v20  ;;  %v10262_v27 = vpack.c.bf16 %v1510_v23, %v1509_v22  ;;  %v1361_v28 = vld [vmem:[%s10217_s8 + $0x40] sm:$0xff]  ;;  %v1362_v29 = vld [vmem:[%s10217_s8 + $0x48] sm:$0xff]  ;;  %v1511_v32 = vld [vmem:[%s10217_s8 + $0x71] sm:$0xff] }
  0x16   : > { %9517 = vmatprep.mubr.bf16.mxu1 %v10228_v14  ;;  %v10010_v30 = vld [vmem:[%s16609_s1 + $0x108] sm:$0xff]   ;;  %v10270_v31 = vpack.c.bf16 %v1362_v29, %v1361_v28  ;;  %v1512_v33 = vld [vmem:[%s10217_s8 + $0x79] sm:$0xff]  ;;  %v10011_v37 = vld [vmem:[%s16609_s1 + $0x110] sm:$0xff]  }
  0x17   : > { %1993 = vmatpush1.bf16.msra.mxu0 %v9996_v6  ;;  %v10012_v34 = vld [vmem:[%s16609_s1 + $0x8] sm:$0xff]   ;;  %v10288_v38 = vpack.c.bf16 %v1512_v33, %v1511_v32  ;;  %v10015_v40 = vld [vmem:[%s16609_s1 + $0x10] sm:$0xff]   ;;  %v10013_v41 = vld [vmem:[%s16609_s1 + $0x118] sm:$0xff]  }
  0x18   : > { %1994 = vmatprep.subr.bf16.mxu0 %v16612_v1  ;;  %9506 = vmatpush3.bf16.msra.mxu1 %v9997_v5  ;;  %v1513_v35 = vld [vmem:[%s10217_s8 + $0x81] sm:$0xff]  ;;  %v1514_v36 = vld [vmem:[%s10217_s8 + $0x89] sm:$0xff]  ;;  %v1515_v42 = vld [vmem:[%s10217_s8 + $0x91] sm:$0xff] }
  0x19   : > { %9507 = vmatprep.subr.bf16.mxu1 %v9999_v7  ;;  %2020 = vmatprep.mubr.bf16.mxu0 %v10270_v31  ;;  %v10290_v39 = vpack.c.bf16 %v1514_v36, %v1513_v35  ;;  %v1516_v43 = vld [vmem:[%s10217_s8 + $0x99] sm:$0xff]  ;;  %v1517_v45 = vld [vmem:[%s10217_s8 + $0xa1] sm:$0xff]  ;;  %v1518_v46 = vld [vmem:[%s10217_s8 + $0xa9] sm:$0xff] }
  0x1a   : > { %v10018_v44 = vld [vmem:[%s16609_s1 + $0x18] sm:$0xff]   ;;  %v10014_v47 = vld [vmem:[%s16609_s1 + $0x120] sm:$0xff]   ;;  %v10314_v48 = vpack.c.bf16 %v1516_v43, %v1515_v42  ;;  %v10316_v49 = vpack.c.bf16 %v1518_v46, %v1517_v45  ;;  %v10016_v51 = vld [vmem:[%s16609_s1 + $0x128] sm:$0xff]  }
  0x1b   : > { %1995 = vmatpush1.bf16.msra.mxu0 %v9998_v8  ;;  %v10020_v50 = vld [vmem:[%s16609_s1 + $0x20] sm:$0xff]   ;;  %v1519_v52 = vld [vmem:[%s10217_s8 + $0xb1] sm:$0xff]  ;;  %v10021_v54 = vld [vmem:[%s16609_s1 + $0x28] sm:$0xff]  }
  0x1c   : > { %1996 = vmatprep.subr.bf16.mxu0 %v16612_v1  ;;  %9508 = vmatpush3.bf16.msra.mxu1 %v9999_v7  ;;  %v1520_v53 = vld [vmem:[%s10217_s8 + $0xb9] sm:$0xff]  ;;  %v1521_v55 = vld [vmem:[%s10217_s8 + $0xc1] sm:$0xff]  ;;  %v1522_v56 = vld [vmem:[%s10217_s8 + $0xc9] sm:$0xff] }
  0x1d   : > { %9509 = vmatprep.subr.bf16.mxu1 %v10001_v9  ;;  %v10017_v57 = vld [vmem:[%s16609_s1 + $0x130] sm:$0xff]   ;;  %v10340_v58 = vpack.c.bf16 %v1520_v53, %v1519_v52  ;;  %v10342_v59 = vpack.c.bf16 %v1522_v56, %v1521_v55  ;;  %v10019_v61 = vld [vmem:[%s16609_s1 + $0x138] sm:$0xff]   ;;  %v1218_v63 = vld [vmem:[%s10217_s8 + $0x47] sm:$0xff] }
  0x1e   : > { %v10022_v60 = vld [vmem:[%s16609_s1 + $0x30] sm:$0xff]   ;;  %v1217_v62 = vld [vmem:[%s10217_s8 + $0x3f] sm:$0xff]  ;;  %v10025_v21 = vld [vmem:[%s16609_s1 + $0x48] sm:$0xff]  }
  0x1f   : > { %1997 = vmatpush1.bf16.msra.mxu0 %v10000_v10  ;;  %v1363_v0 = vld [vmem:[%s10217_s8 + $0x50] sm:$0xff]  ;;  %v1364_v2 = vld [vmem:[%s10217_s8 + $0x58] sm:$0xff]  ;;  %v10363_v6 = vpack.c.bf16 %v1218_v63, %v1217_v62  ;;  %v1525_v7 = vld [vmem:[%s10217_s8 + $0xe1] sm:$0xff] }
  0x20   : > { %1998 = vmatprep.subr.bf16.mxu0 %v16612_v1  ;;  %9510 = vmatpush3.bf16.msra.mxu1 %v10001_v9  ;;  %v1523_v3 = vld [vmem:[%s10217_s8 + $0xd1] sm:$0xff]  ;;  %v1524_v4 = vld [vmem:[%s10217_s8 + $0xd9] sm:$0xff]  ;;  %v1526_v8 = vld [vmem:[%s10217_s8 + $0xe9] sm:$0xff]  ;;  %v10368_v9 = vpack.c.bf16 %v1364_v2, %v1363_v0 }
  0x21   : > { %9511 = vmatprep.subr.bf16.mxu1 %v10003_v13  ;;  %v10023_v5 = vld [vmem:[%s16609_s1 + $0x38] sm:$0xff]   ;;  %v10370_v10 = vpack.c.bf16 %v1524_v4, %v1523_v3  ;;  %v10372_v11 = vpack.c.bf16 %v1526_v8, %v1525_v7  ;;  %v10024_v12 = vld [vmem:[%s16609_s1 + $0x40] sm:$0xff]   ;;  %v1530_v23 = vld [vmem:[%s10217_s8 + $0x109] sm:$0xff] }
  0x22   : > { %v1529_v20 = vld [vmem:[%s10217_s8 + $0x101] sm:$0xff]  ;;  %v10026_v29 = vld [vmem:[%s16609_s1 + $0x50] sm:$0xff]   ;;  %v1368_v36 = vld [vmem:[%s10217_s8 + $0x78] sm:$0xff] }
  0x23   : > { %1999 = vmatpush1.bf16.msra.mxu0 %v10002_v15  ;;  %16995 = vst [vmem:[#allocation4_spill] sm:$0xff] %v10372_v11  ;;  %v1220_v15 = vld [vmem:[%s10217_s8 + $0x57] sm:$0xff]  ;;  %v10400_v28 = vpack.c.bf16 %v1530_v23, %v1529_v20  ;;  %v1222_v32 = vld [vmem:[%s10217_s8 + $0x67] sm:$0xff]  ;;  %v1225_v4 = vld [vmem:[%s10217_s8 + $0x7f] sm:$0xff] }
  0x24   : > { %2000 = vmatprep.subr.bf16.mxu0 %v16612_v1  ;;  %9512 = vmatpush3.bf16.msra.mxu1 %v10003_v13  ;;  %v1219_v13 = vld [vmem:[%s10217_s8 + $0x4f] sm:$0xff]  ;;  %v1369_v52 = vld [vmem:[%s10217_s8 + $0x80] sm:$0xff]  ;;  %v1372_v8 = vld [vmem:[%s10217_s8 + $0x98] sm:$0xff] }
  0x25   : > { %9513 = vmatprep.subr.bf16.mxu1 %v10005_v16  ;;  %v10392_v22 = vpack.c.bf16 %v1220_v15, %v1219_v13  ;;  %16998 = vst [vmem:[#allocation7_spill] sm:$0xff] %v10400_v28  ;;  %v1531_v33 = vld [vmem:[%s10217_s8 + $0x111] sm:$0xff]  ;;  %v1534_v42 = vld [vmem:[%s10217_s8 + $0x129] sm:$0xff]  ;;  %v1536_v55 = vld [vmem:[%s10217_s8 + $0x139] sm:$0xff] }
  0x26   : > { %v1367_v35 = vld [vmem:[%s10217_s8 + $0x70] sm:$0xff]  ;;  %v1370_v53 = vld [vmem:[%s10217_s8 + $0x88] sm:$0xff]  ;;  %v1540_v13 = vld [vmem:[%s10217_s8 + $0x159] sm:$0xff] }
  0x27   : > { %2001 = vmatpush1.bf16.msra.mxu0 %v10004_v17  ;;  %v1365_v17 = vld [vmem:[%s10217_s8 + $0x60] sm:$0xff]  ;;  %v10424_v43 = vpack.c.bf16 %v1368_v36, %v1367_v35  ;;  %v10029_v56 = vld [vmem:[%s16609_s1 + $0x68] sm:$0xff]   ;;  %v10455_v62 = vpack.c.bf16 %v1370_v53, %v1369_v52  ;;  %v10030_v2 = vld [vmem:[%s16609_s1 + $0x70] sm:$0xff]  }
  0x28   : > { %2002 = vmatprep.subr.bf16.mxu0 %v16612_v1  ;;  %9514 = vmatpush3.bf16.msra.mxu1 %v10005_v16  ;;  %v1527_v16 = vld [vmem:[%s10217_s8 + $0xf1] sm:$0xff]  ;;  %v10035_v3 = vld [vmem:[%s16609_s1 + $0x88] sm:$0xff]   ;;  %v1544_v35 = vld [vmem:[%s10217_s8 + $0x179] sm:$0xff] }
  0x29   : > { %9515 = vmatprep.subr.bf16.mxu1 %v10007_v18  ;;  %17000 = vst [vmem:[#allocation9_spill] sm:$0xff] %v10424_v43  ;;  %17004 = vst [vmem:[#allocation13_spill] sm:$0xff] %v10455_v62  ;;  %v1371_v7 = vld [vmem:[%s10217_s8 + $0x90] sm:$0xff]  ;;  %v10031_v15 = vld [vmem:[%s16609_s1 + $0x78] sm:$0xff]  }
  0x2a   : > { %v10038_v23 = vld [vmem:[%s16609_s1 + $0x90] sm:$0xff]   ;;  %v1545_v36 = vld [vmem:[%s10217_s8 + $0x181] sm:$0xff]  ;;  %v1548_v53 = vld [vmem:[%s10217_s8 + $0x199] sm:$0xff] }
  0x2b   : > { %2003 = vmatpush1.bf16.msra.mxu0 %v10006_v19  ;;  %v1528_v19 = vld [vmem:[%s10217_s8 + $0xf9] sm:$0xff]  ;;  %v1547_v52 = vld [vmem:[%s10217_s8 + $0x191] sm:$0xff] }
  0x2c   : > { %2004 = vmatprep.subr.bf16.mxu0 %v16612_v1  ;;  %9516 = vmatpush3.bf16.msra.mxu1 %v10007_v18  ;;  %v1366_v18 = vld [vmem:[%s10217_s8 + $0x68] sm:$0xff] }
  0x2d   : > { %2710 = vmatprep.subr.bf16.mxu1 %v16612_v1 }
  0x2f   : > { %2005 = vmatpush1.bf16.msra.mxu0 %v10008_v24  ;;  %9518 = vmatmul.mubr.bf16.vlgmr.msra.gmra.mrb[0].mxu1 %v10257_v25  ;;  %v10396_v24 = vpack.c.bf16 %v1366_v18, %v1365_v17  ;;  %v1541_v17 = vld [vmem:[%s10217_s8 + $0x161] sm:$0xff]  ;;  %v1542_v18 = vld [vmem:[%s10217_s8 + $0x169] sm:$0xff] }
  0x30   : > { %2006 = vmatprep.subr.bf16.mxu0 %v16612_v1  ;;  %2711 = vmatpush1.bf16.msra.mxu1 %v10009_v26  ;;  %v10398_v26 = vpack.c.bf16 %v1528_v19, %v1527_v16  ;;  %v10486_v19 = vpack.c.bf16 %v1372_v8, %v1371_v7  ;;  %v1377_v8 = vld [vmem:[%s10217_s8 + $0xc0] sm:$0xff] }
  0x31   : > { %9521 = vmatprep.mubr.bf16.mxu1 %v10262_v27  ;;  %2712 = vmatprep.subr.bf16.mxu1 %v16612_v1  ;;  %16996 = vst [vmem:[#allocation5_spill] sm:$0xff] %v10396_v24 }
  0x32   : > { %16997 = vst [vmem:[#allocation6_spill] sm:$0xff] %v10398_v26  ;;  %17008 = vst [vmem:[#allocation17_spill] sm:$0xff] %v10486_v19 }
  0x33   : > { %2007 = vmatpush1.bf16.msra.mxu0 %v10010_v30  ;;  %v1221_v30 = vld [vmem:[%s10217_s8 + $0x5f] sm:$0xff] }
  0x34   : > { %2008 = vmatprep.subr.bf16.mxu0 %v16612_v1  ;;  %2713 = vmatpush1.bf16.msra.mxu1 %v10012_v34  ;;  %v1532_v34 = vld [vmem:[%s10217_s8 + $0x119] sm:$0xff] }
  0x35   : > { %2714 = vmatprep.subr.bf16.mxu1 %v16612_v1  ;;  %v10429_v45 = vpack.c.bf16 %v1532_v34, %v1531_v33  ;;  %v1374_v33 = vld [vmem:[%s10217_s8 + $0xa8] sm:$0xff]  ;;  %v1543_v34 = vld [vmem:[%s10217_s8 + $0x171] sm:$0xff] }
  0x37   : > { %2009 = vmatpush1.bf16.msra.mxu0 %v10011_v37  ;;  %9522 = vmatmul.mubr.bf16.gmra.mrb[4].mxu1 %v10288_v38  ;;  %v1533_v37 = vld [vmem:[%s10217_s8 + $0x121] sm:$0xff]  ;;  %17001 = vst [vmem:[#allocation10_spill] sm:$0xff] %v10429_v45 }
  0x38   : > { %2010 = vmatprep.subr.bf16.mxu0 %v16612_v1  ;;  %9525 = vmatprep.mubr.bf16.mxu1 %v10290_v39  ;;  %v10431_v46 = vpack.c.bf16 %v1534_v42, %v1533_v37 }
  0x39   : > { %2715 = vmatpush1.bf16.msra.mxu1 %v10015_v40  ;;  %v10027_v40 = vld [vmem:[%s16609_s1 + $0x58] sm:$0xff]  }
  0x3a   : > { %2716 = vmatprep.subr.bf16.mxu1 %v16612_v1  ;;  %17002 = vst [vmem:[#allocation11_spill] sm:$0xff] %v10431_v46 }
  0x3b   : > { %2011 = vmatpush1.bf16.msra.mxu0 %v10013_v41  ;;  %v10420_v41 = vpack.c.bf16 %v1222_v32, %v1221_v30  ;;  %v1228_v30 = vld [vmem:[%s10217_s8 + $0x97] sm:$0xff]  ;;  %v1373_v32 = vld [vmem:[%s10217_s8 + $0xa0] sm:$0xff] }
  0x3c   : > { %2012 = vmatprep.subr.bf16.mxu0 %v16612_v1  ;;  %v10510_v42 = vpack.c.bf16 %v1374_v33, %v1373_v32  ;;  %v1233_v32 = vld [vmem:[%s10217_s8 + $0xbf] sm:$0xff]  ;;  %v1234_v33 = vld [vmem:[%s10217_s8 + $0xc7] sm:$0xff] }
  0x3d   : > { %2717 = vmatpush1.bf16.msra.mxu1 %v10018_v44  ;;  %16999 = vst [vmem:[#allocation8_spill] sm:$0xff] %v10420_v41  ;;  %v10032_v44 = vld [vmem:[%s16609_s1 + $0x80] sm:$0xff]  }
  0x3e   : > { %2718 = vmatprep.subr.bf16.mxu1 %v16612_v1  ;;  %17012 = vst [vmem:[#allocation21_spill] sm:$0xff] %v10510_v42 }
  0x3f   : > { %2013 = vmatpush1.bf16.msra.mxu0 %v10014_v47  ;;  %9526 = vmatmul.mubr.bf16.gmra.mrb[8].mxu1 %v10314_v48  ;;  %v10028_v47 = vld [vmem:[%s16609_s1 + $0x60] sm:$0xff]  }
  0x40   : > { %2014 = vmatprep.subr.bf16.mxu0 %v16612_v1  ;;  %9529 = vmatprep.mubr.bf16.mxu1 %v10316_v49 }
  0x41   : > { %2719 = vmatpush1.bf16.msra.mxu1 %v10020_v50  ;;  %v1223_v50 = vld [vmem:[%s10217_s8 + $0x6f] sm:$0xff] }
  0x42   : > { %2720 = vmatprep.subr.bf16.mxu1 %v16612_v1 }
  0x43   : > { %2015 = vmatpush1.bf16.msra.mxu0 %v10016_v51  ;;  %v1224_v51 = vld [vmem:[%s10217_s8 + $0x77] sm:$0xff] }
  0x44   : > { %2016 = vmatprep.subr.bf16.mxu0 %v16612_v1 }
  0x45   : > { %2721 = vmatpush1.bf16.msra.mxu1 %v10021_v54  ;;  %v1535_v54 = vld [vmem:[%s10217_s8 + $0x131] sm:$0xff] }
  0x46   : > { %2722 = vmatprep.subr.bf16.mxu1 %v16612_v1  ;;  %v10457_v63 = vpack.c.bf16 %v1536_v55, %v1535_v54  ;;  %v1375_v54 = vld [vmem:[%s10217_s8 + $0xb0] sm:$0xff]  ;;  %v1376_v55 = vld [vmem:[%s10217_s8 + $0xb8] sm:$0xff] }
  0x47   : > { %2017 = vmatpush1.bf16.msra.mxu0 %v10017_v57  ;;  %9530 = vmatmul.mubr.bf16.gmra.mrb[12].mxu1 %v10340_v58  ;;  %v10450_v57 = vpack.c.bf16 %v1224_v51, %v1223_v50  ;;  %v1230_v50 = vld [vmem:[%s10217_s8 + $0xa7] sm:$0xff] }
  0x48   : > { %2018 = vmatprep.subr.bf16.mxu0 %v16612_v1  ;;  %9533 = vmatprep.mubr.bf16.mxu1 %v10342_v59  ;;  %17005 = vst [vmem:[#allocation14_spill] sm:$0xff] %v10457_v63 }
  0x49   : > { %2723 = vmatpush1.bf16.msra.mxu1 %v10022_v60  ;;  %17003 = vst [vmem:[#allocation12_spill] sm:$0xff] %v10450_v57  ;;  %v1537_v60 = vld [vmem:[%s10217_s8 + $0x141] sm:$0xff] }
  0x4a   : > { %2724 = vmatprep.subr.bf16.mxu1 %v16612_v1 }
  0x4b   : > { %2019 = vmatpush1.bf16.msra.mxu0 %v10019_v61  ;;  %v1538_v61 = vld [vmem:[%s10217_s8 + $0x149] sm:$0xff] }
  0x4c   : > { %9581 = vmatprep.subr.bf16.mxu0 %v10032_v44  ;;  %v10459_v0 = vpack.c.bf16 %v1538_v61, %v1537_v60  ;;  %v1550_v60 = vld [vmem:[%s10217_s8 + $0x1a9] sm:$0xff] }
  0x4d   : > { %2725 = vmatpush1.bf16.msra.mxu1 %v10023_v5  ;;  %v1226_v5 = vld [vmem:[%s10217_s8 + $0x87] sm:$0xff] }
  0x4e   : > { %2021 = vmatmul.mubr.bf16.vlgmr.msra.gmra.mrb[0].mxu0 %v10363_v6  ;;  %2726 = vmatprep.subr.bf16.mxu1 %v16612_v1  ;;  %17006 = vst [vmem:[#allocation15_spill] sm:$0xff] %v10459_v0  ;;  %v10481_v16 = vpack.c.bf16 %v1226_v5, %v1225_v4  ;;  %v1231_v4 = vld [vmem:[%s10217_s8 + $0xaf] sm:$0xff]  ;;  %v1232_v5 = vld [vmem:[%s10217_s8 + $0xb7] sm:$0xff] }
  0x4f   : > { %2028 = vmatprep.mubr.bf16.mxu0 %v10368_v9  ;;  %9534 = vmatmul.mubr.bf16.gmra.mrb[16].mxu1 %v10370_v10 }
  0x50   : > { %9537 = vmatprep.mubr.bf16.mxu1 %v10372_v11  ;;  %9582 = vmatpush3.bf16.msra.mxu0 %v10032_v44  ;;  %17007 = vst [vmem:[#allocation16_spill] sm:$0xff] %v10481_v16  ;;  %v10512_v44 = vpack.c.bf16 %v1544_v35, %v1543_v34  ;;  %v1379_v35 = vld [vmem:[%s10217_s8 + $0xd0] sm:$0xff] }
  0x51   : > { %2727 = vmatpush1.bf16.msra.mxu1 %v10024_v12  ;;  %9583 = vmatprep.subr.bf16.mxu0 %v10035_v3  ;;  %v1539_v12 = vld [vmem:[%s10217_s8 + $0x151] sm:$0xff] }
  0x52   : > { %2728 = vmatprep.subr.bf16.mxu1 %v16612_v1  ;;  %v10488_v20 = vpack.c.bf16 %v1540_v13, %v1539_v12  ;;  %17013 = vst [vmem:[#allocation22_spill] sm:$0xff] %v10512_v44  ;;  %v1378_v12 = vld [vmem:[%s10217_s8 + $0xc8] sm:$0xff]  ;;  %v1551_v13 = vld [vmem:[%s10217_s8 + $0x1b1] sm:$0xff] }
  0x54   : > { %9584 = vmatpush3.bf16.msra.mxu0 %v10035_v3  ;;  %17009 = vst [vmem:[#allocation18_spill] sm:$0xff] %v10488_v20  ;;  %v10532_v3 = vpack.c.bf16 %v1548_v53, %v1547_v52  ;;  %v1558_v52 = vld [vmem:[%s10217_s8 + $0x1e9] sm:$0xff]  ;;  %v10568_v53 = vpack.c.bf16 %v1234_v33, %v1233_v32 }
  0x55   : > { %2729 = vmatpush1.bf16.msra.mxu1 %v10025_v21  ;;  %v10490_v21 = vpack.c.bf16 %v1542_v18, %v1541_v17  ;;  %9585 = vmatprep.subr.bf16.mxu0 %v10038_v23  ;;  %v1553_v17 = vld [vmem:[%s10217_s8 + $0x1c1] sm:$0xff]  ;;  %v1554_v18 = vld [vmem:[%s10217_s8 + $0x1c9] sm:$0xff] }
  0x56   : > { %2029 = vmatmul.mubr.bf16.gmra.mrb[4].mxu0 %v10392_v22  ;;  %2730 = vmatprep.subr.bf16.mxu1 %v16612_v1  ;;  %17017 = vst [vmem:[#allocation26_spill] sm:$0xff] %v10532_v3  ;;  %v10556_v34 = vpack.c.bf16 %v1554_v18, %v1553_v17  ;;  %17023 = vst [vmem:[#allocation32_spill] sm:$0xff] %v10568_v53  ;;  %v1561_v17 = vld [vmem:[%s10217_s8 + $0x201] sm:$0xff]  ;;  %v1562_v18 = vld [vmem:[%s10217_s8 + $0x209] sm:$0xff] }
  0x57   : > { %2036 = vmatprep.mubr.bf16.mxu0 %v10396_v24  ;;  %9538 = vmatmul.mubr.bf16.gmra.mrb[20].mxu1 %v10398_v26  ;;  %17010 = vst [vmem:[#allocation19_spill] sm:$0xff] %v10490_v21 }
  0x58   : > { %9541 = vmatprep.mubr.bf16.mxu1 %v10400_v28  ;;  %9586 = vmatpush3.bf16.msra.mxu0 %v10038_v23  ;;  %v10548_v23 = vpack.c.bf16 %v1232_v5, %v1231_v4  ;;  %17022 = vst [vmem:[#allocation31_spill] sm:$0xff] %v10556_v34  ;;  %v10041_v5 = vld [vmem:[%s16609_s1 + $0x98] sm:$0xff]  }
  0x59   : > { %2731 = vmatpush1.bf16.msra.mxu1 %v10026_v29  ;;  %v1227_v29 = vld [vmem:[%s10217_s8 + $0x8f] sm:$0xff]  ;;  %9587 = vmatprep.subr.bf16.mxu0 %v10041_v5 }
  0x5a   : > { %2732 = vmatprep.subr.bf16.mxu1 %v16612_v1  ;;  %v10507_v37 = vpack.c.bf16 %v1228_v30, %v1227_v29  ;;  %17019 = vst [vmem:[#allocation28_spill] sm:$0xff] %v10548_v23  ;;  %v10550_v29 = vpack.c.bf16 %v1378_v12, %v1377_v8  ;;  %v1381_v8 = vld [vmem:[%s10217_s8 + $0xe0] sm:$0xff]  ;;  %v1382_v12 = vld [vmem:[%s10217_s8 + $0xe8] sm:$0xff] }
  0x5b   : > { %v10593_v33 = vpack.c.bf16 %v1382_v12, %v1381_v8  ;;  %v1566_v8 = vld [vmem:[%s10217_s8 + $0x229] sm:$0xff] }
  0x5c   : > { %17011 = vst [vmem:[#allocation20_spill] sm:$0xff] %v10507_v37  ;;  %17020 = vst [vmem:[#allocation29_spill] sm:$0xff] %v10550_v29  ;;  %9588 = vmatpush3.bf16.msra.mxu0 %v10041_v5  ;;  %v1565_v5 = vld [vmem:[%s10217_s8 + $0x221] sm:$0xff] }
  0x5d   : > { %2733 = vmatpush1.bf16.msra.mxu1 %v10027_v40  ;;  %v1546_v40 = vld [vmem:[%s10217_s8 + $0x189] sm:$0xff]  ;;  %17028 = vst [vmem:[#allocation37_spill] sm:$0xff] %v10593_v33 }
  0x5e   : > { %2037 = vmatmul.mubr.bf16.gmra.mrb[8].mxu0 %v10420_v41  ;;  %2734 = vmatprep.subr.bf16.mxu1 %v16612_v1  ;;  %v10516_v51 = vpack.c.bf16 %v1546_v40, %v1545_v36  ;;  %v1380_v36 = vld [vmem:[%s10217_s8 + $0xd8] sm:$0xff] }
  0x5f   : > { %2044 = vmatprep.mubr.bf16.mxu0 %v10424_v43  ;;  %9542 = vmatmul.mubr.bf16.gmra.mrb[24].mxu1 %v10429_v45  ;;  %v1555_v40 = vld [vmem:[%s10217_s8 + $0x1d1] sm:$0xff] }
  0x60   : > { %9545 = vmatprep.mubr.bf16.mxu1 %v10431_v46  ;;  %17014 = vst [vmem:[#allocation23_spill] sm:$0xff] %v10516_v51 }
  0x61   : > { %2735 = vmatpush1.bf16.msra.mxu1 %v10028_v47  ;;  %v1229_v47 = vld [vmem:[%s10217_s8 + $0x9f] sm:$0xff] }
  0x62   : > { %2736 = vmatprep.subr.bf16.mxu1 %v16612_v1  ;;  %v10528_v61 = vpack.c.bf16 %v1230_v50, %v1229_v47  ;;  %v1556_v47 = vld [vmem:[%s10217_s8 + $0x1d9] sm:$0xff]  ;;  %v1557_v50 = vld [vmem:[%s10217_s8 + $0x1e1] sm:$0xff] }
  0x63   : > { %v10576_v4 = vpack.c.bf16 %v1558_v52, %v1557_v50  ;;  %v1383_v50 = vld [vmem:[%s10217_s8 + $0xf0] sm:$0xff]  ;;  %v1384_v52 = vld [vmem:[%s10217_s8 + $0xf8] sm:$0xff] }
  0x64   : > { %17015 = vst [vmem:[#allocation24_spill] sm:$0xff] %v10528_v61 }
  0x65   : > { %2737 = vmatpush1.bf16.msra.mxu1 %v10029_v56  ;;  %v1549_v56 = vld [vmem:[%s10217_s8 + $0x1a1] sm:$0xff]  ;;  %17026 = vst [vmem:[#allocation35_spill] sm:$0xff] %v10576_v4 }
  0x66   : > { %2045 = vmatmul.mubr.bf16.gmra.mrb[12].mxu0 %v10450_v57  ;;  %2738 = vmatprep.subr.bf16.mxu1 %v16612_v1  ;;  %v10536_v7 = vpack.c.bf16 %v1550_v60, %v1549_v56  ;;  %v1235_v56 = vld [vmem:[%s10217_s8 + $0xcf] sm:$0xff]  ;;  %v1236_v60 = vld [vmem:[%s10217_s8 + $0xd7] sm:$0xff] }
  0x67   : > { %2052 = vmatprep.mubr.bf16.mxu0 %v10455_v62  ;;  %9546 = vmatmul.mubr.bf16.gmra.mrb[28].mxu1 %v10457_v63  ;;  %v10591_v32 = vpack.c.bf16 %v1236_v60, %v1235_v56  ;;  %v1563_v56 = vld [vmem:[%s10217_s8 + $0x211] sm:$0xff]  ;;  %v1564_v60 = vld [vmem:[%s10217_s8 + $0x219] sm:$0xff] }
  0x68   : > { %9549 = vmatprep.mubr.bf16.mxu1 %v10459_v0  ;;  %17018 = vst [vmem:[#allocation27_spill] sm:$0xff] %v10536_v7 }
  0x69   : > { %2739 = vmatpush1.bf16.msra.mxu1 %v10030_v2  ;;  %v10530_v2 = vpack.c.bf16 %v1376_v55, %v1375_v54  ;;  %v10570_v54 = vpack.c.bf16 %v1380_v36, %v1379_v35  ;;  %v10572_v55 = vpack.c.bf16 %v1556_v47, %v1555_v40  ;;  %17027 = vst [vmem:[#allocation36_spill] sm:$0xff] %v10591_v32  ;;  %v1237_v36 = vld [vmem:[%s10217_s8 + $0xdf] sm:$0xff]  ;;  %v1238_v40 = vld [vmem:[%s10217_s8 + $0xe7] sm:$0xff] }
  0x6a   : > { %2740 = vmatprep.subr.bf16.mxu1 %v16612_v1  ;;  %v10599_v47 = vpack.c.bf16 %v1562_v18, %v1561_v17  ;;  %v10611_v12 = vpack.c.bf16 %v1238_v40, %v1237_v36  ;;  %v1239_v17 = vld [vmem:[%s10217_s8 + $0xef] sm:$0xff]  ;;  %v1240_v18 = vld [vmem:[%s10217_s8 + $0xf7] sm:$0xff] }
  0x6b   : > { %17016 = vst [vmem:[#allocation25_spill] sm:$0xff] %v10530_v2  ;;  %17024 = vst [vmem:[#allocation33_spill] sm:$0xff] %v10570_v54  ;;  %v1567_v36 = vld [vmem:[%s10217_s8 + $0x231] sm:$0xff]  ;;  %v1568_v40 = vld [vmem:[%s10217_s8 + $0x239] sm:$0xff] }
  0x6c   : > { %17025 = vst [vmem:[#allocation34_spill] sm:$0xff] %v10572_v55  ;;  %17030 = vst [vmem:[#allocation39_spill] sm:$0xff] %v10599_v47 }
  0x6d   : > { %2741 = vmatpush1.bf16.msra.mxu1 %v10031_v15  ;;  %v1552_v15 = vld [vmem:[%s10217_s8 + $0x1b9] sm:$0xff]  ;;  %17031 = vst [vmem:[#allocation40_spill] sm:$0xff] %v10611_v12 }
  0x6e   : > { %2053 = vmatmul.mubr.bf16.gmra.mrb[16].mxu0 %v10481_v16  ;;  %3577 = vmatprep.subr.bf16.mxu1 %v16612_v1  ;;  %v10552_v30 = vpack.c.bf16 %v1552_v15, %v1551_v13  ;;  %v1559_v13 = vld [vmem:[%s10217_s8 + $0x1f1] sm:$0xff]  ;;  %v1560_v15 = vld [vmem:[%s10217_s8 + $0x1f9] sm:$0xff]  ;;  %v10619_v1 = vpack.c.bf16 %v1566_v8, %v1565_v5  ;;  %v10635_v5 = vpack.c.bf16 %v1568_v40, %v1567_v36 }
  0x6f   : > { %2060 = vmatprep.mubr.bf16.mxu0 %v10486_v19  ;;  %9550 = vmatmul.mubr.bf16.gmra.mrb[32].mxu1 %v10488_v20  ;;  %v10595_v35 = vpack.c.bf16 %v1560_v15, %v1559_v13  ;;  %v10613_v13 = vpack.c.bf16 %v1384_v52, %v1383_v50  ;;  %v10615_v15 = vpack.c.bf16 %v1564_v60, %v1563_v56  ;;  %v1357_v50 = vld [vmem:[%s10217_s8 + $0x20] sm:$0xff]  ;;  %v1358_v52 = vld [vmem:[%s10217_s8 + $0x28] sm:$0xff] }
  0x70   : > { %9553 = vmatprep.mubr.bf16.mxu1 %v10490_v21  ;;  %17021 = vst [vmem:[#allocation30_spill] sm:$0xff] %v10552_v30  ;;  %17034 = vst [vmem:[#allocation43_spill] sm:$0xff] %v10619_v1  ;;  %v10631_v56 = vpack.c.bf16 %v1240_v18, %v1239_v17  ;;  %v1241_v8 = vld [vmem:[%s10217_s8 + $0xff] sm:$0xff]  ;;  %v1214_v17 = vld [vmem:[%s10217_s8 + $0x27] sm:$0xff] }
  0x71   : > { %17029 = vst [vmem:[#allocation38_spill] sm:$0xff] %v10595_v35  ;;  %17032 = vst [vmem:[#allocation41_spill] sm:$0xff] %v10613_v13  ;;  %v1268_v21 = vld [vmem:[%s10217_s8 + $0x1d7] sm:$0xff] }
  0x72   : > { %17033 = vst [vmem:[#allocation42_spill] sm:$0xff] %v10615_v15  ;;  %17035 = vst [vmem:[#allocation44_spill] sm:$0xff] %v10631_v56 }
  0x73   : > { %17037 = vst [vmem:[#allocation46_spill] sm:$0xff] %v10635_v5 }
  0x76   : > { %2061 = vmatmul.mubr.bf16.gmra.mrb[20].mxu0 %v10507_v37 }
  0x77   : > { %2068 = vmatprep.mubr.bf16.mxu0 %v10510_v42  ;;  %9554 = vmatmul.mubr.bf16.gmra.mrb[36].mxu1 %v10512_v44 }
  0x78   : > { %9557 = vmatprep.mubr.bf16.mxu1 %v10516_v51  ;;  %v1245_v51 = vld [vmem:[%s10217_s8 + $0x11f] sm:$0xff] }
  0x7e   : > { %2069 = vmatmul.mubr.bf16.gmra.mrb[24].mxu0 %v10528_v61 }
  0x7f   : > { %2076 = vmatprep.mubr.bf16.mxu0 %v10530_v2  ;;  %9558 = vmatmul.mubr.bf16.gmra.mrb[40].mxu1 %v10532_v3  ;;  %v1389_v3 = vld [vmem:[%s10217_s8 + $0x120] sm:$0xff] }
  0x80   : > { %9561 = vmatprep.mubr.bf16.mxu1 %v10536_v7 }
  0x86   : > { %2077 = vmatmul.mubr.bf16.gmra.mrb[28].mxu0 %v10548_v23 }
  0x87   : > { %2084 = vmatprep.mubr.bf16.mxu0 %v10550_v29  ;;  %9562 = vmatmul.mubr.bf16.gmra.mrb[44].mxu1 %v10552_v30  ;;  %v1213_v30 = vld [vmem:[%s10217_s8 + $0x1f] sm:$0xff] }
  0x88   : > { %9565 = vmatprep.mubr.bf16.mxu1 %v10556_v34  ;;  %v1388_v34 = vld [vmem:[%s10217_s8 + $0x118] sm:$0xff]  ;;  %v1285_v40 = vpack.c.bf16 %v1214_v17, %v1213_v30  ;;  %v1215_v30 = vld [vmem:[%s10217_s8 + $0x2f] sm:$0xff] }
  0x8e   : > { %2085 = vmatmul.mubr.bf16.gmra.mrb[32].mxu0 %v10568_v53 }
  0x8f   : > { %2092 = vmatprep.mubr.bf16.mxu0 %v10570_v54  ;;  %9566 = vmatmul.mubr.bf16.gmra.mrb[48].mxu1 %v10572_v55  ;;  %v1429_v55 = vpack.c.bf16 %v1358_v52, %v1357_v50  ;;  %v10033_v50 = vld [vmem:[%s16609_s1 + $0x180] sm:$0xff]   ;;  %v1243_v52 = vld [vmem:[%s10217_s8 + $0x10f] sm:$0xff] }
  0x90   : > { %9569 = vmatprep.mubr.bf16.mxu1 %v10576_v4  ;;  %v1386_v4 = vld [vmem:[%s10217_s8 + $0x108] sm:$0xff] }
  0x96   : > { %2093 = vmatmul.mubr.bf16.gmra.mrb[36].mxu0 %v10591_v32 }
  0x97   : > { %2100 = vmatprep.mubr.bf16.mxu0 %v10593_v33  ;;  %9570 = vmatmul.mubr.bf16.gmra.mrb[52].mxu1 %v10595_v35  ;;  %v1385_v35 = vld [vmem:[%s10217_s8 + $0x100] sm:$0xff] }
  0x98   : > { %9573 = vmatprep.mubr.bf16.mxu1 %v10599_v47  ;;  %v10633_v60 = vpack.c.bf16 %v1386_v4, %v1385_v35  ;;  %v1242_v47 = vld [vmem:[%s10217_s8 + $0x107] sm:$0xff]  ;;  %v1359_v4 = vld [vmem:[%s10217_s8 + $0x30] sm:$0xff]  ;;  %v1360_v35 = vld [vmem:[%s10217_s8 + $0x38] sm:$0xff] }
  0x99   : > { %v10648_v18 = vpack.c.bf16 %v1242_v47, %v1241_v8  ;;  %v1430_v7 = vpack.c.bf16 %v1360_v35, %v1359_v4  ;;  %v10034_v47 = vld [vmem:[%s16609_s1 + $0x188] sm:$0xff]   ;;  %v17041_v8 = vmov 0   ;;  %v10036_v35 = vld [vmem:[%s16609_s1 + $0x190] sm:$0xff]  }
  0x9a   : > { %17036 = vst [vmem:[#allocation45_spill] sm:$0xff] %v10633_v60 }
  0x9b   : > { %17038 = vst [vmem:[#allocation47_spill] sm:$0xff] %v10648_v18 }
  0x9e   : > { %2101 = vmatmul.mubr.bf16.gmra.mrb[40].mxu0 %v10611_v12 }
  0x9f   : > { %2108 = vmatprep.mubr.bf16.mxu0 %v10613_v13  ;;  %9574 = vmatmul.mubr.bf16.gmra.mrb[56].mxu1 %v10615_v15  ;;  %v1387_v15 = vld [vmem:[%s10217_s8 + $0x110] sm:$0xff] }
  0xa0   : > { %9577 = vmatprep.mubr.bf16.mxu1 %v10619_v1  ;;  %v10650_v36 = vpack.c.bf16 %v1388_v34, %v1387_v15  ;;  %v1244_v1 = vld [vmem:[%s10217_s8 + $0x117] sm:$0xff] }
  0xa1   : > { %v1216_v34 = vld [vmem:[%s10217_s8 + $0x37] sm:$0xff]  ;;  %v10669_v15 = vpack.c.bf16 %v1244_v1, %v1243_v52  ;;  %v10039_v52 = vld [vmem:[%s16609_s1 + $0x1a0] sm:$0xff]  }
  0xa2   : > { %17039 = vst [vmem:[#allocation48_spill] sm:$0xff] %v10650_v36  ;;  %v1286_v4 = vpack.c.bf16 %v1216_v34, %v1215_v30  ;;  %v10037_v1 = vld [vmem:[%s16609_s1 + $0x198] sm:$0xff]   ;;  %v10040_v34 = vld [vmem:[%s16609_s1 + $0x1a8] sm:$0xff]  }
  0xa3   : > { %17040 = vst [vmem:[#allocation49_spill] sm:$0xff] %v10669_v15  ;;  %v1248_v30 = vld [vmem:[%s10217_s8 + $0x137] sm:$0xff] }
  0xa6   : > { %2109 = vmatmul.mubr.bf16.gmra.mrb[44].mxu0 %v10631_v56 }
  0xa7   : > { %2116 = vmatprep.mubr.bf16.mxu0 %v10633_v60  ;;  %9578 = vmatmul.mubr.bf16.gmra.mrb[60].mxu1 %v10635_v5  ;;  %v10044_v5 = vld [vmem:[%s16609_s1 + $0xa0] sm:$0xff]  }
  0xa8   : > { %2742 = vmatprep.mubr.bf16.mxu1 %v1429_v55  ;;  %v1390_v55 = vld [vmem:[%s10217_s8 + $0x128] sm:$0xff]  ;;  %9589 = vmatprep.subr.bf16.mxu0 %v10044_v5 }
  0xa9   : > { %9590 = vmatpush3.bf16.msra.mxu0 %v10044_v5  ;;  %v10672_v17 = vpack.c.bf16 %v1390_v55, %v1389_v3  ;;  %v1391_v5 = vld [vmem:[%s10217_s8 + $0x130] sm:$0xff] }
  0xaa   : > { %v1247_v55 = vld [vmem:[%s10217_s8 + $0x12f] sm:$0xff] }
  0xab   : > { %17042 = vst [vmem:[#allocation50_spill] sm:$0xff] %v10672_v17 }
  0xae   : > { %2117 = vmatmul.mubr.bf16.gmra.mrb[48].mxu0 %v10648_v18 }
  0xaf   : > { %2124 = vmatprep.mubr.bf16.mxu0 %v10650_v36  ;;  %2743 = vmatmul.mubr.bf16.vlgmr.msra.gmra.mrb[64].mxu1 %v1285_v40  ;;  %v1246_v40 = vld [vmem:[%s10217_s8 + $0x127] sm:$0xff] }
  0xb0   : > { %3578 = vmatpush1.bf16.msra.mxu1 %v10033_v50  ;;  %2750 = vmatprep.mubr.bf16.mxu1 %v1430_v7  ;;  %v1392_v7 = vld [vmem:[%s10217_s8 + $0x138] sm:$0xff]  ;;  %v10688_v3 = vpack.c.bf16 %v1246_v40, %v1245_v51  ;;  %v1394_v51 = vld [vmem:[%s10217_s8 + $0x148] sm:$0xff] }
  0xb1   : > { %3579 = vmatprep.subr.bf16.mxu1 %v17041_v8  ;;  %v10691_v50 = vpack.c.bf16 %v1392_v7, %v1391_v5  ;;  %v1249_v40 = vld [vmem:[%s10217_s8 + $0x13f] sm:$0xff]  ;;  %v1250_v5 = vld [vmem:[%s10217_s8 + $0x147] sm:$0xff]  ;;  %v1395_v7 = vld [vmem:[%s10217_s8 + $0x150] sm:$0xff] }
  0xb2   : > { %17043 = vst [vmem:[#allocation51_spill] sm:$0xff] %v10688_v3 }
  0xb3   : > { %17044 = vst [vmem:[#allocation52_spill] sm:$0xff] %v10691_v50 }
  0xb4   : > { %3580 = vmatpush1.bf16.msra.mxu1 %v10034_v47  ;;  %v10047_v47 = vld [vmem:[%s16609_s1 + $0xa8] sm:$0xff]  }
  0xb5   : > { %3581 = vmatprep.subr.bf16.mxu1 %v17041_v8  ;;  %9591 = vmatprep.subr.bf16.mxu0 %v10047_v47 }
  0xb6   : > { %2125 = vmatmul.mubr.bf16.gmra.mrb[52].mxu0 %v10669_v15 }
  0xb7   : > { %2132 = vmatprep.mubr.bf16.mxu0 %v10672_v17  ;;  %2751 = vmatmul.mubr.bf16.gmra.mrb[68].mxu1 %v1286_v4  ;;  %v10711_v4 = vpack.c.bf16 %v1248_v30, %v1247_v55  ;;  %v10049_v55 = vld [vmem:[%s16609_s1 + $0xb8] sm:$0xff]   ;;  %v10737_v30 = vpack.c.bf16 %v1250_v5, %v1249_v40 }
  0xb8   : > { %2758 = vmatprep.mubr.bf16.mxu1 %v10270_v31  ;;  %3582 = vmatpush1.bf16.msra.mxu1 %v10036_v35  ;;  %v1393_v31 = vld [vmem:[%s10217_s8 + $0x140] sm:$0xff]  ;;  %v10048_v35 = vld [vmem:[%s16609_s1 + $0xb0] sm:$0xff]  }
  0xb9   : > { %3583 = vmatprep.subr.bf16.mxu1 %v17041_v8  ;;  %17045 = vst [vmem:[#allocation53_spill] sm:$0xff] %v10711_v4  ;;  %9592 = vmatpush3.bf16.msra.mxu0 %v10047_v47  ;;  %17047 = vst [vmem:[#allocation55_spill] sm:$0xff] %v10737_v30  ;;  %v1397_v47 = vld [vmem:[%s10217_s8 + $0x160] sm:$0xff] }
  0xba   : > { %9593 = vmatprep.subr.bf16.mxu0 %v10048_v35 }
  0xbc   : > { %3584 = vmatpush1.bf16.msra.mxu1 %v10037_v1  ;;  %v1396_v1 = vld [vmem:[%s10217_s8 + $0x158] sm:$0xff] }
  0xbd   : > { %3585 = vmatprep.subr.bf16.mxu1 %v17041_v8  ;;  %9594 = vmatpush3.bf16.msra.mxu0 %v10048_v35  ;;  %v10046_v35 = vld [vmem:[%s16609_s1 + $0x1c8] sm:$0xff]  }
  0xbe   : > { %2133 = vmatmul.mubr.bf16.gmra.mrb[56].mxu0 %v10688_v3  ;;  %9595 = vmatprep.subr.bf16.mxu0 %v10049_v55 }
  0xbf   : > { %2140 = vmatprep.mubr.bf16.mxu0 %v10691_v50  ;;  %2759 = vmatmul.mubr.bf16.gmra.mrb[72].mxu1 %v10363_v6  ;;  %v10714_v6 = vpack.c.bf16 %v1394_v51, %v1393_v31  ;;  %v10045_v31 = vld [vmem:[%s16609_s1 + $0x1c0] sm:$0xff]   ;;  %v1251_v51 = vld [vmem:[%s10217_s8 + $0x14f] sm:$0xff] }
  0xc0   : > { %2766 = vmatprep.mubr.bf16.mxu1 %v10368_v9  ;;  %3586 = vmatpush1.bf16.msra.mxu1 %v10039_v52  ;;  %v10042_v9 = vld [vmem:[%s16609_s1 + $0x1b0] sm:$0xff]   ;;  %v10043_v52 = vld [vmem:[%s16609_s1 + $0x1b8] sm:$0xff]  }
  0xc1   : > { %3587 = vmatprep.subr.bf16.mxu1 %v17041_v8  ;;  %17046 = vst [vmem:[#allocation54_spill] sm:$0xff] %v10714_v6  ;;  %9596 = vmatpush3.bf16.msra.mxu0 %v10049_v55  ;;  %v1399_v55 = vld [vmem:[%s10217_s8 + $0x170] sm:$0xff] }
  0xc4   : > { %3588 = vmatpush1.bf16.msra.mxu1 %v10040_v34  ;;  %v1252_v34 = vld [vmem:[%s10217_s8 + $0x157] sm:$0xff] }
  0xc5   : > { %3589 = vmatprep.subr.bf16.mxu1 %v17041_v8  ;;  %v10757_v40 = vpack.c.bf16 %v1252_v34, %v1251_v51 }
  0xc6   : > { %2141 = vmatmul.mubr.bf16.gmra.mrb[60].mxu0 %v10711_v4 }
  0xc7   : > { %2148 = vmatprep.mubr.bf16.mxu0 %v10714_v6  ;;  %2767 = vmatmul.mubr.bf16.gmra.mrb[76].mxu1 %v10392_v22  ;;  %v10740_v22 = vpack.c.bf16 %v1396_v1, %v1395_v7  ;;  %17049 = vst [vmem:[#allocation57_spill] sm:$0xff] %v10757_v40  ;;  %v10050_v7 = vld [vmem:[%s16609_s1 + $0x1d0] sm:$0xff]   ;;  %v1253_v1 = vld [vmem:[%s10217_s8 + $0x15f] sm:$0xff] }
  0xc8   : > { %2774 = vmatprep.mubr.bf16.mxu1 %v10396_v24  ;;  %3590 = vmatpush1.bf16.msra.mxu1 %v10042_v9  ;;  %v1398_v9 = vld [vmem:[%s10217_s8 + $0x168] sm:$0xff] }
  0xc9   : > { %3591 = vmatprep.subr.bf16.mxu1 %v17041_v8  ;;  %17048 = vst [vmem:[#allocation56_spill] sm:$0xff] %v10740_v22  ;;  %v10760_v5 = vpack.c.bf16 %v1398_v9, %v1397_v47  ;;  %v1255_v47 = vld [vmem:[%s10217_s8 + $0x16f] sm:$0xff]  ;;  %v1256_v9 = vld [vmem:[%s10217_s8 + $0x177] sm:$0xff] }
  0xcb   : > { %17050 = vst [vmem:[#allocation58_spill] sm:$0xff] %v10760_v5 }
  0xcc   : > { %3592 = vmatpush1.bf16.msra.mxu1 %v10043_v52  ;;  %v1254_v52 = vld [vmem:[%s10217_s8 + $0x167] sm:$0xff] }
  0xcd   : > { %3593 = vmatprep.subr.bf16.mxu1 %v17041_v8  ;;  %v10774_v51 = vpack.c.bf16 %v1254_v52, %v1253_v1  ;;  %v10051_v1 = vld [vmem:[%s16609_s1 + $0x1d8] sm:$0xff]   ;;  %v10790_v52 = vpack.c.bf16 %v1256_v9, %v1255_v47 }
  0xce   : > { %2149 = vmatmul.mubr.bf16.gmra.mrb[64].mxu0 %v10737_v30  ;;  %v1404_v47 = vld [vmem:[%s10217_s8 + $0x198] sm:$0xff] }
  0xcf   : > { %2156 = vmatprep.mubr.bf16.mxu0 %v10740_v22  ;;  %2775 = vmatmul.mubr.bf16.gmra.mrb[80].mxu1 %v10420_v41  ;;  %17051 = vst [vmem:[#allocation59_spill] sm:$0xff] %v10774_v51  ;;  %17053 = vst [vmem:[#allocation61_spill] sm:$0xff] %v10790_v52 }
  0xd0   : > { %2782 = vmatprep.mubr.bf16.mxu1 %v10424_v43  ;;  %3594 = vmatpush1.bf16.msra.mxu1 %v10045_v31  ;;  %v1400_v31 = vld [vmem:[%s10217_s8 + $0x178] sm:$0xff] }
  0xd1   : > { %3595 = vmatprep.subr.bf16.mxu1 %v17041_v8  ;;  %v10777_v34 = vpack.c.bf16 %v1400_v31, %v1399_v55  ;;  %v1257_v31 = vld [vmem:[%s10217_s8 + $0x17f] sm:$0xff] }
  0xd3   : > { %17052 = vst [vmem:[#allocation60_spill] sm:$0xff] %v10777_v34 }
  0xd4   : > { %3596 = vmatpush1.bf16.msra.mxu1 %v10046_v35  ;;  %v1401_v35 = vld [vmem:[%s10217_s8 + $0x180] sm:$0xff] }
  0xd5   : > { %3597 = vmatprep.subr.bf16.mxu1 %v17041_v8 }
  0xd6   : > { %2157 = vmatmul.mubr.bf16.gmra.mrb[68].mxu0 %v10757_v40 }
  0xd7   : > { %2164 = vmatprep.mubr.bf16.mxu0 %v10760_v5  ;;  %2783 = vmatmul.mubr.bf16.gmra.mrb[84].mxu1 %v10450_v57 }
  0xd8   : > { %2790 = vmatprep.mubr.bf16.mxu1 %v10455_v62  ;;  %3598 = vmatpush1.bf16.msra.mxu1 %v10050_v7  ;;  %v1402_v7 = vld [vmem:[%s10217_s8 + $0x188] sm:$0xff] }
  0xd9   : > { %3599 = vmatprep.subr.bf16.mxu1 %v17041_v8  ;;  %v10792_v55 = vpack.c.bf16 %v1402_v7, %v1401_v35  ;;  %v1259_v7 = vld [vmem:[%s10217_s8 + $0x18f] sm:$0xff] }
  0xda   : > { %v1406_v62 = vld [vmem:[%s10217_s8 + $0x1a8] sm:$0xff] }
  0xdb   : > { %17054 = vst [vmem:[#allocation62_spill] sm:$0xff] %v10792_v55 }
  0xdc   : > { %3600 = vmatpush1.bf16.msra.mxu1 %v10051_v1  ;;  %v1260_v1 = vld [vmem:[%s10217_s8 + $0x197] sm:$0xff] }
  0xdd   : > { %3601 = vmatprep.subr.bf16.mxu1 %v17041_v8 }
  0xde   : > { %2165 = vmatmul.mubr.bf16.gmra.mrb[72].mxu0 %v10774_v51 }
  0xdf   : > { %2172 = vmatprep.mubr.bf16.mxu0 %v10777_v34  ;;  %2791 = vmatmul.mubr.bf16.gmra.mrb[88].mxu1 %v10481_v16  ;;  %v1258_v16 = vld [vmem:[%s10217_s8 + $0x187] sm:$0xff] }
  0xe0   : > { %2798 = vmatprep.mubr.bf16.mxu1 %v10486_v19  ;;  %v1403_v19 = vld [vmem:[%s10217_s8 + $0x190] sm:$0xff]  ;;  %v10803_v9 = vpack.c.bf16 %v1258_v16, %v1257_v31  ;;  %v10052_v16 = vld [vmem:[%s16609_s1 + $0x1e0] sm:$0xff]  }
  0xe1   : > { %v10805_v35 = vpack.c.bf16 %v1404_v47, %v1403_v19  ;;  %v10818_v19 = vpack.c.bf16 %v1260_v1, %v1259_v7  ;;  %3602 = vmatpush1.bf16.msra.mxu1 %v10052_v16  ;;  %v1261_v47 = vld [vmem:[%s10217_s8 + $0x19f] sm:$0xff]  ;;  %v1264_v16 = vld [vmem:[%s10217_s8 + $0x1b7] sm:$0xff] }
  0xe2   : > { %17055 = vst [vmem:[#allocation63_spill] sm:$0xff] %v10803_v9  ;;  %3603 = vmatprep.subr.bf16.mxu1 %v17041_v8  ;;  %v1408_v7 = vld [vmem:[%s10217_s8 + $0x1b8] sm:$0xff] }
  0xe3   : > { %17056 = vst [vmem:[#allocation64_spill] sm:$0xff] %v10805_v35  ;;  %17057 = vst [vmem:[#allocation65_spill] sm:$0xff] %v10818_v19 }
  0xe6   : > { %2173 = vmatmul.mubr.bf16.gmra.mrb[76].mxu0 %v10790_v52 }
  0xe7   : > { %2180 = vmatprep.mubr.bf16.mxu0 %v10792_v55  ;;  %2799 = vmatmul.mubr.bf16.gmra.mrb[92].mxu1 %v10507_v37  ;;  %v1405_v37 = vld [vmem:[%s10217_s8 + $0x1a0] sm:$0xff] }
  0xe8   : > { %2806 = vmatprep.mubr.bf16.mxu1 %v10510_v42  ;;  %v10820_v31 = vpack.c.bf16 %v1406_v62, %v1405_v37  ;;  %v1263_v37 = vld [vmem:[%s10217_s8 + $0x1af] sm:$0xff]  ;;  %v1409_v42 = vld [vmem:[%s10217_s8 + $0x1c0] sm:$0xff] }
  0xea   : > { %17058 = vst [vmem:[#allocation66_spill] sm:$0xff] %v10820_v31 }
  0xee   : > { %2181 = vmatmul.mubr.bf16.gmra.mrb[80].mxu0 %v10803_v9 }
  0xef   : > { %2188 = vmatprep.mubr.bf16.mxu0 %v10805_v35  ;;  %2807 = vmatmul.mubr.bf16.gmra.mrb[96].mxu1 %v10528_v61  ;;  %v1262_v61 = vld [vmem:[%s10217_s8 + $0x1a7] sm:$0xff] }
  0xf0   : > { %2814 = vmatprep.mubr.bf16.mxu1 %v10530_v2  ;;  %v1407_v2 = vld [vmem:[%s10217_s8 + $0x1b0] sm:$0xff]  ;;  %v10831_v1 = vpack.c.bf16 %v1262_v61, %v1261_v47  ;;  %v10053_v61 = vld [vmem:[%s16609_s1 + $0x1e8] sm:$0xff]  }
  0xf1   : > { %v10833_v62 = vpack.c.bf16 %v1408_v7, %v1407_v2  ;;  %v10846_v2 = vpack.c.bf16 %v1264_v16, %v1263_v37  ;;  %3604 = vmatpush1.bf16.msra.mxu1 %v10053_v61  ;;  %v1265_v37 = vld [vmem:[%s10217_s8 + $0x1bf] sm:$0xff]  ;;  %v1266_v16 = vld [vmem:[%s10217_s8 + $0x1c7] sm:$0xff] }
  0xf2   : > { %17059 = vst [vmem:[#allocation67_spill] sm:$0xff] %v10831_v1  ;;  %3605 = vmatprep.subr.bf16.mxu1 %v17041_v8  ;;  %v10865_v61 = vpack.c.bf16 %v1266_v16, %v1265_v37  ;;  %v1413_v37 = vld [vmem:[%s10217_s8 + $0x1e0] sm:$0xff]  ;;  %v1414_v16 = vld [vmem:[%s10217_s8 + $0x1e8] sm:$0xff] }
  0xf3   : > { %17060 = vst [vmem:[#allocation68_spill] sm:$0xff] %v10833_v62  ;;  %17061 = vst [vmem:[#allocation69_spill] sm:$0xff] %v10846_v2  ;;  %v10892_v20 = vpack.c.bf16 %v1414_v16, %v1413_v37  ;;  %v1415_v37 = vld [vmem:[%s10217_s8 + $0x1f0] sm:$0xff]  ;;  %v1416_v16 = vld [vmem:[%s10217_s8 + $0x1f8] sm:$0xff] }
  0xf4   : > { %17063 = vst [vmem:[#allocation71_spill] sm:$0xff] %v10865_v61  ;;  %v10913_v46 = vpack.c.bf16 %v1416_v16, %v1415_v37  ;;  %v10055_v37 = vld [vmem:[%s16609_s1 + $0x1f8] sm:$0xff]  }
  0xf5   : > { %17066 = vst [vmem:[#allocation74_spill] sm:$0xff] %v10892_v20 }
  0xf6   : > { %2189 = vmatmul.mubr.bf16.gmra.mrb[84].mxu0 %v10818_v19  ;;  %17068 = vst [vmem:[#allocation76_spill] sm:$0xff] %v10913_v46 }
  0xf7   : > { %2196 = vmatprep.mubr.bf16.mxu0 %v10820_v31  ;;  %2815 = vmatmul.mubr.bf16.gmra.mrb[100].mxu1 %v10548_v23  ;;  %v1410_v23 = vld [vmem:[%s10217_s8 + $0x1c8] sm:$0xff] }
  0xf8   : > { %2822 = vmatprep.mubr.bf16.mxu1 %v10550_v29  ;;  %v10850_v7 = vpack.c.bf16 %v1410_v23, %v1409_v42  ;;  %v1411_v42 = vld [vmem:[%s10217_s8 + $0x1d0] sm:$0xff]  ;;  %v1412_v23 = vld [vmem:[%s10217_s8 + $0x1d8] sm:$0xff] }
  0xf9   : > { %v10869_v43 = vpack.c.bf16 %v1412_v23, %v1411_v42  ;;  %v10054_v42 = vld [vmem:[%s16609_s1 + $0x1f0] sm:$0xff]  }
  0xfa   : > { %17062 = vst [vmem:[#allocation70_spill] sm:$0xff] %v10850_v7  ;;  %3606 = vmatpush1.bf16.msra.mxu1 %v10054_v42 }
  0xfb   : > { %17064 = vst [vmem:[#allocation72_spill] sm:$0xff] %v10869_v43  ;;  %3607 = vmatprep.subr.bf16.mxu1 %v17041_v8 }
  0xfe   : > { %2197 = vmatmul.mubr.bf16.gmra.mrb[88].mxu0 %v10831_v1  ;;  %3608 = vmatpush1.bf16.msra.mxu1 %v10055_v37 }
  0xff   : > { %2204 = vmatprep.mubr.bf16.mxu0 %v10833_v62  ;;  %2823 = vmatmul.mubr.bf16.gmra.mrb[104].mxu1 %v10568_v53 }
 0x100   : > { %2830 = vmatprep.mubr.bf16.mxu1 %v10570_v54 }
 0x102   : > { %v10848_v47 = vpop.f32.mrb[0].mxu1 }
 0x103   : > { %v2311_v53 = vpop.f32.mrb[1].mxu1 }
 0x104   : > { %v10853_v29 = vpop.f32.mrb[2].mxu1 }
 0x105   : > { %v10855_v57 = vpop.f32.mrb[3].mxu1 }
 0x106   : > { %2205 = vmatmul.mubr.bf16.gmra.mrb[92].mxu0 %v10846_v2 }
 0x107   : > { %2212 = vmatprep.mubr.bf16.mxu0 %v10850_v7  ;;  %2831 = vmatmul.mubr.bf16.gmra.mrb[108].mxu1 %v10591_v32  ;;  %v1267_v32 = vld [vmem:[%s10217_s8 + $0x1cf] sm:$0xff] }
 0x108   : > { %2838 = vmatprep.mubr.bf16.mxu1 %v10593_v33  ;;  %v10888_v23 = vpack.c.bf16 %v1268_v21, %v1267_v32  ;;  %v1269_v21 = vld [vmem:[%s10217_s8 + $0x1df] sm:$0xff]  ;;  %v1270_v32 = vld [vmem:[%s10217_s8 + $0x1e7] sm:$0xff] }
 0x109   : > { %v10909_v42 = vpack.c.bf16 %v1270_v32, %v1269_v21  ;;  %v1417_v21 = vld [vmem:[%s10217_s8 + $0x200] sm:$0xff]  ;;  %v1418_v32 = vld [vmem:[%s10217_s8 + $0x208] sm:$0xff] }
 0x10a   : > { %v10867_v54 = vpop.f32.mrb[4].mxu1  ;;  %17065 = vst [vmem:[#allocation73_spill] sm:$0xff] %v10888_v23  ;;  %v10938_v28 = vpack.c.bf16 %v1418_v32, %v1417_v21  ;;  %v1420_v21 = vld [vmem:[%s10217_s8 + $0x218] sm:$0xff] }
 0x10b   : > { %v10871_v41 = vpop.f32.mrb[5].mxu1  ;;  %17067 = vst [vmem:[#allocation75_spill] sm:$0xff] %v10909_v42 }
 0x10c   : > { %v10873_v24 = vpop.f32.mrb[6].mxu1  ;;  %17071 = vst [vmem:[#allocation79_spill] sm:$0xff] %v10938_v28 }
 0x10d   : > { %v10875_v44 = vpop.f32.mrb[7].mxu1 }
 0x10e   : > { %2213 = vmatmul.mubr.bf16.gmra.mrb[96].mxu0 %v10865_v61 }
 0x10f   : > { %2220 = vmatprep.mubr.bf16.mxu0 %v10869_v43  ;;  %2839 = vmatmul.mubr.bf16.gmra.mrb[112].mxu1 %v10611_v12  ;;  %v1272_v43 = vld [vmem:[%s10217_s8 + $0x1f7] sm:$0xff] }
 0x110   : > { %2846 = vmatprep.mubr.bf16.mxu1 %v10613_v13 }
 0x112   : > { %v10890_v33 = vpop.f32.mrb[8].mxu1 }
 0x113   : > { %v10895_v12 = vpop.f32.mrb[9].mxu1 }
 0x114   : > { %v10897_v0 = vpop.f32.mrb[10].mxu1 }
 0x115   : > { %v10899_v63 = vpop.f32.mrb[11].mxu1 }
 0x116   : > { %2221 = vmatmul.mubr.bf16.gmra.mrb[100].mxu0 %v10888_v23 }
 0x117   : > { %2228 = vmatprep.mubr.bf16.mxu0 %v10892_v20  ;;  %2847 = vmatmul.mubr.bf16.gmra.mrb[116].mxu1 %v10631_v56  ;;  %v1271_v56 = vld [vmem:[%s10217_s8 + $0x1ef] sm:$0xff] }
 0x118   : > { %2854 = vmatprep.mubr.bf16.mxu1 %v10633_v60 }
 0x11a   : > { %v10911_v13 = vpop.f32.mrb[12].mxu1 }
 0x11b   : > { %v10915_v23 = vpop.f32.mrb[13].mxu1 }
 0x11c   : > { %v10917_v20 = vpop.f32.mrb[14].mxu1 }
 0x11d   : > { %v10919_v45 = vpop.f32.mrb[15].mxu1 }
 0x11e   : > { %2229 = vmatmul.mubr.bf16.gmra.mrb[104].mxu0 %v10909_v42 }
 0x11f   : > { %2236 = vmatprep.mubr.bf16.mxu0 %v10913_v46  ;;  %2855 = vmatmul.mubr.bf16.gmra.mrb[120].mxu1 %v10648_v18  ;;  %v10934_v46 = vpack.c.bf16 %v1272_v43, %v1271_v56  ;;  %v1273_v43 = vld [vmem:[%s10217_s8 + $0x1ff] sm:$0xff]  ;;  %v1274_v56 = vld [vmem:[%s10217_s8 + $0x207] sm:$0xff] }
 0x120   : > { %2862 = vmatprep.mubr.bf16.mxu1 %v10650_v36 }
 0x121   : > { %v2022_v16 = vpop.f32.mrb[0].mxu0  ;;  %17070 = vst [vmem:[#allocation78_spill] sm:$0xff] %v10934_v46 }
 0x122   : > { %v10932_v60 = vadd.f32 %v2311_v53, %v2022_v16  ;;  %v2024_v42 = vpop.f32.mrb[1].mxu0  ;;  %v10936_v18 = vpop.f32.mrb[16].mxu1 }
 0x123   : > { %v2025_v61 = vpop.f32.mrb[2].mxu0  ;;  %v10943_v7 = vpop.f32.mrb[17].mxu1  ;;  %v1419_v42 = vld [vmem:[%s10217_s8 + $0x210] sm:$0xff] }
 0x124   : > { %17069 = vst [vmem:[#allocation77_spill] sm:$0xff] %v10932_v60  ;;  %v10941_v26 = vadd.f32 %v10855_v57, %v2025_v61  ;;  %v2027_v36 = vpop.f32.mrb[3].mxu0  ;;  %v10945_v2 = vpop.f32.mrb[18].mxu1  ;;  %v10960_v61 = vpack.c.bf16 %v1274_v56, %v1273_v43  ;;  %v1275_v56 = vld [vmem:[%s10217_s8 + $0x20f] sm:$0xff] }
 0x125   : > { %v10947_v53 = vpop.f32.mrb[19].mxu1 }
 0x126   : > { %17072 = vst [vmem:[#allocation80_spill] sm:$0xff] %v10941_v26  ;;  %2237 = vmatmul.mubr.bf16.gmra.mrb[108].mxu0 %v10934_v46  ;;  %17074 = vst [vmem:[#allocation82_spill] sm:$0xff] %v10960_v61 }
 0x127   : > { %2244 = vmatprep.mubr.bf16.mxu0 %v10938_v28  ;;  %2863 = vmatmul.mubr.bf16.gmra.mrb[124].mxu1 %v10669_v15  ;;  %v10964_v28 = vpack.c.bf16 %v1420_v21, %v1419_v42  ;;  %v1276_v42 = vld [vmem:[%s10217_s8 + $0x217] sm:$0xff] }
 0x128   : > { %2870 = vmatprep.mubr.bf16.mxu1 %v10672_v17 }
 0x129   : > { %v2030_v32 = vpop.f32.mrb[4].mxu0  ;;  %17075 = vst [vmem:[#allocation83_spill] sm:$0xff] %v10964_v28 }
 0x12a   : > { %v10958_v57 = vadd.f32 %v10848_v47, %v2030_v32  ;;  %v2032_v36 = vpop.f32.mrb[5].mxu0  ;;  %v10962_v37 = vpop.f32.mrb[20].mxu1  ;;  %v10976_v47 = vld [vmem:[%s16609_s1 + $0x200] sm:$0xff]  }
 0x12b   : > { %v2033_v16 = vpop.f32.mrb[6].mxu0  ;;  %v10969_v46 = vpop.f32.mrb[21].mxu1  ;;  %9661 = vmatprep.subr.bf16.mxu0 %v10976_v47 }
 0x12c   : > { %17073 = vst [vmem:[#allocation81_spill] sm:$0xff] %v10958_v57  ;;  %v10967_v15 = vadd.f32 %v10853_v29, %v2033_v16  ;;  %v2035_v17 = vpop.f32.mrb[7].mxu0  ;;  %v10971_v26 = vpop.f32.mrb[22].mxu1  ;;  %v1421_v29 = vld [vmem:[%s10217_s8 + $0x220] sm:$0xff]  ;;  %v10992_v16 = vpack.c.bf16 %v1276_v42, %v1275_v56 }
 0x12d   : > { %v10978_v43 = vpop.f32.mrb[23].mxu1  ;;  %v1422_v17 = vld [vmem:[%s10217_s8 + $0x228] sm:$0xff]  ;;  %v1277_v56 = vld [vmem:[%s10217_s8 + $0x21f] sm:$0xff] }
 0x12e   : > { %17076 = vst [vmem:[#allocation84_spill] sm:$0xff] %v10967_v15  ;;  %2245 = vmatmul.mubr.bf16.gmra.mrb[112].mxu0 %v10960_v61  ;;  %17078 = vst [vmem:[#allocation86_spill] sm:$0xff] %v10992_v16  ;;  %v10996_v15 = vpack.c.bf16 %v1422_v17, %v1421_v29  ;;  %v1278_v42 = vld [vmem:[%s10217_s8 + $0x227] sm:$0xff]  ;;  %v1423_v29 = vld [vmem:[%s10217_s8 + $0x230] sm:$0xff] }
 0x12f   : > { %2252 = vmatprep.mubr.bf16.mxu0 %v10964_v28  ;;  %2871 = vmatmul.mubr.bf16.gmra.mrb[128].mxu1 %v10688_v3  ;;  %v1424_v17 = vld [vmem:[%s10217_s8 + $0x238] sm:$0xff] }
 0x130   : > { %2878 = vmatprep.mubr.bf16.mxu1 %v10691_v50  ;;  %17079 = vst [vmem:[#allocation87_spill] sm:$0xff] %v10996_v15 }
 0x131   : > { %v2038_v21 = vpop.f32.mrb[8].mxu0 }
 0x132   : > { %v10990_v32 = vadd.f32 %v10871_v41, %v2038_v21  ;;  %v2040_v36 = vpop.f32.mrb[9].mxu0  ;;  %v10994_v28 = vpop.f32.mrb[24].mxu1  ;;  %v11018_v21 = vpack.c.bf16 %v1278_v42, %v1277_v56  ;;  %v1279_v56 = vld [vmem:[%s10217_s8 + $0x22f] sm:$0xff]  ;;  %v1280_v42 = vld [vmem:[%s10217_s8 + $0x237] sm:$0xff] }
 0x133   : > { %v2041_v61 = vpop.f32.mrb[10].mxu0  ;;  %v11001_v57 = vpop.f32.mrb[25].mxu1 }
 0x134   : > { %17077 = vst [vmem:[#allocation85_spill] sm:$0xff] %v10990_v32  ;;  %v10999_v3 = vadd.f32 %v10875_v44, %v2041_v61  ;;  %v2043_v60 = vpop.f32.mrb[11].mxu0  ;;  %v11003_v50 = vpop.f32.mrb[26].mxu1  ;;  %17082 = vst [vmem:[#allocation90_spill] sm:$0xff] %v11018_v21 }
 0x135   : > { %v11005_v41 = vpop.f32.mrb[27].mxu1 }
 0x136   : > { %17080 = vst [vmem:[#allocation88_spill] sm:$0xff] %v10999_v3  ;;  %2253 = vmatmul.mubr.bf16.gmra.mrb[116].mxu0 %v10992_v16  ;;  %v11022_v16 = vpack.c.bf16 %v1424_v17, %v1423_v29  ;;  %v1501_v29 = vld [vmem:[%s10217_s8 + $0x21] sm:$0xff]  ;;  %v1502_v17 = vld [vmem:[%s10217_s8 + $0x29] sm:$0xff] }
 0x137   : > { %2260 = vmatprep.mubr.bf16.mxu0 %v10996_v15  ;;  %2879 = vmatmul.mubr.bf16.gmra.mrb[132].mxu1 %v10711_v4 }
 0x138   : > { %2886 = vmatprep.mubr.bf16.mxu1 %v10714_v6  ;;  %17084 = vst [vmem:[#allocation92_spill] sm:$0xff] %v11022_v16 }
 0x139   : > { %v2046_v44 = vpop.f32.mrb[12].mxu0 }
 0x13a   : > { %v11016_v60 = vadd.f32 %v10867_v54, %v2046_v44  ;;  %v2048_v61 = vpop.f32.mrb[13].mxu0  ;;  %v11020_v36 = vpop.f32.mrb[28].mxu1  ;;  %v11044_v44 = vpack.c.bf16 %v1280_v42, %v1279_v56  ;;  %v1504_v56 = vld [vmem:[%s10217_s8 + $0x39] sm:$0xff] }
 0x13b   : > { %17083 = vst [vmem:[#allocation91_spill] sm:$0xff] %v11020_v36  ;;  %v2049_v15 = vpop.f32.mrb[14].mxu0  ;;  %v11027_v3 = vpop.f32.mrb[29].mxu1 }
 0x13c   : > { %17081 = vst [vmem:[#allocation89_spill] sm:$0xff] %v11016_v60  ;;  %v11025_v4 = vadd.f32 %v10873_v24, %v2049_v15  ;;  %v2051_v32 = vpop.f32.mrb[15].mxu0  ;;  %v11029_v6 = vpop.f32.mrb[30].mxu1  ;;  %17087 = vst [vmem:[#allocation95_spill] sm:$0xff] %v11044_v44 }
 0x13d   : > { %17086 = vst [vmem:[#allocation94_spill] sm:$0xff] %v11029_v6  ;;  %v11031_v54 = vpop.f32.mrb[31].mxu1 }
 0x13e   : > { %17085 = vst [vmem:[#allocation93_spill] sm:$0xff] %v11025_v4  ;;  %2261 = vmatmul.mubr.bf16.gmra.mrb[120].mxu0 %v11018_v21  ;;  %v1573_v21 = vpack.c.bf16 %v1502_v17, %v1501_v29 }
 0x13f   : > { %2268 = vmatprep.mubr.bf16.mxu0 %v11022_v16  ;;  %2887 = vmatmul.mubr.bf16.gmra.mrb[136].mxu1 %v10737_v30 }
 0x140   : > { %2894 = vmatprep.mubr.bf16.mxu1 %v10740_v22  ;;  %v10063_v22 = vld [vmem:[%s16609_s1 + $0x238] sm:$0xff]  }
 0x141   : > { %v2054_v24 = vpop.f32.mrb[16].mxu0 }
 0x142   : > { %v11042_v15 = vadd.f32 %v10895_v12, %v2054_v24  ;;  %v2056_v32 = vpop.f32.mrb[17].mxu0  ;;  %v11046_v61 = vpop.f32.mrb[32].mxu1  ;;  %v1503_v12 = vld [vmem:[%s10217_s8 + $0x31] sm:$0xff] }
 0x143   : > { %v2057_v16 = vpop.f32.mrb[18].mxu0  ;;  %v11051_v30 = vpop.f32.mrb[33].mxu1  ;;  %v1574_v29 = vpack.c.bf16 %v1504_v56, %v1503_v12 }
 0x144   : > { %v11049_v4 = vadd.f32 %v10899_v63, %v2057_v16  ;;  %v2059_v6 = vpop.f32.mrb[19].mxu0  ;;  %v11053_v60 = vpop.f32.mrb[34].mxu1 }
 0x145   : > { %v11055_v36 = vpop.f32.mrb[35].mxu1 }
 0x146   : > { %2269 = vmatmul.mubr.bf16.gmra.mrb[124].mxu0 %v11044_v44  ;;  %v10057_v44 = vld [vmem:[%s16609_s1 + $0x208] sm:$0xff]  }
 0x147   : > { %9597 = vmatprep.mubr.bf16.mxu0 %v1573_v21  ;;  %2895 = vmatmul.mubr.bf16.gmra.mrb[140].mxu1 %v10757_v40 }
 0x148   : > { %2902 = vmatprep.mubr.bf16.mxu1 %v10760_v5 }
 0x149   : > { %v2062_v42 = vpop.f32.mrb[20].mxu0 }
 0x14a   : > { %v11063_v63 = vadd.f32 %v10890_v33, %v2062_v42  ;;  %v2064_v16 = vpop.f32.mrb[21].mxu0  ;;  %v11065_v6 = vpop.f32.mrb[36].mxu1 }
 0x14b   : > { %v2065_v17 = vpop.f32.mrb[22].mxu0  ;;  %v11070_v32 = vpop.f32.mrb[37].mxu1 }
 0x14c   : > { %v11068_v24 = vadd.f32 %v10897_v0, %v2065_v17  ;;  %v2067_v21 = vpop.f32.mrb[23].mxu0  ;;  %v11075_v40 = vpop.f32.mrb[38].mxu1  ;;  %v10058_v0 = vld [vmem:[%s16609_s1 + $0x210] sm:$0xff]   ;;  %v10059_v17 = vld [vmem:[%s16609_s1 + $0x218] sm:$0xff]  }
 0x14d   : > { %v11077_v5 = vpop.f32.mrb[39].mxu1 }
 0x14e   : > { %9598 = vmatmul.mubr.bf16.vlgmr.msra.gmra.mrb[128].mxu0 %v1574_v29 }
 0x14f   : > { %9601 = vmatprep.mubr.bf16.mxu0 %v10228_v14  ;;  %9662 = vmatpush3.bf16.msra.mxu0 %v10976_v47 }
 0x150   : > { %2903 = vmatmul.mubr.bf16.gmra.mrb[144].mxu1 %v10774_v51  ;;  %9663 = vmatprep.subr.bf16.mxu0 %v10057_v44 }
 0x151   : > { %v2070_v33 = vpop.f32.mrb[24].mxu0  ;;  %2910 = vmatprep.mubr.bf16.mxu1 %v10777_v34  ;;  %v10061_v34 = vld [vmem:[%s16609_s1 + $0x228] sm:$0xff]  }
 0x152   : > { %v11087_v12 = vadd.f32 %v10915_v23, %v2070_v33  ;;  %v2072_v56 = vpop.f32.mrb[25].mxu0  ;;  %v11089_v42 = vpop.f32.mrb[40].mxu1 }
 0x153   : > { %v2073_v16 = vpop.f32.mrb[26].mxu0  ;;  %9664 = vmatpush3.bf16.msra.mxu0 %v10057_v44  ;;  %v11094_v47 = vpop.f32.mrb[41].mxu1 }
 0x154   : > { %v11092_v14 = vadd.f32 %v10919_v45, %v2073_v16  ;;  %v2075_v29 = vpop.f32.mrb[27].mxu0  ;;  %9665 = vmatprep.subr.bf16.mxu0 %v10058_v0  ;;  %v11099_v21 = vpop.f32.mrb[42].mxu1  ;;  %v10060_v45 = vld [vmem:[%s16609_s1 + $0x220] sm:$0xff]  }
 0x155   : > { %v11101_v23 = vpop.f32.mrb[43].mxu1 }
 0x156   : > { %9602 = vmatmul.mubr.bf16.gmra.mrb[132].mxu0 %v10257_v25 }
 0x157   : > { %9605 = vmatprep.mubr.bf16.mxu0 %v10262_v27  ;;  %9666 = vmatpush3.bf16.msra.mxu0 %v10058_v0 }
 0x158   : > { %2911 = vmatmul.mubr.bf16.gmra.mrb[148].mxu1 %v10790_v52  ;;  %9667 = vmatprep.subr.bf16.mxu0 %v10059_v17 }
 0x159   : > { %v2078_v44 = vpop.f32.mrb[28].mxu0  ;;  %2918 = vmatprep.mubr.bf16.mxu1 %v10792_v55 }
 0x15a   : > { %v11111_v33 = vadd.f32 %v10911_v13, %v2078_v44  ;;  %v2080_v56 = vpop.f32.mrb[29].mxu0  ;;  %v11113_v16 = vpop.f32.mrb[44].mxu1 }
 0x15b   : > { %v2081_v25 = vpop.f32.mrb[30].mxu0  ;;  %9668 = vmatpush3.bf16.msra.mxu0 %v10059_v17  ;;  %v11118_v29 = vpop.f32.mrb[45].mxu1 }
 0x15c   : > { %v11116_v0 = vadd.f32 %v10917_v20, %v2081_v25  ;;  %v2083_v52 = vpop.f32.mrb[31].mxu0  ;;  %9669 = vmatprep.subr.bf16.mxu0 %v10060_v45  ;;  %v11123_v55 = vpop.f32.mrb[46].mxu1  ;;  %v10062_v20 = vld [vmem:[%s16609_s1 + $0x230] sm:$0xff]  }
 0x15d   : > { %v11125_v13 = vpop.f32.mrb[47].mxu1 }
 0x15e   : > { %9606 = vmatmul.mubr.bf16.gmra.mrb[136].mxu0 %v10288_v38 }
 0x15f   : > { %9609 = vmatprep.mubr.bf16.mxu0 %v10290_v39  ;;  %9670 = vmatpush3.bf16.msra.mxu0 %v10060_v45 }
 0x160   : > { %2919 = vmatmul.mubr.bf16.gmra.mrb[152].mxu1 %v10803_v9  ;;  %9671 = vmatprep.subr.bf16.mxu0 %v10061_v34 }
 0x161   : > { %v2086_v52 = vpop.f32.mrb[32].mxu0  ;;  %2926 = vmatprep.mubr.bf16.mxu1 %v10805_v35 }
 0x162   : > { %v11135_v17 = vadd.f32 %v10943_v7, %v2086_v52  ;;  %v2088_v44 = vpop.f32.mrb[33].mxu0  ;;  %v11137_v56 = vpop.f32.mrb[48].mxu1 }
 0x163   : > { %17088 = vst [vmem:[#allocation96_spill] sm:$0xff] %v11137_v56  ;;  %v2089_v25 = vpop.f32.mrb[34].mxu0  ;;  %9672 = vmatpush3.bf16.msra.mxu0 %v10061_v34  ;;  %v11142_v9 = vpop.f32.mrb[49].mxu1 }
 0x164   : > { %v11140_v45 = vadd.f32 %v10947_v53, %v2089_v25  ;;  %v2091_v51 = vpop.f32.mrb[35].mxu0  ;;  %9673 = vmatprep.subr.bf16.mxu0 %v10062_v20  ;;  %v11147_v35 = vpop.f32.mrb[50].mxu1 }
 0x165   : > { %17089 = vst [vmem:[#allocation97_spill] sm:$0xff] %v11147_v35  ;;  %v11149_v7 = vpop.f32.mrb[51].mxu1 }
 0x166   : > { %9610 = vmatmul.mubr.bf16.gmra.mrb[140].mxu0 %v10314_v48 }
 0x167   : > { %9613 = vmatprep.mubr.bf16.mxu0 %v10316_v49  ;;  %9674 = vmatpush3.bf16.msra.mxu0 %v10062_v20 }
 0x168   : > { %2927 = vmatmul.mubr.bf16.gmra.mrb[156].mxu1 %v10818_v19  ;;  %9675 = vmatprep.subr.bf16.mxu0 %v10063_v22 }
 0x169   : > { %v2094_v34 = vpop.f32.mrb[36].mxu0  ;;  %2934 = vmatprep.mubr.bf16.mxu1 %v10820_v31 }
 0x16a   : > { %v11156_v51 = vadd.f32 %v10936_v18, %v2094_v34  ;;  %v2096_v53 = vpop.f32.mrb[37].mxu0  ;;  %v11158_v52 = vpop.f32.mrb[52].mxu1 }
 0x16b   : > { %17090 = vst [vmem:[#allocation98_spill] sm:$0xff] %v11158_v52  ;;  %v2097_v44 = vpop.f32.mrb[38].mxu0  ;;  %9676 = vmatpush3.bf16.msra.mxu0 %v10063_v22  ;;  %v11163_v35 = vpop.f32.mrb[53].mxu1 }
 0x16c   : > { %v11161_v25 = vadd.f32 %v10945_v2, %v2097_v44  ;;  %17091 = vst [vmem:[#allocation99_spill] sm:$0xff] %v11163_v35  ;;  %v2099_v20 = vpop.f32.mrb[39].mxu0  ;;  %5779 = vmatprep.subr.bf16.mxu0 %v17041_v8  ;;  %v11166_v19 = vpop.f32.mrb[54].mxu1 }
 0x16d   : > { %17092 = vst [vmem:[#allocation100_spill] sm:$0xff] %v11166_v19  ;;  %v11168_v56 = vpop.f32.mrb[55].mxu1 }
 0x16e   : > { %17093 = vst [vmem:[#allocation101_spill] sm:$0xff] %v11168_v56  ;;  %9614 = vmatmul.mubr.bf16.gmra.mrb[144].mxu0 %v10340_v58 }
 0x16f   : > { %9617 = vmatprep.mubr.bf16.mxu0 %v10342_v59 }
 0x170   : > { %2935 = vmatmul.mubr.bf16.gmra.mrb[160].mxu1 %v10831_v1 }
 0x171   : > { %v2102_v18 = vpop.f32.mrb[40].mxu0  ;;  %2942 = vmatprep.mubr.bf16.mxu1 %v10833_v62 }
 0x172   : > { %v11175_v22 = vadd.f32 %v10969_v46, %v2102_v18  ;;  %v2104_v2 = vpop.f32.mrb[41].mxu0  ;;  %v11177_v34 = vpop.f32.mrb[56].mxu1  ;;  %v17098_v46 = vld [vmem:[#allocation69_spill] sm:$0xff] }
 0x173   : > { %17094 = vst [vmem:[#allocation102_spill] sm:$0xff] %v11177_v34  ;;  %v2105_v53 = vpop.f32.mrb[42].mxu0  ;;  %v11182_v20 = vpop.f32.mrb[57].mxu1  ;;  %v17099_v2 = vld [vmem:[#allocation70_spill] sm:$0xff] }
 0x174   : > { %v11180_v44 = vadd.f32 %v10978_v43, %v2105_v53  ;;  %17095 = vst [vmem:[#allocation103_spill] sm:$0xff] %v11182_v20  ;;  %v2107_v8 = vpop.f32.mrb[43].mxu0  ;;  %v11184_v31 = vpop.f32.mrb[58].mxu1 }
 0x175   : > { %17096 = vst [vmem:[#allocation104_spill] sm:$0xff] %v11184_v31  ;;  %v11186_v19 = vpop.f32.mrb[59].mxu1 }
 0x176   : > { %17097 = vst [vmem:[#allocation105_spill] sm:$0xff] %v11186_v19  ;;  %9618 = vmatmul.mubr.bf16.gmra.mrb[148].mxu0 %v10370_v10 }
 0x177   : > { %9621 = vmatprep.mubr.bf16.mxu0 %v10372_v11  ;;  %v17115_v11 = vld [vmem:[#allocation74_spill] sm:$0xff] }
 0x178   : > { %2943 = vmatmul.mubr.bf16.gmra.mrb[164].mxu1 %v17098_v46  ;;  %v17104_v46 = vld [vmem:[#allocation6_spill] sm:$0xff] }
 0x179   : > { %v2110_v18 = vpop.f32.mrb[44].mxu0  ;;  %2950 = vmatprep.mubr.bf16.mxu1 %v17099_v2  ;;  %v17105_v2 = vld [vmem:[#allocation7_spill] sm:$0xff] }
 0x17a   : > { %v11193_v62 = vadd.f32 %v10962_v37, %v2110_v18  ;;  %v2112_v43 = vpop.f32.mrb[45].mxu0  ;;  %v11195_v53 = vpop.f32.mrb[60].mxu1  ;;  %v17106_v37 = vld [vmem:[#allocation71_spill] sm:$0xff] }
 0x17b   : > { %17100 = vst [vmem:[#allocation106_spill] sm:$0xff] %v11195_v53  ;;  %v2113_v8 = vpop.f32.mrb[46].mxu0  ;;  %v11200_v31 = vpop.f32.mrb[61].mxu1  ;;  %v17107_v43 = vld [vmem:[#allocation72_spill] sm:$0xff] }
 0x17c   : > { %v11198_v1 = vadd.f32 %v10971_v26, %v2113_v8  ;;  %17101 = vst [vmem:[#allocation107_spill] sm:$0xff] %v11200_v31  ;;  %v2115_v34 = vpop.f32.mrb[47].mxu0  ;;  %v11202_v19 = vpop.f32.mrb[62].mxu1 }
 0x17d   : > { %17102 = vst [vmem:[#allocation108_spill] sm:$0xff] %v11202_v19  ;;  %v11204_v20 = vpop.f32.mrb[63].mxu1  ;;  %v17108_v34 = vld [vmem:[#allocation77_spill] sm:$0xff] }
 0x17e   : > { %17103 = vst [vmem:[#allocation109_spill] sm:$0xff] %v11204_v20  ;;  %9622 = vmatmul.mubr.bf16.gmra.mrb[152].mxu0 %v17104_v46 }
 0x17f   : > { %9625 = vmatprep.mubr.bf16.mxu0 %v17105_v2  ;;  %v17110_v2 = vld [vmem:[#allocation80_spill] sm:$0xff] }
 0x180   : > { %2951 = vmatmul.mubr.bf16.gmra.mrb[168].mxu1 %v17106_v37 }
 0x181   : > { %v2118_v18 = vpop.f32.mrb[48].mxu0  ;;  %2958 = vmatprep.mubr.bf16.mxu1 %v17107_v43  ;;  %v17112_v43 = vld [vmem:[#allocation10_spill] sm:$0xff] }
 0x182   : > { %v11211_v53 = vadd.f32 %v11001_v57, %v2118_v18  ;;  %v2120_v26 = vpop.f32.mrb[49].mxu0  ;;  %v2744_v8 = vpop.f32.mrb[64].mxu1  ;;  %v17113_v57 = vld [vmem:[#allocation11_spill] sm:$0xff]  ;;  %v17114_v18 = vld [vmem:[#allocation73_spill] sm:$0xff] }
 0x183   : > { %v2121_v31 = vpop.f32.mrb[50].mxu0  ;;  %v11214_v52 = vadd.f32 %v2744_v8, %v17108_v34  ;;  %v2746_v20 = vpop.f32.mrb[65].mxu1 }
 0x184   : > { %v11217_v19 = vadd.f32 %v11005_v41, %v2121_v31  ;;  %v2123_v56 = vpop.f32.mrb[51].mxu0  ;;  %v2747_v35 = vpop.f32.mrb[66].mxu1  ;;  %v17116_v20 = vld [vmem:[#allocation81_spill] sm:$0xff] }
 0x185   : > { %17109 = vst [vmem:[#allocation77_spill] sm:$0xff] %v11214_v52  ;;  %v11220_v37 = vadd.f32 %v2747_v35, %v17110_v2  ;;  %v2749_v46 = vpop.f32.mrb[67].mxu1  ;;  %v17118_v52 = vld [vmem:[#allocation84_spill] sm:$0xff] }
 0x186   : > { %9626 = vmatmul.mubr.bf16.gmra.mrb[156].mxu0 %v17112_v43  ;;  %v17123_v43 = vld [vmem:[#allocation76_spill] sm:$0xff] }
 0x187   : > { %17111 = vst [vmem:[#allocation80_spill] sm:$0xff] %v11220_v37  ;;  %9629 = vmatprep.mubr.bf16.mxu0 %v17113_v57 }
 0x188   : > { %2959 = vmatmul.mubr.bf16.gmra.mrb[172].mxu1 %v17114_v18 }
 0x189   : > { %v2126_v26 = vpop.f32.mrb[52].mxu0  ;;  %2966 = vmatprep.mubr.bf16.mxu1 %v17115_v11  ;;  %v17120_v11 = vld [vmem:[#allocation14_spill] sm:$0xff] }
 0x18a   : > { %v11227_v8 = vadd.f32 %v10994_v28, %v2126_v26  ;;  %v2128_v31 = vpop.f32.mrb[53].mxu0  ;;  %v2752_v41 = vpop.f32.mrb[68].mxu1  ;;  %v17121_v28 = vld [vmem:[#allocation15_spill] sm:$0xff] }
 0x18b   : > { %v2129_v56 = vpop.f32.mrb[54].mxu0  ;;  %v11230_v34 = vadd.f32 %v2752_v41, %v17116_v20  ;;  %v2754_v46 = vpop.f32.mrb[69].mxu1  ;;  %v17122_v26 = vld [vmem:[#allocation75_spill] sm:$0xff] }
 0x18c   : > { %v11233_v35 = vadd.f32 %v11003_v50, %v2129_v56  ;;  %v2131_v2 = vpop.f32.mrb[55].mxu0  ;;  %v2755_v37 = vpop.f32.mrb[70].mxu1  ;;  %v17124_v46 = vld [vmem:[#allocation85_spill] sm:$0xff] }
 0x18d   : > { %17117 = vst [vmem:[#allocation81_spill] sm:$0xff] %v11230_v34  ;;  %v11236_v18 = vadd.f32 %v2755_v37, %v17118_v52  ;;  %v2757_v57 = vpop.f32.mrb[71].mxu1  ;;  %v17127_v34 = vld [vmem:[#allocation88_spill] sm:$0xff] }
 0x18e   : > { %9630 = vmatmul.mubr.bf16.gmra.mrb[160].mxu0 %v17120_v11  ;;  %v17132_v11 = vld [vmem:[#allocation79_spill] sm:$0xff] }
 0x18f   : > { %17119 = vst [vmem:[#allocation84_spill] sm:$0xff] %v11236_v18  ;;  %9633 = vmatprep.mubr.bf16.mxu0 %v17121_v28 }
 0x190   : > { %2967 = vmatmul.mubr.bf16.gmra.mrb[176].mxu1 %v17122_v26 }
 0x191   : > { %v2134_v31 = vpop.f32.mrb[56].mxu0  ;;  %2974 = vmatprep.mubr.bf16.mxu1 %v17123_v43  ;;  %v17129_v43 = vld [vmem:[#allocation18_spill] sm:$0xff] }
 0x192   : > { %v11243_v41 = vadd.f32 %v11027_v3, %v2134_v31  ;;  %v2136_v50 = vpop.f32.mrb[57].mxu0  ;;  %v2760_v56 = vpop.f32.mrb[72].mxu1  ;;  %v17130_v3 = vld [vmem:[#allocation19_spill] sm:$0xff]  ;;  %v17131_v31 = vld [vmem:[#allocation78_spill] sm:$0xff] }
 0x193   : > { %v2137_v20 = vpop.f32.mrb[58].mxu0  ;;  %v11246_v2 = vadd.f32 %v2760_v56, %v17124_v46  ;;  %v2762_v37 = vpop.f32.mrb[73].mxu1  ;;  %v17133_v56 = vld [vmem:[#allocation91_spill] sm:$0xff] }
 0x194   : > { %v11249_v52 = vadd.f32 %v11031_v54, %v2137_v20  ;;  %v2139_v57 = vpop.f32.mrb[59].mxu0  ;;  %v2763_v18 = vpop.f32.mrb[74].mxu1 }
 0x195   : > { %17125 = vst [vmem:[#allocation85_spill] sm:$0xff] %v11246_v2  ;;  %v11252_v26 = vadd.f32 %v2763_v18, %v17127_v34  ;;  %v2765_v28 = vpop.f32.mrb[75].mxu1  ;;  %v17135_v57 = vld [vmem:[#allocation89_spill] sm:$0xff]  ;;  %v17137_v18 = vld [vmem:[#allocation94_spill] sm:$0xff] }
 0x196   : > { %17126 = vst [vmem:[#allocation110_spill] sm:$0xff] %v11249_v52  ;;  %9634 = vmatmul.mubr.bf16.gmra.mrb[164].mxu0 %v17129_v43  ;;  %v17138_v43 = vld [vmem:[#allocation93_spill] sm:$0xff] }
 0x197   : > { %17128 = vst [vmem:[#allocation88_spill] sm:$0xff] %v11252_v26  ;;  %9637 = vmatprep.mubr.bf16.mxu0 %v17130_v3 }
 0x198   : > { %2975 = vmatmul.mubr.bf16.gmra.mrb[180].mxu1 %v17131_v31 }
 0x199   : > { %v2142_v50 = vpop.f32.mrb[60].mxu0  ;;  %2982 = vmatprep.mubr.bf16.mxu1 %v17132_v11  ;;  %v17140_v11 = vld [vmem:[#allocation22_spill] sm:$0xff] }
 0x19a   : > { %v11259_v46 = vadd.f32 %v17133_v56, %v2142_v50  ;;  %v2144_v54 = vpop.f32.mrb[61].mxu0  ;;  %v2768_v20 = vpop.f32.mrb[76].mxu1  ;;  %v17141_v50 = vld [vmem:[#allocation23_spill] sm:$0xff]  ;;  %v17142_v56 = vld [vmem:[#allocation82_spill] sm:$0xff] }
 0x19b   : > { %v2145_v37 = vpop.f32.mrb[62].mxu0  ;;  %v11262_v2 = vadd.f32 %v2768_v20, %v17135_v57  ;;  %v2770_v28 = vpop.f32.mrb[77].mxu1 }
 0x19c   : > { %17134 = vst [vmem:[#allocation91_spill] sm:$0xff] %v11259_v46  ;;  %v11265_v34 = vadd.f32 %v17137_v18, %v2145_v37  ;;  %v2147_v26 = vpop.f32.mrb[63].mxu0  ;;  %v2771_v3 = vpop.f32.mrb[78].mxu1  ;;  %v17143_v46 = vld [vmem:[#allocation83_spill] sm:$0xff] }
 0x19d   : > { %17136 = vst [vmem:[#allocation89_spill] sm:$0xff] %v11262_v2  ;;  %v11268_v31 = vadd.f32 %v2771_v3, %v17138_v43  ;;  %v2773_v52 = vpop.f32.mrb[79].mxu1  ;;  %v17149_v2 = vld [vmem:[#allocation5_spill] sm:$0xff] }
 0x19e   : > { %9638 = vmatmul.mubr.bf16.gmra.mrb[168].mxu0 %v17140_v11 }
 0x19f   : > { %17139 = vst [vmem:[#allocation94_spill] sm:$0xff] %v11268_v31  ;;  %9641 = vmatprep.mubr.bf16.mxu0 %v17141_v50 }
 0x1a0   : > { %2983 = vmatmul.mubr.bf16.gmra.mrb[184].mxu1 %v17142_v56 }
 0x1a1   : > { %v2150_v54 = vpop.f32.mrb[64].mxu0  ;;  %2990 = vmatprep.mubr.bf16.mxu1 %v17143_v46  ;;  %v17146_v46 = vld [vmem:[#allocation26_spill] sm:$0xff] }
 0x1a2   : > { %v11275_v20 = vadd.f32 %v11051_v30, %v2150_v54  ;;  %v2152_v37 = vpop.f32.mrb[65].mxu0  ;;  %v2776_v57 = vpop.f32.mrb[80].mxu1  ;;  %v17147_v30 = vld [vmem:[#allocation27_spill] sm:$0xff]  ;;  %v17148_v54 = vld [vmem:[#allocation86_spill] sm:$0xff] }
 0x1a3   : > { %v2153_v26 = vpop.f32.mrb[66].mxu0  ;;  %v11278_v18 = vadd.f32 %v2776_v57, %v11042_v15  ;;  %v2778_v52 = vpop.f32.mrb[81].mxu1 }
 0x1a4   : > { %v11281_v43 = vadd.f32 %v11055_v36, %v2153_v26  ;;  %v2155_v3 = vpop.f32.mrb[67].mxu0  ;;  %v2779_v28 = vpop.f32.mrb[82].mxu1 }
 0x1a5   : > { %17144 = vst [vmem:[#allocation93_spill] sm:$0xff] %v11278_v18  ;;  %v11284_v56 = vadd.f32 %v2779_v28, %v11049_v4  ;;  %v2781_v31 = vpop.f32.mrb[83].mxu1  ;;  %v17155_v18 = vld [vmem:[#allocation9_spill] sm:$0xff] }
 0x1a6   : > { %9642 = vmatmul.mubr.bf16.gmra.mrb[172].mxu0 %v17146_v46 }
 0x1a7   : > { %17145 = vst [vmem:[#allocation22_spill] sm:$0xff] %v11284_v56  ;;  %9645 = vmatprep.mubr.bf16.mxu0 %v17147_v30 }
 0x1a8   : > { %2991 = vmatmul.mubr.bf16.gmra.mrb[188].mxu1 %v17148_v54 }
 0x1a9   : > { %v2158_v37 = vpop.f32.mrb[68].mxu0  ;;  %3609 = vmatprep.mubr.bf16.mxu1 %v17149_v2  ;;  %v17152_v2 = vld [vmem:[#allocation30_spill] sm:$0xff] }
 0x1aa   : > { %v11291_v15 = vadd.f32 %v11046_v61, %v2158_v37  ;;  %v2160_v36 = vpop.f32.mrb[69].mxu0  ;;  %v2784_v57 = vpop.f32.mrb[84].mxu1  ;;  %v17153_v61 = vld [vmem:[#allocation31_spill] sm:$0xff]  ;;  %v17154_v37 = vld [vmem:[#allocation8_spill] sm:$0xff] }
 0x1ab   : > { %v2161_v26 = vpop.f32.mrb[70].mxu0  ;;  %v11294_v52 = vadd.f32 %v2784_v57, %v11063_v63  ;;  %v2786_v31 = vpop.f32.mrb[85].mxu1 }
 0x1ac   : > { %v11297_v4 = vadd.f32 %v11053_v60, %v2161_v26  ;;  %v2163_v3 = vpop.f32.mrb[71].mxu0  ;;  %v2787_v28 = vpop.f32.mrb[86].mxu1 }
 0x1ad   : > { %17150 = vst [vmem:[#allocation23_spill] sm:$0xff] %v11294_v52  ;;  %v11300_v54 = vadd.f32 %v2787_v28, %v11068_v24  ;;  %v2789_v56 = vpop.f32.mrb[87].mxu1  ;;  %v17161_v52 = vld [vmem:[#allocation13_spill] sm:$0xff] }
 0x1ae   : > { %9646 = vmatmul.mubr.bf16.gmra.mrb[176].mxu0 %v17152_v2 }
 0x1af   : > { %17151 = vst [vmem:[#allocation26_spill] sm:$0xff] %v11300_v54  ;;  %9649 = vmatprep.mubr.bf16.mxu0 %v17153_v61 }
 0x1b0   : > { %3610 = vmatmul.mubr.bf16.vlgmr.msra.gmra.mrb[192].mxu1 %v17154_v37 }
 0x1b1   : > { %v2166_v36 = vpop.f32.mrb[72].mxu0  ;;  %3617 = vmatprep.mubr.bf16.mxu1 %v17155_v18  ;;  %v17158_v18 = vld [vmem:[#allocation34_spill] sm:$0xff] }
 0x1b2   : > { %v11307_v63 = vadd.f32 %v11070_v32, %v2166_v36  ;;  %v2168_v60 = vpop.f32.mrb[73].mxu0  ;;  %v2792_v57 = vpop.f32.mrb[88].mxu1  ;;  %v17159_v32 = vld [vmem:[#allocation35_spill] sm:$0xff]  ;;  %v17160_v36 = vld [vmem:[#allocation12_spill] sm:$0xff] }
 0x1b3   : > { %v2169_v26 = vpop.f32.mrb[74].mxu0  ;;  %v11310_v31 = vadd.f32 %v2792_v57, %v11087_v12  ;;  %v2794_v56 = vpop.f32.mrb[89].mxu1 }
 0x1b4   : > { %v11313_v24 = vadd.f32 %v11077_v5, %v2169_v26  ;;  %v2171_v3 = vpop.f32.mrb[75].mxu0  ;;  %v2795_v28 = vpop.f32.mrb[90].mxu1 }
 0x1b5   : > { %17156 = vst [vmem:[#allocation27_spill] sm:$0xff] %v11310_v31  ;;  %v11316_v37 = vadd.f32 %v2795_v28, %v11092_v14  ;;  %v2797_v54 = vpop.f32.mrb[91].mxu1  ;;  %v17166_v31 = vld [vmem:[#allocation17_spill] sm:$0xff] }
 0x1b6   : > { %9650 = vmatmul.mubr.bf16.gmra.mrb[180].mxu0 %v17158_v18 }
 0x1b7   : > { %17157 = vst [vmem:[#allocation5_spill] sm:$0xff] %v11316_v37  ;;  %9653 = vmatprep.mubr.bf16.mxu0 %v17159_v32 }
 0x1b8   : > { %3618 = vmatmul.mubr.bf16.gmra.mrb[196].mxu1 %v17160_v36 }
 0x1b9   : > { %v2174_v60 = vpop.f32.mrb[76].mxu0  ;;  %3625 = vmatprep.mubr.bf16.mxu1 %v17161_v52  ;;  %v17163_v52 = vld [vmem:[#allocation38_spill] sm:$0xff] }
 0x1ba   : > { %v11323_v12 = vadd.f32 %v11065_v6, %v2174_v60  ;;  %v2176_v5 = vpop.f32.mrb[77].mxu0  ;;  %v2800_v57 = vpop.f32.mrb[92].mxu1  ;;  %v17164_v6 = vld [vmem:[#allocation39_spill] sm:$0xff]  ;;  %v17165_v60 = vld [vmem:[#allocation16_spill] sm:$0xff] }
 0x1bb   : > { %v2177_v26 = vpop.f32.mrb[78].mxu0  ;;  %v11326_v56 = vadd.f32 %v2800_v57, %v11111_v33  ;;  %v2802_v54 = vpop.f32.mrb[93].mxu1 }
 0x1bc   : > { %v11329_v14 = vadd.f32 %v11075_v40, %v2177_v26  ;;  %v2179_v3 = vpop.f32.mrb[79].mxu0  ;;  %v2803_v28 = vpop.f32.mrb[94].mxu1 }
 0x1bd   : > { %v11332_v36 = vadd.f32 %v2803_v28, %v11116_v0  ;;  %v2805_v37 = vpop.f32.mrb[95].mxu1 }
 0x1be   : > { %9654 = vmatmul.mubr.bf16.gmra.mrb[184].mxu0 %v17163_v52 }
 0x1bf   : > { %17162 = vst [vmem:[#allocation30_spill] sm:$0xff] %v11332_v36  ;;  %9657 = vmatprep.mubr.bf16.mxu0 %v17164_v6 }
 0x1c0   : > { %3626 = vmatmul.mubr.bf16.gmra.mrb[200].mxu1 %v17165_v60 }
 0x1c1   : > { %v2182_v5 = vpop.f32.mrb[80].mxu0  ;;  %3633 = vmatprep.mubr.bf16.mxu1 %v17166_v31  ;;  %v17167_v31 = vld [vmem:[#allocation42_spill] sm:$0xff] }
 0x1c2   : > { %v11339_v33 = vadd.f32 %v11094_v47, %v2182_v5  ;;  %v2184_v40 = vpop.f32.mrb[81].mxu0  ;;  %v2808_v57 = vpop.f32.mrb[96].mxu1  ;;  %v17168_v47 = vld [vmem:[#allocation20_spill] sm:$0xff] }
 0x1c3   : > { %v2185_v26 = vpop.f32.mrb[82].mxu0  ;;  %v11342_v54 = vadd.f32 %v2808_v57, %v11135_v17  ;;  %v2810_v37 = vpop.f32.mrb[97].mxu1  ;;  %v17169_v40 = vld [vmem:[#allocation21_spill] sm:$0xff] }
 0x1c4   : > { %v11345_v0 = vadd.f32 %v11101_v23, %v2185_v26  ;;  %v2187_v3 = vpop.f32.mrb[83].mxu0  ;;  %v2811_v28 = vpop.f32.mrb[98].mxu1 }
 0x1c5   : > { %v11348_v60 = vadd.f32 %v2811_v28, %v11140_v45  ;;  %v2813_v36 = vpop.f32.mrb[99].mxu1 }
 0x1c6   : > { %9658 = vmatmul.mubr.bf16.gmra.mrb[188].mxu0 %v17167_v31 }
 0x1c7   : > { %9677 = vmatprep.mubr.bf16.mxu0 %v10262_v27 }
 0x1c8   : > { %3634 = vmatmul.mubr.bf16.gmra.mrb[204].mxu1 %v17168_v47 }
 0x1c9   : > { %v2190_v5 = vpop.f32.mrb[84].mxu0  ;;  %3641 = vmatprep.mubr.bf16.mxu1 %v17169_v40  ;;  %v17171_v40 = vld [vmem:[#allocation25_spill] sm:$0xff] }
 0x1ca   : > { %v11355_v17 = vadd.f32 %v11089_v42, %v2190_v5  ;;  %v2192_v23 = vpop.f32.mrb[85].mxu0  ;;  %v2816_v57 = vpop.f32.mrb[100].mxu1  ;;  %v17170_v42 = vld [vmem:[#allocation24_spill] sm:$0xff] }
 0x1cb   : > { %v2193_v26 = vpop.f32.mrb[86].mxu0  ;;  %v11358_v37 = vadd.f32 %v2816_v57, %v11156_v51  ;;  %v2818_v36 = vpop.f32.mrb[101].mxu1 }
 0x1cc   : > { %v11361_v45 = vadd.f32 %v11099_v21, %v2193_v26  ;;  %v2195_v3 = vpop.f32.mrb[87].mxu0  ;;  %v2819_v27 = vpop.f32.mrb[102].mxu1 }
 0x1cd   : > { %v11364_v28 = vadd.f32 %v2819_v27, %v11161_v25  ;;  %v2821_v47 = vpop.f32.mrb[103].mxu1 }
 0x1ce   : > { %9678 = vmatmul.mubr.bf16.vlgmr.msra.gmra.mrb[192].mxu0 %v10288_v38 }
 0x1cf   : > { %9681 = vmatprep.mubr.bf16.mxu0 %v10290_v39 }
 0x1d0   : > { %3642 = vmatmul.mubr.bf16.gmra.mrb[208].mxu1 %v17170_v42  ;;  %v17173_v42 = vld [vmem:[#allocation29_spill] sm:$0xff] }
 0x1d1   : > { %v2198_v5 = vpop.f32.mrb[88].mxu0  ;;  %3649 = vmatprep.mubr.bf16.mxu1 %v17171_v40 }
 0x1d2   : > { %v11371_v51 = vadd.f32 %v11118_v29, %v2198_v5  ;;  %v2200_v21 = vpop.f32.mrb[89].mxu0  ;;  %v2824_v23 = vpop.f32.mrb[104].mxu1  ;;  %v17172_v29 = vld [vmem:[#allocation28_spill] sm:$0xff] }
 0x1d3   : > { %v2201_v57 = vpop.f32.mrb[90].mxu0  ;;  %v11374_v26 = vadd.f32 %v2824_v23, %v11175_v22  ;;  %v2826_v38 = vpop.f32.mrb[105].mxu1 }
 0x1d4   : > { %v11377_v25 = vadd.f32 %v11125_v13, %v2201_v57  ;;  %v2203_v36 = vpop.f32.mrb[91].mxu0  ;;  %v2827_v39 = vpop.f32.mrb[106].mxu1 }
 0x1d5   : > { %v11380_v3 = vadd.f32 %v2827_v39, %v11180_v44  ;;  %v2829_v27 = vpop.f32.mrb[107].mxu1  ;;  %v17175_v39 = vld [vmem:[#allocation33_spill] sm:$0xff] }
 0x1d6   : > { %9682 = vmatmul.mubr.bf16.gmra.mrb[196].mxu0 %v10314_v48 }
 0x1d7   : > { %9685 = vmatprep.mubr.bf16.mxu0 %v10316_v49 }
 0x1d8   : > { %3650 = vmatmul.mubr.bf16.gmra.mrb[212].mxu1 %v17172_v29 }
 0x1d9   : > { %v2206_v47 = vpop.f32.mrb[92].mxu0  ;;  %3657 = vmatprep.mubr.bf16.mxu1 %v17173_v42 }
 0x1da   : > { %v11387_v22 = vadd.f32 %v11113_v16, %v2206_v47  ;;  %v2208_v13 = vpop.f32.mrb[93].mxu0  ;;  %v2832_v5 = vpop.f32.mrb[108].mxu1  ;;  %v17174_v16 = vld [vmem:[#allocation32_spill] sm:$0xff] }
 0x1db   : > { %v2209_v40 = vpop.f32.mrb[94].mxu0  ;;  %v11390_v21 = vadd.f32 %v2832_v5, %v11193_v62  ;;  %v2834_v48 = vpop.f32.mrb[109].mxu1 }
 0x1dc   : > { %v11393_v44 = vadd.f32 %v11123_v55, %v2209_v40  ;;  %v2211_v23 = vpop.f32.mrb[95].mxu0  ;;  %v2835_v49 = vpop.f32.mrb[110].mxu1  ;;  %v17177_v40 = vld [vmem:[#allocation36_spill] sm:$0xff] }
 0x1dd   : > { %v11396_v57 = vadd.f32 %v2835_v49, %v11198_v1  ;;  %v2837_v38 = vpop.f32.mrb[111].mxu1  ;;  %v17178_v23 = vld [vmem:[#allocation37_spill] sm:$0xff] }
 0x1de   : > { %9686 = vmatmul.mubr.bf16.gmra.mrb[200].mxu0 %v10340_v58 }
 0x1df   : > { %9689 = vmatprep.mubr.bf16.mxu0 %v10342_v59 }
 0x1e0   : > { %3658 = vmatmul.mubr.bf16.gmra.mrb[216].mxu1 %v17174_v16 }
 0x1e1   : > { %v2214_v36 = vpop.f32.mrb[96].mxu0  ;;  %3665 = vmatprep.mubr.bf16.mxu1 %v17175_v39 }
 0x1e2   : > { %v11403_v62 = vadd.f32 %v11142_v9, %v2214_v36  ;;  %v2216_v55 = vpop.f32.mrb[97].mxu0  ;;  %v2840_v27 = vpop.f32.mrb[112].mxu1  ;;  %v17176_v9 = vld [vmem:[#allocation4_spill] sm:$0xff] }
 0x1e3   : > { %v2217_v29 = vpop.f32.mrb[98].mxu0  ;;  %v11406_v47 = vadd.f32 %v2840_v27, %v11211_v53  ;;  %v2842_v58 = vpop.f32.mrb[113].mxu1  ;;  %v17179_v53 = vld [vmem:[#allocation96_spill] sm:$0xff] }
 0x1e4   : > { %v11409_v1 = vadd.f32 %v11149_v7, %v2217_v29  ;;  %v2219_v42 = vpop.f32.mrb[99].mxu0  ;;  %v2843_v59 = vpop.f32.mrb[114].mxu1 }
 0x1e5   : > { %v11412_v13 = vadd.f32 %v2843_v59, %v11217_v19  ;;  %v2845_v5 = vpop.f32.mrb[115].mxu1  ;;  %v17180_v19 = vld [vmem:[#allocation97_spill] sm:$0xff]  ;;  %v17181_v42 = vld [vmem:[#allocation6_spill] sm:$0xff]  ;;  %v17182_v59 = vld [vmem:[#allocation7_spill] sm:$0xff] }
 0x1e6   : > { %9690 = vmatmul.mubr.bf16.gmra.mrb[204].mxu0 %v10370_v10  ;;  %v17183_v5 = vld [vmem:[#allocation40_spill] sm:$0xff] }
 0x1e7   : > { %9693 = vmatprep.mubr.bf16.mxu0 %v17176_v9 }
 0x1e8   : > { %3666 = vmatmul.mubr.bf16.gmra.mrb[220].mxu1 %v17177_v40  ;;  %v17184_v40 = vld [vmem:[#allocation41_spill] sm:$0xff] }
 0x1e9   : > { %v2222_v48 = vpop.f32.mrb[100].mxu0  ;;  %3673 = vmatprep.mubr.bf16.mxu1 %v17178_v23 }
 0x1ea   : > { %v11419_v49 = vadd.f32 %v17179_v53, %v2222_v48  ;;  %v2224_v7 = vpop.f32.mrb[101].mxu0  ;;  %v2848_v38 = vpop.f32.mrb[116].mxu1 }
 0x1eb   : > { %v2225_v16 = vpop.f32.mrb[102].mxu0  ;;  %v11422_v36 = vadd.f32 %v2848_v38, %v11227_v8  ;;  %v2850_v10 = vpop.f32.mrb[117].mxu1  ;;  %v17185_v8 = vld [vmem:[#allocation99_spill] sm:$0xff] }
 0x1ec   : > { %v11425_v39 = vadd.f32 %v17180_v19, %v2225_v16  ;;  %v2227_v55 = vpop.f32.mrb[103].mxu0  ;;  %v2851_v27 = vpop.f32.mrb[118].mxu1 }
 0x1ed   : > { %v11428_v29 = vadd.f32 %v2851_v27, %v11233_v35  ;;  %v2853_v58 = vpop.f32.mrb[119].mxu1  ;;  %v17186_v35 = vld [vmem:[#allocation101_spill] sm:$0xff]  ;;  %v17187_v27 = vld [vmem:[#allocation110_spill] sm:$0xff] }
 0x1ee   : > { %9694 = vmatmul.mubr.bf16.gmra.mrb[208].mxu0 %v17181_v42 }
 0x1ef   : > { %9697 = vmatprep.mubr.bf16.mxu0 %v17182_v59  ;;  %v17189_v59 = vld [vmem:[#allocation10_spill] sm:$0xff] }
 0x1f0   : > { %3674 = vmatmul.mubr.bf16.gmra.mrb[224].mxu1 %v17183_v5  ;;  %v17190_v5 = vld [vmem:[#allocation11_spill] sm:$0xff] }
 0x1f1   : > { %v2230_v9 = vpop.f32.mrb[104].mxu0  ;;  %3681 = vmatprep.mubr.bf16.mxu1 %v17184_v40 }
 0x1f2   : > { %v11435_v48 = vadd.f32 %v17185_v8, %v2230_v9  ;;  %v2232_v23 = vpop.f32.mrb[105].mxu0  ;;  %v2856_v53 = vpop.f32.mrb[120].mxu1  ;;  %v17191_v9 = vld [vmem:[#allocation44_spill] sm:$0xff]  ;;  %v17192_v8 = vld [vmem:[#allocation45_spill] sm:$0xff] }
 0x1f3   : > { %v2233_v7 = vpop.f32.mrb[106].mxu0  ;;  %v11438_v38 = vadd.f32 %v2856_v53, %v11243_v41  ;;  %v2858_v19 = vpop.f32.mrb[121].mxu1  ;;  %v17193_v41 = vld [vmem:[#allocation98_spill] sm:$0xff] }
 0x1f4   : > { %v11441_v16 = vadd.f32 %v17186_v35, %v2233_v7  ;;  %v2235_v10 = vpop.f32.mrb[107].mxu0  ;;  %v2859_v55 = vpop.f32.mrb[122].mxu1  ;;  %v17195_v19 = vld [vmem:[#allocation91_spill] sm:$0xff] }
 0x1f5   : > { %v11444_v58 = vadd.f32 %v2859_v55, %v17187_v27  ;;  %v2861_v42 = vpop.f32.mrb[123].mxu1  ;;  %v17196_v55 = vld [vmem:[#allocation100_spill] sm:$0xff] }
 0x1f6   : > { %9698 = vmatmul.mubr.bf16.gmra.mrb[212].mxu0 %v17189_v59 }
 0x1f7   : > { %17188 = vst [vmem:[#allocation31_spill] sm:$0xff] %v11444_v58  ;;  %9701 = vmatprep.mubr.bf16.mxu0 %v17190_v5 }
 0x1f8   : > { %3682 = vmatmul.mubr.bf16.gmra.mrb[228].mxu1 %v17191_v9 }
 0x1f9   : > { %v2238_v40 = vpop.f32.mrb[108].mxu0  ;;  %3689 = vmatprep.mubr.bf16.mxu1 %v17192_v8  ;;  %v17198_v8 = vld [vmem:[#allocation14_spill] sm:$0xff] }
 0x1fa   : > { %v11451_v23 = vadd.f32 %v17193_v41, %v2238_v40  ;;  %v2240_v53 = vpop.f32.mrb[109].mxu0  ;;  %v2864_v7 = vpop.f32.mrb[124].mxu1  ;;  %v17199_v40 = vld [vmem:[#allocation15_spill] sm:$0xff] }
 0x1fb   : > { %v2241_v35 = vpop.f32.mrb[110].mxu0  ;;  %v11454_v10 = vadd.f32 %v2864_v7, %v17195_v19  ;;  %v2866_v42 = vpop.f32.mrb[125].mxu1  ;;  %v17200_v41 = vld [vmem:[#allocation47_spill] sm:$0xff] }
 0x1fc   : > { %17194 = vst [vmem:[#allocation8_spill] sm:$0xff] %v11451_v23  ;;  %v11457_v27 = vadd.f32 %v17196_v55, %v2241_v35  ;;  %v2243_v59 = vpop.f32.mrb[111].mxu0  ;;  %v2867_v5 = vpop.f32.mrb[126].mxu1  ;;  %v17201_v23 = vld [vmem:[#allocation48_spill] sm:$0xff]  ;;  %v17202_v7 = vld [vmem:[#allocation103_spill] sm:$0xff] }
 0x1fd   : > { %v11460_v9 = vadd.f32 %v2867_v5, %v11265_v34  ;;  %v2869_v58 = vpop.f32.mrb[127].mxu1  ;;  %v17204_v34 = vld [vmem:[#allocation105_spill] sm:$0xff] }
 0x1fe   : > { %17197 = vst [vmem:[#allocation9_spill] sm:$0xff] %v11457_v27  ;;  %9702 = vmatmul.mubr.bf16.gmra.mrb[216].mxu0 %v17198_v8 }
 0x1ff   : > { %9705 = vmatprep.mubr.bf16.mxu0 %v17199_v40 }
 0x200   : > { %3690 = vmatmul.mubr.bf16.gmra.mrb[232].mxu1 %v17200_v41 }
 0x201   : > { %v2246_v53 = vpop.f32.mrb[112].mxu0  ;;  %3697 = vmatprep.mubr.bf16.mxu1 %v17201_v23  ;;  %v17206_v23 = vld [vmem:[#allocation18_spill] sm:$0xff] }
 0x202   : > { %v11467_v19 = vadd.f32 %v17202_v7, %v2246_v53  ;;  %v2248_v35 = vpop.f32.mrb[113].mxu0  ;;  %v2872_v55 = vpop.f32.mrb[128].mxu1  ;;  %v17207_v53 = vld [vmem:[#allocation19_spill] sm:$0xff]  ;;  %v17208_v7 = vld [vmem:[#allocation49_spill] sm:$0xff] }
 0x203   : > { %v2249_v42 = vpop.f32.mrb[114].mxu0  ;;  %v11470_v59 = vadd.f32 %v2872_v55, %v11275_v20  ;;  %v2874_v5 = vpop.f32.mrb[129].mxu1  ;;  %v17210_v20 = vld [vmem:[#allocation102_spill] sm:$0xff] }
 0x204   : > { %17203 = vst [vmem:[#allocation34_spill] sm:$0xff] %v11467_v19  ;;  %v11473_v58 = vadd.f32 %v17204_v34, %v2249_v42  ;;  %v2251_v8 = vpop.f32.mrb[115].mxu0  ;;  %v2875_v40 = vpop.f32.mrb[130].mxu1  ;;  %v17209_v19 = vld [vmem:[#allocation50_spill] sm:$0xff] }
 0x205   : > { %v11476_v41 = vadd.f32 %v2875_v40, %v11281_v43  ;;  %v2877_v27 = vpop.f32.mrb[131].mxu1  ;;  %v17211_v43 = vld [vmem:[#allocation104_spill] sm:$0xff] }
 0x206   : > { %17205 = vst [vmem:[#allocation35_spill] sm:$0xff] %v11473_v58  ;;  %9706 = vmatmul.mubr.bf16.gmra.mrb[220].mxu0 %v17206_v23 }
 0x207   : > { %9709 = vmatprep.mubr.bf16.mxu0 %v17207_v53 }
 0x208   : > { %3698 = vmatmul.mubr.bf16.gmra.mrb[236].mxu1 %v17208_v7 }
 0x209   : > { %v2254_v35 = vpop.f32.mrb[116].mxu0  ;;  %3705 = vmatprep.mubr.bf16.mxu1 %v17209_v19  ;;  %v17212_v19 = vld [vmem:[#allocation51_spill] sm:$0xff] }
 0x20a   : > { %v11483_v55 = vadd.f32 %v17210_v20, %v2254_v35  ;;  %v2256_v42 = vpop.f32.mrb[117].mxu0  ;;  %v2880_v34 = vpop.f32.mrb[132].mxu1  ;;  %v17213_v20 = vld [vmem:[#allocation52_spill] sm:$0xff] }
 0x20b   : > { %v2257_v5 = vpop.f32.mrb[118].mxu0  ;;  %v11486_v8 = vadd.f32 %v2880_v34, %v11291_v15  ;;  %v2882_v40 = vpop.f32.mrb[133].mxu1  ;;  %v17214_v15 = vld [vmem:[#allocation107_spill] sm:$0xff] }
 0x20c   : > { %v11489_v27 = vadd.f32 %v17211_v43, %v2257_v5  ;;  %v2259_v23 = vpop.f32.mrb[119].mxu0  ;;  %v2883_v53 = vpop.f32.mrb[134].mxu1 }
 0x20d   : > { %v11492_v7 = vadd.f32 %v2883_v53, %v11297_v4  ;;  %v2885_v58 = vpop.f32.mrb[135].mxu1  ;;  %v17215_v4 = vld [vmem:[#allocation109_spill] sm:$0xff] }
 0x20e   : > { %9710 = vmatmul.mubr.bf16.gmra.mrb[224].mxu0 %v17140_v11 }
 0x20f   : > { %9713 = vmatprep.mubr.bf16.mxu0 %v17141_v50 }
 0x210   : > { %3706 = vmatmul.mubr.bf16.gmra.mrb[240].mxu1 %v17212_v19 }
 0x211   : > { %v2262_v35 = vpop.f32.mrb[120].mxu0  ;;  %3713 = vmatprep.mubr.bf16.mxu1 %v17213_v20 }
 0x212   : > { %v11499_v42 = vadd.f32 %v17214_v15, %v2262_v35  ;;  %v2264_v34 = vpop.f32.mrb[121].mxu0  ;;  %v2888_v5 = vpop.f32.mrb[136].mxu1  ;;  %v17216_v35 = vld [vmem:[#allocation53_spill] sm:$0xff]  ;;  %v17217_v15 = vld [vmem:[#allocation54_spill] sm:$0xff] }
 0x213   : > { %v2265_v43 = vpop.f32.mrb[122].mxu0  ;;  %v11502_v40 = vadd.f32 %v2888_v5, %v11307_v63  ;;  %v2890_v11 = vpop.f32.mrb[137].mxu1  ;;  %v17218_v63 = vld [vmem:[#allocation106_spill] sm:$0xff] }
 0x214   : > { %v11505_v58 = vadd.f32 %v17215_v4, %v2265_v43  ;;  %v2267_v23 = vpop.f32.mrb[123].mxu0  ;;  %v2891_v50 = vpop.f32.mrb[138].mxu1 }
 0x215   : > { %v11508_v53 = vadd.f32 %v2891_v50, %v11313_v24  ;;  %v2893_v19 = vpop.f32.mrb[139].mxu1  ;;  %v17219_v24 = vld [vmem:[#allocation108_spill] sm:$0xff] }
 0x216   : > { %9714 = vmatmul.mubr.bf16.gmra.mrb[228].mxu0 %v17146_v46 }
 0x217   : > { %9717 = vmatprep.mubr.bf16.mxu0 %v17147_v30 }
 0x218   : > { %3714 = vmatmul.mubr.bf16.gmra.mrb[244].mxu1 %v17216_v35 }
 0x219   : > { %v2270_v20 = vpop.f32.mrb[124].mxu0  ;;  %3721 = vmatprep.mubr.bf16.mxu1 %v17217_v15 }
 0x21a   : > { %v11515_v34 = vadd.f32 %v17218_v63, %v2270_v20  ;;  %v2272_v5 = vpop.f32.mrb[125].mxu0  ;;  %v2896_v43 = vpop.f32.mrb[140].mxu1  ;;  %v17221_v20 = vld [vmem:[#allocation55_spill] sm:$0xff]  ;;  %v17222_v63 = vld [vmem:[#allocation56_spill] sm:$0xff] }
 0x21b   : > { %v2273_v4 = vpop.f32.mrb[126].mxu0  ;;  %v11518_v11 = vadd.f32 %v2896_v43, %v11323_v12  ;;  %v2898_v46 = vpop.f32.mrb[141].mxu1  ;;  %v17223_v12 = vld [vmem:[#allocation81_spill] sm:$0xff] }
 0x21c   : > { %v11521_v23 = vadd.f32 %v17219_v24, %v2273_v4  ;;  %v2275_v50 = vpop.f32.mrb[127].mxu0  ;;  %v2899_v30 = vpop.f32.mrb[142].mxu1  ;;  %v17224_v24 = vld [vmem:[#allocation77_spill] sm:$0xff] }
 0x21d   : > { %v11524_v19 = vadd.f32 %v2899_v30, %v11329_v14  ;;  %v2901_v35 = vpop.f32.mrb[143].mxu1  ;;  %v17225_v30 = vld [vmem:[#allocation84_spill] sm:$0xff] }
 0x21e   : > { %17220 = vst [vmem:[#allocation12_spill] sm:$0xff] %v11521_v23  ;;  %9718 = vmatmul.mubr.bf16.gmra.mrb[232].mxu0 %v17152_v2  ;;  %v17227_v23 = vld [vmem:[#allocation80_spill] sm:$0xff] }
 0x21f   : > { %9721 = vmatprep.mubr.bf16.mxu0 %v17153_v61 }
 0x220   : > { %3722 = vmatmul.mubr.bf16.gmra.mrb[248].mxu1 %v17221_v20 }
 0x221   : > { %v9599_v15 = vpop.f32.mrb[128].mxu0  ;;  %3729 = vmatprep.mubr.bf16.mxu1 %v17222_v63 }
 0x222   : > { %v11531_v5 = vadd.f32 %v9599_v15, %v17223_v12  ;;  %v3033_v43 = vpop.f32.mrb[129].mxu0 }
 0x223   : > { %v2904_v4 = vpop.f32.mrb[144].mxu1  ;;  %v11534_v46 = vadd.f32 %v3033_v43, %v17224_v24  ;;  %v9600_v14 = vpop.f32.mrb[130].mxu0  ;;  %v17229_v43 = vld [vmem:[#allocation57_spill] sm:$0xff] }
 0x224   : > { %v11537_v50 = vadd.f32 %v2904_v4, %v11339_v33  ;;  %v2906_v2 = vpop.f32.mrb[145].mxu1  ;;  %v11540_v61 = vadd.f32 %v9600_v14, %v17225_v30  ;;  %v3036_v35 = vpop.f32.mrb[131].mxu0  ;;  %v17230_v4 = vld [vmem:[#allocation58_spill] sm:$0xff]  ;;  %v17231_v24 = vld [vmem:[#allocation89_spill] sm:$0xff] }
 0x225   : > { %v2907_v20 = vpop.f32.mrb[146].mxu1  ;;  %v11543_v63 = vadd.f32 %v3036_v35, %v17227_v23  ;;  %v17232_v23 = vld [vmem:[#allocation85_spill] sm:$0xff] }
 0x226   : > { %17226 = vst [vmem:[#allocation13_spill] sm:$0xff] %v11540_v61  ;;  %v11546_v15 = vadd.f32 %v2907_v20, %v11345_v0  ;;  %v2909_v12 = vpop.f32.mrb[147].mxu1  ;;  %9722 = vmatmul.mubr.bf16.gmra.mrb[236].mxu0 %v17158_v18  ;;  %v17235_v61 = vld [vmem:[#allocation88_spill] sm:$0xff] }
 0x227   : > { %17228 = vst [vmem:[#allocation38_spill] sm:$0xff] %v11543_v63  ;;  %9725 = vmatprep.mubr.bf16.mxu0 %v17159_v32  ;;  %v17233_v12 = vld [vmem:[#allocation94_spill] sm:$0xff] }
 0x228   : > { %3730 = vmatmul.mubr.bf16.gmra.mrb[252].mxu1 %v17229_v43 }
 0x229   : > { %v9603_v33 = vpop.f32.mrb[132].mxu0  ;;  %3737 = vmatprep.mubr.bf16.mxu1 %v17230_v4 }
 0x22a   : > { %v11553_v14 = vadd.f32 %v9603_v33, %v17231_v24  ;;  %v3049_v2 = vpop.f32.mrb[133].mxu0 }
 0x22b   : > { %v2912_v30 = vpop.f32.mrb[148].mxu1  ;;  %v11556_v35 = vadd.f32 %v3049_v2, %v17232_v23  ;;  %v9604_v0 = vpop.f32.mrb[134].mxu0  ;;  %v17237_v2 = vld [vmem:[#allocation59_spill] sm:$0xff] }
 0x22c   : > { %v11559_v20 = vadd.f32 %v2912_v30, %v11355_v17  ;;  %v2914_v18 = vpop.f32.mrb[149].mxu1  ;;  %v11562_v32 = vadd.f32 %v9604_v0, %v17233_v12  ;;  %v3052_v43 = vpop.f32.mrb[135].mxu0  ;;  %v17238_v30 = vld [vmem:[#allocation60_spill] sm:$0xff]  ;;  %v17239_v23 = vld [vmem:[#allocation23_spill] sm:$0xff]  ;;  %v17241_v12 = vld [vmem:[#allocation93_spill] sm:$0xff] }
 0x22d   : > { %v2915_v63 = vpop.f32.mrb[150].mxu1  ;;  %v11565_v4 = vadd.f32 %v3052_v43, %v17235_v61  ;;  %v17243_v43 = vld [vmem:[#allocation26_spill] sm:$0xff] }
 0x22e   : > { %17234 = vst [vmem:[#allocation39_spill] sm:$0xff] %v11562_v32  ;;  %v11568_v33 = vadd.f32 %v2915_v63, %v11361_v45  ;;  %v2917_v24 = vpop.f32.mrb[151].mxu1  ;;  %9726 = vmatmul.mubr.bf16.gmra.mrb[240].mxu0 %v17163_v52 }
 0x22f   : > { %17236 = vst [vmem:[#allocation16_spill] sm:$0xff] %v11565_v4  ;;  %9729 = vmatprep.mubr.bf16.mxu0 %v17164_v6  ;;  %v17245_v4 = vld [vmem:[#allocation22_spill] sm:$0xff] }
 0x230   : > { %3738 = vmatmul.mubr.bf16.gmra.mrb[0].mxu1 %v17237_v2 }
 0x231   : > { %v9607_v17 = vpop.f32.mrb[136].mxu0  ;;  %3745 = vmatprep.mubr.bf16.mxu1 %v17238_v30 }
 0x232   : > { %v11575_v0 = vadd.f32 %v9607_v17, %v17239_v23  ;;  %v3065_v18 = vpop.f32.mrb[137].mxu0 }
 0x233   : > { %v2920_v61 = vpop.f32.mrb[152].mxu1  ;;  %v11578_v45 = vadd.f32 %v3065_v18, %v17241_v12  ;;  %v9608_v63 = vpop.f32.mrb[138].mxu0  ;;  %v17247_v18 = vld [vmem:[#allocation43_spill] sm:$0xff]  ;;  %v17248_v12 = vld [vmem:[#allocation61_spill] sm:$0xff] }
 0x234   : > { %17240 = vst [vmem:[#allocation17_spill] sm:$0xff] %v11575_v0  ;;  %v11581_v52 = vadd.f32 %v2920_v61, %v11371_v51  ;;  %v2922_v6 = vpop.f32.mrb[153].mxu1  ;;  %v11584_v24 = vadd.f32 %v9608_v63, %v17243_v43  ;;  %v3068_v2 = vpop.f32.mrb[139].mxu0  ;;  %v1569_v51 = vld [vmem:[%s10217_s8 + $0x241] sm:$0xff]  ;;  %v1570_v61 = vld [vmem:[%s10217_s8 + $0x249] sm:$0xff] }
 0x235   : > { %17242 = vst [vmem:[#allocation42_spill] sm:$0xff] %v11578_v45  ;;  %v2923_v30 = vpop.f32.mrb[154].mxu1  ;;  %v11587_v17 = vadd.f32 %v3068_v2, %v17245_v4  ;;  %v17249_v63 = vld [vmem:[#allocation62_spill] sm:$0xff]  ;;  %v17251_v2 = vld [vmem:[#allocation27_spill] sm:$0xff] }
 0x236   : > { %17244 = vst [vmem:[#allocation20_spill] sm:$0xff] %v11584_v24  ;;  %v11590_v23 = vadd.f32 %v2923_v30, %v11377_v25  ;;  %v2925_v0 = vpop.f32.mrb[155].mxu1  ;;  %9730 = vmatmul.mubr.bf16.gmra.mrb[244].mxu0 %v17167_v31  ;;  %v1607_v30 = vpack.c.bf16 %v1570_v61, %v1569_v51  ;;  %v1571_v51 = vld [vmem:[%s10217_s8 + $0x251] sm:$0xff]  ;;  %v1572_v61 = vld [vmem:[%s10217_s8 + $0x259] sm:$0xff] }
 0x237   : > { %17246 = vst [vmem:[#allocation21_spill] sm:$0xff] %v11587_v17  ;;  %9733 = vmatprep.mubr.bf16.mxu0 %v17247_v18  ;;  %v17252_v17 = vld [vmem:[#allocation30_spill] sm:$0xff] }
 0x238   : > { %3746 = vmatmul.mubr.bf16.gmra.mrb[4].mxu1 %v17248_v12 }
 0x239   : > { %v9611_v6 = vpop.f32.mrb[140].mxu0  ;;  %3753 = vmatprep.mubr.bf16.mxu1 %v17249_v63 }
 0x23a   : > { %v11599_v43 = vadd.f32 %v9611_v6, %v11326_v56  ;;  %v3081_v4 = vpop.f32.mrb[141].mxu0  ;;  %v17253_v56 = vld [vmem:[#allocation5_spill] sm:$0xff] }
 0x23b   : > { %v2928_v25 = vpop.f32.mrb[156].mxu1  ;;  %v11602_v0 = vadd.f32 %v3081_v4, %v17251_v2  ;;  %v9612_v31 = vpop.f32.mrb[142].mxu0  ;;  %v17254_v4 = vld [vmem:[#allocation46_spill] sm:$0xff]  ;;  %v17256_v2 = vld [vmem:[#allocation64_spill] sm:$0xff] }
 0x23c   : > { %17250 = vst [vmem:[#allocation24_spill] sm:$0xff] %v11599_v43  ;;  %v11605_v18 = vadd.f32 %v2928_v25, %v11387_v22  ;;  %v2930_v12 = vpop.f32.mrb[157].mxu1  ;;  %v11608_v24 = vadd.f32 %v9612_v31, %v17252_v17  ;;  %v3084_v63 = vpop.f32.mrb[143].mxu0  ;;  %v17255_v22 = vld [vmem:[#allocation63_spill] sm:$0xff] }
 0x23d   : > { %v2931_v45 = vpop.f32.mrb[158].mxu1  ;;  %v11611_v6 = vadd.f32 %v3084_v63, %v17253_v56  ;;  %v1608_v12 = vpack.c.bf16 %v1572_v61, %v1571_v51 }
 0x23e   : > { %v11614_v43 = vadd.f32 %v2931_v45, %v11393_v44  ;;  %v2933_v32 = vpop.f32.mrb[159].mxu1  ;;  %9734 = vmatmul.mubr.bf16.gmra.mrb[248].mxu0 %v17254_v4 }
 0x23f   : > { %9737 = vmatprep.mubr.bf16.mxu0 %v1607_v30 }
 0x240   : > { %3754 = vmatmul.mubr.bf16.gmra.mrb[8].mxu1 %v17255_v22 }
 0x241   : > { %v9615_v25 = vpop.f32.mrb[144].mxu0  ;;  %3761 = vmatprep.mubr.bf16.mxu1 %v17256_v2 }
 0x242   : > { %v11622_v17 = vadd.f32 %v9615_v25, %v11358_v37  ;;  %v3097_v31 = vpop.f32.mrb[145].mxu0  ;;  %v17258_v25 = vld [vmem:[#allocation66_spill] sm:$0xff] }
 0x243   : > { %v2936_v63 = vpop.f32.mrb[160].mxu1  ;;  %v11625_v44 = vadd.f32 %v3097_v31, %v11342_v54  ;;  %v9616_v32 = vpop.f32.mrb[146].mxu0  ;;  %v17257_v54 = vld [vmem:[#allocation65_spill] sm:$0xff] }
 0x244   : > { %v11628_v45 = vadd.f32 %v2936_v63, %v11403_v62  ;;  %v2938_v30 = vpop.f32.mrb[161].mxu1  ;;  %v11631_v56 = vadd.f32 %v9616_v32, %v11364_v28  ;;  %v3100_v4 = vpop.f32.mrb[147].mxu0 }
 0x245   : > { %v2939_v22 = vpop.f32.mrb[162].mxu1  ;;  %v11634_v2 = vadd.f32 %v3100_v4, %v11348_v60 }
 0x246   : > { %v11637_v37 = vadd.f32 %v2939_v22, %v11409_v1  ;;  %v2941_v51 = vpop.f32.mrb[163].mxu1  ;;  %9738 = vmatmul.mubr.bf16.gmra.mrb[252].mxu0 %v1608_v12 }
 0x248   : > { %3762 = vmatmul.mubr.bf16.gmra.mrb[12].mxu1 %v17257_v54  ;;  %v17259_v54 = vld [vmem:[#allocation67_spill] sm:$0xff] }
 0x249   : > { %v9619_v61 = vpop.f32.mrb[148].mxu0  ;;  %3769 = vmatprep.mubr.bf16.mxu1 %v17258_v25 }
 0x24a   : > { %v11642_v62 = vadd.f32 %v9619_v61, %v11390_v21  ;;  %v3113_v28 = vpop.f32.mrb[149].mxu0  ;;  %v17260_v61 = vld [vmem:[#allocation68_spill] sm:$0xff] }
 0x24b   : > { %v2944_v31 = vpop.f32.mrb[164].mxu1  ;;  %v11645_v63 = vadd.f32 %v3113_v28, %v11374_v26  ;;  %v9620_v60 = vpop.f32.mrb[150].mxu0 }
 0x24c   : > { %v11648_v32 = vadd.f32 %v2944_v31, %v11419_v49  ;;  %v2946_v1 = vpop.f32.mrb[165].mxu1  ;;  %v11651_v12 = vadd.f32 %v9620_v60, %v11396_v57  ;;  %v3116_v30 = vpop.f32.mrb[151].mxu0 }
 0x24d   : > { %v2947_v4 = vpop.f32.mrb[166].mxu1  ;;  %v11654_v22 = vadd.f32 %v3116_v30, %v11380_v3 }
 0x24e   : > { %v11657_v21 = vadd.f32 %v2947_v4, %v11425_v39  ;;  %v2949_v51 = vpop.f32.mrb[167].mxu1 }
 0x250   : > { %3770 = vmatmul.mubr.bf16.gmra.mrb[16].mxu1 %v17259_v54  ;;  %v17261_v54 = vld [vmem:[#allocation69_spill] sm:$0xff] }
 0x251   : > { %v9623_v26 = vpop.f32.mrb[152].mxu0  ;;  %3777 = vmatprep.mubr.bf16.mxu1 %v17260_v61 }
 0x252   : > { %v11662_v49 = vadd.f32 %v9623_v26, %v11422_v36  ;;  %v3129_v25 = vpop.f32.mrb[153].mxu0  ;;  %v17262_v26 = vld [vmem:[#allocation70_spill] sm:$0xff] }
 0x253   : > { %v2952_v57 = vpop.f32.mrb[168].mxu1  ;;  %v11665_v28 = vadd.f32 %v3129_v25, %v11406_v47  ;;  %v9624_v31 = vpop.f32.mrb[154].mxu0 }
 0x254   : > { %v11668_v3 = vadd.f32 %v2952_v57, %v11435_v48  ;;  %v2954_v39 = vpop.f32.mrb[169].mxu1  ;;  %v11671_v60 = vadd.f32 %v9624_v31, %v11428_v29  ;;  %v3132_v1 = vpop.f32.mrb[155].mxu0 }
 0x255   : > { %v2955_v30 = vpop.f32.mrb[170].mxu1  ;;  %v11674_v4 = vadd.f32 %v3132_v1, %v11412_v13  ;;  %v17264_v13 = vld [vmem:[#allocation8_spill] sm:$0xff] }
 0x256   : > { %v11677_v36 = vadd.f32 %v2955_v30, %v11441_v16  ;;  %v2957_v51 = vpop.f32.mrb[171].mxu1 }
 0x257   : > { %v17266_v51 = vld [vmem:[#allocation31_spill] sm:$0xff] }
 0x258   : > { %3778 = vmatmul.mubr.bf16.gmra.mrb[20].mxu1 %v17261_v54 }
 0x259   : > { %v9627_v47 = vpop.f32.mrb[156].mxu0  ;;  %3785 = vmatprep.mubr.bf16.mxu1 %v17262_v26 }
 0x25a   : > { %v11682_v48 = vadd.f32 %v9627_v47, %v11454_v10  ;;  %v3145_v61 = vpop.f32.mrb[157].mxu0  ;;  %v17267_v10 = vld [vmem:[#allocation9_spill] sm:$0xff] }
 0x25b   : > { %v2960_v29 = vpop.f32.mrb[172].mxu1  ;;  %v11685_v25 = vadd.f32 %v3145_v61, %v11438_v38  ;;  %v9628_v57 = vpop.f32.mrb[158].mxu0  ;;  %v17269_v61 = vld [vmem:[#allocation72_spill] sm:$0xff] }
 0x25c   : > { %17263 = vst [vmem:[#allocation25_spill] sm:$0xff] %v11682_v48  ;;  %v11688_v31 = vadd.f32 %v2960_v29, %v17264_v13  ;;  %v2962_v16 = vpop.f32.mrb[173].mxu1  ;;  %v11691_v39 = vadd.f32 %v9628_v57, %v11460_v9  ;;  %v3148_v1 = vpop.f32.mrb[159].mxu0  ;;  %v17268_v48 = vld [vmem:[#allocation71_spill] sm:$0xff] }
 0x25d   : > { %v2963_v30 = vpop.f32.mrb[174].mxu1  ;;  %v11694_v54 = vadd.f32 %v3148_v1, %v17266_v51  ;;  %v17271_v1 = vld [vmem:[#allocation34_spill] sm:$0xff] }
 0x25e   : > { %17265 = vst [vmem:[#allocation28_spill] sm:$0xff] %v11691_v39  ;;  %v11697_v47 = vadd.f32 %v2963_v30, %v17267_v10  ;;  %v2965_v26 = vpop.f32.mrb[175].mxu1  ;;  %v17273_v39 = vld [vmem:[#allocation73_spill] sm:$0xff] }
 0x260   : > { %3786 = vmatmul.mubr.bf16.gmra.mrb[24].mxu1 %v17268_v48 }
 0x261   : > { %v9631_v38 = vpop.f32.mrb[160].mxu0  ;;  %3793 = vmatprep.mubr.bf16.mxu1 %v17269_v61 }
 0x262   : > { %v11702_v29 = vadd.f32 %v9631_v38, %v11486_v8  ;;  %v3161_v13 = vpop.f32.mrb[161].mxu0  ;;  %v17272_v8 = vld [vmem:[#allocation35_spill] sm:$0xff] }
 0x263   : > { %v2968_v9 = vpop.f32.mrb[176].mxu1  ;;  %v11705_v57 = vadd.f32 %v3161_v13, %v11470_v59  ;;  %v9632_v16 = vpop.f32.mrb[162].mxu0  ;;  %v17274_v13 = vld [vmem:[#allocation74_spill] sm:$0xff] }
 0x264   : > { %17270 = vst [vmem:[#allocation29_spill] sm:$0xff] %v11702_v29  ;;  %v11708_v51 = vadd.f32 %v2968_v9, %v17271_v1  ;;  %v2970_v30 = vpop.f32.mrb[177].mxu1  ;;  %v11711_v10 = vadd.f32 %v9632_v16, %v11492_v7  ;;  %v3164_v48 = vpop.f32.mrb[163].mxu0 }
 0x265   : > { %v2971_v26 = vpop.f32.mrb[178].mxu1  ;;  %v11714_v61 = vadd.f32 %v3164_v48, %v11476_v41 }
 0x266   : > { %v11717_v38 = vadd.f32 %v2971_v26, %v17272_v8  ;;  %v2973_v29 = vpop.f32.mrb[179].mxu1 }
 0x268   : > { %3794 = vmatmul.mubr.bf16.gmra.mrb[28].mxu1 %v17273_v39 }
 0x269   : > { %v9635_v59 = vpop.f32.mrb[164].mxu0  ;;  %3801 = vmatprep.mubr.bf16.mxu1 %v17274_v13  ;;  %v17275_v13 = vld [vmem:[#allocation75_spill] sm:$0xff] }
 0x26a   : > { %v11722_v9 = vadd.f32 %v9635_v59, %v11518_v11  ;;  %v3177_v1 = vpop.f32.mrb[165].mxu0 }
 0x26b   : > { %v2976_v7 = vpop.f32.mrb[180].mxu1  ;;  %v11725_v16 = vadd.f32 %v3177_v1, %v11502_v40  ;;  %v9636_v30 = vpop.f32.mrb[166].mxu0  ;;  %v17276_v1 = vld [vmem:[#allocation76_spill] sm:$0xff] }
 0x26c   : > { %v11728_v41 = vadd.f32 %v2976_v7, %v11483_v55  ;;  %v2978_v48 = vpop.f32.mrb[181].mxu1  ;;  %v11731_v29 = vadd.f32 %v9636_v30, %v11524_v19  ;;  %v3180_v39 = vpop.f32.mrb[167].mxu0 }
 0x26d   : > { %v2979_v26 = vpop.f32.mrb[182].mxu1  ;;  %v11734_v8 = vadd.f32 %v3180_v39, %v11508_v53 }
 0x26e   : > { %v11737_v11 = vadd.f32 %v2979_v26, %v11489_v27  ;;  %v2981_v59 = vpop.f32.mrb[183].mxu1 }
 0x270   : > { %3802 = vmatmul.mubr.bf16.gmra.mrb[32].mxu1 %v17275_v13 }
 0x271   : > { %v9639_v40 = vpop.f32.mrb[168].mxu0  ;;  %3809 = vmatprep.mubr.bf16.mxu1 %v17276_v1  ;;  %v17278_v1 = vld [vmem:[#allocation78_spill] sm:$0xff] }
 0x272   : > { %v11742_v55 = vadd.f32 %v9639_v40, %v11559_v20  ;;  %v3193_v7 = vpop.f32.mrb[169].mxu0 }
 0x273   : > { %v2984_v19 = vpop.f32.mrb[184].mxu1  ;;  %v11745_v30 = vadd.f32 %v3193_v7, %v11537_v50  ;;  %v9640_v48 = vpop.f32.mrb[170].mxu0  ;;  %v17279_v7 = vld [vmem:[#allocation79_spill] sm:$0xff] }
 0x274   : > { %v11748_v53 = vadd.f32 %v2984_v19, %v11499_v42  ;;  %v2986_v27 = vpop.f32.mrb[185].mxu1  ;;  %v11751_v39 = vadd.f32 %v9640_v48, %v11568_v33  ;;  %v3196_v26 = vpop.f32.mrb[171].mxu0 }
 0x275   : > { %v2987_v59 = vpop.f32.mrb[186].mxu1  ;;  %v11754_v13 = vadd.f32 %v3196_v26, %v11546_v15 }
 0x276   : > { %17277 = vst [vmem:[#allocation32_spill] sm:$0xff] %v11751_v39  ;;  %v11757_v20 = vadd.f32 %v2987_v59, %v11505_v58  ;;  %v2989_v40 = vpop.f32.mrb[187].mxu1 }
 0x278   : > { %3810 = vmatmul.mubr.bf16.gmra.mrb[36].mxu1 %v17278_v1 }
 0x279   : > { %v9643_v50 = vpop.f32.mrb[172].mxu0  ;;  %3817 = vmatprep.mubr.bf16.mxu1 %v17279_v7  ;;  %v17281_v7 = vld [vmem:[#allocation12_spill] sm:$0xff] }
 0x27a   : > { %v11762_v42 = vadd.f32 %v9643_v50, %v11605_v18  ;;  %v3209_v19 = vpop.f32.mrb[173].mxu0 }
 0x27b   : > { %v2992_v33 = vpop.f32.mrb[188].mxu1  ;;  %v11765_v48 = vadd.f32 %v3209_v19, %v11581_v52  ;;  %v9644_v27 = vpop.f32.mrb[174].mxu0  ;;  %v17283_v52 = vld [vmem:[#allocation83_spill] sm:$0xff] }
 0x27c   : > { %17280 = vst [vmem:[#allocation33_spill] sm:$0xff] %v11762_v42  ;;  %v2993_v15 = vadd.f32 %v2992_v33, %v11515_v34  ;;  %v2994_v26 = vpop.f32.mrb[189].mxu1  ;;  %v11769_v58 = vadd.f32 %v9644_v27, %v11614_v43  ;;  %v3212_v59 = vpop.f32.mrb[175].mxu0  ;;  %v17282_v42 = vld [vmem:[#allocation82_spill] sm:$0xff] }
 0x27d   : > { %v2995_v40 = vpop.f32.mrb[190].mxu1  ;;  %v11772_v1 = vadd.f32 %v3212_v59, %v11590_v23 }
 0x27e   : > { %v2996_v18 = vadd.f32 %v2995_v40, %v17281_v7  ;;  %v2997_v50 = vpop.f32.mrb[191].mxu1 }
 0x27f   : > { %v17288_v50 = vld [vmem:[#allocation87_spill] sm:$0xff] }
 0x280   : > { %3818 = vmatmul.mubr.bf16.gmra.mrb[40].mxu1 %v17282_v42 }
 0x281   : > { %v9647_v39 = vpop.f32.mrb[176].mxu0  ;;  %3825 = vmatprep.mubr.bf16.mxu1 %v17283_v52 }
 0x282   : > { %v11778_v19 = vadd.f32 %v9647_v39, %v11648_v32  ;;  %v3225_v34 = vpop.f32.mrb[177].mxu0  ;;  %v17287_v32 = vld [vmem:[#allocation86_spill] sm:$0xff] }
 0x283   : > { %v11781_v43 = vadd.f32 %v3225_v34, %v11628_v45  ;;  %v11783_v33 = vpop.f32.mrb[192].mxu1  ;;  %v9648_v27 = vpop.f32.mrb[178].mxu0 }
 0x284   : > { %17284 = vst [vmem:[#allocation4_spill] sm:$0xff] %v11778_v19  ;;  %v11786_v23 = vadd.f32 %v9648_v27, %v11657_v21  ;;  %v3613_v26 = vpop.f32.mrb[193].mxu1  ;;  %v3228_v59 = vpop.f32.mrb[179].mxu0  ;;  %v1427_v19 = vld [vmem:[%s10217_s8 + $0x250] sm:$0xff] }
 0x285   : > { %v11789_v42 = vadd.f32 %v3228_v59, %v11637_v37  ;;  %v11791_v40 = vpop.f32.mrb[194].mxu1 }
 0x286   : > { %17285 = vst [vmem:[#allocation36_spill] sm:$0xff] %v11786_v23  ;;  %v3616_v7 = vpop.f32.mrb[195].mxu1 }
 0x287   : > { %17286 = vst [vmem:[#allocation37_spill] sm:$0xff] %v11789_v42 }
 0x288   : > { %3826 = vmatmul.mubr.bf16.gmra.mrb[44].mxu1 %v17287_v32 }
 0x289   : > { %v9651_v39 = vpop.f32.mrb[180].mxu0  ;;  %3833 = vmatprep.mubr.bf16.mxu1 %v17288_v50 }
 0x28a   : > { %v11796_v45 = vadd.f32 %v9651_v39, %v11688_v31  ;;  %v3241_v52 = vpop.f32.mrb[181].mxu0  ;;  %v17293_v31 = vld [vmem:[#allocation90_spill] sm:$0xff] }
 0x28b   : > { %v11799_v21 = vadd.f32 %v3241_v52, %v11668_v3  ;;  %v3619_v34 = vpop.f32.mrb[196].mxu1  ;;  %v9652_v37 = vpop.f32.mrb[182].mxu0 }
 0x28c   : > { %17289 = vst [vmem:[#allocation96_spill] sm:$0xff] %v11796_v45  ;;  %v11802_v27 = vadd.f32 %v9652_v37, %v11697_v47  ;;  %v3621_v26 = vpop.f32.mrb[197].mxu1  ;;  %v3244_v59 = vpop.f32.mrb[183].mxu0  ;;  %v17294_v45 = vld [vmem:[#allocation92_spill] sm:$0xff]  ;;  %v1426_v47 = vld [vmem:[%s10217_s8 + $0x248] sm:$0xff] }
 0x28d   : > { %17290 = vst [vmem:[#allocation97_spill] sm:$0xff] %v11799_v21  ;;  %v11805_v7 = vadd.f32 %v3244_v59, %v11677_v36  ;;  %v3622_v32 = vpop.f32.mrb[198].mxu1  ;;  %v1425_v21 = vld [vmem:[%s10217_s8 + $0x240] sm:$0xff] }
 0x28e   : > { %17291 = vst [vmem:[#allocation6_spill] sm:$0xff] %v11802_v27  ;;  %v3624_v50 = vpop.f32.mrb[199].mxu1  ;;  %v17299_v27 = vld [vmem:[#allocation95_spill] sm:$0xff] }
 0x28f   : > { %17292 = vst [vmem:[#allocation7_spill] sm:$0xff] %v11805_v7 }
 0x290   : > { %3834 = vmatmul.mubr.bf16.gmra.mrb[48].mxu1 %v17293_v31 }
 0x291   : > { %v9655_v39 = vpop.f32.mrb[184].mxu0  ;;  %3841 = vmatprep.mubr.bf16.mxu1 %v17294_v45 }
 0x292   : > { %v11810_v3 = vadd.f32 %v9655_v39, %v11728_v41  ;;  %v3257_v52 = vpop.f32.mrb[185].mxu0  ;;  %v1463_v39 = vpack.c.bf16 %v1426_v47, %v1425_v21 }
 0x293   : > { %v11815_v37 = vadd.f32 %v3257_v52, %v11708_v51  ;;  %v3627_v36 = vpop.f32.mrb[200].mxu1  ;;  %v9656_v26 = vpop.f32.mrb[186].mxu0  ;;  %v1281_v51 = vld [vmem:[%s10217_s8 + $0x23f] sm:$0xff]  ;;  %v1282_v52 = vld [vmem:[%s10217_s8 + $0x247] sm:$0xff] }
 0x294   : > { %17295 = vst [vmem:[#allocation40_spill] sm:$0xff] %v11810_v3  ;;  %v11818_v59 = vadd.f32 %v9656_v26, %v11737_v11  ;;  %v3629_v50 = vpop.f32.mrb[201].mxu1  ;;  %v3260_v45 = vpop.f32.mrb[187].mxu0  ;;  %v1428_v11 = vld [vmem:[%s10217_s8 + $0x258] sm:$0xff]  ;;  %v1319_v47 = vpack.c.bf16 %v1282_v52, %v1281_v51 }
 0x295   : > { %17296 = vst [vmem:[#allocation41_spill] sm:$0xff] %v11815_v37  ;;  %v11821_v41 = vadd.f32 %v3260_v45, %v11717_v38  ;;  %v3630_v31 = vpop.f32.mrb[202].mxu1 }
 0x296   : > { %17297 = vst [vmem:[#allocation99_spill] sm:$0xff] %v11818_v59  ;;  %v3632_v3 = vpop.f32.mrb[203].mxu1  ;;  %v1283_v59 = vld [vmem:[%s10217_s8 + $0x24f] sm:$0xff] }
 0x297   : > { %17298 = vst [vmem:[#allocation101_spill] sm:$0xff] %v11821_v41  ;;  %v1284_v41 = vld [vmem:[%s10217_s8 + $0x257] sm:$0xff] }
 0x298   : > { %3842 = vmatmul.mubr.bf16.gmra.mrb[52].mxu1 %v17299_v27 }
 0x299   : > { %v9659_v7 = vpop.f32.mrb[188].mxu0  ;;  %3849 = vmatprep.mubr.bf16.mxu1 %v1463_v39 }
 0x29a   : > { %v11826_v37 = vadd.f32 %v9659_v7, %v2993_v15  ;;  %v3273_v23 = vpop.f32.mrb[189].mxu0  ;;  %v1464_v7 = vpack.c.bf16 %v1428_v11, %v1427_v19 }
 0x29b   : > { %v11831_v26 = vadd.f32 %v3273_v23, %v11748_v53  ;;  %v3635_v38 = vpop.f32.mrb[204].mxu1  ;;  %v9660_v50 = vpop.f32.mrb[190].mxu0 }
 0x29c   : > { %17300 = vst [vmem:[#allocation110_spill] sm:$0xff] %v11826_v37  ;;  %v11833_v21 = vadd.f32 %v9660_v50, %v2996_v18  ;;  %v3637_v3 = vpop.f32.mrb[205].mxu1  ;;  %v3276_v27 = vpop.f32.mrb[191].mxu0 }
 0x29d   : > { %17301 = vst [vmem:[#allocation10_spill] sm:$0xff] %v11831_v26  ;;  %v11836_v45 = vadd.f32 %v3276_v27, %v11757_v20  ;;  %v3638_v15 = vpop.f32.mrb[206].mxu1  ;;  %v1320_v27 = vpack.c.bf16 %v1284_v41, %v1283_v59 }
 0x29e   : > { %17302 = vst [vmem:[#allocation11_spill] sm:$0xff] %v11833_v21  ;;  %v3640_v39 = vpop.f32.mrb[207].mxu1 }
 0x29f   : > { %17303 = vst [vmem:[#allocation44_spill] sm:$0xff] %v11836_v45  ;;  %v17307_v39 = vld [vmem:[#allocation38_spill] sm:$0xff]  ;;  %v17319_v45 = vld [vmem:[#allocation20_spill] sm:$0xff] }
 0x2a0   : > { %3850 = vmatmul.mubr.bf16.gmra.mrb[56].mxu1 %v1319_v47 }
 0x2a1   : > { %v9679_v37 = vpop.f32.mrb[192].mxu0  ;;  %3857 = vmatprep.mubr.bf16.mxu1 %v1464_v7  ;;  %v17305_v7 = vld [vmem:[#allocation13_spill] sm:$0xff] }
 0x2a2   : > { %v3909_v53 = vadd.f32 %v9679_v37, %v3619_v34  ;;  %v3900_v23 = vpop.f32.mrb[193].mxu0 }
 0x2a3   : > { %v3643_v26 = vpop.f32.mrb[208].mxu1  ;;  %v3901_v18 = vadd.f32 %v3900_v23, %v11783_v33  ;;  %v9680_v50 = vpop.f32.mrb[194].mxu0 }
 0x2a4   : > { %v11842_v3 = vadd.f32 %v3909_v53, %v11531_v5  ;;  %v3645_v51 = vpop.f32.mrb[209].mxu1  ;;  %v3912_v20 = vadd.f32 %v9680_v50, %v3622_v32  ;;  %v3903_v52 = vpop.f32.mrb[195].mxu0 }
 0x2a5   : > { %v11845_v19 = vadd.f32 %v3901_v18, %v11534_v46  ;;  %v3646_v11 = vpop.f32.mrb[210].mxu1  ;;  %v3904_v47 = vadd.f32 %v3903_v52, %v11791_v40 }
 0x2a6   : > { %17304 = vst [vmem:[#allocation45_spill] sm:$0xff] %v11842_v3  ;;  %v11849_v34 = vadd.f32 %v3912_v20, %v17305_v7  ;;  %v3648_v37 = vpop.f32.mrb[211].mxu1  ;;  %v4221_v21 = vmul.f32 0.0, %v11842_v3 }
 0x2a7   : > { %v11852_v33 = vadd.f32 %v3904_v47, %v17307_v39  ;;  %v17311_v47 = vld [vmem:[#allocation39_spill] sm:$0xff] }
 0x2a8   : > { %17306 = vst [vmem:[#allocation98_spill] sm:$0xff] %v11849_v34  ;;  %3858 = vmatmul.mubr.bf16.gmra.mrb[60].mxu1 %v1320_v27 }
 0x2a9   : > { %17308 = vst [vmem:[#allocation91_spill] sm:$0xff] %v11852_v33  ;;  %v9683_v5 = vpop.f32.mrb[196].mxu0 }
 0x2aa   : > { %v3925_v53 = vadd.f32 %v9683_v5, %v3635_v38  ;;  %v3916_v23 = vpop.f32.mrb[197].mxu0  ;;  %v17313_v38 = vld [vmem:[#allocation16_spill] sm:$0xff] }
 0x2ab   : > { %v3651_v32 = vpop.f32.mrb[212].mxu1  ;;  %v3917_v50 = vadd.f32 %v3916_v23, %v3627_v36  ;;  %v9684_v59 = vpop.f32.mrb[198].mxu0  ;;  %v4353_v36 = vmul.f32 %v11852_v33, %v11852_v33 }
 0x2ac   : > { %v11855_v46 = vadd.f32 %v3925_v53, %v11553_v14  ;;  %v3653_v41 = vpop.f32.mrb[213].mxu1  ;;  %v3928_v18 = vadd.f32 %v9684_v59, %v3638_v15  ;;  %v3919_v40 = vpop.f32.mrb[199].mxu0  ;;  %v4354_v15 = vmul.f32 %v11842_v3, %v11842_v3  ;;  %v17315_v59 = vld [vmem:[#allocation17_spill] sm:$0xff] }
 0x2ad   : > { %v11858_v51 = vadd.f32 %v3917_v50, %v11556_v35  ;;  %v3654_v20 = vpop.f32.mrb[214].mxu1  ;;  %v3920_v52 = vadd.f32 %v3919_v40, %v3630_v31  ;;  %v4352_v35 = vmul.f32 %v11845_v19, %v11845_v19  ;;  %v4283_v50 = vadd.f32 %v11852_v33, %v11845_v19 }
 0x2ae   : > { %17309 = vst [vmem:[#allocation100_spill] sm:$0xff] %v11855_v46  ;;  %v11861_v7 = vadd.f32 %v3928_v18, %v17311_v47  ;;  %v3656_v27 = vpop.f32.mrb[215].mxu1  ;;  %v17317_v47 = vld [vmem:[#allocation42_spill] sm:$0xff]  ;;  %v4418_v42 = vmul.f32 0.0, %v4354_v15 }
 0x2af   : > { %17310 = vst [vmem:[#allocation14_spill] sm:$0xff] %v11858_v51  ;;  %v11864_v37 = vadd.f32 %v3920_v52, %v17313_v38 }
 0x2b0   : > { %17312 = vst [vmem:[#allocation15_spill] sm:$0xff] %v11861_v7 }
 0x2b1   : > { %17314 = vst [vmem:[#allocation47_spill] sm:$0xff] %v11864_v37  ;;  %v9687_v14 = vpop.f32.mrb[200].mxu0 }
 0x2b2   : > { %v3941_v39 = vadd.f32 %v9687_v14, %v3651_v32  ;;  %v3932_v5 = vpop.f32.mrb[201].mxu0  ;;  %v4480_v32 = vadd.f32 %v4353_v36, %v4352_v35 }
 0x2b3   : > { %v3659_v31 = vpop.f32.mrb[216].mxu1  ;;  %v3933_v53 = vadd.f32 %v3932_v5, %v3643_v26  ;;  %v9688_v23 = vpop.f32.mrb[202].mxu0 }
 0x2b4   : > { %v11875_v41 = vadd.f32 %v3941_v39, %v17315_v59  ;;  %v3661_v18 = vpop.f32.mrb[217].mxu1  ;;  %v3944_v40 = vadd.f32 %v9688_v23, %v3654_v20  ;;  %v3935_v52 = vpop.f32.mrb[203].mxu0  ;;  %v4355_v39 = vmul.f32 %v11849_v34, %v11849_v34  ;;  %v17321_v59 = vld [vmem:[#allocation21_spill] sm:$0xff]  ;;  %v4284_v20 = vadd.f32 %v4283_v50, %v4221_v21 }
 0x2b5   : > { %v11878_v27 = vadd.f32 %v3933_v53, %v17317_v47  ;;  %v3662_v38 = vpop.f32.mrb[218].mxu1  ;;  %v3936_v14 = vadd.f32 %v3935_v52, %v3646_v11  ;;  %v4481_v36 = vadd.f32 %v4480_v32, %v4418_v42  ;;  %v4222_v53 = vmul.f32 0.0, %v11849_v34  ;;  %v10064_v11 = vld [vmem:[%s16610_s2 + $0x140] sm:$0xff]  }
 0x2b6   : > { %17316 = vst [vmem:[#allocation48_spill] sm:$0xff] %v11875_v41  ;;  %v11882_v26 = vadd.f32 %v3944_v40, %v17319_v45  ;;  %v3664_v5 = vpop.f32.mrb[219].mxu1  ;;  %v4419_v45 = vmul.f32 0.0, %v4355_v39  ;;  %9741 = vmatprep.subr.bf16.mxu1 %v10064_v11  ;;  %v10065_v42 = vld [vmem:[%s16610_s2 + $0xc0] sm:$0xff]   ;;  %v4356_v21 = vmul.f32 %v11858_v51, %v11858_v51 }
 0x2b7   : > { %17318 = vst [vmem:[#allocation103_spill] sm:$0xff] %v11878_v27  ;;  %v11887_v18 = vadd.f32 %v3936_v14, %v17321_v59  ;;  %v4285_v47 = vadd.f32 %v4284_v20, %v4222_v53  ;;  %9742 = vmatpush3.bf16.msra.mxu1 %v10064_v11  ;;  %5780 = vmatpush1.bf16.msra.mxu0 %v10065_v42  ;;  %v17327_v53 = vmov 0  }
 0x2b8   : > { %17320 = vst [vmem:[#allocation105_spill] sm:$0xff] %v11882_v26  ;;  %v4482_v50 = vadd.f32 %v4481_v36, %v4419_v45  ;;  %5781 = vmatprep.subr.bf16.mxu0 %v17327_v53  ;;  %v4358_v45 = vmul.f32 %v11855_v46, %v11855_v46 }
 0x2b9   : > { %17322 = vst [vmem:[#allocation18_spill] sm:$0xff] %v11887_v18  ;;  %v9691_v35 = vpop.f32.mrb[204].mxu0 }
 0x2ba   : > { %v3948_v23 = vpop.f32.mrb[205].mxu0 }
 0x2bb   : > { %v3667_v40 = vpop.f32.mrb[220].mxu1  ;;  %v3949_v52 = vadd.f32 %v3948_v23, %v3659_v31  ;;  %v9692_v15 = vpop.f32.mrb[206].mxu0  ;;  %v17324_v31 = vld [vmem:[#allocation24_spill] sm:$0xff]  ;;  %v4286_v23 = vadd.f32 %v4285_v47, %v11858_v51 }
 0x2bc   : > { %v3957_v5 = vadd.f32 %v9691_v35, %v3667_v40  ;;  %v3669_v3 = vpop.f32.mrb[221].mxu1  ;;  %v3951_v33 = vpop.f32.mrb[207].mxu0 }
 0x2bd   : > { %v11899_v32 = vadd.f32 %v3949_v52, %v11602_v0  ;;  %v3670_v14 = vpop.f32.mrb[222].mxu1  ;;  %v3952_v39 = vadd.f32 %v3951_v33, %v3662_v38  ;;  %v4483_v0 = vadd.f32 %v4482_v50, %v4356_v21  ;;  %v4357_v33 = vmul.f32 %v11864_v37, %v11864_v37 }
 0x2be   : > { %v11902_v59 = vadd.f32 %v3957_v5, %v17324_v31  ;;  %v3960_v3 = vadd.f32 %v9692_v15, %v3670_v14  ;;  %v3672_v20 = vpop.f32.mrb[223].mxu1  ;;  %v10066_v31 = vld [vmem:[%s16610_s2 + $0xc8] sm:$0xff]  }
 0x2bf   : > { %17323 = vst [vmem:[#allocation19_spill] sm:$0xff] %v11899_v32  ;;  %v11905_v35 = vadd.f32 %v3952_v39, %v11611_v6  ;;  %v4287_v6 = vadd.f32 %v4286_v23, %v11864_v37  ;;  %v4484_v47 = vadd.f32 %v4483_v0, %v4357_v33  ;;  %v4359_v20 = vmul.f32 %v11861_v7, %v11861_v7 }
 0x2c0   : > { %17325 = vst [vmem:[#allocation49_spill] sm:$0xff] %v11902_v59  ;;  %v11910_v36 = vadd.f32 %v3960_v3, %v11608_v24  ;;  %v4225_v24 = vmul.f32 0.0, %v11855_v46  ;;  %v4422_v3 = vmul.f32 0.0, %v4358_v45  ;;  %5782 = vmatpush1.bf16.msra.mxu0 %v10066_v31 }
 0x2c1   : > { %17326 = vst [vmem:[#allocation50_spill] sm:$0xff] %v11905_v35  ;;  %v9695_v38 = vpop.f32.mrb[208].mxu0  ;;  %5783 = vmatprep.subr.bf16.mxu0 %v17327_v53 }
 0x2c2   : > { %17328 = vst [vmem:[#allocation102_spill] sm:$0xff] %v11910_v36  ;;  %v3964_v11 = vpop.f32.mrb[209].mxu0  ;;  %v4288_v23 = vadd.f32 %v4287_v6, %v4225_v24  ;;  %v4485_v0 = vadd.f32 %v4484_v47, %v4422_v3  ;;  %v4360_v6 = vmul.f32 %v11878_v27, %v11878_v27 }
 0x2c3   : > { %v3675_v40 = vpop.f32.mrb[224].mxu1  ;;  %v9696_v52 = vpop.f32.mrb[210].mxu0 }
 0x2c4   : > { %v3965_v15 = vadd.f32 %v3964_v11, %v3675_v40  ;;  %v3677_v5 = vpop.f32.mrb[225].mxu1  ;;  %v3967_v42 = vpop.f32.mrb[211].mxu0 }
 0x2c5   : > { %v3678_v14 = vpop.f32.mrb[226].mxu1 }
 0x2c6   : > { %v11919_v21 = vadd.f32 %v3965_v15, %v11625_v44  ;;  %v3968_v50 = vadd.f32 %v3967_v42, %v3678_v14  ;;  %v3680_v39 = vpop.f32.mrb[227].mxu1  ;;  %v4226_v44 = vmul.f32 0.0, %v11861_v7  ;;  %v4423_v15 = vmul.f32 0.0, %v4359_v20 }
 0x2c8   : > { %17329 = vst [vmem:[#allocation104_spill] sm:$0xff] %v11919_v21  ;;  %v11927_v11 = vadd.f32 %v3968_v50, %v11634_v2  ;;  %v4289_v14 = vadd.f32 %v4288_v23, %v4226_v44  ;;  %v10067_v2 = vld [vmem:[%s16610_s2 + $0xd0] sm:$0xff]   ;;  %v4486_v47 = vadd.f32 %v4485_v0, %v4423_v15  ;;  %v4361_v44 = vmul.f32 %v11887_v18, %v11887_v18 }
 0x2c9   : > { %v9699_v33 = vpop.f32.mrb[212].mxu0  ;;  %5784 = vmatpush1.bf16.msra.mxu0 %v10067_v2 }
 0x2ca   : > { %17330 = vst [vmem:[#allocation51_spill] sm:$0xff] %v11927_v11  ;;  %v3980_v40 = vpop.f32.mrb[213].mxu0  ;;  %5785 = vmatprep.subr.bf16.mxu0 %v17327_v53  ;;  %v4487_v23 = vadd.f32 %v4486_v47, %v4360_v6  ;;  %v4229_v6 = vmul.f32 0.0, %v11875_v41 }
 0x2cb   : > { %v3683_v5 = vpop.f32.mrb[228].mxu1  ;;  %v9700_v42 = vpop.f32.mrb[214].mxu0 }
 0x2cc   : > { %v3973_v45 = vadd.f32 %v9695_v38, %v3683_v5  ;;  %v3685_v39 = vpop.f32.mrb[229].mxu1  ;;  %v3983_v46 = vpop.f32.mrb[215].mxu0  ;;  %v4290_v38 = vadd.f32 %v4289_v14, %v11878_v27  ;;  %v10068_v27 = vld [vmem:[%s16610_s2 + $0xd8] sm:$0xff]  }
 0x2cd   : > { %v3686_v24 = vpop.f32.mrb[230].mxu1  ;;  %5786 = vmatpush1.bf16.msra.mxu0 %v10068_v27 }
 0x2ce   : > { %v11937_v50 = vadd.f32 %v3973_v45, %v11622_v17  ;;  %v3976_v31 = vadd.f32 %v9696_v52, %v3686_v24  ;;  %v3688_v3 = vpop.f32.mrb[231].mxu1  ;;  %v4362_v17 = vmul.f32 %v11875_v41, %v11875_v41  ;;  %v4291_v45 = vadd.f32 %v4290_v38, %v11887_v18  ;;  %5787 = vmatprep.subr.bf16.mxu0 %v17327_v53  ;;  %v10071_v41 = vld [vmem:[%s16610_s2 + $0xe8] sm:$0xff]  }
 0x2cf   : > { %v4363_v38 = vmul.f32 %v11882_v26, %v11882_v26 }
 0x2d0   : > { %17331 = vst [vmem:[#allocation52_spill] sm:$0xff] %v11937_v50  ;;  %v11942_v20 = vadd.f32 %v3976_v31, %v11631_v56  ;;  %v4488_v56 = vadd.f32 %v4487_v23, %v4361_v44  ;;  %v4426_v7 = vmul.f32 0.0, %v4362_v17  ;;  %v10069_v17 = vld [vmem:[%s16610_s2 + $0x148] sm:$0xff]  }
 0x2d1   : > { %v11946_v5 = vpop.f32.mrb[216].mxu0  ;;  %9743 = vmatprep.subr.bf16.mxu1 %v10069_v17 }
 0x2d2   : > { %17332 = vst [vmem:[#allocation107_spill] sm:$0xff] %v11942_v20  ;;  %v3996_v0 = vpop.f32.mrb[217].mxu0  ;;  %v4489_v23 = vadd.f32 %v4488_v56, %v4426_v7  ;;  %v10070_v56 = vld [vmem:[%s16610_s2 + $0xe0] sm:$0xff]   ;;  %9744 = vmatpush3.bf16.msra.mxu1 %v10069_v17 }
 0x2d3   : > { %v3691_v52 = vpop.f32.mrb[232].mxu1  ;;  %v11950_v15 = vpop.f32.mrb[218].mxu0  ;;  %5788 = vmatpush1.bf16.msra.mxu0 %v10070_v56 }
 0x2d4   : > { %v3981_v39 = vadd.f32 %v3980_v40, %v3691_v52  ;;  %v3693_v14 = vpop.f32.mrb[233].mxu1  ;;  %v3999_v2 = vpop.f32.mrb[219].mxu0  ;;  %v4292_v40 = vadd.f32 %v4291_v45, %v4229_v6  ;;  %v4364_v6 = vmul.f32 %v11899_v32, %v11899_v32  ;;  %5789 = vmatprep.subr.bf16.mxu0 %v17327_v53 }
 0x2d5   : > { %v3694_v24 = vpop.f32.mrb[234].mxu1 }
 0x2d6   : > { %v11955_v47 = vadd.f32 %v3981_v39, %v11645_v63  ;;  %v3984_v31 = vadd.f32 %v3983_v46, %v3694_v24  ;;  %v3696_v3 = vpop.f32.mrb[235].mxu1  ;;  %v4230_v63 = vmul.f32 0.0, %v11882_v26  ;;  %v4427_v39 = vmul.f32 0.0, %v4363_v38 }
 0x2d7   : > { %5790 = vmatpush1.bf16.msra.mxu0 %v10071_v41  ;;  %v10072_v41 = vld [vmem:[%s16610_s2 + $0xf0] sm:$0xff]  }
 0x2d8   : > { %17333 = vst [vmem:[#allocation109_spill] sm:$0xff] %v11955_v47  ;;  %v11963_v52 = vadd.f32 %v3984_v31, %v11654_v22  ;;  %v4293_v22 = vadd.f32 %v4292_v40, %v4230_v63  ;;  %v4490_v31 = vadd.f32 %v4489_v23, %v4427_v39  ;;  %5791 = vmatprep.subr.bf16.mxu0 %v17327_v53 }
 0x2d9   : > { %v11965_v44 = vpop.f32.mrb[220].mxu0 }
 0x2da   : > { %17334 = vst [vmem:[#allocation53_spill] sm:$0xff] %v11963_v52  ;;  %v11969_v46 = vpop.f32.mrb[221].mxu0 }
 0x2db   : > { %v3699_v14 = vpop.f32.mrb[236].mxu1  ;;  %v11974_v45 = vpop.f32.mrb[222].mxu0  ;;  %5792 = vmatpush1.bf16.msra.mxu0 %v10072_v41  ;;  %v4371_v41 = vmul.f32 %v11942_v20, %v11942_v20 }
 0x2dc   : > { %v3989_v24 = vadd.f32 %v9699_v33, %v3699_v14  ;;  %v3701_v27 = vpop.f32.mrb[237].mxu1  ;;  %v11976_v7 = vpop.f32.mrb[223].mxu0  ;;  %v4294_v33 = vadd.f32 %v4293_v22, %v11899_v32  ;;  %v4491_v14 = vadd.f32 %v4490_v31, %v4364_v6  ;;  %v4233_v31 = vmul.f32 0.0, %v11902_v59  ;;  %5793 = vmatprep.subr.bf16.mxu0 %v17327_v53 }
 0x2dd   : > { %v3702_v3 = vpop.f32.mrb[238].mxu1  ;;  %v4365_v27 = vmul.f32 %v11905_v35, %v11905_v35 }
 0x2de   : > { %v11984_v38 = vadd.f32 %v3989_v24, %v11642_v62  ;;  %v3992_v26 = vadd.f32 %v9700_v42, %v3702_v3  ;;  %v3704_v40 = vpop.f32.mrb[239].mxu1  ;;  %v4366_v62 = vmul.f32 %v11902_v59, %v11902_v59  ;;  %v4295_v24 = vadd.f32 %v4294_v33, %v11905_v35 }
 0x2e0   : > { %17335 = vst [vmem:[#allocation54_spill] sm:$0xff] %v11984_v38  ;;  %v11989_v63 = vadd.f32 %v3992_v26, %v11651_v12  ;;  %v4492_v26 = vadd.f32 %v4491_v14, %v4365_v27  ;;  %v4430_v18 = vmul.f32 0.0, %v4366_v62  ;;  %v4296_v33 = vadd.f32 %v4295_v24, %v4233_v31 }
 0x2e1   : > { %v11993_v23 = vpop.f32.mrb[224].mxu0 }
 0x2e2   : > { %17336 = vst [vmem:[#allocation106_spill] sm:$0xff] %v11989_v63  ;;  %v11995_v17 = vpop.f32.mrb[225].mxu0  ;;  %v4493_v14 = vadd.f32 %v4492_v26, %v4430_v18  ;;  %v4368_v18 = vmul.f32 %v11919_v21, %v11919_v21 }
 0x2e3   : > { %v3707_v42 = vpop.f32.mrb[240].mxu1  ;;  %v11999_v39 = vpop.f32.mrb[226].mxu0 }
 0x2e4   : > { %v3997_v22 = vadd.f32 %v3996_v0, %v3707_v42  ;;  %v3709_v56 = vpop.f32.mrb[241].mxu1  ;;  %v12002_v12 = vpop.f32.mrb[227].mxu0  ;;  %v4367_v0 = vmul.f32 %v11910_v36, %v11910_v36 }
 0x2e5   : > { %v3710_v6 = vpop.f32.mrb[242].mxu1 }
 0x2e6   : > { %v12006_v3 = vadd.f32 %v3997_v22, %v11665_v28  ;;  %v4000_v40 = vadd.f32 %v3999_v2, %v3710_v6  ;;  %v3712_v32 = vpop.f32.mrb[243].mxu1  ;;  %v4234_v28 = vmul.f32 0.0, %v11910_v36  ;;  %v4431_v2 = vmul.f32 0.0, %v4367_v0 }
 0x2e8   : > { %17337 = vst [vmem:[#allocation108_spill] sm:$0xff] %v12006_v3  ;;  %v12014_v42 = vadd.f32 %v4000_v40, %v11674_v4  ;;  %v4297_v56 = vadd.f32 %v4296_v33, %v4234_v28  ;;  %v4494_v26 = vadd.f32 %v4493_v14, %v4431_v2  ;;  %v4369_v14 = vmul.f32 %v11927_v11, %v11927_v11 }
 0x2e9   : > { %v12016_v27 = vpop.f32.mrb[228].mxu0 }
 0x2ea   : > { %17338 = vst [vmem:[#allocation55_spill] sm:$0xff] %v12014_v42  ;;  %v12020_v32 = vpop.f32.mrb[229].mxu0  ;;  %v4298_v28 = vadd.f32 %v4297_v56, %v11919_v21 }
 0x2eb   : > { %v3715_v22 = vpop.f32.mrb[244].mxu1  ;;  %v12022_v62 = vpop.f32.mrb[230].mxu0 }
 0x2ec   : > { %v4005_v24 = vadd.f32 %v11946_v5, %v3715_v22  ;;  %v3717_v6 = vpop.f32.mrb[245].mxu1  ;;  %v12025_v4 = vpop.f32.mrb[231].mxu0  ;;  %v4370_v5 = vmul.f32 %v11937_v50, %v11937_v50 }
 0x2ed   : > { %v3718_v31 = vpop.f32.mrb[246].mxu1  ;;  %v4495_v6 = vadd.f32 %v4494_v26, %v4368_v18 }
 0x2ee   : > { %v12033_v40 = vadd.f32 %v4005_v24, %v11662_v49  ;;  %v4008_v0 = vadd.f32 %v11950_v15, %v3718_v31  ;;  %v3720_v33 = vpop.f32.mrb[247].mxu1  ;;  %v4237_v15 = vmul.f32 0.0, %v11937_v50  ;;  %v4434_v24 = vmul.f32 0.0, %v4370_v5 }
 0x2ef   : > { %v4238_v50 = vmul.f32 0.0, %v11942_v20 }
 0x2f0   : > { %17339 = vst [vmem:[#allocation56_spill] sm:$0xff] %v12033_v40  ;;  %v12041_v22 = vadd.f32 %v4008_v0, %v11671_v60  ;;  %v4299_v60 = vadd.f32 %v4298_v28, %v11927_v11  ;;  %v4496_v0 = vadd.f32 %v4495_v6, %v4369_v14  ;;  %v10073_v28 = vld [vmem:[%s16610_s2 + $0xf8] sm:$0xff]   ;;  %v4372_v6 = vmul.f32 %v11955_v47, %v11955_v47 }
 0x2f1   : > { %v12045_v49 = vpop.f32.mrb[232].mxu0  ;;  %5794 = vmatpush1.bf16.msra.mxu0 %v10073_v28  ;;  %v17341_v28 = vld [vmem:[#allocation25_spill] sm:$0xff] }
 0x2f2   : > { %17340 = vst [vmem:[#allocation81_spill] sm:$0xff] %v12041_v22  ;;  %v12048_v2 = vpop.f32.mrb[233].mxu0  ;;  %v4300_v36 = vadd.f32 %v4299_v60, %v4237_v15  ;;  %v4497_v11 = vadd.f32 %v4496_v0, %v4434_v24  ;;  %5795 = vmatprep.subr.bf16.mxu0 %v17327_v53  ;;  %v4241_v0 = vmul.f32 0.0, %v11984_v38 }
 0x2f3   : > { %v3723_v31 = vpop.f32.mrb[248].mxu1  ;;  %v12052_v33 = vpop.f32.mrb[234].mxu0 }
 0x2f4   : > { %v4013_v56 = vadd.f32 %v11969_v46, %v3723_v31  ;;  %v3725_v18 = vpop.f32.mrb[249].mxu1  ;;  %v12056_v26 = vpop.f32.mrb[235].mxu0  ;;  %v4435_v46 = vmul.f32 0.0, %v4371_v41 }
 0x2f5   : > { %v3726_v21 = vpop.f32.mrb[250].mxu1 }
 0x2f6   : > { %v12060_v5 = vadd.f32 %v4013_v56, %v11685_v25  ;;  %v4016_v59 = vadd.f32 %v11976_v7, %v3726_v21  ;;  %v3728_v35 = vpop.f32.mrb[251].mxu1  ;;  %v4301_v25 = vadd.f32 %v4300_v36, %v4238_v50  ;;  %v4498_v7 = vadd.f32 %v4497_v11, %v4435_v46  ;;  %v10075_v36 = vld [vmem:[%s16610_s2 + $0x100] sm:$0xff]  }
 0x2f7   : > { %v10074_v35 = vld [vmem:[%s16610_s2 + $0x150] sm:$0xff]   ;;  %v4373_v11 = vmul.f32 %v11963_v52, %v11963_v52  ;;  %5796 = vmatpush1.bf16.msra.mxu0 %v10075_v36 }
 0x2f8   : > { %v12067_v31 = vadd.f32 %v4016_v59, %v11694_v54  ;;  %v4374_v54 = vmul.f32 %v11984_v38, %v11984_v38  ;;  %v4302_v24 = vadd.f32 %v4301_v25, %v11955_v47  ;;  %9745 = vmatprep.subr.bf16.mxu1 %v10074_v35  ;;  %v4499_v50 = vadd.f32 %v4498_v7, %v4372_v6  ;;  %v17343_v7 = vld [vmem:[#allocation28_spill] sm:$0xff] }
 0x2f9   : > { %v12071_v14 = vpop.f32.mrb[236].mxu0  ;;  %9746 = vmatpush3.bf16.msra.mxu1 %v10074_v35  ;;  %5797 = vmatprep.subr.bf16.mxu0 %v17327_v53 }
 0x2fa   : > { %v12074_v21 = vpop.f32.mrb[237].mxu0  ;;  %v4303_v6 = vadd.f32 %v4302_v24, %v11963_v52  ;;  %v4500_v35 = vadd.f32 %v4499_v50, %v4373_v11  ;;  %v4376_v50 = vmul.f32 %v12006_v3, %v12006_v3 }
 0x2fb   : > { %v3731_v59 = vpop.f32.mrb[252].mxu1  ;;  %v12081_v15 = vpop.f32.mrb[238].mxu0 }
 0x2fc   : > { %v4021_v41 = vadd.f32 %v11965_v44, %v3731_v59  ;;  %v3733_v60 = vpop.f32.mrb[253].mxu1  ;;  %v12085_v56 = vpop.f32.mrb[239].mxu0  ;;  %v4438_v59 = vmul.f32 0.0, %v4374_v54 }
 0x2fd   : > { %v3734_v18 = vpop.f32.mrb[254].mxu1  ;;  %v4375_v60 = vmul.f32 %v11989_v63, %v11989_v63 }
 0x2fe   : > { %v12094_v46 = vadd.f32 %v4021_v41, %v17341_v28  ;;  %v4024_v44 = vadd.f32 %v11974_v45, %v3734_v18  ;;  %v3736_v25 = vpop.f32.mrb[255].mxu1  ;;  %v4304_v41 = vadd.f32 %v4303_v6, %v4241_v0  ;;  %v4242_v28 = vmul.f32 0.0, %v11989_v63 }
 0x2ff   : > { %v4501_v36 = vadd.f32 %v4500_v35, %v4438_v59  ;;  %v4439_v54 = vmul.f32 0.0, %v4375_v60 }
 0x300   : > { %17342 = vst [vmem:[#allocation77_spill] sm:$0xff] %v12094_v46  ;;  %v12102_v47 = vadd.f32 %v4024_v44, %v17343_v7  ;;  %v4305_v44 = vadd.f32 %v4304_v41, %v4242_v28  ;;  %v4378_v7 = vmul.f32 %v12033_v40, %v12033_v40  ;;  %v4379_v28 = vmul.f32 %v12041_v22, %v12041_v22 }
 0x301   : > { %v12104_v38 = vpop.f32.mrb[240].mxu0  ;;  %v4502_v60 = vadd.f32 %v4501_v36, %v4439_v54 }
 0x302   : > { %v12107_v45 = vpop.f32.mrb[241].mxu0  ;;  %v4443_v34 = vmul.f32 0.0, %v4379_v28 }
 0x303   : > { %v3739_v18 = vpop.f32.mrb[0].mxu1  ;;  %v12109_v25 = vpop.f32.mrb[242].mxu0  ;;  %v4503_v35 = vadd.f32 %v4502_v60, %v4376_v50 }
 0x304   : > { %v4029_v20 = vadd.f32 %v11995_v17, %v3739_v18  ;;  %v3741_v37 = vpop.f32.mrb[1].mxu1  ;;  %v12112_v24 = vpop.f32.mrb[243].mxu0  ;;  %v4306_v17 = vadd.f32 %v4305_v44, %v12006_v3  ;;  %v4377_v18 = vmul.f32 %v12014_v42, %v12014_v42  ;;  %v17345_v3 = vld [vmem:[#allocation29_spill] sm:$0xff] }
 0x305   : > { %v3742_v11 = vpop.f32.mrb[2].mxu1 }
 0x306   : > { %v12117_v0 = vadd.f32 %v4029_v20, %v11705_v57  ;;  %v4032_v6 = vadd.f32 %v12002_v12, %v3742_v11  ;;  %v3744_v59 = vpop.f32.mrb[3].mxu1  ;;  %v4245_v57 = vmul.f32 0.0, %v12033_v40  ;;  %v4442_v12 = vmul.f32 0.0, %v4378_v7 }
 0x307   : > { %v4246_v40 = vmul.f32 0.0, %v12041_v22 }
 0x308   : > { %17344 = vst [vmem:[#allocation84_spill] sm:$0xff] %v12117_v0  ;;  %v12124_v37 = vadd.f32 %v4032_v6, %v11714_v61  ;;  %v4307_v61 = vadd.f32 %v4306_v17, %v12014_v42  ;;  %v4504_v6 = vadd.f32 %v4503_v35, %v4377_v18 }
 0x309   : > { %v12128_v41 = vpop.f32.mrb[244].mxu0 }
 0x30a   : > { %v12131_v20 = vpop.f32.mrb[245].mxu0  ;;  %v4308_v60 = vadd.f32 %v4307_v61, %v4245_v57  ;;  %v4505_v51 = vadd.f32 %v4504_v6, %v4442_v12 }
 0x30b   : > { %v3747_v36 = vpop.f32.mrb[4].mxu1  ;;  %v12135_v54 = vpop.f32.mrb[246].mxu0 }
 0x30c   : > { %v4037_v50 = vadd.f32 %v11993_v23, %v3747_v36  ;;  %v3749_v11 = vpop.f32.mrb[5].mxu1  ;;  %v12139_v44 = vpop.f32.mrb[247].mxu0  ;;  %v4380_v23 = vmul.f32 %v12060_v5, %v12060_v5  ;;  %v4309_v35 = vadd.f32 %v4308_v60, %v4246_v40  ;;  %v4506_v57 = vadd.f32 %v4505_v51, %v4443_v34 }
 0x30d   : > { %v3750_v59 = vpop.f32.mrb[6].mxu1  ;;  %v4381_v40 = vmul.f32 %v12067_v31, %v12067_v31  ;;  %v4249_v34 = vmul.f32 0.0, %v12094_v46 }
 0x30e   : > { %v12143_v7 = vadd.f32 %v4037_v50, %v17345_v3  ;;  %v4040_v63 = vadd.f32 %v11999_v39, %v3750_v59  ;;  %v3752_v52 = vpop.f32.mrb[7].mxu1  ;;  %v4382_v3 = vmul.f32 %v12094_v46, %v12094_v46  ;;  %v4507_v28 = vadd.f32 %v4506_v57, %v4380_v23 }
 0x30f   : > { %v4310_v52 = vadd.f32 %v4309_v35, %v12060_v5 }
 0x310   : > { %17346 = vst [vmem:[#allocation80_spill] sm:$0xff] %v12143_v7  ;;  %v12147_v17 = vadd.f32 %v4040_v63, %v11711_v10  ;;  %v4446_v59 = vmul.f32 0.0, %v4382_v3  ;;  %v4508_v35 = vadd.f32 %v4507_v28, %v4381_v40 }
 0x311   : > { %v12151_v36 = vpop.f32.mrb[248].mxu0  ;;  %v4311_v60 = vadd.f32 %v4310_v52, %v12067_v31 }
 0x312   : > { %v12153_v18 = vpop.f32.mrb[249].mxu0 }
 0x313   : > { %v3755_v61 = vpop.f32.mrb[8].mxu1  ;;  %v12157_v39 = vpop.f32.mrb[250].mxu0 }
 0x314   : > { %v4045_v10 = vadd.f32 %v12020_v32, %v3755_v61  ;;  %v3757_v63 = vpop.f32.mrb[9].mxu1  ;;  %v12161_v12 = vpop.f32.mrb[251].mxu0  ;;  %v4383_v32 = vmul.f32 %v12102_v47, %v12102_v47  ;;  %v4312_v61 = vadd.f32 %v4311_v60, %v4249_v34  ;;  %v4386_v60 = vmul.f32 %v12143_v7, %v12143_v7 }
 0x315   : > { %v3758_v50 = vpop.f32.mrb[10].mxu1  ;;  %v4250_v63 = vmul.f32 0.0, %v12102_v47 }
 0x316   : > { %v12167_v51 = vadd.f32 %v4045_v10, %v11725_v16  ;;  %v4048_v11 = vadd.f32 %v12025_v4, %v3758_v50  ;;  %v3760_v6 = vpop.f32.mrb[11].mxu1  ;;  %v4509_v10 = vadd.f32 %v4508_v35, %v4446_v59  ;;  %v4447_v4 = vmul.f32 0.0, %v4383_v32 }
 0x317   : > { %v4313_v40 = vadd.f32 %v4312_v61, %v4250_v63  ;;  %v4253_v61 = vmul.f32 0.0, %v12143_v7 }
 0x318   : > { %v12174_v23 = vadd.f32 %v4048_v11, %v11734_v8  ;;  %v4384_v8 = vmul.f32 %v12117_v0, %v12117_v0  ;;  %v4510_v32 = vadd.f32 %v4509_v10, %v4447_v4 }
 0x319   : > { %v12176_v57 = vpop.f32.mrb[252].mxu0 }
 0x31a   : > { %v12179_v16 = vpop.f32.mrb[253].mxu0  ;;  %v4511_v35 = vadd.f32 %v4510_v32, %v4384_v8  ;;  %v4254_v8 = vmul.f32 0.0, %v12147_v17 }
 0x31b   : > { %v3763_v50 = vpop.f32.mrb[12].mxu1  ;;  %v12181_v3 = vpop.f32.mrb[254].mxu0 }
 0x31c   : > { %v4053_v6 = vadd.f32 %v12016_v27, %v3763_v50  ;;  %v3765_v46 = vpop.f32.mrb[13].mxu1  ;;  %v12184_v52 = vpop.f32.mrb[255].mxu0  ;;  %v4314_v27 = vadd.f32 %v4313_v40, %v12117_v0  ;;  %v4385_v50 = vmul.f32 %v12124_v37, %v12124_v37 }
 0x31d   : > { %v3766_v28 = vpop.f32.mrb[14].mxu1 }
 0x31e   : > { %v12189_v34 = vadd.f32 %v4053_v6, %v11722_v9  ;;  %v4056_v11 = vadd.f32 %v12022_v62, %v3766_v28  ;;  %v3768_v59 = vpop.f32.mrb[15].mxu1  ;;  %v4450_v9 = vmul.f32 0.0, %v4386_v60  ;;  %v4387_v62 = vmul.f32 %v12147_v17, %v12147_v17 }
 0x31f   : > { %v4315_v10 = vadd.f32 %v4314_v27, %v12124_v37  ;;  %v4512_v28 = vadd.f32 %v4511_v35, %v4385_v50 }
 0x320   : > { %v12196_v46 = vadd.f32 %v4056_v11, %v11731_v29  ;;  %v4451_v7 = vmul.f32 0.0, %v4387_v62  ;;  %v4390_v50 = vmul.f32 %v12189_v34, %v12189_v34  ;;  %v4257_v62 = vmul.f32 0.0, %v12189_v34 }
 0x321   : > { %v4316_v29 = vadd.f32 %v4315_v10, %v4253_v61  ;;  %v4513_v60 = vadd.f32 %v4512_v28, %v4450_v9  ;;  %v4389_v9 = vmul.f32 %v12174_v23, %v12174_v23 }
 0x322   : > { %v4454_v28 = vmul.f32 0.0, %v4390_v50 }
 0x323   : > { %v3771_v63 = vpop.f32.mrb[16].mxu1  ;;  %v4317_v27 = vadd.f32 %v4316_v29, %v4254_v8  ;;  %v4514_v35 = vadd.f32 %v4513_v60, %v4451_v7  ;;  %v17347_v29 = vld [vmem:[#allocation32_spill] sm:$0xff]  ;;  %v4258_v60 = vmul.f32 0.0, %v12196_v46 }
 0x324   : > { %v4061_v4 = vadd.f32 %v12048_v2, %v3771_v63  ;;  %v3773_v6 = vpop.f32.mrb[17].mxu1  ;;  %v4388_v2 = vmul.f32 %v12167_v51, %v12167_v51 }
 0x325   : > { %v3774_v40 = vpop.f32.mrb[18].mxu1 }
 0x326   : > { %v12207_v11 = vadd.f32 %v4061_v4, %v11745_v30  ;;  %v4064_v59 = vadd.f32 %v12056_v26, %v3774_v40  ;;  %v3776_v32 = vpop.f32.mrb[19].mxu1  ;;  %v4318_v30 = vadd.f32 %v4317_v27, %v12167_v51  ;;  %v4515_v10 = vadd.f32 %v4514_v35, %v4388_v2 }
 0x327   : > { %v4391_v40 = vmul.f32 %v12196_v46, %v12196_v46 }
 0x328   : > { %v12211_v0 = vadd.f32 %v4064_v59, %v11754_v13  ;;  %v4516_v59 = vadd.f32 %v4515_v10, %v4389_v9  ;;  %v4392_v50 = vmul.f32 %v12207_v11, %v12207_v11 }
 0x329   : > { %v4455_v27 = vmul.f32 0.0, %v4391_v40 }
 0x32a   : > { %v4517_v2 = vadd.f32 %v4516_v59, %v4454_v28 }
 0x32b   : > { %v3779_v61 = vpop.f32.mrb[20].mxu1 }
 0x32c   : > { %v4069_v63 = vadd.f32 %v12045_v49, %v3779_v61  ;;  %v3781_v26 = vpop.f32.mrb[21].mxu1  ;;  %v4319_v49 = vadd.f32 %v4318_v30, %v12174_v23  ;;  %v4518_v9 = vadd.f32 %v4517_v2, %v4455_v27  ;;  %v17348_v27 = vld [vmem:[#allocation33_spill] sm:$0xff] }
 0x32d   : > { %v3782_v13 = vpop.f32.mrb[22].mxu1 }
 0x32e   : > { %v12223_v4 = vadd.f32 %v4069_v63, %v11742_v55  ;;  %v4072_v7 = vadd.f32 %v12052_v33, %v3782_v13  ;;  %v3784_v6 = vpop.f32.mrb[23].mxu1  ;;  %v4320_v32 = vadd.f32 %v4319_v49, %v4257_v62 }
 0x32f   : > { %v4393_v6 = vmul.f32 %v12211_v0, %v12211_v0 }
 0x330   : > { %v12230_v8 = vadd.f32 %v4072_v7, %v17347_v29  ;;  %v4321_v63 = vadd.f32 %v4320_v32, %v4258_v60  ;;  %v4394_v13 = vmul.f32 %v12223_v4, %v12223_v4  ;;  %v4519_v7 = vadd.f32 %v4518_v9, %v4392_v50 }
 0x331   : > { %v4261_v28 = vmul.f32 0.0, %v12223_v4 }
 0x332   : > { %v4322_v62 = vadd.f32 %v4321_v63, %v12207_v11  ;;  %v4520_v32 = vadd.f32 %v4519_v7, %v4393_v6  ;;  %v4262_v2 = vmul.f32 0.0, %v12230_v8 }
 0x333   : > { %v3787_v55 = vpop.f32.mrb[24].mxu1 }
 0x334   : > { %v4077_v35 = vadd.f32 %v12074_v21, %v3787_v55  ;;  %v3789_v33 = vpop.f32.mrb[25].mxu1  ;;  %v4323_v49 = vadd.f32 %v4322_v62, %v12211_v0 }
 0x335   : > { %v3790_v61 = vpop.f32.mrb[26].mxu1 }
 0x336   : > { %v12237_v30 = vadd.f32 %v4077_v35, %v11765_v48  ;;  %v4080_v26 = vadd.f32 %v12085_v56, %v3790_v61  ;;  %v3792_v10 = vpop.f32.mrb[27].mxu1  ;;  %v4458_v48 = vmul.f32 0.0, %v4394_v13  ;;  %v4395_v56 = vmul.f32 %v12230_v8, %v12230_v8 }
 0x338   : > { %v12244_v21 = vadd.f32 %v4080_v26, %v11772_v1  ;;  %v4324_v1 = vadd.f32 %v4323_v49, %v4261_v28  ;;  %v4521_v50 = vadd.f32 %v4520_v32, %v4458_v48  ;;  %v4459_v61 = vmul.f32 0.0, %v4395_v56  ;;  %v17349_v32 = vld [vmem:[#allocation37_spill] sm:$0xff] }
 0x33a   : > { %v4325_v26 = vadd.f32 %v4324_v1, %v4262_v2  ;;  %v4522_v10 = vadd.f32 %v4521_v50, %v4459_v61  ;;  %v4397_v28 = vmul.f32 %v12244_v21, %v12244_v21 }
 0x33b   : > { %v3795_v40 = vpop.f32.mrb[28].mxu1 }
 0x33c   : > { %v4085_v29 = vadd.f32 %v12071_v14, %v3795_v40  ;;  %v3797_v59 = vpop.f32.mrb[29].mxu1  ;;  %v4396_v14 = vmul.f32 %v12237_v30, %v12237_v30  ;;  %v4326_v62 = vadd.f32 %v4325_v26, %v12237_v30 }
 0x33d   : > { %v3798_v60 = vpop.f32.mrb[30].mxu1 }
 0x33e   : > { %v12255_v55 = vadd.f32 %v4085_v29, %v17348_v27  ;;  %v4088_v35 = vadd.f32 %v12081_v15, %v3798_v60  ;;  %v3800_v33 = vpop.f32.mrb[31].mxu1  ;;  %v4523_v6 = vadd.f32 %v4522_v10, %v4396_v14  ;;  %v17350_v10 = vld [vmem:[#allocation4_spill] sm:$0xff] }
 0x340   : > { %v12259_v63 = vadd.f32 %v4088_v35, %v11769_v58  ;;  %v4398_v9 = vmul.f32 %v12255_v55, %v12255_v55  ;;  %v4265_v48 = vmul.f32 0.0, %v12255_v55  ;;  %v4524_v1 = vadd.f32 %v4523_v6, %v4397_v28  ;;  %v17351_v28 = vld [vmem:[#allocation36_spill] sm:$0xff] }
 0x342   : > { %v4462_v29 = vmul.f32 0.0, %v4398_v9  ;;  %v4399_v59 = vmul.f32 %v12259_v63, %v12259_v63  ;;  %v4266_v27 = vmul.f32 0.0, %v12259_v63 }
 0x343   : > { %v3803_v13 = vpop.f32.mrb[32].mxu1 }
 0x344   : > { %v4093_v7 = vadd.f32 %v12107_v45, %v3803_v13  ;;  %v3805_v15 = vpop.f32.mrb[33].mxu1  ;;  %v4327_v45 = vadd.f32 %v4326_v62, %v12244_v21  ;;  %v4525_v35 = vadd.f32 %v4524_v1, %v4462_v29  ;;  %v4463_v33 = vmul.f32 0.0, %v4399_v59 }
 0x345   : > { %v3806_v58 = vpop.f32.mrb[34].mxu1 }
 0x346   : > { %v12271_v56 = vadd.f32 %v4093_v7, %v11781_v43  ;;  %v4096_v40 = vadd.f32 %v12112_v24, %v3806_v58  ;;  %v3808_v49 = vpop.f32.mrb[35].mxu1  ;;  %v4328_v2 = vadd.f32 %v4327_v45, %v4265_v48  ;;  %v4526_v7 = vadd.f32 %v4525_v35, %v4463_v33  ;;  %v17352_v33 = vld [vmem:[#allocation97_spill] sm:$0xff] }
 0x348   : > { %v12278_v60 = vadd.f32 %v4096_v40, %v17349_v32  ;;  %v4400_v61 = vmul.f32 %v12271_v56, %v12271_v56  ;;  %v4329_v26 = vadd.f32 %v4328_v2, %v4266_v27 }
 0x34a   : > { %v4330_v15 = vadd.f32 %v4329_v26, %v12271_v56  ;;  %v4527_v58 = vadd.f32 %v4526_v7, %v4400_v61  ;;  %v4401_v48 = vmul.f32 %v12278_v60, %v12278_v60  ;;  %v17353_v26 = vld [vmem:[#allocation7_spill] sm:$0xff] }
 0x34b   : > { %v3811_v43 = vpop.f32.mrb[36].mxu1 }
 0x34c   : > { %v4101_v50 = vadd.f32 %v12104_v38, %v3811_v43  ;;  %v3813_v24 = vpop.f32.mrb[37].mxu1  ;;  %v4331_v59 = vadd.f32 %v4330_v15, %v12278_v60  ;;  %v4528_v1 = vadd.f32 %v4527_v58, %v4401_v48 }
 0x34d   : > { %v3814_v14 = vpop.f32.mrb[38].mxu1 }
 0x34e   : > { %v12285_v9 = vadd.f32 %v4101_v50, %v17350_v10  ;;  %v4104_v13 = vadd.f32 %v12109_v25, %v3814_v14  ;;  %v3816_v62 = vpop.f32.mrb[39].mxu1 }
 0x350   : > { %v4402_v6 = vmul.f32 %v12285_v9, %v12285_v9  ;;  %v12292_v38 = vadd.f32 %v4104_v13, %v17351_v28  ;;  %v4269_v40 = vmul.f32 0.0, %v12285_v9 }
 0x352   : > { %v4466_v49 = vmul.f32 0.0, %v4402_v6  ;;  %v4403_v25 = vmul.f32 %v12292_v38, %v12292_v38  ;;  %v4332_v27 = vadd.f32 %v4331_v59, %v4269_v40  ;;  %v4270_v35 = vmul.f32 0.0, %v12292_v38 }
 0x353   : > { %v3819_v29 = vpop.f32.mrb[40].mxu1 }
 0x354   : > { %v4109_v45 = vadd.f32 %v12131_v20, %v3819_v29  ;;  %v3821_v32 = vpop.f32.mrb[41].mxu1  ;;  %v4529_v61 = vadd.f32 %v4528_v1, %v4466_v49  ;;  %v4467_v14 = vmul.f32 0.0, %v4403_v25  ;;  %v4333_v13 = vadd.f32 %v4332_v27, %v4270_v35  ;;  %v17354_v49 = vld [vmem:[#allocation96_spill] sm:$0xff]  ;;  %v17355_v1 = vld [vmem:[#allocation6_spill] sm:$0xff] }
 0x355   : > { %v3822_v2 = vpop.f32.mrb[42].mxu1  ;;  %v10077_v27 = vld [vmem:[%s16610_s2 + $0x110] sm:$0xff]  }
 0x356   : > { %v12303_v43 = vadd.f32 %v4109_v45, %v17352_v33  ;;  %v4112_v50 = vadd.f32 %v12139_v44, %v3822_v2  ;;  %v3824_v24 = vpop.f32.mrb[43].mxu1  ;;  %v4530_v62 = vadd.f32 %v4529_v61, %v4467_v14  ;;  %v10076_v44 = vld [vmem:[%s16610_s2 + $0x108] sm:$0xff]  }
 0x357   : > { %5798 = vmatpush1.bf16.msra.mxu0 %v10076_v44 }
 0x358   : > { %v12307_v10 = vadd.f32 %v4112_v50, %v17353_v26  ;;  %v4404_v20 = vmul.f32 %v12303_v43, %v12303_v43  ;;  %v4334_v15 = vadd.f32 %v4333_v13, %v12303_v43  ;;  %5799 = vmatprep.subr.bf16.mxu0 %v17327_v53 }
 0x35a   : > { %v4531_v58 = vadd.f32 %v4530_v62, %v4404_v20  ;;  %v4405_v48 = vmul.f32 %v12307_v10, %v12307_v10  ;;  %v10078_v62 = vld [vmem:[%s16610_s2 + $0x118] sm:$0xff]  }
 0x35b   : > { %v3827_v7 = vpop.f32.mrb[44].mxu1  ;;  %5800 = vmatpush1.bf16.msra.mxu0 %v10077_v27 }
 0x35c   : > { %v4117_v6 = vadd.f32 %v12128_v41, %v3827_v7  ;;  %v3829_v28 = vpop.f32.mrb[45].mxu1  ;;  %v4335_v41 = vadd.f32 %v4334_v15, %v12307_v10  ;;  %v4532_v35 = vadd.f32 %v4531_v58, %v4405_v48  ;;  %5801 = vmatprep.subr.bf16.mxu0 %v17327_v53  ;;  %v17356_v15 = vld [vmem:[#allocation41_spill] sm:$0xff]  ;;  %v10079_v48 = vld [vmem:[%s16610_s2 + $0x158] sm:$0xff]  }
 0x35d   : > { %v3830_v40 = vpop.f32.mrb[46].mxu1  ;;  %9747 = vmatprep.subr.bf16.mxu1 %v10079_v48 }
 0x35e   : > { %v12319_v25 = vadd.f32 %v4117_v6, %v17354_v49  ;;  %v4120_v29 = vadd.f32 %v12135_v54, %v3830_v40  ;;  %v3832_v59 = vpop.f32.mrb[47].mxu1  ;;  %9748 = vmatpush3.bf16.msra.mxu1 %v10079_v48 }
 0x35f   : > { %5802 = vmatpush1.bf16.msra.mxu0 %v10078_v62 }
 0x360   : > { %v4273_v45 = vmul.f32 0.0, %v12319_v25  ;;  %v4406_v32 = vmul.f32 %v12319_v25, %v12319_v25  ;;  %v12328_v2 = vadd.f32 %v4120_v29, %v17355_v1  ;;  %5803 = vmatprep.subr.bf16.mxu0 %v17327_v53  ;;  %v17357_v29 = vld [vmem:[#allocation101_spill] sm:$0xff]  ;;  %v10083_v1 = vld [vmem:[%s16610_s2 + $0x160] sm:$0xff]  }
 0x361   : > { %9749 = vmatprep.subr.bf16.mxu1 %v10083_v1 }
 0x362   : > { %v4336_v54 = vadd.f32 %v4335_v41, %v4273_v45  ;;  %v4470_v33 = vmul.f32 0.0, %v4406_v32  ;;  %v4274_v50 = vmul.f32 0.0, %v12328_v2  ;;  %v4407_v24 = vmul.f32 %v12328_v2, %v12328_v2  ;;  %9750 = vmatpush3.bf16.msra.mxu1 %v10083_v1 }
 0x363   : > { %v3835_v61 = vpop.f32.mrb[48].mxu1 }
 0x364   : > { %v4533_v14 = vadd.f32 %v4532_v35, %v4470_v33  ;;  %v4471_v26 = vmul.f32 0.0, %v4407_v24  ;;  %v4125_v20 = vadd.f32 %v12153_v18, %v3835_v61  ;;  %v3837_v13 = vpop.f32.mrb[49].mxu1  ;;  %v4337_v28 = vadd.f32 %v4336_v54, %v4274_v50  ;;  %v10081_v50 = vld [vmem:[%s16610_s2 + $0x128] sm:$0xff]   ;;  %v17359_v61 = vld [vmem:[#allocation40_spill] sm:$0xff] }
 0x365   : > { %v3838_v7 = vpop.f32.mrb[50].mxu1  ;;  %v10084_v13 = vld [vmem:[%s16610_s2 + $0x168] sm:$0xff]  }
 0x366   : > { %v12342_v6 = vadd.f32 %v4125_v20, %v17356_v15  ;;  %v4128_v44 = vadd.f32 %v12161_v12, %v3838_v7  ;;  %v3840_v58 = vpop.f32.mrb[51].mxu1  ;;  %v4534_v18 = vadd.f32 %v4533_v14, %v4471_v26  ;;  %v10080_v12 = vld [vmem:[%s16610_s2 + $0x120] sm:$0xff]   ;;  %v17360_v7 = vld [vmem:[#allocation99_spill] sm:$0xff]  ;;  %9751 = vmatprep.subr.bf16.mxu1 %v10084_v13 }
 0x367   : > { %5804 = vmatpush1.bf16.msra.mxu0 %v10080_v12  ;;  %9752 = vmatpush3.bf16.msra.mxu1 %v10084_v13  ;;  %v17363_v13 = vld [vmem:[#allocation44_spill] sm:$0xff] }
 0x368   : > { %v4338_v40 = vadd.f32 %v4337_v28, %v12342_v6  ;;  %v4408_v49 = vmul.f32 %v12342_v6, %v12342_v6  ;;  %v12353_v59 = vadd.f32 %v4128_v44, %v17357_v29  ;;  %5805 = vmatprep.subr.bf16.mxu0 %v17327_v53  ;;  %v10082_v28 = vld [vmem:[%s16610_s2 + $0x130] sm:$0xff]   ;;  %v10087_v29 = vld [vmem:[%s16610_s2 + $0x178] sm:$0xff]  }
 0x369   : > { %v10086_v44 = vld [vmem:[%s16610_s2 + $0x170] sm:$0xff]  }
 0x36a   : > { %17358 = vst [vmem:[#allocation57_spill] sm:$0xff] %v12353_v59  ;;  %v4535_v41 = vadd.f32 %v4534_v18, %v4408_v49  ;;  %v4339_v45 = vadd.f32 %v4338_v40, %v12353_v59  ;;  %v4409_v32 = vmul.f32 %v12353_v59, %v12353_v59  ;;  %v10085_v49 = vld [vmem:[%s16610_s2 + $0x138] sm:$0xff]   ;;  %9753 = vmatprep.subr.bf16.mxu1 %v10086_v44 }
 0x36b   : > { %v3843_v27 = vpop.f32.mrb[52].mxu1  ;;  %5806 = vmatpush1.bf16.msra.mxu0 %v10081_v50  ;;  %9754 = vmatpush3.bf16.msra.mxu1 %v10086_v44 }
 0x36c   : > { %v4536_v35 = vadd.f32 %v4535_v41, %v4409_v32  ;;  %v4133_v54 = vadd.f32 %v12151_v36, %v3843_v27  ;;  %v3845_v33 = vpop.f32.mrb[53].mxu1  ;;  %5807 = vmatprep.subr.bf16.mxu0 %v17327_v53  ;;  %v10151_v36 = vmov 0.0   ;;  %v12402_v41 = vld [vmem:[%s16610_s2 + $0x80] sm:$0xff]   ;;  %9755 = vmatprep.subr.bf16.mxu1 %v10087_v29 }
 0x36d   : > { %v3846_v24 = vpop.f32.mrb[54].mxu1  ;;  %1197 = vst [vmem:[#allocation2] sm:$0xff] %v10151_v36  ;;  %1204 = vst [vmem:[#allocation2 + $0x38] sm:$0xff] %v10151_v36 }
 0x36e   : > { %v12370_v14 = vadd.f32 %v4133_v54, %v17359_v61  ;;  %v4136_v26 = vadd.f32 %v12157_v39, %v3846_v24  ;;  %v3848_v20 = vpop.f32.mrb[55].mxu1  ;;  %1200 = vst [vmem:[#allocation2 + $0x18] sm:$0xff] %v10151_v36  ;;  %1201 = vst [vmem:[#allocation2 + $0x20] sm:$0xff] %v10151_v36  ;;  %v17362_v24 = vld [vmem:[#allocation10_spill] sm:$0xff] }
 0x36f   : > { %1202 = vst [vmem:[#allocation2 + $0x28] sm:$0xff] %v10151_v36  ;;  %1203 = vst [vmem:[#allocation2 + $0x30] sm:$0xff] %v10151_v36  ;;  %5808 = vmatpush1.bf16.msra.mxu0 %v10082_v28  ;;  %9756 = vmatpush3.bf16.msra.mxu1 %v10087_v29 }
 0x370   : > { %1205 = vst [vmem:[#allocation2 + $0x240] sm:$0xff] %v10151_v36  ;;  %1206 = vst [vmem:[#allocation2 + $0x248] sm:$0xff] %v10151_v36  ;;  %v4277_v39 = vmul.f32 0.0, %v12370_v14  ;;  %v4410_v62 = vmul.f32 %v12370_v14, %v12370_v14  ;;  %v12381_v15 = vadd.f32 %v4136_v26, %v17360_v7  ;;  %5809 = vmatprep.subr.bf16.mxu0 %v17327_v53  ;;  %6501 = vmatprep.subr.bf16.mxu1 %v17327_v53  ;;  %v17390_v53 = vld [vmem:[#allocation108_spill] sm:$0xff] }
 0x371   : > { %1207 = vst [vmem:[#allocation2 + $0x250] sm:$0xff] %v10151_v36  ;;  %1208 = vst [vmem:[#allocation2 + $0x258] sm:$0xff] %v10151_v36 }
 0x372   : > { %1209 = vst [vmem:[#allocation2 + $0x260] sm:$0xff] %v10151_v36  ;;  %v4340_v58 = vadd.f32 %v4339_v45, %v4277_v39  ;;  %v4474_v48 = vmul.f32 0.0, %v4410_v62  ;;  %v4278_v18 = vmul.f32 0.0, %v12381_v15  ;;  %v4411_v40 = vmul.f32 %v12381_v15, %v12381_v15  ;;  %17361 = vst [vmem:[#allocation58_spill] sm:$0xff] %v12402_v41 }
 0x373   : > { %v3851_v12 = vpop.f32.mrb[56].mxu1  ;;  %5810 = vmatpush1.bf16.msra.mxu0 %v10085_v49 }
 0x374   : > { %v4537_v45 = vadd.f32 %v4536_v35, %v4474_v48  ;;  %v4475_v32 = vmul.f32 0.0, %v4411_v40  ;;  %v4141_v1 = vadd.f32 %v12179_v16, %v3851_v12  ;;  %v4341_v27 = vadd.f32 %v4340_v58, %v4278_v18  ;;  %v3853_v54 = vpop.f32.mrb[57].mxu1  ;;  %9821 = vmatprep.subr.bf16.mxu0 %v12402_v41  ;;  %v17364_v18 = vld [vmem:[#allocation110_spill] sm:$0xff]  ;;  %v17393_v41 = vld [vmem:[#allocation84_spill] sm:$0xff] }
 0x375   : > { %v3854_v33 = vpop.f32.mrb[58].mxu1 }
 0x376   : > { %v4538_v50 = vadd.f32 %v4537_v45, %v4475_v32  ;;  %v12406_v61 = vadd.f32 %v4141_v1, %v17362_v24  ;;  %v4144_v26 = vadd.f32 %v12184_v52, %v3854_v33  ;;  %v3856_v20 = vpop.f32.mrb[59].mxu1  ;;  %v17366_v32 = vld [vmem:[#allocation11_spill] sm:$0xff] }
 0x378   : > { %v4342_v35 = vadd.f32 %v4341_v27, %v12406_v61  ;;  %v4412_v16 = vmul.f32 %v12406_v61, %v12406_v61  ;;  %v12414_v36 = vadd.f32 %v4144_v26, %v17363_v13 }
 0x37a   : > { %v4539_v39 = vadd.f32 %v4538_v50, %v4412_v16  ;;  %v4343_v62 = vadd.f32 %v4342_v35, %v12414_v36  ;;  %v4413_v52 = vmul.f32 %v12414_v36, %v12414_v36 }
 0x37b   : > { %v3859_v7 = vpop.f32.mrb[60].mxu1 }
 0x37c   : > { %v4540_v28 = vadd.f32 %v4539_v39, %v4413_v52  ;;  %v4149_v44 = vadd.f32 %v12176_v57, %v3859_v7  ;;  %v3861_v58 = vpop.f32.mrb[61].mxu1 }
 0x37d   : > { %v3862_v48 = vpop.f32.mrb[62].mxu1 }
 0x37e   : > { %v12422_v40 = vadd.f32 %v4149_v44, %v17364_v18  ;;  %v4152_v49 = vadd.f32 %v12181_v3, %v3862_v48  ;;  %v3864_v29 = vpop.f32.mrb[63].mxu1 }
 0x380   : > { %17365 = vst [vmem:[#allocation89_spill] sm:$0xff] %v12422_v40  ;;  %v4281_v12 = vmul.f32 0.0, %v12422_v40  ;;  %v4414_v45 = vmul.f32 %v12422_v40, %v12422_v40  ;;  %v12429_v1 = vadd.f32 %v4152_v49, %v17366_v32  ;;  %v17388_v32 = vld [vmem:[#allocation54_spill] sm:$0xff] }
 0x382   : > { %v4344_v27 = vadd.f32 %v4343_v62, %v4281_v12  ;;  %v4478_v54 = vmul.f32 0.0, %v4414_v45  ;;  %v4282_v57 = vmul.f32 0.0, %v12429_v1  ;;  %v4415_v33 = vmul.f32 %v12429_v1, %v12429_v1 }
 0x384   : > { %v4541_v50 = vadd.f32 %v4540_v28, %v4478_v54  ;;  %v4345_v24 = vadd.f32 %v4344_v27, %v4282_v57  ;;  %v4479_v26 = vmul.f32 0.0, %v4415_v33  ;;  %v17367_v27 = vld [vmem:[#allocation91_spill] sm:$0xff]  ;;  %v17368_v57 = vld [vmem:[#allocation45_spill] sm:$0xff] }
 0x385   : > { %v17386_v33 = vld [vmem:[#allocation109_spill] sm:$0xff] }
 0x386   : > { %v4346_v3 = vrot.slane %v4345_v24, 4  ;;  %v4542_v20 = vadd.f32 %v4541_v50, %v4479_v26  ;;  %v17369_v50 = vld [vmem:[#allocation98_spill] sm:$0xff]  ;;  %v17387_v54 = vld [vmem:[#allocation53_spill] sm:$0xff] }
 0x387   : > { %v17370_v26 = vld [vmem:[#allocation14_spill] sm:$0xff] }
 0x388   : > { %v4347_v35 = vadd.f32 %v4346_v3, %v4345_v24  ;;  %v4543_v16 = vrot.slane %v4542_v20, 4  ;;  %v17384_v3 = vld [vmem:[#allocation52_spill] sm:$0xff] }
 0x38a   : > { %v4348_v13 = vrot.slane %v4347_v35, 2  ;;  %v4544_v39 = vadd.f32 %v4543_v16, %v4542_v20  ;;  %v17371_v20 = vld [vmem:[#allocation47_spill] sm:$0xff] }
 0x38c   : > { %v4349_v52 = vadd.f32 %v4348_v13, %v4347_v35  ;;  %v4545_v7 = vrot.slane %v4544_v39, 2  ;;  %v17372_v13 = vld [vmem:[#allocation100_spill] sm:$0xff] }
 0x38e   : > { %v4350_v44 = vrot.slane %v4349_v52, 1  ;;  %v4546_v58 = vadd.f32 %v4545_v7, %v4544_v39  ;;  %v17394_v39 = vld [vmem:[#allocation80_spill] sm:$0xff] }
 0x390   : > { %v4351_v62 = vadd.f32 %v4350_v44, %v4349_v52  ;;  %v4547_v48 = vrot.slane %v4546_v58, 1  ;;  %v17373_v52 = vld [vmem:[#allocation15_spill] sm:$0xff] }
 0x391   : > { %v17374_v44 = vld [vmem:[#allocation103_spill] sm:$0xff] }
 0x392   : > { %v4548_v18 = vadd.f32 %v4547_v48, %v4546_v58  ;;  %v12434_v49 = vmul.f32 0.00390625, %v4351_v62  ;;  %v17375_v62 = vld [vmem:[#allocation18_spill] sm:$0xff]  ;;  %v17392_v48 = vld [vmem:[#allocation77_spill] sm:$0xff] }
 0x394   : > { %v4550_v29 = vmul.f32 0.00390625, %v4548_v18  ;;  %v4551_v28 = vmul.f32 %v12434_v49, %v12434_v49  ;;  %v17376_v18 = vld [vmem:[#allocation48_spill] sm:$0xff]  ;;  %v4606_v42 = vsub.f32 %v12303_v43, %v12434_v49  ;;  %v4607_v35 = vsub.f32 %v12307_v10, %v12434_v49 }
 0x395   : > { %v4609_v7 = vsub.f32 %v12328_v2, %v12434_v49  ;;  %v17395_v58 = vsub.f32 %v12429_v1, %v12434_v49  ;;  %v17396_v12 = vsub.f32 %v11845_v19, %v12434_v49  ;;  %v17397_v43 = vsub.f32 %v17367_v27, %v12434_v49 }
 0x396   : > { %v4552_v45 = vsub.f32 %v4550_v29, %v4551_v28  ;;  %v17377_v28 = vld [vmem:[#allocation105_spill] sm:$0xff]  ;;  %v4608_v29 = vsub.f32 %v12319_v25, %v12434_v49  ;;  %v17398_v25 = vsub.f32 %v17368_v57, %v12434_v49  ;;  %v17399_v1 = vsub.f32 %v17369_v50, %v12434_v49 }
 0x398   : > { %v4553_v16 = vmax.f32 %v4552_v45, 0.0  ;;  %v17378_v45 = vld [vmem:[#allocation19_spill] sm:$0xff] }
 0x39a   : > { %v4618_v24 = vadd.f32 1e-05, %v4553_v16  ;;  %v17385_v16 = vld [vmem:[#allocation107_spill] sm:$0xff] }
 0x39c   : > { %10136 = vrsqrt.f32 %v4618_v24  ;;  %v17391_v24 = vld [vmem:[#allocation56_spill] sm:$0xff] }
 0x3a6   : > { %v12558_v59 = vpop.eup %10136 }
 0x3a7   : > { %v4683_v22 = vmul.f32 %v12558_v59, %v17395_v58  ;;  %v12576_v40 = vmul.f32 %v12558_v59, %v17396_v12  ;;  %v12582_v10 = vmul.f32 %v12558_v59, %v17397_v43  ;;  %v12588_v2 = vmul.f32 %v12558_v59, %v17398_v25 }
 0x3a8   : > { %v12594_v19 = vmul.f32 %v12558_v59, %v17399_v1  ;;  %v17400_v12 = vsub.f32 %v17370_v26, %v12434_v49  ;;  %v17401_v58 = vsub.f32 %v17371_v20, %v12434_v49  ;;  %v17402_v43 = vsub.f32 %v17372_v13, %v12434_v49 }
 0x3a9   : > { %vm4747_vm0 = vcmp.gt.f32.partialorder %v4683_v22, 0.0  ;;  %v4811_v25 = vmul.f32 0.2, %v4683_v22  ;;  %v17403_v26 = vsub.f32 %v17373_v52, %v12434_v49  ;;  %v17404_v20 = vsub.f32 %v17374_v44, %v12434_v49 }
 0x3aa   : > { %v12600_v27 = vmul.f32 %v12558_v59, %v17400_v12  ;;  %v12606_v57 = vmul.f32 %v12558_v59, %v17401_v58  ;;  %v12612_v50 = vmul.f32 %v12558_v59, %v17402_v43  ;;  %v17406_v13 = vsub.f32 %v17375_v62, %v12434_v49 }
 0x3ab   : > { %v12618_v1 = vmul.f32 %v12558_v59, %v17403_v26  ;;  %v12624_v12 = vmul.f32 %v12558_v59, %v17404_v20  ;;  %v17408_v43 = vsub.f32 %v17376_v18, %v12434_v49  ;;  %v17410_v26 = vsub.f32 %v17377_v28, %v12434_v49 }
 0x3ac   : > { %v12630_v58 = vmul.f32 %v12558_v59, %v17406_v13  ;;  %v17412_v20 = vsub.f32 %v17378_v45, %v12434_v49  ;;  %v4875_v13 = vsel %vm4747_vm0, %v4683_v22, %v4811_v25  ;;  %v17420_v22 = vld [vmem:[#allocation104_spill] sm:$0xff]  ;;  %vm4684_vm1 = vcmp.gt.f32.partialorder %v12576_v40, 0.0 }
 0x3ad   : > { %17405 = vst [vmem:[#allocation85_spill] sm:$0xff] %v12624_v12  ;;  %v12636_v52 = vmul.f32 %v12558_v59, %v17408_v43  ;;  %v12642_v44 = vmul.f32 %v12558_v59, %v17410_v26  ;;  %v17416_v43 = vld [vmem:[#allocation49_spill] sm:$0xff]  ;;  %v17418_v26 = vld [vmem:[#allocation102_spill] sm:$0xff]  ;;  %v17421_v25 = vsub.f32 %v17420_v22, %v12434_v49  ;;  %v17426_v22 = vsub.f32 %v17386_v33, %v12434_v49 }
 0x3ae   : > { %17407 = vst [vmem:[#allocation94_spill] sm:$0xff] %v12630_v58  ;;  %v12648_v62 = vmul.f32 %v12558_v59, %v17412_v20  ;;  %v17413_v58 = vld [vmem:[#allocation50_spill] sm:$0xff]  ;;  %v4939_v20 = vmul.f32 0.0, %v4875_v13  ;;  %vm4685_vm2 = vcmp.gt.f32.partialorder %v12582_v10, 0.0  ;;  %vm4686_vm3 = vcmp.gt.f32.partialorder %v12588_v2, 0.0 }
 0x3af   : > { %17409 = vst [vmem:[#allocation88_spill] sm:$0xff] %v12636_v52  ;;  %17411 = vst [vmem:[#allocation59_spill] sm:$0xff] %v12642_v44  ;;  %v17414_v12 = vsub.f32 %v17413_v58, %v12434_v49  ;;  %v17417_v52 = vsub.f32 %v17416_v43, %v12434_v49  ;;  %v17419_v44 = vsub.f32 %v17418_v26, %v12434_v49  ;;  %vm4687_vm4 = vcmp.gt.f32.partialorder %v12594_v19, 0.0 }
 0x3b0   : > { %v12672_v58 = vmul.f32 %v12558_v59, %v17421_v25  ;;  %v12696_v25 = vmul.f32 %v12558_v59, %v17426_v22  ;;  %5003 = vst [vmem:[#allocation2 + $0x238] sm:$0xff] %v4939_v20  ;;  %v17432_v22 = vsub.f32 %v17390_v53, %v12434_v49  ;;  %v17435_v20 = vsub.f32 %v17391_v24, %v12434_v49 }
 0x3b1   : > { %v12654_v18 = vmul.f32 %v12558_v59, %v17414_v12  ;;  %v12660_v28 = vmul.f32 %v12558_v59, %v17417_v52  ;;  %v12666_v45 = vmul.f32 %v12558_v59, %v17419_v44  ;;  %v17422_v12 = vld [vmem:[#allocation51_spill] sm:$0xff]  ;;  %v17424_v52 = vsub.f32 %v17384_v3, %v12434_v49 }
 0x3b2   : > { %v17425_v44 = vsub.f32 %v17385_v16, %v12434_v49  ;;  %vm4688_vm5 = vcmp.gt.f32.partialorder %v12600_v27, 0.0  ;;  %vm4689_vm6 = vcmp.gt.f32.partialorder %v12606_v57, 0.0  ;;  %vm4690_vm7 = vcmp.gt.f32.partialorder %v12612_v50, 0.0 }
 0x3b3   : > { %17415 = vst [vmem:[#allocation60_spill] sm:$0xff] %v12654_v18  ;;  %v17423_v18 = vsub.f32 %v17422_v12, %v12434_v49  ;;  %v12684_v26 = vmul.f32 %v12558_v59, %v17424_v52  ;;  %v17429_v12 = vsub.f32 %v17388_v32, %v12434_v49  ;;  %v17430_v52 = vld [vmem:[#allocation106_spill] sm:$0xff]  ;;  %vm4691_vm8 = vcmp.gt.f32.partialorder %v12618_v1, 0.0 }
 0x3b4   : > { %v12690_v13 = vmul.f32 %v12558_v59, %v17425_v44  ;;  %v17431_v44 = vsub.f32 %v17430_v52, %v12434_v49  ;;  %v17436_v52 = vld [vmem:[#allocation81_spill] sm:$0xff]  ;;  %vm4696_vm13 = vcmp.gt.f32.partialorder %v12648_v62, 0.0  ;;  %vm4698_vm15 = vcmp.gt.f32.partialorder %v12660_v28, 0.0 }
 0x3b5   : > { %v12678_v43 = vmul.f32 %v12558_v59, %v17423_v18  ;;  %v17427_v18 = vsub.f32 %v17387_v54, %v12434_v49  ;;  %v12708_v16 = vmul.f32 %v12558_v59, %v17429_v12  ;;  %v12720_v54 = vmul.f32 %v12558_v59, %v17432_v22 }
 0x3b6   : > { %v12714_v33 = vmul.f32 %v12558_v59, %v17431_v44  ;;  %v12732_v12 = vmul.f32 %v12558_v59, %v17435_v20  ;;  %v17437_v44 = vsub.f32 %v17436_v52, %v12434_v49  ;;  %v17438_v22 = vsub.f32 %v12060_v5, %v12434_v49 }
 0x3b7   : > { %v12702_v3 = vmul.f32 %v12558_v59, %v17427_v18  ;;  %v17433_v18 = vld [vmem:[#allocation55_spill] sm:$0xff]  ;;  %v17440_v20 = vsub.f32 %v17392_v48, %v12434_v49  ;;  %vm4699_vm0 = vcmp.gt.f32.partialorder %v12666_v45, 0.0 }
 0x3b8   : > { %v12738_v53 = vmul.f32 %v12558_v59, %v17437_v44  ;;  %v17441_v44 = vsub.f32 %v12102_v47, %v12434_v49 }
 0x3b9   : > { %17428 = vst [vmem:[#allocation23_spill] sm:$0xff] %v12702_v3  ;;  %v17434_v3 = vsub.f32 %v17433_v18, %v12434_v49  ;;  %v12744_v18 = vmul.f32 %v12558_v59, %v17438_v22  ;;  %v12756_v52 = vmul.f32 %v12558_v59, %v17440_v20  ;;  %v17442_v22 = vsub.f32 %v17393_v41, %v12434_v49 }
 0x3ba   : > { %v12762_v5 = vmul.f32 %v12558_v59, %v17441_v44  ;;  %v17444_v20 = vsub.f32 %v17394_v39, %v12434_v49  ;;  %v17445_v44 = vsub.f32 %v12147_v17, %v12434_v49 }
 0x3bb   : > { %v12726_v32 = vmul.f32 %v12558_v59, %v17434_v3  ;;  %v17439_v3 = vsub.f32 %v12067_v31, %v12434_v49  ;;  %v12768_v31 = vmul.f32 %v12558_v59, %v17442_v22  ;;  %v17446_v22 = vsub.f32 %v12167_v51, %v12434_v49 }
 0x3bc   : > { %v12780_v47 = vmul.f32 %v12558_v59, %v17444_v20  ;;  %v12786_v41 = vmul.f32 %v12558_v59, %v17445_v44  ;;  %v17448_v20 = vsub.f32 %v12189_v34, %v12434_v49  ;;  %v17449_v44 = vsub.f32 %v12196_v46, %v12434_v49 }
 0x3bd   : > { %v12750_v24 = vmul.f32 %v12558_v59, %v17439_v3  ;;  %v17443_v3 = vsub.f32 %v12124_v37, %v12434_v49  ;;  %v12792_v37 = vmul.f32 %v12558_v59, %v17446_v22  ;;  %v17450_v22 = vsub.f32 %v12207_v11, %v12434_v49 }
 0x3be   : > { %v12804_v17 = vmul.f32 %v12558_v59, %v17448_v20  ;;  %v12810_v51 = vmul.f32 %v12558_v59, %v17449_v44  ;;  %v17452_v20 = vsub.f32 %v12223_v4, %v12434_v49  ;;  %v17453_v44 = vsub.f32 %v12230_v8, %v12434_v49 }
 0x3bf   : > { %v12774_v48 = vmul.f32 %v12558_v59, %v17443_v3  ;;  %v17447_v3 = vsub.f32 %v12174_v23, %v12434_v49  ;;  %v12816_v23 = vmul.f32 %v12558_v59, %v17450_v22  ;;  %v17454_v22 = vsub.f32 %v12237_v30, %v12434_v49 }
 0x3c0   : > { %v12828_v46 = vmul.f32 %v12558_v59, %v17452_v20  ;;  %v12834_v11 = vmul.f32 %v12558_v59, %v17453_v44  ;;  %v17456_v20 = vsub.f32 %v12255_v55, %v12434_v49  ;;  %v17457_v44 = vsub.f32 %v12259_v63, %v12434_v49 }
 0x3c1   : > { %v12798_v39 = vmul.f32 %v12558_v59, %v17447_v3  ;;  %v17451_v3 = vsub.f32 %v12211_v0, %v12434_v49  ;;  %v12840_v0 = vmul.f32 %v12558_v59, %v17454_v22  ;;  %v17458_v22 = vsub.f32 %v12271_v56, %v12434_v49 }
 0x3c2   : > { %v12852_v8 = vmul.f32 %v12558_v59, %v17456_v20  ;;  %v12858_v30 = vmul.f32 %v12558_v59, %v17457_v44  ;;  %v17461_v20 = vsub.f32 %v12285_v9, %v12434_v49  ;;  %v17463_v44 = vsub.f32 %v12292_v38, %v12434_v49 }
 0x3c3   : > { %v12822_v34 = vmul.f32 %v12558_v59, %v17451_v3  ;;  %v17455_v3 = vsub.f32 %v12244_v21, %v12434_v49  ;;  %v12864_v21 = vmul.f32 %v12558_v59, %v17458_v22  ;;  %v12885_v22 = vmul.f32 %v12558_v59, %v4606_v42 }
 0x3c4   : > { %v12876_v63 = vmul.f32 %v12558_v59, %v17461_v20  ;;  %v12882_v56 = vmul.f32 %v12558_v59, %v17463_v44  ;;  %v12894_v9 = vmul.f32 %v12558_v59, %v4609_v7  ;;  %v17469_v20 = vsub.f32 %v12342_v6, %v12434_v49  ;;  %v17471_v44 = vld [vmem:[#allocation57_spill] sm:$0xff] }
 0x3c5   : > { %v12846_v4 = vmul.f32 %v12558_v59, %v17455_v3  ;;  %17459 = vst [vmem:[#allocation93_spill] sm:$0xff] %v12864_v21  ;;  %v17460_v3 = vsub.f32 %v12278_v60, %v12434_v49  ;;  %17465 = vst [vmem:[#allocation43_spill] sm:$0xff] %v12885_v22  ;;  %v12888_v60 = vmul.f32 %v12558_v59, %v4607_v35 }
 0x3c6   : > { %17462 = vst [vmem:[#allocation26_spill] sm:$0xff] %v12876_v63  ;;  %17464 = vst [vmem:[#allocation22_spill] sm:$0xff] %v12882_v56  ;;  %v12900_v38 = vmul.f32 %v12558_v59, %v17469_v20  ;;  %v17472_v56 = vsub.f32 %v17471_v44, %v12434_v49  ;;  %v17474_v35 = vsub.f32 %v12370_v14, %v12434_v49 }
 0x3c7   : > { %v12870_v55 = vmul.f32 %v12558_v59, %v17460_v3  ;;  %17466 = vst [vmem:[#allocation61_spill] sm:$0xff] %v12888_v60  ;;  %v12891_v3 = vmul.f32 %v12558_v59, %v4608_v29  ;;  %17468 = vst [vmem:[#allocation27_spill] sm:$0xff] %v12894_v9  ;;  %v17476_v7 = vsub.f32 %v12381_v15, %v12434_v49  ;;  %v12978_v60 = vmul.f32 0.2, %v12648_v62 }
 0x3c8   : > { %17470 = vst [vmem:[#allocation30_spill] sm:$0xff] %v12900_v38  ;;  %v12906_v42 = vmul.f32 %v12558_v59, %v17472_v56  ;;  %v12912_v29 = vmul.f32 %v12558_v59, %v17474_v35  ;;  %v17478_v20 = vsub.f32 %v12406_v61, %v12434_v49  ;;  %v17480_v56 = vsub.f32 %v12414_v36, %v12434_v49  ;;  %v17482_v35 = vld [vmem:[#allocation89_spill] sm:$0xff] }
 0x3c9   : > { %17467 = vst [vmem:[#allocation62_spill] sm:$0xff] %v12891_v3  ;;  %v12918_v6 = vmul.f32 %v12558_v59, %v17476_v7  ;;  %v17485_v61 = vld [vmem:[#allocation85_spill] sm:$0xff]  ;;  %v4748_v36 = vmul.f32 0.2, %v12576_v40  ;;  %v4750_v7 = vmul.f32 0.2, %v12588_v2 }
 0x3ca   : > { %17473 = vst [vmem:[#allocation5_spill] sm:$0xff] %v12906_v42  ;;  %17475 = vst [vmem:[#allocation46_spill] sm:$0xff] %v12912_v29  ;;  %v12924_v44 = vmul.f32 %v12558_v59, %v17478_v20  ;;  %v12930_v14 = vmul.f32 %v12558_v59, %v17480_v56  ;;  %v17483_v29 = vsub.f32 %v17482_v35, %v12434_v49  ;;  %vm4692_vm9 = vcmp.gt.f32.partialorder %v17485_v61, 0.0  ;;  %v17487_v49 = vld [vmem:[#allocation88_spill] sm:$0xff]  ;;  %v17488_v56 = vld [vmem:[#allocation59_spill] sm:$0xff] }
 0x3cb   : > { %17477 = vst [vmem:[#allocation63_spill] sm:$0xff] %v12918_v6  ;;  %vm4694_vm11 = vcmp.gt.f32.partialorder %v17487_v49, 0.0  ;;  %v4751_v20 = vmul.f32 0.2, %v12594_v19  ;;  %vm4695_vm12 = vcmp.gt.f32.partialorder %v17488_v56, 0.0  ;;  %v17491_v3 = vld [vmem:[#allocation60_spill] sm:$0xff]  ;;  %v12983_v22 = vsel %vm4686_vm3, %v12588_v2, %v4750_v7 }
 0x3cc   : > { %17479 = vst [vmem:[#allocation64_spill] sm:$0xff] %v12924_v44  ;;  %17481 = vst [vmem:[#allocation65_spill] sm:$0xff] %v12930_v14  ;;  %v12936_v15 = vmul.f32 %v12558_v59, %v17483_v29  ;;  %v17486_v59 = vld [vmem:[#allocation94_spill] sm:$0xff]  ;;  %v4749_v29 = vmul.f32 0.2, %v12582_v10  ;;  %v12960_v44 = vsel %vm4684_vm1, %v12576_v40, %v4748_v36  ;;  %vm4697_vm14 = vcmp.gt.f32.partialorder %v17491_v3, 0.0 }
 0x3cd   : > { %vm4693_vm10 = vcmp.gt.f32.partialorder %v17486_v59, 0.0  ;;  %v4752_v35 = vmul.f32 0.2, %v12600_v27  ;;  %v4754_v14 = vmul.f32 0.2, %v12612_v50  ;;  %17489 = vst [vmem:[#allocation67_spill] sm:$0xff] %v12960_v44  ;;  %v12999_v63 = vsel %vm4687_vm4, %v12594_v19, %v4751_v20 }
 0x3ce   : > { %17484 = vst [vmem:[#allocation66_spill] sm:$0xff] %v12936_v15  ;;  %v4753_v15 = vmul.f32 0.2, %v12606_v57  ;;  %v4755_v6 = vmul.f32 0.2, %v12618_v1  ;;  %v12969_v9 = vsel %vm4685_vm2, %v12582_v10, %v4749_v29  ;;  %4940 = vst [vmem:[#allocation2 + $0x40] sm:$0xff] %v12960_v44 }
 0x3cf   : > { %v4756_v42 = vmul.f32 0.2, %v17485_v61  ;;  %v4757_v38 = vmul.f32 0.2, %v17486_v59  ;;  %17490 = vst [vmem:[#allocation68_spill] sm:$0xff] %v12969_v9  ;;  %17492 = vst [vmem:[#allocation69_spill] sm:$0xff] %v12983_v22  ;;  %v13014_v22 = vsel %vm4688_vm5, %v12600_v27, %v4752_v35 }
 0x3d0   : > { %v4758_v40 = vmul.f32 0.2, %v17487_v49  ;;  %v12975_v36 = vmul.f32 0.2, %v17488_v56  ;;  %4941 = vst [vmem:[#allocation2 + $0x48] sm:$0xff] %v12969_v9  ;;  %17493 = vst [vmem:[#allocation70_spill] sm:$0xff] %v12999_v63 }
 0x3d1   : > { %v12988_v10 = vmul.f32 0.2, %v17491_v3  ;;  %v12991_v29 = vmul.f32 0.2, %v12660_v28  ;;  %v12994_v44 = vmul.f32 0.2, %v12666_v45 }
 0x3d2   : > { %v13003_v2 = vmul.f32 0.2, %v12672_v58  ;;  %v13006_v7 = vmul.f32 0.2, %v12678_v43  ;;  %v13009_v9 = vmul.f32 0.2, %v12684_v26 }
 0x3d3   : > { %17496 = vst [vmem:[#allocation9_spill] sm:$0xff] %v13014_v22  ;;  %vm4700_vm1 = vcmp.gt.f32.partialorder %v12672_v58, 0.0  ;;  %v13018_v19 = vmul.f32 0.2, %v12690_v13  ;;  %v13021_v20 = vmul.f32 0.2, %v12696_v25 }
 0x3d4   : > { %17494 = vst [vmem:[#allocation8_spill] sm:$0xff] %v13003_v2  ;;  %17495 = vst [vmem:[#allocation31_spill] sm:$0xff] %v13009_v9  ;;  %v17498_v63 = vld [vmem:[#allocation23_spill] sm:$0xff]  ;;  %v13029_v9 = vsel %vm4689_vm6, %v12606_v57, %v4753_v15  ;;  %vm4701_vm2 = vcmp.gt.f32.partialorder %v12678_v43, 0.0  ;;  %v13034_v27 = vmul.f32 0.2, %v12708_v16 }
 0x3d5   : > { %17497 = vst [vmem:[#allocation71_spill] sm:$0xff] %v13021_v20  ;;  %v13024_v2 = vmul.f32 0.2, %v17498_v63  ;;  %17500 = vst [vmem:[#allocation34_spill] sm:$0xff] %v13029_v9  ;;  %v13037_v35 = vmul.f32 0.2, %v12714_v33 }
 0x3d6   : > { %4944 = vst [vmem:[#allocation2 + $0x60] sm:$0xff] %v13014_v22  ;;  %v13040_v20 = vmul.f32 0.2, %v12720_v54  ;;  %4945 = vst [vmem:[#allocation2 + $0x68] sm:$0xff] %v13029_v9  ;;  %vm4702_vm3 = vcmp.gt.f32.partialorder %v12684_v26, 0.0  ;;  %vm4703_vm4 = vcmp.gt.f32.partialorder %v12690_v13, 0.0 }
 0x3d7   : > { %17499 = vst [vmem:[#allocation72_spill] sm:$0xff] %v13024_v2  ;;  %v13045_v2 = vsel %vm4690_vm7, %v12612_v50, %v4754_v14  ;;  %v13050_v57 = vmul.f32 0.2, %v12726_v32  ;;  %v13053_v15 = vmul.f32 0.2, %v12732_v12  ;;  %vm4705_vm6 = vcmp.gt.f32.partialorder %v17498_v63, 0.0 }
 0x3d8   : > { %17501 = vst [vmem:[#allocation35_spill] sm:$0xff] %v13040_v20  ;;  %17502 = vst [vmem:[#allocation73_spill] sm:$0xff] %v13045_v2  ;;  %v13056_v22 = vmul.f32 0.2, %v12738_v53  ;;  %v13061_v20 = vsel %vm4691_vm8, %v12618_v1, %v4755_v6  ;;  %v13066_v50 = vmul.f32 0.2, %v12744_v18  ;;  %v13077_v2 = vsel %vm4692_vm9, %v17485_v61, %v4756_v42 }
 0x3d9   : > { %17503 = vst [vmem:[#allocation74_spill] sm:$0xff] %v13061_v20  ;;  %v13069_v14 = vmul.f32 0.2, %v12750_v24  ;;  %v13072_v9 = vmul.f32 0.2, %v12756_v52  ;;  %17504 = vst [vmem:[#allocation75_spill] sm:$0xff] %v13077_v2  ;;  %v13095_v42 = vsel %vm4693_vm10, %v17486_v59, %v4757_v38  ;;  %v13114_v38 = vsel %vm4694_vm11, %v17487_v49, %v4758_v40 }
 0x3da   : > { %v13084_v1 = vmul.f32 0.2, %v12762_v5  ;;  %v13087_v6 = vmul.f32 0.2, %v12768_v31  ;;  %v13090_v20 = vmul.f32 0.2, %v12774_v48  ;;  %v13134_v49 = vsel %vm4695_vm12, %v17488_v56, %v12975_v36 }
 0x3db   : > { %17507 = vst [vmem:[#allocation79_spill] sm:$0xff] %v13095_v42  ;;  %4948 = vst [vmem:[#allocation2 + $0x80] sm:$0xff] %v13077_v2  ;;  %vm4709_vm9 = vcmp.gt.f32.partialorder %v12726_v32, 0.0  ;;  %v13103_v61 = vmul.f32 0.2, %v12780_v47  ;;  %vm4713_vm10 = vcmp.gt.f32.partialorder %v12750_v24, 0.0  ;;  %v13153_v56 = vsel %vm4696_vm13, %v12648_v62, %v12978_v60 }
 0x3dc   : > { %17505 = vst [vmem:[#allocation76_spill] sm:$0xff] %v13087_v6  ;;  %17506 = vst [vmem:[#allocation78_spill] sm:$0xff] %v13090_v20  ;;  %v13106_v20 = vmul.f32 0.2, %v12786_v41  ;;  %v13109_v6 = vmul.f32 0.2, %v12792_v37  ;;  %v13172_v62 = vsel %vm4697_vm14, %v17491_v3, %v12988_v10  ;;  %v13192_v3 = vsel %vm4698_vm15, %v12660_v28, %v12991_v29 }
 0x3dd   : > { %17509 = vst [vmem:[#allocation82_spill] sm:$0xff] %v13114_v38  ;;  %4949 = vst [vmem:[#allocation2 + $0x88] sm:$0xff] %v13095_v42  ;;  %v13122_v59 = vmul.f32 0.2, %v12798_v39  ;;  %v13125_v2 = vmul.f32 0.2, %v12804_v17  ;;  %v13212_v28 = vsel %vm4699_vm0, %v12666_v45, %v12994_v44 }
 0x3de   : > { %17508 = vst [vmem:[#allocation12_spill] sm:$0xff] %v13109_v6  ;;  %v13128_v6 = vmul.f32 0.2, %v12810_v51  ;;  %17510 = vst [vmem:[#allocation83_spill] sm:$0xff] %v13134_v49  ;;  %vm4717_vm11 = vcmp.gt.f32.partialorder %v12774_v48, 0.0  ;;  %vm4721_vm12 = vcmp.gt.f32.partialorder %v12798_v39, 0.0 }
 0x3df   : > { %v13141_v40 = vmul.f32 0.2, %v12816_v23  ;;  %v13144_v42 = vmul.f32 0.2, %v12822_v34  ;;  %v13147_v38 = vmul.f32 0.2, %v12828_v46 }
 0x3e0   : > { %17512 = vst [vmem:[#allocation87_spill] sm:$0xff] %v13153_v56  ;;  %v13160_v36 = vmul.f32 0.2, %v12834_v11  ;;  %v13163_v49 = vmul.f32 0.2, %v12840_v0  ;;  %17515 = vst [vmem:[#allocation95_spill] sm:$0xff] %v13172_v62 }
 0x3e1   : > { %17511 = vst [vmem:[#allocation86_spill] sm:$0xff] %v13147_v38  ;;  %v13166_v38 = vmul.f32 0.2, %v12846_v4  ;;  %4952 = vst [vmem:[#allocation2 + $0xa0] sm:$0xff] %v13153_v56  ;;  %vm4725_vm13 = vcmp.gt.f32.partialorder %v12822_v34, 0.0  ;;  %vm4729_vm14 = vcmp.gt.f32.partialorder %v12846_v4, 0.0 }
 0x3e2   : > { %17513 = vst [vmem:[#allocation90_spill] sm:$0xff] %v13163_v49  ;;  %v13180_v60 = vmul.f32 0.2, %v12852_v8  ;;  %v13186_v49 = vmul.f32 0.2, %v12864_v21  ;;  %17519 = vst [vmem:[#allocation16_spill] sm:$0xff] %v13192_v3 }
 0x3e3   : > { %17514 = vst [vmem:[#allocation92_spill] sm:$0xff] %v13166_v38  ;;  %v13183_v38 = vmul.f32 0.2, %v12858_v30  ;;  %4953 = vst [vmem:[#allocation2 + $0xa8] sm:$0xff] %v13172_v62  ;;  %v13200_v10 = vmul.f32 0.2, %v12870_v55 }
 0x3e4   : > { %17516 = vst [vmem:[#allocation13_spill] sm:$0xff] %v13180_v60  ;;  %17518 = vst [vmem:[#allocation39_spill] sm:$0xff] %v13186_v49  ;;  %v17521_v56 = vld [vmem:[#allocation26_spill] sm:$0xff]  ;;  %vm4733_vm15 = vcmp.gt.f32.partialorder %v12870_v55, 0.0  ;;  %v17526_v29 = vld [vmem:[#allocation43_spill] sm:$0xff]  ;;  %vm17551_vm8 = vcmp.gt.f32.partialorder %v12708_v16, 0.0 }
 0x3e5   : > { %17517 = vst [vmem:[#allocation38_spill] sm:$0xff] %v13183_v38  ;;  %17520 = vst [vmem:[#allocation17_spill] sm:$0xff] %v13200_v10  ;;  %v13203_v49 = vmul.f32 0.2, %v17521_v56  ;;  %v17523_v38 = vld [vmem:[#allocation22_spill] sm:$0xff]  ;;  %v17528_v3 = vld [vmem:[#allocation61_spill] sm:$0xff] }
 0x3e6   : > { %v13206_v60 = vmul.f32 0.2, %v17523_v38  ;;  %17525 = vst [vmem:[#allocation21_spill] sm:$0xff] %v13212_v28  ;;  %v13219_v62 = vmul.f32 0.2, %v17526_v29  ;;  %v17532_v21 = vld [vmem:[#allocation8_spill] sm:$0xff] }
 0x3e7   : > { %17522 = vst [vmem:[#allocation42_spill] sm:$0xff] %v13203_v49  ;;  %v13222_v49 = vmul.f32 0.2, %v17528_v3  ;;  %v13231_v45 = vsel %vm4700_vm1, %v12672_v58, %v17532_v21  ;;  %vm4737_vm0 = vcmp.gt.f32.partialorder %v17528_v3, 0.0  ;;  %v17534_v44 = vld [vmem:[#allocation27_spill] sm:$0xff]  ;;  %v17535_v28 = vld [vmem:[#allocation30_spill] sm:$0xff]  ;;  %v13250_v58 = vsel %vm4701_vm2, %v12678_v43, %v13006_v7 }
 0x3e8   : > { %17524 = vst [vmem:[#allocation20_spill] sm:$0xff] %v13206_v60  ;;  %17527 = vst [vmem:[#allocation24_spill] sm:$0xff] %v13219_v62  ;;  %v17530_v60 = vld [vmem:[#allocation62_spill] sm:$0xff]  ;;  %v13238_v29 = vmul.f32 0.2, %v17534_v44  ;;  %v17542_v44 = vld [vmem:[#allocation63_spill] sm:$0xff] }
 0x3e9   : > { %17529 = vst [vmem:[#allocation25_spill] sm:$0xff] %v13222_v49  ;;  %v13225_v10 = vmul.f32 0.2, %v17530_v60  ;;  %17533 = vst [vmem:[#allocation29_spill] sm:$0xff] %v13231_v45  ;;  %v13241_v49 = vmul.f32 0.2, %v17535_v28 }
 0x3ea   : > { %17536 = vst [vmem:[#allocation32_spill] sm:$0xff] %v13238_v29  ;;  %17540 = vst [vmem:[#allocation4_spill] sm:$0xff] %v13250_v58  ;;  %v17541_v21 = vld [vmem:[#allocation46_spill] sm:$0xff]  ;;  %vm4743_vm5 = vcmp.gt.f32.partialorder %v17542_v44, 0.0  ;;  %v17543_v29 = vld [vmem:[#allocation64_spill] sm:$0xff] }
 0x3eb   : > { %17531 = vst [vmem:[#allocation28_spill] sm:$0xff] %v13225_v10  ;;  %17537 = vst [vmem:[#allocation33_spill] sm:$0xff] %v13241_v49  ;;  %v17538_v10 = vld [vmem:[#allocation5_spill] sm:$0xff]  ;;  %vm4742_vm7 = vcmp.gt.f32.partialorder %v17541_v21, 0.0  ;;  %v13258_v28 = vmul.f32 0.2, %v17541_v21 }
 0x3ec   : > { %v13244_v62 = vmul.f32 0.2, %v17538_v10  ;;  %4956 = vst [vmem:[#allocation2 + $0xc0] sm:$0xff] %v13231_v45  ;;  %vm4741_vm1 = vcmp.gt.f32.partialorder %v17538_v10, 0.0  ;;  %v13264_v49 = vmul.f32 0.2, %v17543_v29  ;;  %v13285_v29 = vsel %vm4703_vm4, %v12690_v13, %v13018_v19 }
 0x3ed   : > { %v17544_v43 = vld [vmem:[#allocation31_spill] sm:$0xff]  ;;  %4957 = vst [vmem:[#allocation2 + $0xc8] sm:$0xff] %v13250_v58  ;;  %v17546_v45 = vld [vmem:[#allocation65_spill] sm:$0xff]  ;;  %v17547_v10 = vld [vmem:[#allocation66_spill] sm:$0xff]  ;;  %vm17552_vm4 = vcmp.gt.f32.partialorder %v12714_v33, 0.0 }
 0x3ee   : > { %17539 = vst [vmem:[#allocation37_spill] sm:$0xff] %v13244_v62  ;;  %v13261_v62 = vmul.f32 0.2, %v17542_v44  ;;  %v13270_v7 = vsel %vm4702_vm3, %v12684_v26, %v17544_v43  ;;  %vm4745_vm2 = vcmp.gt.f32.partialorder %v17546_v45, 0.0  ;;  %v13276_v21 = vmul.f32 0.2, %v17546_v45 }
 0x3ef   : > { %17545 = vst [vmem:[#allocation36_spill] sm:$0xff] %v13270_v7  ;;  %v13279_v44 = vmul.f32 0.2, %v17547_v10  ;;  %v17548_v26 = vld [vmem:[#allocation71_spill] sm:$0xff]  ;;  %vm17549_vm3 = vcmp.gt.f32.partialorder %v12696_v25, 0.0  ;;  %v17550_v58 = vld [vmem:[#allocation72_spill] sm:$0xff]  ;;  %v13303_v10 = vsel %vm17551_vm8, %v12708_v16, %v13034_v27  ;;  %v13309_v13 = vsel %vm17552_vm4, %v12714_v33, %v13037_v35 }
 0x3f0   : > { %v13291_v43 = vsel %vm17549_vm3, %v12696_v25, %v17548_v26  ;;  %v13297_v7 = vsel %vm4705_vm6, %v17498_v63, %v17550_v58  ;;  %v17553_v25 = vld [vmem:[#allocation35_spill] sm:$0xff]  ;;  %vm17554_vm3 = vcmp.gt.f32.partialorder %v12720_v54, 0.0  ;;  %v13322_v16 = vsel %vm4709_vm9, %v12726_v32, %v13050_v57  ;;  %v17576_v35 = vld [vmem:[#allocation13_spill] sm:$0xff]  ;;  %v17578_v57 = vld [vmem:[#allocation38_spill] sm:$0xff] }
 0x3f1   : > { %v13315_v19 = vsel %vm17554_vm3, %v12720_v54, %v17553_v25  ;;  %4960 = vst [vmem:[#allocation2 + $0xe0] sm:$0xff] %v13291_v43  ;;  %vm17555_vm6 = vcmp.gt.f32.partialorder %v12732_v12, 0.0  ;;  %vm17556_vm8 = vcmp.gt.f32.partialorder %v12738_v53, 0.0  ;;  %vm17557_vm4 = vcmp.gt.f32.partialorder %v12744_v18, 0.0  ;;  %4961 = vst [vmem:[#allocation2 + $0xe8] sm:$0xff] %v13297_v7  ;;  %v17594_v26 = vld [vmem:[#allocation32_spill] sm:$0xff] }
 0x3f2   : > { %v13328_v33 = vsel %vm17555_vm6, %v12732_v12, %v13053_v15  ;;  %v13334_v54 = vsel %vm17556_vm8, %v12738_v53, %v13056_v22  ;;  %v13340_v63 = vsel %vm17557_vm4, %v12744_v18, %v13066_v50  ;;  %4964 = vst [vmem:[#allocation2 + $0x100] sm:$0xff] %v13315_v19  ;;  %v13348_v32 = vsel %vm4713_vm10, %v12750_v24, %v13069_v14  ;;  %v17560_v18 = vld [vmem:[#allocation76_spill] sm:$0xff]  ;;  %v17562_v24 = vld [vmem:[#allocation78_spill] sm:$0xff]  ;;  %v17580_v15 = vld [vmem:[#allocation39_spill] sm:$0xff] }
 0x3f3   : > { %vm17558_vm9 = vcmp.gt.f32.partialorder %v12756_v52, 0.0  ;;  %vm17559_vm3 = vcmp.gt.f32.partialorder %v12762_v5, 0.0  ;;  %vm17561_vm6 = vcmp.gt.f32.partialorder %v12768_v31, 0.0  ;;  %4965 = vst [vmem:[#allocation2 + $0x108] sm:$0xff] %v13322_v16  ;;  %4968 = vst [vmem:[#allocation2 + $0x120] sm:$0xff] %v13340_v63  ;;  %vm17563_vm10 = vcmp.gt.f32.partialorder %v12780_v47, 0.0 }
 0x3f4   : > { %v13354_v12 = vsel %vm17558_vm9, %v12756_v52, %v13072_v9  ;;  %v13360_v53 = vsel %vm17559_vm3, %v12762_v5, %v13084_v1  ;;  %v13366_v22 = vsel %vm17561_vm6, %v12768_v31, %v17560_v18  ;;  %v13374_v52 = vsel %vm4717_vm11, %v12774_v48, %v17562_v24  ;;  %v17565_v9 = vld [vmem:[#allocation12_spill] sm:$0xff]  ;;  %4969 = vst [vmem:[#allocation2 + $0x128] sm:$0xff] %v13348_v32  ;;  %v17581_v50 = vld [vmem:[#allocation93_spill] sm:$0xff]  ;;  %v17584_v1 = vld [vmem:[#allocation42_spill] sm:$0xff] }
 0x3f5   : > { %v13380_v5 = vsel %vm17563_vm10, %v12780_v47, %v13103_v61  ;;  %vm17564_vm8 = vcmp.gt.f32.partialorder %v12786_v41, 0.0  ;;  %vm17566_vm4 = vcmp.gt.f32.partialorder %v12792_v37, 0.0  ;;  %4972 = vst [vmem:[#allocation2 + $0x140] sm:$0xff] %v13366_v22  ;;  %v13400_v48 = vsel %vm4721_vm12, %v12798_v39, %v13122_v59  ;;  %4973 = vst [vmem:[#allocation2 + $0x148] sm:$0xff] %v13374_v52  ;;  %v17588_v61 = vld [vmem:[#allocation24_spill] sm:$0xff]  ;;  %v17589_v59 = vld [vmem:[#allocation43_spill] sm:$0xff] }
 0x3f6   : > { %v13386_v31 = vsel %vm17564_vm8, %v12786_v41, %v13106_v20  ;;  %v13392_v27 = vsel %vm17566_vm4, %v12792_v37, %v17565_v9  ;;  %vm17567_vm11 = vcmp.gt.f32.partialorder %v12804_v17, 0.0  ;;  %vm17568_vm9 = vcmp.gt.f32.partialorder %v12810_v51, 0.0  ;;  %4977 = vst [vmem:[#allocation2 + $0x168] sm:$0xff] %v13400_v48  ;;  %v17592_v58 = vld [vmem:[#allocation28_spill] sm:$0xff]  ;;  %v17595_v25 = vld [vmem:[#allocation27_spill] sm:$0xff]  ;;  %v17597_v18 = vld [vmem:[#allocation33_spill] sm:$0xff] }
 0x3f7   : > { %v13406_v47 = vsel %vm17567_vm11, %v12804_v17, %v13125_v2  ;;  %v13412_v41 = vsel %vm17568_vm9, %v12810_v51, %v13128_v6  ;;  %vm17569_vm3 = vcmp.gt.f32.partialorder %v12816_v23, 0.0  ;;  %4976 = vst [vmem:[#allocation2 + $0x160] sm:$0xff] %v13392_v27  ;;  %v13426_v39 = vsel %vm4725_vm13, %v12822_v34, %v13144_v42  ;;  %v17570_v17 = vld [vmem:[#allocation86_spill] sm:$0xff]  ;;  %v17575_v34 = vld [vmem:[#allocation92_spill] sm:$0xff] }
 0x3f8   : > { %v13418_v37 = vsel %vm17569_vm3, %v12816_v23, %v13141_v40  ;;  %vm17571_vm12 = vcmp.gt.f32.partialorder %v12828_v46, 0.0  ;;  %vm17572_vm6 = vcmp.gt.f32.partialorder %v12834_v11, 0.0  ;;  %v17573_v2 = vld [vmem:[#allocation90_spill] sm:$0xff]  ;;  %vm17574_vm10 = vcmp.gt.f32.partialorder %v12840_v0, 0.0  ;;  %4981 = vst [vmem:[#allocation2 + $0x188] sm:$0xff] %v13426_v39 }
 0x3f9   : > { %v13432_v51 = vsel %vm17571_vm12, %v12828_v46, %v17570_v17  ;;  %v13438_v23 = vsel %vm17572_vm6, %v12834_v11, %v13160_v36  ;;  %v4856_v20 = vsel %vm17574_vm10, %v12840_v0, %v17573_v2  ;;  %4980 = vst [vmem:[#allocation2 + $0x180] sm:$0xff] %v13418_v37  ;;  %v4857_v46 = vsel %vm4729_vm14, %v12846_v4, %v17575_v34  ;;  %v17583_v4 = vld [vmem:[#allocation17_spill] sm:$0xff]  ;;  %v17598_v24 = vld [vmem:[#allocation30_spill] sm:$0xff]  ;;  %v17603_v34 = vld [vmem:[#allocation63_spill] sm:$0xff] }
 0x3fa   : > { %vm17577_vm13 = vcmp.gt.f32.partialorder %v12852_v8, 0.0  ;;  %vm17579_vm8 = vcmp.gt.f32.partialorder %v12858_v30, 0.0  ;;  %vm17582_vm4 = vcmp.gt.f32.partialorder %v17581_v50, 0.0  ;;  %4984 = vst [vmem:[#allocation2 + $0x1a0] sm:$0xff] %v4856_v20  ;;  %vm17585_vm14 = vcmp.gt.f32.partialorder %v17521_v56, 0.0  ;;  %4985 = vst [vmem:[#allocation2 + $0x1a8] sm:$0xff] %v4857_v46 }
 0x3fb   : > { %v13454_v11 = vsel %vm17577_vm13, %v12852_v8, %v17576_v35  ;;  %v13460_v0 = vsel %vm17579_vm8, %v12858_v30, %v17578_v57  ;;  %v4860_v14 = vsel %vm17582_vm4, %v17581_v50, %v17580_v15  ;;  %v4861_v8 = vsel %vm4733_vm15, %v12870_v55, %v17583_v4  ;;  %v17586_v30 = vld [vmem:[#allocation20_spill] sm:$0xff]  ;;  %v17591_v36 = vld [vmem:[#allocation25_spill] sm:$0xff]  ;;  %v17602_v20 = vld [vmem:[#allocation46_spill] sm:$0xff] }
 0x3fc   : > { %v4862_v6 = vsel %vm17585_vm14, %v17521_v56, %v17584_v1  ;;  %vm17587_vm11 = vcmp.gt.f32.partialorder %v17523_v38, 0.0  ;;  %vm17590_vm9 = vcmp.gt.f32.partialorder %v17589_v59, 0.0  ;;  %4988 = vst [vmem:[#allocation2 + $0x1c0] sm:$0xff] %v4860_v14  ;;  %v4865_v55 = vsel %vm4737_vm0, %v17528_v3, %v17591_v36  ;;  %4989 = vst [vmem:[#allocation2 + $0x1c8] sm:$0xff] %v4861_v8  ;;  %v17600_v17 = vld [vmem:[#allocation37_spill] sm:$0xff]  ;;  %v17604_v35 = vld [vmem:[#allocation64_spill] sm:$0xff] }
 0x3fd   : > { %v4863_v42 = vsel %vm17587_vm11, %v17523_v38, %v17586_v30  ;;  %v4864_v40 = vsel %vm17590_vm9, %v17589_v59, %v17588_v61  ;;  %vm17593_vm15 = vcmp.gt.f32.partialorder %v17530_v60, 0.0  ;;  %vm17596_vm3 = vcmp.gt.f32.partialorder %v17595_v25, 0.0  ;;  %v17601_v2 = vld [vmem:[#allocation5_spill] sm:$0xff]  ;;  %4993 = vst [vmem:[#allocation2 + $0x1e8] sm:$0xff] %v4865_v55  ;;  %v17606_v50 = vld [vmem:[#allocation66_spill] sm:$0xff]  ;;  %v17613_v59 = vld [vmem:[#allocation83_spill] sm:$0xff] }
 0x3fe   : > { %v4866_v56 = vsel %vm17593_vm15, %v17530_v60, %v17592_v58  ;;  %v4867_v38 = vsel %vm17596_vm3, %v17595_v25, %v17594_v26  ;;  %vm17599_vm12 = vcmp.gt.f32.partialorder %v17598_v24, 0.0  ;;  %4992 = vst [vmem:[#allocation2 + $0x1e0] sm:$0xff] %v4864_v40  ;;  %v4869_v3 = vsel %vm4741_vm1, %v17601_v2, %v17600_v17  ;;  %v17608_v14 = vld [vmem:[#allocation69_spill] sm:$0xff]  ;;  %v17611_v30 = vld [vmem:[#allocation74_spill] sm:$0xff]  ;;  %v17616_v26 = vld [vmem:[#allocation36_spill] sm:$0xff] }
 0x3ff   : > { %v4868_v9 = vsel %vm17599_vm12, %v17598_v24, %v17597_v18  ;;  %v4870_v60 = vsel %vm4742_vm7, %v17602_v20, %v13258_v28  ;;  %v4871_v46 = vsel %vm4743_vm5, %v17603_v34, %v13261_v62  ;;  %vm17605_vm0 = vcmp.gt.f32.partialorder %v17604_v35, 0.0  ;;  %v17609_v62 = vld [vmem:[#allocation70_spill] sm:$0xff]  ;;  %4997 = vst [vmem:[#allocation2 + $0x208] sm:$0xff] %v4869_v3  ;;  %v17615_v55 = vld [vmem:[#allocation21_spill] sm:$0xff] }
 0x400   : > { %v4872_v57 = vsel %vm17605_vm0, %v17604_v35, %v13264_v49  ;;  %4996 = vst [vmem:[#allocation2 + $0x200] sm:$0xff] %v4868_v9  ;;  %v4873_v15 = vsel %vm4745_vm2, %v17546_v45, %v13276_v21  ;;  %vm17607_vm7 = vcmp.gt.f32.partialorder %v17606_v50, 0.0  ;;  %v13524_v4 = vmul.f32 0.0, %v17608_v14  ;;  %v17610_v49 = vld [vmem:[#allocation73_spill] sm:$0xff]  ;;  %v17612_v45 = vld [vmem:[#allocation82_spill] sm:$0xff] }
 0x401   : > { %v4874_v28 = vsel %vm17607_vm7, %v17606_v50, %v13279_v44  ;;  %v13527_v8 = vmul.f32 0.0, %v17609_v62  ;;  %5000 = vst [vmem:[#allocation2 + $0x220] sm:$0xff] %v4872_v57  ;;  %v13530_v1 = vmul.f32 0.0, %v17610_v49  ;;  %v13533_v61 = vmul.f32 0.0, %v17611_v30  ;;  %5001 = vst [vmem:[#allocation2 + $0x228] sm:$0xff] %v4873_v15  ;;  %v17614_v44 = vld [vmem:[#allocation16_spill] sm:$0xff] }
 0x402   : > { %v13536_v21 = vmul.f32 0.0, %v17612_v45  ;;  %v13539_v40 = vmul.f32 0.0, %v17613_v59  ;;  %v13542_v36 = vmul.f32 0.0, %v17614_v44  ;;  %v13545_v58 = vmul.f32 0.0, %v17615_v55  ;;  %4942 = vst [vmem:[#allocation2 + $0x50] sm:$0xff] %v13524_v4  ;;  %v5009_v3 = vld [vmem:[#allocation2 + $0x47] sm:$0xff] }
 0x403   : > { %v13548_v25 = vmul.f32 0.0, %v17616_v26  ;;  %v13551_v18 = vmul.f32 0.0, %v13285_v29  ;;  %4943 = vst [vmem:[#allocation2 + $0x58] sm:$0xff] %v13527_v8  ;;  %v13556_v24 = vmul.f32 0.0, %v13303_v10  ;;  %v13559_v9 = vmul.f32 0.0, %v13309_v13  ;;  %4946 = vst [vmem:[#allocation2 + $0x70] sm:$0xff] %v13530_v1 }
 0x404   : > { %v13562_v17 = vmul.f32 0.0, %v13328_v33  ;;  %v13565_v2 = vmul.f32 0.0, %v13334_v54  ;;  %4947 = vst [vmem:[#allocation2 + $0x78] sm:$0xff] %v13533_v61  ;;  %4950 = vst [vmem:[#allocation2 + $0x90] sm:$0xff] %v13536_v21  ;;  %v13572_v10 = vmul.f32 0.0, %v13354_v12  ;;  %v13575_v29 = vmul.f32 0.0, %v13360_v53 }
 0x405   : > { %4951 = vst [vmem:[#allocation2 + $0x98] sm:$0xff] %v13539_v40  ;;  %v13578_v13 = vmul.f32 0.0, %v13380_v5  ;;  %v13581_v33 = vmul.f32 0.0, %v13386_v31  ;;  %4954 = vst [vmem:[#allocation2 + $0xb0] sm:$0xff] %v13542_v36  ;;  %v13588_v54 = vmul.f32 0.0, %v13406_v47  ;;  %v13591_v12 = vmul.f32 0.0, %v13412_v41 }
 0x406   : > { %4955 = vst [vmem:[#allocation2 + $0xb8] sm:$0xff] %v13545_v58  ;;  %4958 = vst [vmem:[#allocation2 + $0xd0] sm:$0xff] %v13548_v25  ;;  %v4918_v53 = vmul.f32 0.0, %v13432_v51  ;;  %v4919_v5 = vmul.f32 0.0, %v13438_v23  ;;  %v5008_v31 = vld [vmem:[#allocation2 + $0x3f] sm:$0xff]  ;;  %v4922_v47 = vmul.f32 0.0, %v13454_v11  ;;  %v13623_v49 = vpack.c.bf16 %v13533_v61, %v13530_v1 }
 0x407   : > { %4959 = vst [vmem:[#allocation2 + $0xd8] sm:$0xff] %v13551_v18  ;;  %4962 = vst [vmem:[#allocation2 + $0xf0] sm:$0xff] %v13556_v24  ;;  %v4923_v20 = vmul.f32 0.0, %v13460_v0  ;;  %v4926_v41 = vmul.f32 0.0, %v4862_v6  ;;  %v4927_v34 = vmul.f32 0.0, %v4863_v42  ;;  %v4930_v51 = vmul.f32 0.0, %v4866_v56 }
 0x408   : > { %4963 = vst [vmem:[#allocation2 + $0xf8] sm:$0xff] %v13559_v9  ;;  %4966 = vst [vmem:[#allocation2 + $0x110] sm:$0xff] %v13562_v17  ;;  %v4931_v23 = vmul.f32 0.0, %v4867_v38  ;;  %v4934_v35 = vmul.f32 0.0, %v4870_v60  ;;  %v4935_v57 = vmul.f32 0.0, %v4871_v46  ;;  %v4938_v11 = vmul.f32 0.0, %v4874_v28 }
 0x409   : > { %4967 = vst [vmem:[#allocation2 + $0x118] sm:$0xff] %v13565_v2  ;;  %4970 = vst [vmem:[#allocation2 + $0x130] sm:$0xff] %v13572_v10  ;;  %v17617_v0 = vld [vmem:[#allocation67_spill] sm:$0xff]  ;;  %v17618_v6 = vld [vmem:[#allocation68_spill] sm:$0xff]  ;;  %v13611_v15 = vpack.c.bf16 %v5009_v3, %v5008_v31  ;;  %v13615_v56 = vpack.c.bf16 %v13527_v8, %v13524_v4  ;;  %v13631_v8 = vpack.c.bf16 %v13539_v40, %v13536_v21 }
 0x40a   : > { %4971 = vst [vmem:[#allocation2 + $0x138] sm:$0xff] %v13575_v29  ;;  %4974 = vst [vmem:[#allocation2 + $0x150] sm:$0xff] %v13578_v13  ;;  %v13609_v42 = vpack.c.bf16 %v17618_v6, %v17617_v0  ;;  %v5296_v38 = vld [vmem:[#allocation2 + $0x41] sm:$0xff]  ;;  %v5297_v60 = vld [vmem:[#allocation2 + $0x49] sm:$0xff]  ;;  %v13647_v21 = vpack.c.bf16 %v13545_v58, %v13542_v36  ;;  %v13667_v58 = vpack.c.bf16 %v13297_v7, %v13291_v43 }
 0x40b   : > { %4975 = vst [vmem:[#allocation2 + $0x158] sm:$0xff] %v13581_v33  ;;  %4978 = vst [vmem:[#allocation2 + $0x170] sm:$0xff] %v13588_v54  ;;  %v5298_v46 = vld [vmem:[#allocation2 + $0x51] sm:$0xff]  ;;  %v5299_v50 = vld [vmem:[#allocation2 + $0x59] sm:$0xff]  ;;  %v13634_v59 = vpack.c.bf16 %v5297_v60, %v5296_v38  ;;  %v13681_v7 = vpack.c.bf16 %v13322_v16, %v13315_v19  ;;  %v13697_v19 = vpack.c.bf16 %v13575_v29, %v13572_v10 }
 0x40c   : > { %4979 = vst [vmem:[#allocation2 + $0x178] sm:$0xff] %v13591_v12  ;;  %4982 = vst [vmem:[#allocation2 + $0x190] sm:$0xff] %v4918_v53  ;;  %v17619_v28 = vld [vmem:[#allocation9_spill] sm:$0xff]  ;;  %v17620_v14 = vld [vmem:[#allocation34_spill] sm:$0xff]  ;;  %5811 = vmatprep.mubr.bf16.mxu0 %v13609_v42  ;;  %v13636_v44 = vpack.c.bf16 %v5299_v50, %v5298_v46  ;;  %v13701_v16 = vpack.c.bf16 %v13374_v52, %v13366_v22  ;;  %v13718_v22 = vpack.c.bf16 %v13591_v12, %v13588_v54 }
 0x40d   : > { %4983 = vst [vmem:[#allocation2 + $0x198] sm:$0xff] %v4919_v5  ;;  %4986 = vst [vmem:[#allocation2 + $0x1b0] sm:$0xff] %v4922_v47  ;;  %v13619_v62 = vpack.c.bf16 %v17620_v14, %v17619_v28  ;;  %v17623_v30 = vld [vmem:[#allocation75_spill] sm:$0xff]  ;;  %v5301_v55 = vld [vmem:[#allocation2 + $0x69] sm:$0xff]  ;;  %5812 = vmatmul.mubr.bf16.vlgmr.msra.gmra.mrb[0].mxu0 %v13611_v15  ;;  %v13656_v47 = vpack.c.bf16 %v13551_v18, %v13548_v25  ;;  %9757 = vmatprep.mubr.bf16.mxu1 %v13634_v59 }
 0x40e   : > { %4987 = vst [vmem:[#allocation2 + $0x1b8] sm:$0xff] %v4923_v20  ;;  %4990 = vst [vmem:[#allocation2 + $0x1d0] sm:$0xff] %v4926_v41  ;;  %v17624_v45 = vld [vmem:[#allocation79_spill] sm:$0xff]  ;;  %v10089_v1 = vld [vmem:[%s16610_s2 + $0x88] sm:$0xff]   ;;  %5819 = vmatprep.mubr.bf16.mxu0 %v13615_v56  ;;  %9758 = vmatmul.mubr.bf16.vlgmr.msra.gmra.mrb[64].mxu1 %v13636_v44  ;;  %v13673_v25 = vpack.c.bf16 %v13559_v9, %v13556_v24  ;;  %v13688_v24 = vpack.c.bf16 %v13565_v2, %v13562_v17 }
 0x40f   : > { %4991 = vst [vmem:[#allocation2 + $0x1d8] sm:$0xff] %v4927_v34  ;;  %4994 = vst [vmem:[#allocation2 + $0x1f0] sm:$0xff] %v4930_v51  ;;  %v13627_v4 = vpack.c.bf16 %v17624_v45, %v17623_v30  ;;  %v17627_v61 = vld [vmem:[#allocation87_spill] sm:$0xff]  ;;  %v5300_v40 = vld [vmem:[#allocation2 + $0x61] sm:$0xff]  ;;  %v13692_v9 = vpack.c.bf16 %v13348_v32, %v13340_v63  ;;  %v13707_v63 = vpack.c.bf16 %v13581_v33, %v13578_v13 }
 0x410   : > { %4995 = vst [vmem:[#allocation2 + $0x1f8] sm:$0xff] %v4931_v23  ;;  %4998 = vst [vmem:[#allocation2 + $0x210] sm:$0xff] %v4934_v35  ;;  %v17628_v26 = vld [vmem:[#allocation95_spill] sm:$0xff]  ;;  %v17631_v5 = vld [vmem:[#allocation29_spill] sm:$0xff]  ;;  %v13663_v36 = vpack.c.bf16 %v5301_v55, %v5300_v40  ;;  %v13714_v2 = vpack.c.bf16 %v13400_v48, %v13392_v27  ;;  %v13728_v13 = vpack.c.bf16 %v13426_v39, %v13418_v37 }
 0x411   : > { %4999 = vst [vmem:[#allocation2 + $0x218] sm:$0xff] %v4935_v57  ;;  %17621 = vst [vmem:[#allocation97_spill] sm:$0xff] %v13619_v62  ;;  %v13643_v53 = vpack.c.bf16 %v17628_v26, %v17627_v61  ;;  %v17632_v31 = vld [vmem:[#allocation4_spill] sm:$0xff]  ;;  %v17636_v41 = vld [vmem:[#allocation58_spill] sm:$0xff]  ;;  %v17641_v57 = vmov 0  }
 0x412   : > { %17622 = vst [vmem:[#allocation7_spill] sm:$0xff] %v13623_v49  ;;  %17625 = vst [vmem:[#allocation96_spill] sm:$0xff] %v13627_v4  ;;  %v13652_v3 = vpack.c.bf16 %v17632_v31, %v17631_v5  ;;  %v10091_v20 = vld [vmem:[%s16610_s2] sm:$0xff]   ;;  %9822 = vmatpush3.bf16.msra.mxu0 %v17636_v41  ;;  %9761 = vmatprep.mubr.bf16.mxu1 %v13663_v36  ;;  %v5010_v18 = vld [vmem:[#allocation2 + $0x4f] sm:$0xff] }
 0x413   : > { %17626 = vst [vmem:[#allocation6_spill] sm:$0xff] %v13631_v8  ;;  %5002 = vst [vmem:[#allocation2 + $0x230] sm:$0xff] %v4938_v11  ;;  %v5011_v34 = vld [vmem:[#allocation2 + $0x57] sm:$0xff]  ;;  %9823 = vmatprep.subr.bf16.mxu0 %v10089_v1  ;;  %6502 = vmatpush1.bf16.msra.mxu1 %v10091_v20  ;;  %v10092_v43 = vld [vmem:[%s16610_s2 + $0x8] sm:$0xff]  }
 0x414   : > { %17629 = vst [vmem:[#allocation41_spill] sm:$0xff] %v13643_v53  ;;  %17630 = vst [vmem:[#allocation101_spill] sm:$0xff] %v13647_v21  ;;  %v10090_v51 = vld [vmem:[%s16610_s2 + $0x90] sm:$0xff]   ;;  %v5303_v35 = vld [vmem:[#allocation2 + $0x79] sm:$0xff]  ;;  %6503 = vmatprep.subr.bf16.mxu1 %v17641_v57  ;;  %v13703_v11 = vpack.c.bf16 %v5011_v34, %v5010_v18 }
 0x415   : > { %17633 = vst [vmem:[#allocation40_spill] sm:$0xff] %v13652_v3  ;;  %17634 = vst [vmem:[#allocation99_spill] sm:$0xff] %v13656_v47  ;;  %v5302_v23 = vld [vmem:[#allocation2 + $0x71] sm:$0xff]  ;;  %v5305_v17 = vld [vmem:[#allocation2 + $0x89] sm:$0xff] }
 0x416   : > { %17635 = vst [vmem:[#allocation10_spill] sm:$0xff] %v13667_v58  ;;  %17637 = vst [vmem:[#allocation44_spill] sm:$0xff] %v13673_v25  ;;  %9824 = vmatpush3.bf16.msra.mxu0 %v10089_v1  ;;  %v10099_v32 = vld [vmem:[%s16610_s2 + $0x98] sm:$0xff]   ;;  %v13721_v52 = vpack.c.bf16 %v5303_v35, %v5302_v23  ;;  %v5304_v10 = vld [vmem:[#allocation2 + $0x81] sm:$0xff] }
 0x417   : > { %17638 = vst [vmem:[#allocation110_spill] sm:$0xff] %v13681_v7  ;;  %17639 = vst [vmem:[#allocation11_spill] sm:$0xff] %v13688_v24  ;;  %9825 = vmatprep.subr.bf16.mxu0 %v10090_v51  ;;  %5820 = vmatmul.mubr.bf16.gmra.mrb[4].mxu0 %v13703_v11  ;;  %v10093_v29 = vld [vmem:[%s16610_s2 + $0x10] sm:$0xff]   ;;  %v13731_v27 = vpack.c.bf16 %v5305_v17, %v5304_v10  ;;  %v5012_v48 = vld [vmem:[#allocation2 + $0x5f] sm:$0xff] }
 0x418   : > { %17640 = vst [vmem:[#allocation91_spill] sm:$0xff] %v13692_v9  ;;  %17642 = vst [vmem:[#allocation45_spill] sm:$0xff] %v13697_v19  ;;  %6504 = vmatpush1.bf16.msra.mxu1 %v10092_v43  ;;  %5827 = vmatprep.mubr.bf16.mxu0 %v13619_v62  ;;  %v10094_v33 = vld [vmem:[%s16610_s2 + $0x18] sm:$0xff]   ;;  %v5013_v37 = vld [vmem:[#allocation2 + $0x67] sm:$0xff] }
 0x419   : > { %17643 = vst [vmem:[#allocation98_spill] sm:$0xff] %v13701_v16  ;;  %17644 = vst [vmem:[#allocation14_spill] sm:$0xff] %v13707_v63  ;;  %6505 = vmatprep.subr.bf16.mxu1 %v17641_v57  ;;  %9762 = vmatmul.mubr.bf16.gmra.mrb[68].mxu1 %v13721_v52  ;;  %v5306_v39 = vld [vmem:[#allocation2 + $0x91] sm:$0xff]  ;;  %v5307_v54 = vld [vmem:[#allocation2 + $0x99] sm:$0xff]  ;;  %v13740_v12 = vpack.c.bf16 %v5013_v37, %v5012_v48 }
 0x41a   : > { %17645 = vst [vmem:[#allocation47_spill] sm:$0xff] %v13714_v2  ;;  %17646 = vst [vmem:[#allocation100_spill] sm:$0xff] %v13718_v22  ;;  %9826 = vmatpush3.bf16.msra.mxu0 %v10090_v51  ;;  %9765 = vmatprep.mubr.bf16.mxu1 %v13731_v27  ;;  %v5309_v0 = vld [vmem:[#allocation2 + $0xa9] sm:$0xff]  ;;  %v13743_v6 = vpack.c.bf16 %v5307_v54, %v5306_v39  ;;  %v5308_v38 = vld [vmem:[#allocation2 + $0xa1] sm:$0xff] }
 0x41b   : > { %17647 = vst [vmem:[#allocation15_spill] sm:$0xff] %v13728_v13  ;;  %9827 = vmatprep.subr.bf16.mxu0 %v10099_v32  ;;  %17648 = vst [vmem:[#allocation103_spill] sm:$0xff] %v13740_v12  ;;  %v10095_v60 = vld [vmem:[%s16610_s2 + $0x20] sm:$0xff]   ;;  %v13749_v46 = vpack.c.bf16 %v5309_v0, %v5308_v38  ;;  %v5014_v50 = vld [vmem:[#allocation2 + $0x6f] sm:$0xff] }
 0x41c   : > { %6506 = vmatpush1.bf16.msra.mxu1 %v10093_v29  ;;  %v5015_v28 = vld [vmem:[#allocation2 + $0x77] sm:$0xff]  ;;  %v10096_v14 = vld [vmem:[%s16610_s2 + $0x28] sm:$0xff]   ;;  %v10108_v55 = vld [vmem:[%s16610_s2 + $0xa0] sm:$0xff]  }
 0x41d   : > { %6507 = vmatprep.subr.bf16.mxu1 %v17641_v57  ;;  %v5310_v30 = vld [vmem:[#allocation2 + $0xb1] sm:$0xff]  ;;  %v5311_v45 = vld [vmem:[#allocation2 + $0xb9] sm:$0xff]  ;;  %v13761_v1 = vpack.c.bf16 %v5015_v28, %v5014_v50  ;;  %v5313_v61 = vld [vmem:[#allocation2 + $0xc9] sm:$0xff] }
 0x41e   : > { %9828 = vmatpush3.bf16.msra.mxu0 %v10099_v32  ;;  %v13764_v26 = vpack.c.bf16 %v5311_v45, %v5310_v30  ;;  %v5312_v40 = vld [vmem:[#allocation2 + $0xc1] sm:$0xff]  ;;  %v10097_v5 = vld [vmem:[%s16610_s2 + $0x30] sm:$0xff]   ;;  %v10098_v41 = vld [vmem:[%s16610_s2 + $0x38] sm:$0xff]  }
 0x41f   : > { %5828 = vmatmul.mubr.bf16.gmra.mrb[8].mxu0 %v13740_v12  ;;  %17649 = vst [vmem:[#allocation18_spill] sm:$0xff] %v13761_v1  ;;  %9829 = vmatprep.subr.bf16.mxu0 %v10108_v55  ;;  %v13770_v31 = vpack.c.bf16 %v5313_v61, %v5312_v40  ;;  %v5016_v20 = vld [vmem:[#allocation2 + $0x7f] sm:$0xff]  ;;  %v5017_v18 = vld [vmem:[#allocation2 + $0x87] sm:$0xff]  ;;  %v5314_v34 = vld [vmem:[#allocation2 + $0xd1] sm:$0xff] }
 0x420   : > { %6508 = vmatpush1.bf16.msra.mxu1 %v10094_v33  ;;  %5835 = vmatprep.mubr.bf16.mxu0 %v13623_v49  ;;  %v5315_v51 = vld [vmem:[#allocation2 + $0xd9] sm:$0xff]  ;;  %v13779_v43 = vpack.c.bf16 %v5017_v18, %v5016_v20  ;;  %v5317_v23 = vld [vmem:[#allocation2 + $0xe9] sm:$0xff]  ;;  %v5316_v17 = vld [vmem:[#allocation2 + $0xe1] sm:$0xff] }
 0x421   : > { %6509 = vmatprep.subr.bf16.mxu1 %v17641_v57  ;;  %9766 = vmatmul.mubr.bf16.gmra.mrb[72].mxu1 %v13743_v6  ;;  %v13782_v35 = vpack.c.bf16 %v5315_v51, %v5314_v34  ;;  %v10100_v32 = vld [vmem:[%s16610_s2 + $0x40] sm:$0xff]   ;;  %v10109_v10 = vld [vmem:[%s16610_s2 + $0xa8] sm:$0xff]   ;;  %v13791_v29 = vpack.c.bf16 %v5317_v23, %v5316_v17  ;;  %v5019_v33 = vld [vmem:[#allocation2 + $0x97] sm:$0xff] }
 0x422   : > { %9769 = vmatprep.mubr.bf16.mxu1 %v13749_v46  ;;  %9830 = vmatpush3.bf16.msra.mxu0 %v10108_v55  ;;  %17650 = vst [vmem:[#allocation48_spill] sm:$0xff] %v13779_v43  ;;  %v5018_v48 = vld [vmem:[#allocation2 + $0x8f] sm:$0xff]  ;;  %v5319_v54 = vld [vmem:[#allocation2 + $0xf9] sm:$0xff]  ;;  %v5320_v50 = vld [vmem:[#allocation2 + $0x101] sm:$0xff] }
 0x423   : > { %9831 = vmatprep.subr.bf16.mxu0 %v10109_v10  ;;  %v10101_v37 = vld [vmem:[%s16610_s2 + $0x48] sm:$0xff]   ;;  %v5318_v39 = vld [vmem:[#allocation2 + $0xf1] sm:$0xff]  ;;  %v13800_v0 = vpack.c.bf16 %v5019_v33, %v5018_v48  ;;  %v5020_v30 = vld [vmem:[#allocation2 + $0x9f] sm:$0xff] }
 0x424   : > { %6510 = vmatpush1.bf16.msra.mxu1 %v10095_v60  ;;  %v5321_v38 = vld [vmem:[#allocation2 + $0x109] sm:$0xff]  ;;  %v13803_v60 = vpack.c.bf16 %v5319_v54, %v5318_v39  ;;  %v10103_v45 = vld [vmem:[%s16610_s2 + $0x58] sm:$0xff]   ;;  %v5324_v18 = vld [vmem:[#allocation2 + $0x121] sm:$0xff] }
 0x425   : > { %6511 = vmatprep.subr.bf16.mxu1 %v17641_v57  ;;  %17651 = vst [vmem:[#allocation105_spill] sm:$0xff] %v13800_v0  ;;  %v10102_v28 = vld [vmem:[%s16610_s2 + $0x50] sm:$0xff]   ;;  %v5021_v55 = vld [vmem:[#allocation2 + $0xa7] sm:$0xff]  ;;  %v5323_v40 = vld [vmem:[#allocation2 + $0x119] sm:$0xff] }
 0x426   : > { %9832 = vmatpush3.bf16.msra.mxu0 %v10109_v10  ;;  %17652 = vst [vmem:[#allocation19_spill] sm:$0xff] %v13803_v60  ;;  %v5322_v61 = vld [vmem:[#allocation2 + $0x111] sm:$0xff]  ;;  %v5325_v20 = vld [vmem:[#allocation2 + $0x129] sm:$0xff]  ;;  %v10104_v34 = vld [vmem:[%s16610_s2 + $0x60] sm:$0xff]  }
 0x427   : > { %5836 = vmatmul.mubr.bf16.gmra.mrb[12].mxu0 %v13761_v1  ;;  %v13827_v51 = vpack.c.bf16 %v5325_v20, %v5324_v18  ;;  %v5022_v23 = vld [vmem:[#allocation2 + $0xaf] sm:$0xff]  ;;  %v5023_v17 = vld [vmem:[#allocation2 + $0xb7] sm:$0xff]  ;;  %v5328_v54 = vld [vmem:[#allocation2 + $0x141] sm:$0xff] }
 0x428   : > { %6512 = vmatpush1.bf16.msra.mxu1 %v10096_v14  ;;  %5843 = vmatprep.mubr.bf16.mxu0 %v13627_v4  ;;  %v13809_v14 = vpack.c.bf16 %v5321_v38, %v5320_v50  ;;  %v5326_v10 = vld [vmem:[#allocation2 + $0x131] sm:$0xff]  ;;  %v5327_v48 = vld [vmem:[#allocation2 + $0x139] sm:$0xff]  ;;  %v13836_v33 = vpack.c.bf16 %v5023_v17, %v5022_v23  ;;  %v5333_v20 = vld [vmem:[#allocation2 + $0x169] sm:$0xff] }
 0x429   : > { %6513 = vmatprep.subr.bf16.mxu1 %v17641_v57  ;;  %9770 = vmatmul.mubr.bf16.gmra.mrb[76].mxu1 %v13764_v26  ;;  %17656 = vst [vmem:[#allocation53_spill] sm:$0xff] %v13827_v51  ;;  %v13839_v39 = vpack.c.bf16 %v5327_v48, %v5326_v10  ;;  %v10106_v38 = vld [vmem:[%s16610_s2 + $0x70] sm:$0xff]  }
 0x42a   : > { %9773 = vmatprep.mubr.bf16.mxu1 %v13770_v31  ;;  %17653 = vst [vmem:[#allocation52_spill] sm:$0xff] %v13809_v14  ;;  %17657 = vst [vmem:[#allocation54_spill] sm:$0xff] %v13836_v33  ;;  %v10110_v23 = vld [vmem:[%s16610_s2 + $0xb0] sm:$0xff]  }
 0x42b   : > { %17658 = vst [vmem:[#allocation108_spill] sm:$0xff] %v13839_v39  ;;  %9833 = vmatprep.subr.bf16.mxu0 %v10110_v23  ;;  %v5027_v10 = vld [vmem:[#allocation2 + $0xd7] sm:$0xff] }
 0x42c   : > { %6514 = vmatpush1.bf16.msra.mxu1 %v10097_v5  ;;  %v13818_v5 = vpack.c.bf16 %v5021_v55, %v5020_v30  ;;  %v10107_v30 = vld [vmem:[%s16610_s2 + $0x78] sm:$0xff]   ;;  %9834 = vmatpush3.bf16.msra.mxu0 %v10110_v23 }
 0x42d   : > { %6515 = vmatprep.subr.bf16.mxu1 %v17641_v57  ;;  %v5330_v55 = vld [vmem:[#allocation2 + $0x151] sm:$0xff] }
 0x42e   : > { %17654 = vst [vmem:[#allocation107_spill] sm:$0xff] %v13818_v5  ;;  %v5334_v48 = vld [vmem:[#allocation2 + $0x171] sm:$0xff] }
 0x42f   : > { %5844 = vmatmul.mubr.bf16.gmra.mrb[16].mxu0 %v13779_v43 }
 0x430   : > { %6516 = vmatpush1.bf16.msra.mxu1 %v10098_v41  ;;  %5851 = vmatprep.mubr.bf16.mxu0 %v13631_v8  ;;  %v13821_v41 = vpack.c.bf16 %v5323_v40, %v5322_v61  ;;  %v5331_v61 = vld [vmem:[#allocation2 + $0x159] sm:$0xff] }
 0x431   : > { %6517 = vmatprep.subr.bf16.mxu1 %v17641_v57  ;;  %9774 = vmatmul.mubr.bf16.gmra.mrb[80].mxu1 %v13782_v35  ;;  %v13857_v18 = vpack.c.bf16 %v5331_v61, %v5330_v55  ;;  %v5028_v55 = vld [vmem:[#allocation2 + $0xdf] sm:$0xff]  ;;  %v5029_v61 = vld [vmem:[#allocation2 + $0xe7] sm:$0xff] }
 0x432   : > { %9777 = vmatprep.mubr.bf16.mxu1 %v13791_v29  ;;  %17655 = vst [vmem:[#allocation109_spill] sm:$0xff] %v13821_v41  ;;  %v13877_v23 = vpack.c.bf16 %v5029_v61, %v5028_v55  ;;  %v5345_v61 = vld [vmem:[#allocation2 + $0x1c9] sm:$0xff] }
 0x433   : > { %17661 = vst [vmem:[#allocation84_spill] sm:$0xff] %v13857_v18 }
 0x434   : > { %6518 = vmatpush1.bf16.msra.mxu1 %v10100_v32  ;;  %v10105_v32 = vld [vmem:[%s16610_s2 + $0x68] sm:$0xff]   ;;  %17666 = vst [vmem:[#allocation104_spill] sm:$0xff] %v13877_v23 }
 0x435   : > { %6519 = vmatprep.subr.bf16.mxu1 %v17641_v57 }
 0x437   : > { %5852 = vmatmul.mubr.bf16.gmra.mrb[20].mxu0 %v13800_v0 }
 0x438   : > { %6520 = vmatpush1.bf16.msra.mxu1 %v10101_v37  ;;  %5859 = vmatprep.mubr.bf16.mxu0 %v13643_v53  ;;  %v5329_v37 = vld [vmem:[#allocation2 + $0x149] sm:$0xff] }
 0x439   : > { %6521 = vmatprep.subr.bf16.mxu1 %v17641_v57  ;;  %9778 = vmatmul.mubr.bf16.gmra.mrb[84].mxu1 %v13803_v60  ;;  %v13845_v50 = vpack.c.bf16 %v5329_v37, %v5328_v54  ;;  %v5335_v37 = vld [vmem:[#allocation2 + $0x179] sm:$0xff] }
 0x43a   : > { %9781 = vmatprep.mubr.bf16.mxu1 %v13809_v14 }
 0x43b   : > { %17659 = vst [vmem:[#allocation56_spill] sm:$0xff] %v13845_v50 }
 0x43c   : > { %6522 = vmatpush1.bf16.msra.mxu1 %v10102_v28  ;;  %v5024_v28 = vld [vmem:[#allocation2 + $0xbf] sm:$0xff] }
 0x43d   : > { %6523 = vmatprep.subr.bf16.mxu1 %v17641_v57 }
 0x43f   : > { %5860 = vmatmul.mubr.bf16.gmra.mrb[24].mxu0 %v13818_v5 }
 0x440   : > { %6524 = vmatpush1.bf16.msra.mxu1 %v10103_v45  ;;  %5867 = vmatprep.mubr.bf16.mxu0 %v13647_v21  ;;  %v5025_v45 = vld [vmem:[#allocation2 + $0xc7] sm:$0xff] }
 0x441   : > { %6525 = vmatprep.subr.bf16.mxu1 %v17641_v57  ;;  %9782 = vmatmul.mubr.bf16.gmra.mrb[88].mxu1 %v13821_v41  ;;  %v13854_v40 = vpack.c.bf16 %v5025_v45, %v5024_v28  ;;  %v13870_v28 = vpack.c.bf16 %v5335_v37, %v5334_v48  ;;  %v5340_v48 = vld [vmem:[#allocation2 + $0x1a1] sm:$0xff] }
 0x442   : > { %9785 = vmatprep.mubr.bf16.mxu1 %v13827_v51 }
 0x443   : > { %17660 = vst [vmem:[#allocation77_spill] sm:$0xff] %v13854_v40  ;;  %17664 = vst [vmem:[#allocation49_spill] sm:$0xff] %v13870_v28 }
 0x444   : > { %6526 = vmatpush1.bf16.msra.mxu1 %v10104_v34  ;;  %v5332_v34 = vld [vmem:[#allocation2 + $0x161] sm:$0xff] }
 0x445   : > { %6527 = vmatprep.subr.bf16.mxu1 %v17641_v57  ;;  %v13863_v17 = vpack.c.bf16 %v5333_v20, %v5332_v34  ;;  %v5338_v20 = vld [vmem:[#allocation2 + $0x191] sm:$0xff]  ;;  %v5339_v34 = vld [vmem:[#allocation2 + $0x199] sm:$0xff] }
 0x447   : > { %5868 = vmatmul.mubr.bf16.gmra.mrb[28].mxu0 %v13836_v33  ;;  %17662 = vst [vmem:[#allocation80_spill] sm:$0xff] %v13863_v17 }
 0x448   : > { %6528 = vmatpush1.bf16.msra.mxu1 %v10105_v32  ;;  %5875 = vmatprep.mubr.bf16.mxu0 %v13652_v3  ;;  %v5026_v32 = vld [vmem:[#allocation2 + $0xcf] sm:$0xff] }
 0x449   : > { %6529 = vmatprep.subr.bf16.mxu1 %v17641_v57  ;;  %9786 = vmatmul.mubr.bf16.gmra.mrb[92].mxu1 %v13839_v39  ;;  %v13867_v54 = vpack.c.bf16 %v5027_v10, %v5026_v32  ;;  %v5341_v32 = vld [vmem:[#allocation2 + $0x1a9] sm:$0xff]  ;;  %v13880_v10 = vpack.c.bf16 %v5339_v34, %v5338_v20  ;;  %v5344_v34 = vld [vmem:[#allocation2 + $0x1c1] sm:$0xff]  ;;  %v5359_v39 = vld [vmem:[#allocation2 + $0x239] sm:$0xff] }
 0x44a   : > { %9789 = vmatprep.mubr.bf16.mxu1 %v13845_v50  ;;  %v13883_v37 = vpack.c.bf16 %v5341_v32, %v5340_v48  ;;  %v13893_v32 = vpack.c.bf16 %v5345_v61, %v5344_v34  ;;  %v5032_v48 = vld [vmem:[#allocation2 + $0xff] sm:$0xff] }
 0x44b   : > { %17663 = vst [vmem:[#allocation50_spill] sm:$0xff] %v13867_v54  ;;  %17667 = vst [vmem:[#allocation51_spill] sm:$0xff] %v13880_v10  ;;  %v10111_v61 = vld [vmem:[%s16610_s2 + $0xb8] sm:$0xff]  }
 0x44c   : > { %6530 = vmatpush1.bf16.msra.mxu1 %v10106_v38  ;;  %v5337_v38 = vld [vmem:[#allocation2 + $0x189] sm:$0xff]  ;;  %17668 = vst [vmem:[#allocation106_spill] sm:$0xff] %v13883_v37  ;;  %17671 = vst [vmem:[#allocation57_spill] sm:$0xff] %v13893_v32  ;;  %9835 = vmatprep.subr.bf16.mxu0 %v10111_v61  ;;  %v5355_v50 = vld [vmem:[#allocation2 + $0x219] sm:$0xff] }
 0x44d   : > { %6531 = vmatprep.subr.bf16.mxu1 %v17641_v57  ;;  %9836 = vmatpush3.bf16.msra.mxu0 %v10111_v61  ;;  %v5036_v61 = vld [vmem:[#allocation2 + $0x11f] sm:$0xff] }
 0x44e   : > { %7368 = vmatprep.subr.bf16.mxu0 %v17641_v57 }
 0x44f   : > { %5876 = vmatmul.mubr.bf16.gmra.mrb[32].mxu0 %v13854_v40 }
 0x450   : > { %6532 = vmatpush1.bf16.msra.mxu1 %v10107_v30  ;;  %5883 = vmatprep.mubr.bf16.mxu0 %v13656_v47  ;;  %v5336_v30 = vld [vmem:[#allocation2 + $0x181] sm:$0xff] }
 0x451   : > { %9790 = vmatmul.mubr.bf16.gmra.mrb[96].mxu1 %v13857_v18  ;;  %v13873_v45 = vpack.c.bf16 %v5337_v38, %v5336_v30  ;;  %v5030_v38 = vld [vmem:[#allocation2 + $0xef] sm:$0xff]  ;;  %v5031_v30 = vld [vmem:[#allocation2 + $0xf7] sm:$0xff] }
 0x452   : > { %9793 = vmatprep.mubr.bf16.mxu1 %v13863_v17  ;;  %v13887_v55 = vpack.c.bf16 %v5031_v30, %v5030_v38  ;;  %v5347_v17 = vld [vmem:[#allocation2 + $0x1d9] sm:$0xff]  ;;  %v5349_v30 = vld [vmem:[#allocation2 + $0x1e9] sm:$0xff] }
 0x453   : > { %17665 = vst [vmem:[#allocation102_spill] sm:$0xff] %v13873_v45 }
 0x454   : > { %17669 = vst [vmem:[#allocation55_spill] sm:$0xff] %v13887_v55 }
 0x457   : > { %5884 = vmatmul.mubr.bf16.gmra.mrb[36].mxu0 %v13867_v54 }
 0x458   : > { %5891 = vmatprep.mubr.bf16.mxu0 %v13667_v58 }
 0x459   : > { %9794 = vmatmul.mubr.bf16.gmra.mrb[100].mxu1 %v13870_v28  ;;  %v5343_v28 = vld [vmem:[#allocation2 + $0x1b9] sm:$0xff] }
 0x45a   : > { %9797 = vmatprep.mubr.bf16.mxu1 %v13873_v45  ;;  %v5342_v45 = vld [vmem:[#allocation2 + $0x1b1] sm:$0xff] }
 0x45b   : > { %v13890_v20 = vpack.c.bf16 %v5343_v28, %v5342_v45  ;;  %v5348_v45 = vld [vmem:[#allocation2 + $0x1e1] sm:$0xff] }
 0x45c   : > { %v13906_v34 = vpack.c.bf16 %v5349_v30, %v5348_v45  ;;  %v5352_v30 = vld [vmem:[#allocation2 + $0x201] sm:$0xff] }
 0x45d   : > { %17670 = vst [vmem:[#allocation81_spill] sm:$0xff] %v13890_v20 }
 0x45e   : > { %17674 = vst [vmem:[#allocation94_spill] sm:$0xff] %v13906_v34 }
 0x45f   : > { %5892 = vmatmul.mubr.bf16.gmra.mrb[40].mxu0 %v13877_v23 }
 0x460   : > { %5899 = vmatprep.mubr.bf16.mxu0 %v13673_v25 }
 0x461   : > { %9798 = vmatmul.mubr.bf16.gmra.mrb[104].mxu1 %v13880_v10  ;;  %v5346_v10 = vld [vmem:[#allocation2 + $0x1d1] sm:$0xff] }
 0x462   : > { %9801 = vmatprep.mubr.bf16.mxu1 %v13883_v37  ;;  %v5033_v37 = vld [vmem:[#allocation2 + $0x107] sm:$0xff]  ;;  %v13900_v28 = vpack.c.bf16 %v5347_v17, %v5346_v10  ;;  %v5350_v17 = vld [vmem:[#allocation2 + $0x1f1] sm:$0xff]  ;;  %v5351_v10 = vld [vmem:[#allocation2 + $0x1f9] sm:$0xff] }
 0x463   : > { %v13897_v38 = vpack.c.bf16 %v5033_v37, %v5032_v48  ;;  %v5034_v37 = vld [vmem:[#allocation2 + $0x10f] sm:$0xff]  ;;  %v5035_v48 = vld [vmem:[#allocation2 + $0x117] sm:$0xff]  ;;  %v13914_v18 = vpack.c.bf16 %v5351_v10, %v5350_v17  ;;  %v5356_v10 = vld [vmem:[#allocation2 + $0x221] sm:$0xff] }
 0x464   : > { %17673 = vst [vmem:[#allocation85_spill] sm:$0xff] %v13900_v28 }
 0x465   : > { %17672 = vst [vmem:[#allocation89_spill] sm:$0xff] %v13897_v38  ;;  %17676 = vst [vmem:[#allocation59_spill] sm:$0xff] %v13914_v18 }
 0x467   : > { %5900 = vmatmul.mubr.bf16.gmra.mrb[44].mxu0 %v13887_v55 }
 0x468   : > { %5907 = vmatprep.mubr.bf16.mxu0 %v13681_v7 }
 0x469   : > { %9802 = vmatmul.mubr.bf16.gmra.mrb[108].mxu1 %v13890_v20  ;;  %v5353_v20 = vld [vmem:[#allocation2 + $0x209] sm:$0xff] }
 0x46a   : > { %9805 = vmatprep.mubr.bf16.mxu1 %v13893_v32  ;;  %v13911_v32 = vpack.c.bf16 %v5035_v48, %v5034_v37  ;;  %v13917_v45 = vpack.c.bf16 %v5353_v20, %v5352_v30  ;;  %v5357_v48 = vld [vmem:[#allocation2 + $0x229] sm:$0xff] }
 0x46b   : > { %v13927_v20 = vpack.c.bf16 %v5357_v48, %v5356_v10  ;;  %v5038_v30 = vld [vmem:[#allocation2 + $0x12f] sm:$0xff]  ;;  %v5004_v48 = vld [vmem:[#allocation2 + $0x1f] sm:$0xff]  ;;  %v5005_v10 = vld [vmem:[#allocation2 + $0x27] sm:$0xff] }
 0x46c   : > { %17675 = vst [vmem:[#allocation88_spill] sm:$0xff] %v13911_v32  ;;  %17677 = vst [vmem:[#allocation60_spill] sm:$0xff] %v13917_v45 }
 0x46d   : > { %17680 = vst [vmem:[#allocation22_spill] sm:$0xff] %v13927_v20 }
 0x46f   : > { %5908 = vmatmul.mubr.bf16.gmra.mrb[48].mxu0 %v13897_v38 }
 0x470   : > { %5915 = vmatprep.mubr.bf16.mxu0 %v13688_v24 }
 0x471   : > { %9806 = vmatmul.mubr.bf16.gmra.mrb[112].mxu1 %v13900_v28  ;;  %v5354_v28 = vld [vmem:[#allocation2 + $0x211] sm:$0xff] }
 0x472   : > { %9809 = vmatprep.mubr.bf16.mxu1 %v13906_v34  ;;  %v5037_v34 = vld [vmem:[#allocation2 + $0x127] sm:$0xff]  ;;  %v13924_v17 = vpack.c.bf16 %v5355_v50, %v5354_v28  ;;  %v5040_v28 = vld [vmem:[#allocation2 + $0x13f] sm:$0xff] }
 0x473   : > { %v13921_v37 = vpack.c.bf16 %v5037_v34, %v5036_v61  ;;  %v10140_v61 = vld [vmem:[#allocation2] sm:$0xff] }
 0x474   : > { %17679 = vst [vmem:[#allocation26_spill] sm:$0xff] %v13924_v17  ;;  %v5220_v51 = vpack.c.bf16 %v10140_v61, %v10140_v61  ;;  %v5076_v61 = vpack.c.bf16 %v5005_v10, %v5004_v48  ;;  %v5195_v10 = vld [vmem:[#allocation2 + $0x198] sm:$0xff] }
 0x475   : > { %17678 = vst [vmem:[#allocation23_spill] sm:$0xff] %v13921_v37 }
 0x477   : > { %5916 = vmatmul.mubr.bf16.gmra.mrb[52].mxu0 %v13911_v32 }
 0x478   : > { %5923 = vmatprep.mubr.bf16.mxu0 %v13692_v9 }
 0x479   : > { %9810 = vmatmul.mubr.bf16.gmra.mrb[116].mxu1 %v13914_v18  ;;  %v5358_v18 = vld [vmem:[#allocation2 + $0x231] sm:$0xff] }
 0x47a   : > { %9813 = vmatprep.mubr.bf16.mxu1 %v13917_v45  ;;  %v5039_v45 = vld [vmem:[#allocation2 + $0x137] sm:$0xff]  ;;  %v13934_v50 = vpack.c.bf16 %v5359_v39, %v5358_v18  ;;  %v5042_v39 = vld [vmem:[#allocation2 + $0x14f] sm:$0xff] }
 0x47b   : > { %v13931_v34 = vpack.c.bf16 %v5039_v45, %v5038_v30  ;;  %v10112_v45 = vld [vmem:[%s16610_s2 + $0x200] sm:$0xff]   ;;  %v5043_v18 = vld [vmem:[#allocation2 + $0x157] sm:$0xff] }
 0x47c   : > { %17682 = vst [vmem:[#allocation62_spill] sm:$0xff] %v13934_v50  ;;  %9901 = vmatprep.subr.bf16.mxu1 %v10112_v45  ;;  %v13945_v41 = vpack.c.bf16 %v5043_v18, %v5042_v39  ;;  %v5051_v39 = vld [vmem:[#allocation2 + $0x197] sm:$0xff]  ;;  %v5196_v18 = vld [vmem:[#allocation2 + $0x1a0] sm:$0xff] }
 0x47d   : > { %17681 = vst [vmem:[#allocation61_spill] sm:$0xff] %v13931_v34 }
 0x47e   : > { %17684 = vst [vmem:[#allocation31_spill] sm:$0xff] %v13945_v41 }
 0x47f   : > { %5924 = vmatmul.mubr.bf16.gmra.mrb[56].mxu0 %v13921_v37 }
 0x480   : > { %5931 = vmatprep.mubr.bf16.mxu0 %v13697_v19 }
 0x481   : > { %9814 = vmatmul.mubr.bf16.gmra.mrb[120].mxu1 %v13924_v17  ;;  %v5007_v17 = vld [vmem:[#allocation2 + $0x37] sm:$0xff] }
 0x482   : > { %9817 = vmatprep.mubr.bf16.mxu1 %v13927_v20  ;;  %v5041_v20 = vld [vmem:[#allocation2 + $0x147] sm:$0xff] }
 0x483   : > { %v13941_v30 = vpack.c.bf16 %v5041_v20, %v5040_v28  ;;  %v5044_v20 = vld [vmem:[#allocation2 + $0x15f] sm:$0xff]  ;;  %v5045_v28 = vld [vmem:[#allocation2 + $0x167] sm:$0xff] }
 0x484   : > { %v13950_v48 = vpack.c.bf16 %v5045_v28, %v5044_v20  ;;  %v5197_v20 = vld [vmem:[#allocation2 + $0x1a8] sm:$0xff] }
 0x485   : > { %17683 = vst [vmem:[#allocation8_spill] sm:$0xff] %v13941_v30 }
 0x486   : > { %17685 = vst [vmem:[#allocation65_spill] sm:$0xff] %v13950_v48 }
 0x487   : > { %5932 = vmatmul.mubr.bf16.gmra.mrb[60].mxu0 %v13931_v34 }
 0x488   : > { %5939 = vmatprep.mubr.bf16.mxu0 %v13701_v16 }
 0x489   : > { %9818 = vmatmul.mubr.bf16.gmra.mrb[124].mxu1 %v13934_v50  ;;  %v5006_v50 = vld [vmem:[#allocation2 + $0x2f] sm:$0xff] }
 0x48a   : > { %6533 = vmatprep.mubr.bf16.mxu1 %v5220_v51  ;;  %v5077_v14 = vpack.c.bf16 %v5007_v17, %v5006_v50  ;;  %v5047_v17 = vld [vmem:[#allocation2 + $0x177] sm:$0xff] }
 0x48f   : > { %5940 = vmatmul.mubr.bf16.gmra.mrb[64].mxu0 %v13941_v30 }
 0x490   : > { %5947 = vmatprep.mubr.bf16.mxu0 %v13707_v63 }
 0x491   : > { %6534 = vmatmul.mubr.bf16.vlgmr.msra.gmra.mrb[128].mxu1 %v5076_v61 }
 0x492   : > { %6541 = vmatprep.mubr.bf16.mxu1 %v5220_v51  ;;  %9902 = vmatpush3.bf16.msra.mxu1 %v10112_v45  ;;  %v5046_v51 = vld [vmem:[#allocation2 + $0x16f] sm:$0xff]  ;;  %v5049_v45 = vld [vmem:[#allocation2 + $0x187] sm:$0xff] }
 0x493   : > { %v13956_v50 = vpack.c.bf16 %v5047_v17, %v5046_v51  ;;  %v13975_v51 = vpack.c.bf16 %v5197_v20, %v5196_v18  ;;  %v5052_v17 = vld [vmem:[#allocation2 + $0x19f] sm:$0xff]  ;;  %v5201_v20 = vld [vmem:[#allocation2 + $0x1c8] sm:$0xff] }
 0x494   : > { %v5200_v18 = vld [vmem:[#allocation2 + $0x1c0] sm:$0xff] }
 0x495   : > { %17686 = vst [vmem:[#allocation71_spill] sm:$0xff] %v13956_v50  ;;  %17690 = vst [vmem:[#allocation78_spill] sm:$0xff] %v13975_v51 }
 0x497   : > { %5948 = vmatmul.mubr.bf16.gmra.mrb[68].mxu0 %v13945_v41 }
 0x498   : > { %5955 = vmatprep.mubr.bf16.mxu0 %v13714_v2 }
 0x499   : > { %6542 = vmatmul.mubr.bf16.gmra.mrb[132].mxu1 %v5077_v14  ;;  %v5194_v14 = vld [vmem:[#allocation2 + $0x190] sm:$0xff] }
 0x49a   : > { %6549 = vmatprep.mubr.bf16.mxu1 %v13609_v42  ;;  %v5048_v42 = vld [vmem:[#allocation2 + $0x17f] sm:$0xff]  ;;  %v13967_v61 = vpack.c.bf16 %v5195_v10, %v5194_v14  ;;  %v5053_v10 = vld [vmem:[#allocation2 + $0x1a7] sm:$0xff] }
 0x49b   : > { %v5199_v14 = vld [vmem:[#allocation2 + $0x1b8] sm:$0xff] }
 0x49c   : > { %17688 = vst [vmem:[#allocation35_spill] sm:$0xff] %v13967_v61 }
 0x49f   : > { %5956 = vmatmul.mubr.bf16.gmra.mrb[72].mxu0 %v13950_v48 }
 0x4a0   : > { %5963 = vmatprep.mubr.bf16.mxu0 %v13718_v22 }
 0x4a1   : > { %6550 = vmatmul.mubr.bf16.gmra.mrb[136].mxu1 %v13611_v15  ;;  %v10117_v15 = vld [vmem:[%s16610_s2 + $0x208] sm:$0xff]  }
 0x4a2   : > { %6557 = vmatprep.mubr.bf16.mxu1 %v13615_v56  ;;  %v13965_v56 = vpack.c.bf16 %v5049_v45, %v5048_v42  ;;  %9903 = vmatprep.subr.bf16.mxu1 %v10117_v15  ;;  %v5198_v42 = vld [vmem:[#allocation2 + $0x1b0] sm:$0xff]  ;;  %v13981_v45 = vpack.c.bf16 %v5053_v10, %v5052_v17  ;;  %v5056_v17 = vld [vmem:[#allocation2 + $0x1bf] sm:$0xff]  ;;  %v5057_v10 = vld [vmem:[#allocation2 + $0x1c7] sm:$0xff] }
 0x4a3   : > { %9904 = vmatpush3.bf16.msra.mxu1 %v10117_v15  ;;  %v13983_v15 = vpack.c.bf16 %v5199_v14, %v5198_v42  ;;  %v5202_v42 = vld [vmem:[#allocation2 + $0x1d0] sm:$0xff]  ;;  %v5203_v14 = vld [vmem:[#allocation2 + $0x1d8] sm:$0xff] }
 0x4a4   : > { %17687 = vst [vmem:[#allocation72_spill] sm:$0xff] %v13965_v56  ;;  %17691 = vst [vmem:[#allocation12_spill] sm:$0xff] %v13981_v45 }
 0x4a5   : > { %17692 = vst [vmem:[#allocation86_spill] sm:$0xff] %v13983_v15 }
 0x4a7   : > { %5964 = vmatmul.mubr.bf16.gmra.mrb[76].mxu0 %v13956_v50 }
 0x4a8   : > { %5971 = vmatprep.mubr.bf16.mxu0 %v13728_v13 }
 0x4a9   : > { %6558 = vmatmul.mubr.bf16.gmra.mrb[140].mxu1 %v13703_v11  ;;  %v5050_v11 = vld [vmem:[#allocation2 + $0x18f] sm:$0xff] }
 0x4aa   : > { %6565 = vmatprep.mubr.bf16.mxu1 %v13619_v62  ;;  %v13973_v28 = vpack.c.bf16 %v5051_v39, %v5050_v11  ;;  %v5054_v11 = vld [vmem:[#allocation2 + $0x1af] sm:$0xff]  ;;  %v5055_v39 = vld [vmem:[#allocation2 + $0x1b7] sm:$0xff] }
 0x4ac   : > { %17689 = vst [vmem:[#allocation76_spill] sm:$0xff] %v13973_v28 }
 0x4af   : > { %5972 = vmatmul.mubr.bf16.gmra.mrb[80].mxu0 %v13965_v56 }
 0x4b0   : > { %5979 = vmatprep.mubr.bf16.mxu0 %v13967_v61 }
 0x4b1   : > { %6566 = vmatmul.mubr.bf16.gmra.mrb[144].mxu1 %v13740_v12 }
 0x4b2   : > { %6573 = vmatprep.mubr.bf16.mxu1 %v13623_v49 }
 0x4b7   : > { %5980 = vmatmul.mubr.bf16.gmra.mrb[84].mxu0 %v13973_v28 }
 0x4b8   : > { %5987 = vmatprep.mubr.bf16.mxu0 %v13975_v51 }
 0x4b9   : > { %6574 = vmatmul.mubr.bf16.gmra.mrb[148].mxu1 %v13761_v1  ;;  %v13991_v1 = vpack.c.bf16 %v5201_v20, %v5200_v18  ;;  %v5058_v18 = vld [vmem:[#allocation2 + $0x1cf] sm:$0xff]  ;;  %v5059_v20 = vld [vmem:[#allocation2 + $0x1d7] sm:$0xff] }
 0x4ba   : > { %6581 = vmatprep.mubr.bf16.mxu1 %v13627_v4  ;;  %v13989_v4 = vpack.c.bf16 %v5055_v39, %v5054_v11  ;;  %v14000_v11 = vpack.c.bf16 %v5057_v10, %v5056_v17  ;;  %v14002_v39 = vpack.c.bf16 %v5203_v14, %v5202_v42  ;;  %v5206_v42 = vld [vmem:[#allocation2 + $0x1f0] sm:$0xff]  ;;  %v5207_v14 = vld [vmem:[#allocation2 + $0x1f8] sm:$0xff]  ;;  %v5061_v10 = vld [vmem:[#allocation2 + $0x1e7] sm:$0xff] }
 0x4bb   : > { %17694 = vst [vmem:[#allocation92_spill] sm:$0xff] %v13991_v1 }
 0x4bc   : > { %17693 = vst [vmem:[#allocation90_spill] sm:$0xff] %v13989_v4  ;;  %17695 = vst [vmem:[#allocation13_spill] sm:$0xff] %v14000_v11 }
 0x4bd   : > { %17696 = vst [vmem:[#allocation38_spill] sm:$0xff] %v14002_v39 }
 0x4bf   : > { %5988 = vmatmul.mubr.bf16.gmra.mrb[88].mxu0 %v13981_v45 }
 0x4c0   : > { %5995 = vmatprep.mubr.bf16.mxu0 %v13983_v15 }
 0x4c1   : > { %6582 = vmatmul.mubr.bf16.gmra.mrb[152].mxu1 %v13779_v43  ;;  %v14008_v43 = vpack.c.bf16 %v5059_v20, %v5058_v18  ;;  %v5063_v18 = vld [vmem:[#allocation2 + $0x1f7] sm:$0xff] }
 0x4c2   : > { %6589 = vmatprep.mubr.bf16.mxu1 %v13631_v8  ;;  %v10122_v8 = vld [vmem:[%s16610_s2 + $0x210] sm:$0xff]  }
 0x4c3   : > { %9905 = vmatprep.subr.bf16.mxu1 %v10122_v8  ;;  %17697 = vst [vmem:[#allocation39_spill] sm:$0xff] %v14008_v43 }
 0x4c4   : > { %9906 = vmatpush3.bf16.msra.mxu1 %v10122_v8  ;;  %v5060_v8 = vld [vmem:[#allocation2 + $0x1df] sm:$0xff] }
 0x4c7   : > { %5996 = vmatmul.mubr.bf16.gmra.mrb[92].mxu0 %v13989_v4 }
 0x4c8   : > { %6003 = vmatprep.mubr.bf16.mxu0 %v13991_v1 }
 0x4c9   : > { %6590 = vmatmul.mubr.bf16.gmra.mrb[156].mxu1 %v13800_v0  ;;  %v5205_v0 = vld [vmem:[#allocation2 + $0x1e8] sm:$0xff] }
 0x4ca   : > { %6597 = vmatprep.mubr.bf16.mxu1 %v13643_v53  ;;  %v5204_v53 = vld [vmem:[#allocation2 + $0x1e0] sm:$0xff] }
 0x4cb   : > { %v14010_v17 = vpack.c.bf16 %v5205_v0, %v5204_v53  ;;  %v5062_v0 = vld [vmem:[#allocation2 + $0x1ef] sm:$0xff] }
 0x4cd   : > { %17698 = vst [vmem:[#allocation93_spill] sm:$0xff] %v14010_v17 }
 0x4cf   : > { %6004 = vmatmul.mubr.bf16.gmra.mrb[96].mxu0 %v14000_v11 }
 0x4d0   : > { %6011 = vmatprep.mubr.bf16.mxu0 %v14002_v39 }
 0x4d1   : > { %6598 = vmatmul.mubr.bf16.gmra.mrb[160].mxu1 %v13818_v5  ;;  %v14018_v5 = vpack.c.bf16 %v5207_v14, %v5206_v42  ;;  %v14024_v42 = vpack.c.bf16 %v5063_v18, %v5062_v0  ;;  %v5210_v18 = vld [vmem:[#allocation2 + $0x210] sm:$0xff] }
 0x4d2   : > { %6605 = vmatprep.mubr.bf16.mxu1 %v13647_v21  ;;  %v14016_v21 = vpack.c.bf16 %v5061_v10, %v5060_v8 }
 0x4d3   : > { %17700 = vst [vmem:[#allocation42_spill] sm:$0xff] %v14018_v5  ;;  %17701 = vst [vmem:[#allocation20_spill] sm:$0xff] %v14024_v42 }
 0x4d4   : > { %17699 = vst [vmem:[#allocation17_spill] sm:$0xff] %v14016_v21 }
 0x4d7   : > { %6012 = vmatmul.mubr.bf16.gmra.mrb[100].mxu0 %v14008_v43 }
 0x4d8   : > { %6019 = vmatprep.mubr.bf16.mxu0 %v14010_v17 }
 0x4d9   : > { %6606 = vmatmul.mubr.bf16.gmra.mrb[164].mxu1 %v13836_v33  ;;  %v5209_v33 = vld [vmem:[#allocation2 + $0x208] sm:$0xff] }
 0x4da   : > { %6613 = vmatprep.mubr.bf16.mxu1 %v13652_v3  ;;  %v5208_v3 = vld [vmem:[#allocation2 + $0x200] sm:$0xff] }
 0x4df   : > { %6020 = vmatmul.mubr.bf16.gmra.mrb[104].mxu0 %v14016_v21  ;;  %v5065_v21 = vld [vmem:[#allocation2 + $0x207] sm:$0xff] }
 0x4e0   : > { %6027 = vmatprep.mubr.bf16.mxu0 %v14018_v5  ;;  %v5813_v53 = vpop.f32.mrb[0].mxu0  ;;  %v14028_v5 = vpack.c.bf16 %v5209_v33, %v5208_v3 }
 0x4e1   : > { %6614 = vmatmul.mubr.bf16.gmra.mrb[168].mxu1 %v13854_v40  ;;  %v5815_v20 = vpop.f32.mrb[1].mxu0  ;;  %v9759_v12 = vpop.f32.mrb[64].mxu1 }
 0x4e2   : > { %6621 = vmatprep.mubr.bf16.mxu1 %v13656_v47  ;;  %v5816_v49 = vpop.f32.mrb[2].mxu0  ;;  %v6102_v10 = vpop.f32.mrb[65].mxu1  ;;  %17702 = vst [vmem:[#allocation24_spill] sm:$0xff] %v14028_v5 }
 0x4e3   : > { %v5818_v8 = vpop.f32.mrb[3].mxu0  ;;  %v14026_v14 = vadd.f32 %v6102_v10, %v5813_v53  ;;  %v9760_v62 = vpop.f32.mrb[66].mxu1  ;;  %v5211_v53 = vld [vmem:[#allocation2 + $0x218] sm:$0xff] }
 0x4e4   : > { %v6105_v40 = vpop.f32.mrb[67].mxu1  ;;  %v5064_v8 = vld [vmem:[#allocation2 + $0x1ff] sm:$0xff] }
 0x4e5   : > { %v14031_v47 = vadd.f32 %v6105_v40, %v5816_v49  ;;  %v14038_v49 = vpack.c.bf16 %v5065_v21, %v5064_v8  ;;  %v10127_v40 = vld [vmem:[%s16610_s2 + $0x218] sm:$0xff]  }
 0x4e6   : > { %9907 = vmatprep.subr.bf16.mxu1 %v10127_v40 }
 0x4e7   : > { %6028 = vmatmul.mubr.bf16.gmra.mrb[108].mxu0 %v14024_v42  ;;  %17704 = vst [vmem:[#allocation25_spill] sm:$0xff] %v14038_v49  ;;  %9908 = vmatpush3.bf16.msra.mxu1 %v10127_v40 }
 0x4e8   : > { %6035 = vmatprep.mubr.bf16.mxu0 %v14028_v5  ;;  %v14045_v5 = vpack.c.bf16 %v5211_v53, %v5210_v18 }
 0x4e9   : > { %6622 = vmatmul.mubr.bf16.gmra.mrb[172].mxu1 %v13867_v54 }
 0x4ea   : > { %v5821_v20 = vpop.f32.mrb[4].mxu0  ;;  %6629 = vmatprep.mubr.bf16.mxu1 %v13667_v58  ;;  %17706 = vst [vmem:[#allocation32_spill] sm:$0xff] %v14045_v5 }
 0x4eb   : > { %v5823_v0 = vpop.f32.mrb[5].mxu0  ;;  %v14036_v10 = vadd.f32 %v9759_v12, %v5821_v20  ;;  %v5067_v20 = vld [vmem:[#allocation2 + $0x217] sm:$0xff] }
 0x4ec   : > { %v5824_v3 = vpop.f32.mrb[6].mxu0  ;;  %v9763_v33 = vpop.f32.mrb[68].mxu1  ;;  %v5213_v0 = vld [vmem:[#allocation2 + $0x228] sm:$0xff] }
 0x4ed   : > { %17703 = vst [vmem:[#allocation43_spill] sm:$0xff] %v14036_v10  ;;  %v5826_v42 = vpop.f32.mrb[7].mxu0  ;;  %v6118_v17 = vpop.f32.mrb[69].mxu1  ;;  %v14043_v54 = vadd.f32 %v9760_v62, %v5824_v3  ;;  %v5212_v62 = vld [vmem:[#allocation2 + $0x220] sm:$0xff] }
 0x4ee   : > { %v9764_v58 = vpop.f32.mrb[70].mxu1  ;;  %v5066_v42 = vld [vmem:[#allocation2 + $0x20f] sm:$0xff] }
 0x4ef   : > { %17705 = vst [vmem:[#allocation28_spill] sm:$0xff] %v14043_v54  ;;  %6036 = vmatmul.mubr.bf16.gmra.mrb[112].mxu0 %v14038_v49  ;;  %v6121_v12 = vpop.f32.mrb[71].mxu1  ;;  %v14055_v10 = vpack.c.bf16 %v5067_v20, %v5066_v42  ;;  %v5214_v42 = vld [vmem:[#allocation2 + $0x230] sm:$0xff]  ;;  %v5215_v20 = vld [vmem:[#allocation2 + $0x238] sm:$0xff] }
 0x4f0   : > { %6043 = vmatprep.mubr.bf16.mxu0 %v14045_v5  ;;  %v14061_v5 = vpack.c.bf16 %v5213_v0, %v5212_v62  ;;  %v5069_v62 = vld [vmem:[#allocation2 + $0x227] sm:$0xff] }
 0x4f1   : > { %6630 = vmatmul.mubr.bf16.gmra.mrb[176].mxu1 %v13877_v23  ;;  %17708 = vst [vmem:[#allocation33_spill] sm:$0xff] %v14055_v10 }
 0x4f2   : > { %v5829_v21 = vpop.f32.mrb[8].mxu0  ;;  %6637 = vmatprep.mubr.bf16.mxu1 %v13673_v25  ;;  %17710 = vst [vmem:[#allocation37_spill] sm:$0xff] %v14061_v5 }
 0x4f3   : > { %v5831_v8 = vpop.f32.mrb[9].mxu0  ;;  %v14051_v3 = vadd.f32 %v6118_v17, %v5829_v21 }
 0x4f4   : > { %v5832_v18 = vpop.f32.mrb[10].mxu0  ;;  %v14053_v53 = vpop.f32.mrb[72].mxu1 }
 0x4f5   : > { %17707 = vst [vmem:[#allocation27_spill] sm:$0xff] %v14051_v3  ;;  %v5834_v49 = vpop.f32.mrb[11].mxu0  ;;  %v6134_v54 = vpop.f32.mrb[73].mxu1  ;;  %v14057_v40 = vadd.f32 %v6121_v12, %v5832_v18 }
 0x4f6   : > { %v14059_v23 = vpop.f32.mrb[74].mxu1  ;;  %v5068_v49 = vld [vmem:[#allocation2 + $0x21f] sm:$0xff] }
 0x4f7   : > { %17709 = vst [vmem:[#allocation30_spill] sm:$0xff] %v14057_v40  ;;  %6044 = vmatmul.mubr.bf16.gmra.mrb[116].mxu0 %v14055_v10  ;;  %v6137_v8 = vpop.f32.mrb[75].mxu1  ;;  %v14073_v40 = vpack.c.bf16 %v5069_v62, %v5068_v49  ;;  %v10131_v49 = vld [vmem:[%s16610_s2 + $0x220] sm:$0xff]  }
 0x4f8   : > { %6051 = vmatprep.mubr.bf16.mxu0 %v14061_v5  ;;  %9909 = vmatprep.subr.bf16.mxu1 %v10131_v49 }
 0x4f9   : > { %6638 = vmatmul.mubr.bf16.gmra.mrb[180].mxu1 %v13887_v55  ;;  %17712 = vst [vmem:[#allocation46_spill] sm:$0xff] %v14073_v40 }
 0x4fa   : > { %v5837_v17 = vpop.f32.mrb[12].mxu0  ;;  %6645 = vmatprep.mubr.bf16.mxu1 %v13681_v7  ;;  %v14079_v7 = vpack.c.bf16 %v5215_v20, %v5214_v42  ;;  %v5071_v42 = vld [vmem:[#allocation2 + $0x237] sm:$0xff]  ;;  %9910 = vmatpush3.bf16.msra.mxu1 %v10131_v49 }
 0x4fb   : > { %v5839_v21 = vpop.f32.mrb[13].mxu0  ;;  %v14067_v12 = vadd.f32 %v9763_v33, %v5837_v17  ;;  %v5292_v33 = vld [vmem:[#allocation2 + $0x21] sm:$0xff]  ;;  %v5293_v17 = vld [vmem:[#allocation2 + $0x29] sm:$0xff] }
 0x4fc   : > { %v5840_v18 = vpop.f32.mrb[14].mxu0  ;;  %v14069_v25 = vpop.f32.mrb[76].mxu1  ;;  %17714 = vst [vmem:[#allocation64_spill] sm:$0xff] %v14079_v7 }
 0x4fd   : > { %17711 = vst [vmem:[#allocation5_spill] sm:$0xff] %v14067_v12  ;;  %v5842_v0 = vpop.f32.mrb[15].mxu0  ;;  %v14071_v10 = vpop.f32.mrb[77].mxu1  ;;  %v14075_v5 = vadd.f32 %v9764_v58, %v5840_v18  ;;  %v5070_v18 = vld [vmem:[#allocation2 + $0x22f] sm:$0xff] }
 0x4fe   : > { %v14077_v55 = vpop.f32.mrb[78].mxu1  ;;  %v14096_v12 = vpack.c.bf16 %v5071_v42, %v5070_v18 }
 0x4ff   : > { %17713 = vst [vmem:[#allocation63_spill] sm:$0xff] %v14075_v5  ;;  %6052 = vmatmul.mubr.bf16.gmra.mrb[120].mxu0 %v14073_v40  ;;  %v14082_v21 = vpop.f32.mrb[79].mxu1 }
 0x500   : > { %6059 = vmatprep.mubr.bf16.mxu0 %v14079_v7  ;;  %v5364_v7 = vpack.c.bf16 %v5293_v17, %v5292_v33  ;;  %17715 = vst [vmem:[#allocation66_spill] sm:$0xff] %v14096_v12  ;;  %v5295_v17 = vld [vmem:[#allocation2 + $0x39] sm:$0xff] }
 0x501   : > { %6646 = vmatmul.mubr.bf16.gmra.mrb[184].mxu1 %v13897_v38 }
 0x502   : > { %v5845_v58 = vpop.f32.mrb[16].mxu0  ;;  %6653 = vmatprep.mubr.bf16.mxu1 %v13688_v24  ;;  %v10132_v24 = vld [vmem:[%s16610_s2 + $0x228] sm:$0xff]  }
 0x503   : > { %v5847_v20 = vpop.f32.mrb[17].mxu0  ;;  %v14090_v62 = vadd.f32 %v6134_v54, %v5845_v58  ;;  %9911 = vmatprep.subr.bf16.mxu1 %v10132_v24 }
 0x504   : > { %v5848_v0 = vpop.f32.mrb[18].mxu0  ;;  %v14092_v40 = vpop.f32.mrb[80].mxu1  ;;  %9912 = vmatpush3.bf16.msra.mxu1 %v10132_v24 }
 0x505   : > { %v5850_v38 = vpop.f32.mrb[19].mxu0  ;;  %v14094_v5 = vpop.f32.mrb[81].mxu1  ;;  %v14101_v3 = vadd.f32 %v6137_v8, %v5848_v0  ;;  %v5294_v8 = vld [vmem:[#allocation2 + $0x31] sm:$0xff] }
 0x506   : > { %v14103_v20 = vpop.f32.mrb[82].mxu1  ;;  %v10134_v38 = vld [vmem:[%s16610_s2 + $0x230] sm:$0xff]  }
 0x507   : > { %6060 = vmatmul.mubr.bf16.gmra.mrb[124].mxu0 %v14096_v12  ;;  %v14106_v54 = vpop.f32.mrb[83].mxu1  ;;  %9913 = vmatprep.subr.bf16.mxu1 %v10134_v38  ;;  %v5365_v12 = vpack.c.bf16 %v5295_v17, %v5294_v8 }
 0x508   : > { %9837 = vmatprep.mubr.bf16.mxu0 %v5364_v7  ;;  %v10113_v7 = vld [vmem:[%s16610_s2 + $0x180] sm:$0xff]   ;;  %9914 = vmatpush3.bf16.msra.mxu1 %v10134_v38  ;;  %v10114_v38 = vld [vmem:[%s16610_s2 + $0x188] sm:$0xff]  }
 0x509   : > { %6654 = vmatmul.mubr.bf16.gmra.mrb[188].mxu1 %v13911_v32 }
 0x50a   : > { %v5853_v33 = vpop.f32.mrb[20].mxu0  ;;  %6661 = vmatprep.mubr.bf16.mxu1 %v13692_v9 }
 0x50b   : > { %v5855_v49 = vpop.f32.mrb[21].mxu0  ;;  %v14114_v58 = vadd.f32 %v14053_v53, %v5853_v33 }
 0x50c   : > { %v5856_v18 = vpop.f32.mrb[22].mxu0  ;;  %v14116_v42 = vpop.f32.mrb[84].mxu1  ;;  %v10135_v49 = vld [vmem:[%s16610_s2 + $0x238] sm:$0xff]  }
 0x50d   : > { %v5858_v24 = vpop.f32.mrb[23].mxu0  ;;  %v14121_v0 = vpop.f32.mrb[85].mxu1  ;;  %v14127_v9 = vadd.f32 %v14059_v23, %v5856_v18  ;;  %9915 = vmatprep.subr.bf16.mxu1 %v10135_v49 }
 0x50e   : > { %v14129_v53 = vpop.f32.mrb[86].mxu1  ;;  %9916 = vmatpush3.bf16.msra.mxu1 %v10135_v49 }
 0x50f   : > { %v14131_v33 = vpop.f32.mrb[87].mxu1  ;;  %9838 = vmatmul.mubr.bf16.vlgmr.msra.gmra.mrb[128].mxu0 %v5365_v12 }
 0x510   : > { %9841 = vmatprep.mubr.bf16.mxu0 %v13634_v59  ;;  %7369 = vmatpush1.bf16.msra.mxu0 %v10113_v7  ;;  %v10115_v59 = vld [vmem:[%s16610_s2 + $0x190] sm:$0xff]  }
 0x511   : > { %6662 = vmatmul.mubr.bf16.gmra.mrb[192].mxu1 %v13921_v37  ;;  %7370 = vmatprep.subr.bf16.mxu0 %v17641_v57 }
 0x512   : > { %v5861_v8 = vpop.f32.mrb[24].mxu0  ;;  %6669 = vmatprep.mubr.bf16.mxu1 %v13697_v19 }
 0x513   : > { %v5863_v23 = vpop.f32.mrb[25].mxu0  ;;  %v14141_v17 = vadd.f32 %v14071_v10, %v5861_v8 }
 0x514   : > { %v5864_v12 = vpop.f32.mrb[26].mxu0  ;;  %v14143_v18 = vpop.f32.mrb[88].mxu1  ;;  %7371 = vmatpush1.bf16.msra.mxu0 %v10114_v38  ;;  %v10116_v38 = vld [vmem:[%s16610_s2 + $0x198] sm:$0xff]  }
 0x515   : > { %v5866_v7 = vpop.f32.mrb[27].mxu0  ;;  %v14148_v24 = vpop.f32.mrb[89].mxu1  ;;  %7372 = vmatprep.subr.bf16.mxu0 %v17641_v57  ;;  %v14152_v19 = vadd.f32 %v14082_v21, %v5864_v12 }
 0x516   : > { %v14154_v49 = vpop.f32.mrb[90].mxu1 }
 0x517   : > { %v14156_v10 = vpop.f32.mrb[91].mxu1  ;;  %9842 = vmatmul.mubr.bf16.gmra.mrb[132].mxu0 %v13636_v44 }
 0x518   : > { %9845 = vmatprep.mubr.bf16.mxu0 %v13663_v36  ;;  %7373 = vmatpush1.bf16.msra.mxu0 %v10115_v59  ;;  %v10118_v59 = vld [vmem:[%s16610_s2 + $0x1a0] sm:$0xff]  }
 0x519   : > { %6670 = vmatmul.mubr.bf16.gmra.mrb[196].mxu1 %v13931_v34  ;;  %7374 = vmatprep.subr.bf16.mxu0 %v17641_v57 }
 0x51a   : > { %v5869_v8 = vpop.f32.mrb[28].mxu0  ;;  %6677 = vmatprep.mubr.bf16.mxu1 %v13701_v16 }
 0x51b   : > { %v5871_v21 = vpop.f32.mrb[29].mxu0  ;;  %v14167_v23 = vadd.f32 %v14069_v25, %v5869_v8 }
 0x51c   : > { %v5872_v12 = vpop.f32.mrb[30].mxu0  ;;  %v14169_v44 = vpop.f32.mrb[92].mxu1  ;;  %7375 = vmatpush1.bf16.msra.mxu0 %v10116_v38  ;;  %v10119_v38 = vld [vmem:[%s16610_s2 + $0x1a8] sm:$0xff]  }
 0x51d   : > { %v5874_v7 = vpop.f32.mrb[31].mxu0  ;;  %v14174_v37 = vpop.f32.mrb[93].mxu1  ;;  %7376 = vmatprep.subr.bf16.mxu0 %v17641_v57  ;;  %v14178_v34 = vadd.f32 %v14077_v55, %v5872_v12 }
 0x51e   : > { %v14180_v21 = vpop.f32.mrb[94].mxu1 }
 0x51f   : > { %17716 = vst [vmem:[#allocation69_spill] sm:$0xff] %v14178_v34  ;;  %v14182_v25 = vpop.f32.mrb[95].mxu1  ;;  %9846 = vmatmul.mubr.bf16.gmra.mrb[136].mxu0 %v13721_v52 }
 0x520   : > { %9849 = vmatprep.mubr.bf16.mxu0 %v13731_v27  ;;  %7377 = vmatpush1.bf16.msra.mxu0 %v10118_v59  ;;  %v10120_v59 = vld [vmem:[%s16610_s2 + $0x1b0] sm:$0xff]  }
 0x521   : > { %6678 = vmatmul.mubr.bf16.gmra.mrb[200].mxu1 %v13941_v30  ;;  %7378 = vmatprep.subr.bf16.mxu0 %v17641_v57 }
 0x522   : > { %v5877_v8 = vpop.f32.mrb[32].mxu0  ;;  %6685 = vmatprep.mubr.bf16.mxu1 %v13707_v63 }
 0x523   : > { %v5879_v55 = vpop.f32.mrb[33].mxu0  ;;  %v14193_v12 = vadd.f32 %v14094_v5, %v5877_v8 }
 0x524   : > { %v5880_v7 = vpop.f32.mrb[34].mxu0  ;;  %v14195_v16 = vpop.f32.mrb[96].mxu1  ;;  %7379 = vmatpush1.bf16.msra.mxu0 %v10119_v38 }
 0x525   : > { %17717 = vst [vmem:[#allocation70_spill] sm:$0xff] %v14193_v12  ;;  %v5882_v32 = vpop.f32.mrb[35].mxu0  ;;  %v14200_v34 = vpop.f32.mrb[97].mxu1  ;;  %7380 = vmatprep.subr.bf16.mxu0 %v17641_v57  ;;  %v14204_v30 = vadd.f32 %v14106_v54, %v5880_v7 }
 0x526   : > { %v14206_v55 = vpop.f32.mrb[98].mxu1  ;;  %v10121_v32 = vld [vmem:[%s16610_s2 + $0x1b8] sm:$0xff]  }
 0x527   : > { %17718 = vst [vmem:[#allocation73_spill] sm:$0xff] %v14204_v30  ;;  %v14208_v5 = vpop.f32.mrb[99].mxu1  ;;  %9850 = vmatmul.mubr.bf16.gmra.mrb[140].mxu0 %v13743_v6 }
 0x528   : > { %9853 = vmatprep.mubr.bf16.mxu0 %v13749_v46  ;;  %7381 = vmatpush1.bf16.msra.mxu0 %v10120_v59  ;;  %v10123_v59 = vld [vmem:[%s16610_s2 + $0x1c0] sm:$0xff]  }
 0x529   : > { %6686 = vmatmul.mubr.bf16.gmra.mrb[204].mxu1 %v13945_v41  ;;  %7382 = vmatprep.subr.bf16.mxu0 %v17641_v57 }
 0x52a   : > { %v5885_v38 = vpop.f32.mrb[36].mxu0  ;;  %6693 = vmatprep.mubr.bf16.mxu1 %v13714_v2 }
 0x52b   : > { %v5887_v54 = vpop.f32.mrb[37].mxu0  ;;  %v14219_v8 = vadd.f32 %v14092_v40, %v5885_v38 }
 0x52c   : > { %v5888_v7 = vpop.f32.mrb[38].mxu0  ;;  %v14221_v63 = vpop.f32.mrb[100].mxu1  ;;  %7383 = vmatpush1.bf16.msra.mxu0 %v10121_v32 }
 0x52d   : > { %17719 = vst [vmem:[#allocation74_spill] sm:$0xff] %v14219_v8  ;;  %v5890_v30 = vpop.f32.mrb[39].mxu0  ;;  %v14226_v12 = vpop.f32.mrb[101].mxu1  ;;  %7384 = vmatprep.subr.bf16.mxu0 %v17641_v57  ;;  %v14230_v41 = vadd.f32 %v14103_v20, %v5888_v7 }
 0x52e   : > { %v14232_v54 = vpop.f32.mrb[102].mxu1  ;;  %v10124_v30 = vld [vmem:[%s16610_s2 + $0x1c8] sm:$0xff]  }
 0x52f   : > { %17720 = vst [vmem:[#allocation82_spill] sm:$0xff] %v14230_v41  ;;  %v14234_v40 = vpop.f32.mrb[103].mxu1  ;;  %9854 = vmatmul.mubr.bf16.gmra.mrb[144].mxu0 %v13764_v26 }
 0x530   : > { %9857 = vmatprep.mubr.bf16.mxu0 %v13770_v31  ;;  %7385 = vmatpush1.bf16.msra.mxu0 %v10123_v59  ;;  %v10125_v59 = vld [vmem:[%s16610_s2 + $0x1d0] sm:$0xff]  }
 0x531   : > { %6694 = vmatmul.mubr.bf16.gmra.mrb[208].mxu1 %v13950_v48  ;;  %7386 = vmatprep.subr.bf16.mxu0 %v17641_v57 }
 0x532   : > { %v5893_v32 = vpop.f32.mrb[40].mxu0  ;;  %6701 = vmatprep.mubr.bf16.mxu1 %v13718_v22 }
 0x533   : > { %v5895_v20 = vpop.f32.mrb[41].mxu0  ;;  %v14245_v38 = vadd.f32 %v14121_v0, %v5893_v32 }
 0x534   : > { %v5896_v7 = vpop.f32.mrb[42].mxu0  ;;  %v14247_v2 = vpop.f32.mrb[104].mxu1  ;;  %7387 = vmatpush1.bf16.msra.mxu0 %v10124_v30 }
 0x535   : > { %17721 = vst [vmem:[#allocation83_spill] sm:$0xff] %v14245_v38  ;;  %v5898_v41 = vpop.f32.mrb[43].mxu0  ;;  %v14252_v8 = vpop.f32.mrb[105].mxu1  ;;  %7388 = vmatprep.subr.bf16.mxu0 %v17641_v57  ;;  %v14256_v48 = vadd.f32 %v14131_v33, %v5896_v7 }
 0x536   : > { %v14258_v20 = vpop.f32.mrb[106].mxu1  ;;  %v10126_v41 = vld [vmem:[%s16610_s2 + $0x1d8] sm:$0xff]  }
 0x537   : > { %17722 = vst [vmem:[#allocation16_spill] sm:$0xff] %v14256_v48  ;;  %v14260_v0 = vpop.f32.mrb[107].mxu1  ;;  %9858 = vmatmul.mubr.bf16.gmra.mrb[148].mxu0 %v13782_v35 }
 0x538   : > { %9861 = vmatprep.mubr.bf16.mxu0 %v13791_v29  ;;  %7389 = vmatpush1.bf16.msra.mxu0 %v10125_v59  ;;  %v10128_v59 = vld [vmem:[%s16610_s2 + $0x1e0] sm:$0xff]  }
 0x539   : > { %6702 = vmatmul.mubr.bf16.gmra.mrb[212].mxu1 %v13956_v50  ;;  %7390 = vmatprep.subr.bf16.mxu0 %v17641_v57 }
 0x53a   : > { %v5901_v30 = vpop.f32.mrb[44].mxu0  ;;  %6709 = vmatprep.mubr.bf16.mxu1 %v13728_v13 }
 0x53b   : > { %v5903_v33 = vpop.f32.mrb[45].mxu0  ;;  %v14271_v32 = vadd.f32 %v14116_v42, %v5901_v30  ;;  %v17725_v30 = vld [vmem:[#allocation52_spill] sm:$0xff] }
 0x53c   : > { %v5904_v7 = vpop.f32.mrb[46].mxu0  ;;  %v14273_v22 = vpop.f32.mrb[108].mxu1  ;;  %7391 = vmatpush1.bf16.msra.mxu0 %v10126_v41 }
 0x53d   : > { %17723 = vst [vmem:[#allocation21_spill] sm:$0xff] %v14271_v32  ;;  %v5906_v48 = vpop.f32.mrb[47].mxu0  ;;  %v14278_v38 = vpop.f32.mrb[109].mxu1  ;;  %7392 = vmatprep.subr.bf16.mxu0 %v17641_v57  ;;  %v14282_v50 = vadd.f32 %v14129_v53, %v5904_v7 }
 0x53e   : > { %v14284_v33 = vpop.f32.mrb[110].mxu1  ;;  %v10129_v48 = vld [vmem:[%s16610_s2 + $0x1e8] sm:$0xff]  }
 0x53f   : > { %17724 = vst [vmem:[#allocation36_spill] sm:$0xff] %v14282_v50  ;;  %v14286_v42 = vpop.f32.mrb[111].mxu1  ;;  %9862 = vmatmul.mubr.bf16.gmra.mrb[152].mxu0 %v13803_v60  ;;  %v17732_v60 = vld [vmem:[#allocation108_spill] sm:$0xff] }
 0x540   : > { %9865 = vmatprep.mubr.bf16.mxu0 %v17725_v30  ;;  %7393 = vmatpush1.bf16.msra.mxu0 %v10128_v59  ;;  %v10130_v59 = vld [vmem:[%s16610_s2 + $0x1f0] sm:$0xff]  }
 0x541   : > { %6710 = vmatmul.mubr.bf16.gmra.mrb[216].mxu1 %v13965_v56  ;;  %7394 = vmatprep.subr.bf16.mxu0 %v17641_v57 }
 0x542   : > { %v5909_v41 = vpop.f32.mrb[48].mxu0  ;;  %6717 = vmatprep.mubr.bf16.mxu1 %v13967_v61  ;;  %v17729_v61 = vld [vmem:[#allocation53_spill] sm:$0xff] }
 0x543   : > { %v5911_v53 = vpop.f32.mrb[49].mxu0  ;;  %v14297_v7 = vadd.f32 %v14148_v24, %v5909_v41  ;;  %v17728_v41 = vld [vmem:[#allocation109_spill] sm:$0xff] }
 0x544   : > { %v5912_v13 = vpop.f32.mrb[50].mxu0  ;;  %v14299_v50 = vpop.f32.mrb[112].mxu1  ;;  %7395 = vmatpush1.bf16.msra.mxu0 %v10129_v48 }
 0x545   : > { %17726 = vst [vmem:[#allocation67_spill] sm:$0xff] %v14297_v7  ;;  %v5914_v32 = vpop.f32.mrb[51].mxu0  ;;  %v14304_v30 = vpop.f32.mrb[113].mxu1  ;;  %7396 = vmatprep.subr.bf16.mxu0 %v17641_v57  ;;  %v14308_v56 = vadd.f32 %v14156_v10, %v5912_v13 }
 0x546   : > { %v14310_v53 = vpop.f32.mrb[114].mxu1  ;;  %v10133_v32 = vld [vmem:[%s16610_s2 + $0x1f8] sm:$0xff]  }
 0x547   : > { %17727 = vst [vmem:[#allocation68_spill] sm:$0xff] %v14308_v56  ;;  %v14312_v24 = vpop.f32.mrb[115].mxu1  ;;  %9866 = vmatmul.mubr.bf16.gmra.mrb[156].mxu0 %v17728_v41 }
 0x548   : > { %9869 = vmatprep.mubr.bf16.mxu0 %v17729_v61  ;;  %7397 = vmatpush1.bf16.msra.mxu0 %v10130_v59 }
 0x549   : > { %6718 = vmatmul.mubr.bf16.gmra.mrb[220].mxu1 %v13973_v28  ;;  %7398 = vmatprep.subr.bf16.mxu0 %v17641_v57 }
 0x54a   : > { %v5917_v48 = vpop.f32.mrb[52].mxu0  ;;  %6725 = vmatprep.mubr.bf16.mxu1 %v13975_v51 }
 0x54b   : > { %v5919_v13 = vpop.f32.mrb[53].mxu0  ;;  %v14323_v10 = vadd.f32 %v14143_v18, %v5917_v48 }
 0x54c   : > { %v5920_v56 = vpop.f32.mrb[54].mxu0  ;;  %v14325_v7 = vpop.f32.mrb[116].mxu1  ;;  %7399 = vmatpush1.bf16.msra.mxu0 %v10133_v32  ;;  %v17733_v13 = vld [vmem:[#allocation56_spill] sm:$0xff] }
 0x54d   : > { %17730 = vst [vmem:[#allocation9_spill] sm:$0xff] %v14323_v10  ;;  %v5922_v59 = vpop.f32.mrb[55].mxu0  ;;  %v14327_v61 = vpop.f32.mrb[117].mxu1  ;;  %v14330_v41 = vadd.f32 %v14154_v49, %v5920_v56 }
 0x54e   : > { %v14332_v28 = vpop.f32.mrb[118].mxu1 }
 0x54f   : > { %17731 = vst [vmem:[#allocation34_spill] sm:$0xff] %v14330_v41  ;;  %v14334_v57 = vpop.f32.mrb[119].mxu1  ;;  %9870 = vmatmul.mubr.bf16.gmra.mrb[160].mxu0 %v17732_v60 }
 0x550   : > { %9873 = vmatprep.mubr.bf16.mxu0 %v17733_v13 }
 0x551   : > { %6726 = vmatmul.mubr.bf16.gmra.mrb[224].mxu1 %v13981_v45  ;;  %v17738_v45 = vld [vmem:[#allocation84_spill] sm:$0xff] }
 0x552   : > { %v5925_v18 = vpop.f32.mrb[56].mxu0  ;;  %6733 = vmatprep.mubr.bf16.mxu1 %v13983_v15  ;;  %v17739_v15 = vld [vmem:[#allocation80_spill] sm:$0xff] }
 0x553   : > { %v5927_v32 = vpop.f32.mrb[57].mxu0  ;;  %v14341_v48 = vadd.f32 %v14174_v37, %v5925_v18 }
 0x554   : > { %v5928_v59 = vpop.f32.mrb[58].mxu0  ;;  %v14343_v56 = vpop.f32.mrb[120].mxu1 }
 0x555   : > { %17734 = vst [vmem:[#allocation75_spill] sm:$0xff] %v14341_v48  ;;  %17735 = vst [vmem:[#allocation79_spill] sm:$0xff] %v14343_v56  ;;  %v5930_v49 = vpop.f32.mrb[59].mxu0  ;;  %v14345_v51 = vpop.f32.mrb[121].mxu1  ;;  %v14348_v41 = vadd.f32 %v14182_v25, %v5928_v59 }
 0x556   : > { %v14350_v10 = vpop.f32.mrb[122].mxu1 }
 0x557   : > { %17736 = vst [vmem:[#allocation87_spill] sm:$0xff] %v14348_v41  ;;  %17737 = vst [vmem:[#allocation95_spill] sm:$0xff] %v14350_v10  ;;  %v14352_v13 = vpop.f32.mrb[123].mxu1  ;;  %9874 = vmatmul.mubr.bf16.gmra.mrb[164].mxu0 %v17738_v45 }
 0x558   : > { %9877 = vmatprep.mubr.bf16.mxu0 %v17739_v15 }
 0x559   : > { %6734 = vmatmul.mubr.bf16.gmra.mrb[228].mxu1 %v13989_v4  ;;  %v17745_v4 = vld [vmem:[#allocation49_spill] sm:$0xff] }
 0x55a   : > { %v5933_v37 = vpop.f32.mrb[60].mxu0  ;;  %6741 = vmatprep.mubr.bf16.mxu1 %v13991_v1  ;;  %v17746_v1 = vld [vmem:[#allocation102_spill] sm:$0xff] }
 0x55b   : > { %v5935_v18 = vpop.f32.mrb[61].mxu0  ;;  %v14359_v32 = vadd.f32 %v14169_v44, %v5933_v37 }
 0x55c   : > { %v5936_v49 = vpop.f32.mrb[62].mxu0  ;;  %v14361_v25 = vpop.f32.mrb[124].mxu1 }
 0x55d   : > { %17740 = vst [vmem:[#allocation29_spill] sm:$0xff] %v14359_v32  ;;  %17741 = vst [vmem:[#allocation4_spill] sm:$0xff] %v14361_v25  ;;  %v5938_v59 = vpop.f32.mrb[63].mxu0  ;;  %v14363_v41 = vpop.f32.mrb[125].mxu1  ;;  %v14366_v48 = vadd.f32 %v14180_v21, %v5936_v49 }
 0x55e   : > { %v14368_v10 = vpop.f32.mrb[126].mxu1 }
 0x55f   : > { %17742 = vst [vmem:[#allocation58_spill] sm:$0xff] %v14366_v48  ;;  %17743 = vst [vmem:[#allocation108_spill] sm:$0xff] %v14368_v10  ;;  %v14370_v56 = vpop.f32.mrb[127].mxu1  ;;  %9878 = vmatmul.mubr.bf16.gmra.mrb[168].mxu0 %v17745_v4 }
 0x560   : > { %17744 = vst [vmem:[#allocation84_spill] sm:$0xff] %v14370_v56  ;;  %9881 = vmatprep.mubr.bf16.mxu0 %v17746_v1  ;;  %v17751_v56 = vld [vmem:[#allocation51_spill] sm:$0xff] }
 0x561   : > { %6742 = vmatmul.mubr.bf16.gmra.mrb[232].mxu1 %v14000_v11 }
 0x562   : > { %v5941_v44 = vpop.f32.mrb[64].mxu0  ;;  %6749 = vmatprep.mubr.bf16.mxu1 %v14002_v39 }
 0x563   : > { %v14377_v37 = vadd.f32 %v14200_v34, %v5941_v44  ;;  %v5943_v18 = vpop.f32.mrb[65].mxu0  ;;  %v17752_v34 = vld [vmem:[#allocation106_spill] sm:$0xff] }
 0x564   : > { %v5944_v59 = vpop.f32.mrb[66].mxu0  ;;  %v6535_v21 = vpop.f32.mrb[128].mxu1  ;;  %v17753_v18 = vld [vmem:[#allocation93_spill] sm:$0xff] }
 0x565   : > { %17747 = vst [vmem:[#allocation80_spill] sm:$0xff] %v14377_v37  ;;  %v14380_v49 = vadd.f32 %v14208_v5, %v5944_v59  ;;  %v14383_v48 = vadd.f32 %v6535_v21, %v14026_v14  ;;  %v5946_v32 = vpop.f32.mrb[67].mxu0  ;;  %v6537_v10 = vpop.f32.mrb[129].mxu1  ;;  %v17759_v37 = vld [vmem:[#allocation81_spill] sm:$0xff] }
 0x566   : > { %v6538_v25 = vpop.f32.mrb[130].mxu1 }
 0x567   : > { %17748 = vst [vmem:[#allocation49_spill] sm:$0xff] %v14380_v49  ;;  %17749 = vst [vmem:[#allocation102_spill] sm:$0xff] %v14383_v48  ;;  %v14386_v11 = vadd.f32 %v6538_v25, %v14031_v47  ;;  %9882 = vmatmul.mubr.bf16.gmra.mrb[172].mxu0 %v17751_v56  ;;  %v6540_v39 = vpop.f32.mrb[131].mxu1  ;;  %v17756_v47 = vld [vmem:[#allocation43_spill] sm:$0xff] }
 0x568   : > { %9885 = vmatprep.mubr.bf16.mxu0 %v17752_v34 }
 0x569   : > { %17750 = vst [vmem:[#allocation111_spill] sm:$0xff] %v14386_v11  ;;  %6750 = vmatmul.mubr.bf16.gmra.mrb[236].mxu1 %v14008_v43  ;;  %v17757_v11 = vld [vmem:[#allocation28_spill] sm:$0xff] }
 0x56a   : > { %v5949_v44 = vpop.f32.mrb[68].mxu0  ;;  %6757 = vmatprep.mubr.bf16.mxu1 %v17753_v18 }
 0x56b   : > { %v14393_v5 = vadd.f32 %v14195_v16, %v5949_v44  ;;  %v5951_v14 = vpop.f32.mrb[69].mxu0  ;;  %v17760_v16 = vld [vmem:[#allocation57_spill] sm:$0xff] }
 0x56c   : > { %v5952_v32 = vpop.f32.mrb[70].mxu0  ;;  %v6543_v10 = vpop.f32.mrb[132].mxu1  ;;  %v17761_v44 = vld [vmem:[#allocation17_spill] sm:$0xff] }
 0x56d   : > { %17754 = vst [vmem:[#allocation51_spill] sm:$0xff] %v14393_v5  ;;  %v14396_v59 = vadd.f32 %v14206_v55, %v5952_v32  ;;  %v14399_v25 = vadd.f32 %v6543_v10, %v17756_v47  ;;  %v5954_v39 = vpop.f32.mrb[71].mxu0  ;;  %v6545_v21 = vpop.f32.mrb[133].mxu1  ;;  %v17762_v5 = vld [vmem:[#allocation42_spill] sm:$0xff] }
 0x56e   : > { %v6546_v49 = vpop.f32.mrb[134].mxu1 }
 0x56f   : > { %17755 = vst [vmem:[#allocation106_spill] sm:$0xff] %v14396_v59  ;;  %v14402_v43 = vadd.f32 %v6546_v49, %v17757_v11  ;;  %9886 = vmatmul.mubr.bf16.gmra.mrb[176].mxu0 %v17759_v37  ;;  %v6548_v18 = vpop.f32.mrb[135].mxu1  ;;  %v17765_v11 = vld [vmem:[#allocation27_spill] sm:$0xff] }
 0x570   : > { %9889 = vmatprep.mubr.bf16.mxu0 %v17760_v16 }
 0x571   : > { %17758 = vst [vmem:[#allocation43_spill] sm:$0xff] %v14402_v43  ;;  %6758 = vmatmul.mubr.bf16.gmra.mrb[240].mxu1 %v17761_v44  ;;  %v17767_v43 = vld [vmem:[#allocation30_spill] sm:$0xff] }
 0x572   : > { %v5957_v14 = vpop.f32.mrb[72].mxu0  ;;  %6765 = vmatprep.mubr.bf16.mxu1 %v17762_v5  ;;  %v17769_v5 = vld [vmem:[#allocation85_spill] sm:$0xff] }
 0x573   : > { %v14409_v55 = vadd.f32 %v14226_v12, %v5957_v14  ;;  %v5959_v32 = vpop.f32.mrb[73].mxu0  ;;  %v17770_v12 = vld [vmem:[#allocation94_spill] sm:$0xff]  ;;  %v17771_v14 = vld [vmem:[#allocation20_spill] sm:$0xff] }
 0x574   : > { %v5960_v10 = vpop.f32.mrb[74].mxu0  ;;  %v6551_v47 = vpop.f32.mrb[136].mxu1 }
 0x575   : > { %17763 = vst [vmem:[#allocation28_spill] sm:$0xff] %v14409_v55  ;;  %v14412_v39 = vadd.f32 %v14234_v40, %v5960_v10  ;;  %v14415_v49 = vadd.f32 %v6551_v47, %v17765_v11  ;;  %v5962_v18 = vpop.f32.mrb[75].mxu0  ;;  %v6553_v21 = vpop.f32.mrb[137].mxu1  ;;  %v17772_v55 = vld [vmem:[#allocation24_spill] sm:$0xff] }
 0x576   : > { %v6554_v59 = vpop.f32.mrb[138].mxu1 }
 0x577   : > { %17764 = vst [vmem:[#allocation81_spill] sm:$0xff] %v14412_v39  ;;  %17766 = vst [vmem:[#allocation57_spill] sm:$0xff] %v14415_v49  ;;  %v14418_v44 = vadd.f32 %v6554_v59, %v17767_v43  ;;  %v6556_v48 = vpop.f32.mrb[139].mxu1  ;;  %9890 = vmatmul.mubr.bf16.gmra.mrb[180].mxu0 %v17769_v5  ;;  %v17775_v43 = vld [vmem:[#allocation5_spill] sm:$0xff] }
 0x578   : > { %9893 = vmatprep.mubr.bf16.mxu0 %v17770_v12 }
 0x579   : > { %17768 = vst [vmem:[#allocation27_spill] sm:$0xff] %v14418_v44  ;;  %6766 = vmatmul.mubr.bf16.gmra.mrb[244].mxu1 %v17771_v14  ;;  %v17776_v44 = vld [vmem:[#allocation63_spill] sm:$0xff] }
 0x57a   : > { %v5965_v32 = vpop.f32.mrb[76].mxu0  ;;  %6773 = vmatprep.mubr.bf16.mxu1 %v17772_v55  ;;  %v17777_v55 = vld [vmem:[#allocation59_spill] sm:$0xff] }
 0x57b   : > { %v14425_v40 = vadd.f32 %v14221_v63, %v5965_v32  ;;  %v5967_v10 = vpop.f32.mrb[77].mxu0  ;;  %v17778_v63 = vld [vmem:[#allocation60_spill] sm:$0xff]  ;;  %v17779_v32 = vld [vmem:[#allocation25_spill] sm:$0xff] }
 0x57c   : > { %v5968_v47 = vpop.f32.mrb[78].mxu0  ;;  %v6559_v11 = vpop.f32.mrb[140].mxu1 }
 0x57d   : > { %17773 = vst [vmem:[#allocation30_spill] sm:$0xff] %v14425_v40  ;;  %v14428_v18 = vadd.f32 %v14232_v54, %v5968_v47  ;;  %v14431_v48 = vadd.f32 %v6559_v11, %v17775_v43  ;;  %v5970_v59 = vpop.f32.mrb[79].mxu0  ;;  %v6561_v21 = vpop.f32.mrb[141].mxu1  ;;  %v17780_v40 = vld [vmem:[#allocation32_spill] sm:$0xff] }
 0x57e   : > { %v6562_v39 = vpop.f32.mrb[142].mxu1 }
 0x57f   : > { %17774 = vst [vmem:[#allocation85_spill] sm:$0xff] %v14428_v18  ;;  %v14434_v14 = vadd.f32 %v6562_v39, %v17776_v44  ;;  %v6564_v49 = vpop.f32.mrb[143].mxu1  ;;  %9894 = vmatmul.mubr.bf16.gmra.mrb[184].mxu0 %v17777_v55 }
 0x580   : > { %9897 = vmatprep.mubr.bf16.mxu0 %v17778_v63 }
 0x581   : > { %6774 = vmatmul.mubr.bf16.gmra.mrb[248].mxu1 %v17779_v32 }
 0x582   : > { %v5973_v10 = vpop.f32.mrb[80].mxu0  ;;  %6781 = vmatprep.mubr.bf16.mxu1 %v17780_v40  ;;  %v17781_v40 = vld [vmem:[#allocation26_spill] sm:$0xff] }
 0x583   : > { %v14441_v54 = vadd.f32 %v14252_v8, %v5973_v10  ;;  %v5975_v47 = vpop.f32.mrb[81].mxu0  ;;  %v17782_v8 = vld [vmem:[#allocation97_spill] sm:$0xff] }
 0x584   : > { %v5976_v11 = vpop.f32.mrb[82].mxu0  ;;  %v6567_v43 = vpop.f32.mrb[144].mxu1  ;;  %v17783_v10 = vld [vmem:[#allocation33_spill] sm:$0xff] }
 0x585   : > { %v14444_v59 = vadd.f32 %v14260_v0, %v5976_v11  ;;  %v14447_v44 = vadd.f32 %v6567_v43, %v14090_v62  ;;  %v5978_v39 = vpop.f32.mrb[83].mxu0  ;;  %v6569_v49 = vpop.f32.mrb[145].mxu1 }
 0x586   : > { %v6570_v21 = vpop.f32.mrb[146].mxu1 }
 0x587   : > { %v14450_v32 = vadd.f32 %v6570_v21, %v14101_v3  ;;  %v6572_v18 = vpop.f32.mrb[147].mxu1  ;;  %9898 = vmatmul.mubr.bf16.gmra.mrb[188].mxu0 %v17781_v40 }
 0x588   : > { %7400 = vmatprep.mubr.bf16.mxu0 %v17782_v8 }
 0x589   : > { %6782 = vmatmul.mubr.bf16.gmra.mrb[252].mxu1 %v17783_v10 }
 0x58a   : > { %v5981_v47 = vpop.f32.mrb[84].mxu0  ;;  %9917 = vmatprep.mubr.bf16.mxu1 %v13663_v36  ;;  %v17784_v36 = vld [vmem:[#allocation103_spill] sm:$0xff] }
 0x58b   : > { %v14457_v0 = vadd.f32 %v14247_v2, %v5981_v47  ;;  %v5983_v62 = vpop.f32.mrb[85].mxu0  ;;  %v17785_v2 = vld [vmem:[#allocation7_spill] sm:$0xff] }
 0x58c   : > { %v5984_v11 = vpop.f32.mrb[86].mxu0  ;;  %v6575_v43 = vpop.f32.mrb[148].mxu1 }
 0x58d   : > { %v14460_v39 = vadd.f32 %v14258_v20, %v5984_v11  ;;  %v14463_v3 = vadd.f32 %v6575_v43, %v14114_v58  ;;  %v5986_v18 = vpop.f32.mrb[87].mxu0  ;;  %v6577_v49 = vpop.f32.mrb[149].mxu1 }
 0x58e   : > { %v6578_v21 = vpop.f32.mrb[150].mxu1 }
 0x58f   : > { %v14466_v8 = vadd.f32 %v6578_v21, %v14127_v9  ;;  %v6580_v10 = vpop.f32.mrb[151].mxu1  ;;  %7401 = vmatmul.mubr.bf16.vlgmr.msra.gmra.mrb[192].mxu0 %v17784_v36 }
 0x590   : > { %7408 = vmatprep.mubr.bf16.mxu0 %v17785_v2 }
 0x591   : > { %9918 = vmatmul.mubr.bf16.vlgmr.msra.gmra.mrb[0].mxu1 %v13721_v52 }
 0x592   : > { %v5989_v47 = vpop.f32.mrb[88].mxu0  ;;  %9921 = vmatprep.mubr.bf16.mxu1 %v13731_v27  ;;  %v17786_v27 = vld [vmem:[#allocation18_spill] sm:$0xff] }
 0x593   : > { %v14473_v20 = vadd.f32 %v14278_v38, %v5989_v47  ;;  %v5991_v58 = vpop.f32.mrb[89].mxu0  ;;  %v17787_v38 = vld [vmem:[#allocation96_spill] sm:$0xff] }
 0x594   : > { %v5992_v62 = vpop.f32.mrb[90].mxu0  ;;  %v6583_v11 = vpop.f32.mrb[152].mxu1 }
 0x595   : > { %v14476_v43 = vadd.f32 %v14286_v42, %v5992_v62  ;;  %v14479_v9 = vadd.f32 %v6583_v11, %v14141_v17  ;;  %v5994_v10 = vpop.f32.mrb[91].mxu0  ;;  %v6585_v18 = vpop.f32.mrb[153].mxu1 }
 0x596   : > { %v6586_v49 = vpop.f32.mrb[154].mxu1  ;;  %v17788_v18 = vld [vmem:[#allocation69_spill] sm:$0xff] }
 0x597   : > { %v14482_v52 = vadd.f32 %v6586_v49, %v14152_v19  ;;  %v6588_v21 = vpop.f32.mrb[155].mxu1  ;;  %7409 = vmatmul.mubr.bf16.gmra.mrb[196].mxu0 %v17786_v27 }
 0x598   : > { %7416 = vmatprep.mubr.bf16.mxu0 %v17787_v38 }
 0x599   : > { %9922 = vmatmul.mubr.bf16.gmra.mrb[4].mxu1 %v13743_v6 }
 0x59a   : > { %v5997_v36 = vpop.f32.mrb[92].mxu0  ;;  %9925 = vmatprep.mubr.bf16.mxu1 %v13749_v46  ;;  %v17789_v46 = vld [vmem:[#allocation48_spill] sm:$0xff] }
 0x59b   : > { %v14489_v42 = vadd.f32 %v14273_v22, %v5997_v36  ;;  %v5999_v17 = vpop.f32.mrb[93].mxu0  ;;  %v17790_v22 = vld [vmem:[#allocation6_spill] sm:$0xff] }
 0x59c   : > { %v6000_v2 = vpop.f32.mrb[94].mxu0  ;;  %v6591_v47 = vpop.f32.mrb[156].mxu1  ;;  %v17791_v17 = vld [vmem:[#allocation70_spill] sm:$0xff] }
 0x59d   : > { %v14492_v58 = vadd.f32 %v14284_v33, %v6000_v2  ;;  %v14495_v19 = vadd.f32 %v6591_v47, %v14167_v23  ;;  %v6002_v62 = vpop.f32.mrb[95].mxu0  ;;  %v6593_v11 = vpop.f32.mrb[157].mxu1 }
 0x59e   : > { %v6594_v10 = vpop.f32.mrb[158].mxu1 }
 0x59f   : > { %v14498_v6 = vadd.f32 %v6594_v10, %v17788_v18  ;;  %v6596_v49 = vpop.f32.mrb[159].mxu1  ;;  %7417 = vmatmul.mubr.bf16.gmra.mrb[200].mxu0 %v17789_v46  ;;  %v17792_v10 = vld [vmem:[#allocation73_spill] sm:$0xff] }
 0x5a0   : > { %7424 = vmatprep.mubr.bf16.mxu0 %v17790_v22 }
 0x5a1   : > { %9926 = vmatmul.mubr.bf16.gmra.mrb[8].mxu1 %v13764_v26 }
 0x5a2   : > { %v6005_v21 = vpop.f32.mrb[96].mxu0  ;;  %9929 = vmatprep.mubr.bf16.mxu1 %v13770_v31  ;;  %v17793_v31 = vld [vmem:[#allocation105_spill] sm:$0xff] }
 0x5a3   : > { %v14505_v33 = vadd.f32 %v14304_v30, %v6005_v21  ;;  %v6007_v23 = vpop.f32.mrb[97].mxu0  ;;  %v17794_v30 = vld [vmem:[#allocation41_spill] sm:$0xff] }
 0x5a4   : > { %v6008_v27 = vpop.f32.mrb[98].mxu0  ;;  %v6599_v38 = vpop.f32.mrb[160].mxu1 }
 0x5a5   : > { %v14508_v36 = vadd.f32 %v14312_v24, %v6008_v27  ;;  %v14511_v2 = vadd.f32 %v6599_v38, %v17791_v17  ;;  %v6010_v47 = vpop.f32.mrb[99].mxu0  ;;  %v6601_v62 = vpop.f32.mrb[161].mxu1  ;;  %v17795_v27 = vld [vmem:[#allocation74_spill] sm:$0xff] }
 0x5a6   : > { %v6602_v11 = vpop.f32.mrb[162].mxu1 }
 0x5a7   : > { %v14514_v26 = vadd.f32 %v6602_v11, %v17792_v10  ;;  %v6604_v18 = vpop.f32.mrb[163].mxu1  ;;  %7425 = vmatmul.mubr.bf16.gmra.mrb[204].mxu0 %v17793_v31  ;;  %v17796_v11 = vld [vmem:[#allocation82_spill] sm:$0xff] }
 0x5a8   : > { %7432 = vmatprep.mubr.bf16.mxu0 %v17794_v30  ;;  %v17799_v18 = vld [vmem:[#allocation19_spill] sm:$0xff]  ;;  %v17800_v30 = vld [vmem:[#allocation52_spill] sm:$0xff] }
 0x5a9   : > { %9930 = vmatmul.mubr.bf16.gmra.mrb[12].mxu1 %v13782_v35 }
 0x5aa   : > { %v6013_v49 = vpop.f32.mrb[100].mxu0  ;;  %9933 = vmatprep.mubr.bf16.mxu1 %v13791_v29  ;;  %v17797_v29 = vld [vmem:[#allocation107_spill] sm:$0xff] }
 0x5ab   : > { %v14521_v24 = vadd.f32 %v14299_v50, %v6013_v49  ;;  %v6015_v46 = vpop.f32.mrb[101].mxu0  ;;  %v17798_v50 = vld [vmem:[#allocation101_spill] sm:$0xff] }
 0x5ac   : > { %v6016_v22 = vpop.f32.mrb[102].mxu0  ;;  %v6607_v21 = vpop.f32.mrb[164].mxu1 }
 0x5ad   : > { %v14524_v23 = vadd.f32 %v14310_v53, %v6016_v22  ;;  %v14527_v38 = vadd.f32 %v6607_v21, %v17795_v27  ;;  %v6018_v17 = vpop.f32.mrb[103].mxu0  ;;  %v6609_v47 = vpop.f32.mrb[165].mxu1  ;;  %v17802_v27 = vld [vmem:[#allocation83_spill] sm:$0xff] }
 0x5ae   : > { %v6610_v62 = vpop.f32.mrb[166].mxu1 }
 0x5af   : > { %v14530_v35 = vadd.f32 %v6610_v62, %v17796_v11  ;;  %v6612_v10 = vpop.f32.mrb[167].mxu1  ;;  %7433 = vmatmul.mubr.bf16.gmra.mrb[208].mxu0 %v17797_v29 }
 0x5b0   : > { %7440 = vmatprep.mubr.bf16.mxu0 %v17798_v50  ;;  %v17803_v10 = vld [vmem:[#allocation16_spill] sm:$0xff] }
 0x5b1   : > { %9934 = vmatmul.mubr.bf16.gmra.mrb[16].mxu1 %v17799_v18  ;;  %v17804_v18 = vld [vmem:[#allocation54_spill] sm:$0xff] }
 0x5b2   : > { %v6021_v31 = vpop.f32.mrb[104].mxu0  ;;  %9937 = vmatprep.mubr.bf16.mxu1 %v17800_v30 }
 0x5b3   : > { %v14537_v53 = vadd.f32 %v14327_v61, %v6021_v31  ;;  %v6023_v49 = vpop.f32.mrb[105].mxu0  ;;  %v17805_v61 = vld [vmem:[#allocation40_spill] sm:$0xff]  ;;  %v17806_v31 = vld [vmem:[#allocation109_spill] sm:$0xff] }
 0x5b4   : > { %v6024_v46 = vpop.f32.mrb[106].mxu0  ;;  %v6615_v22 = vpop.f32.mrb[168].mxu1  ;;  %v17807_v49 = vld [vmem:[#allocation53_spill] sm:$0xff] }
 0x5b5   : > { %v14540_v21 = vadd.f32 %v14334_v57, %v6024_v46  ;;  %v14543_v17 = vadd.f32 %v6615_v22, %v17802_v27  ;;  %v6026_v47 = vpop.f32.mrb[107].mxu0  ;;  %v6617_v62 = vpop.f32.mrb[169].mxu1 }
 0x5b6   : > { %v6618_v11 = vpop.f32.mrb[170].mxu1  ;;  %v17809_v62 = vld [vmem:[#allocation21_spill] sm:$0xff] }
 0x5b7   : > { %17801 = vst [vmem:[#allocation94_spill] sm:$0xff] %v14540_v21  ;;  %v14546_v29 = vadd.f32 %v6618_v11, %v17803_v10  ;;  %v6620_v50 = vpop.f32.mrb[171].mxu1  ;;  %7441 = vmatmul.mubr.bf16.gmra.mrb[212].mxu0 %v17804_v18 }
 0x5b8   : > { %7448 = vmatprep.mubr.bf16.mxu0 %v17805_v61  ;;  %v17810_v61 = vld [vmem:[#allocation36_spill] sm:$0xff] }
 0x5b9   : > { %9938 = vmatmul.mubr.bf16.gmra.mrb[20].mxu1 %v17806_v31 }
 0x5ba   : > { %v6029_v30 = vpop.f32.mrb[108].mxu0  ;;  %9941 = vmatprep.mubr.bf16.mxu1 %v17807_v49  ;;  %v17811_v49 = vld [vmem:[#allocation77_spill] sm:$0xff] }
 0x5bb   : > { %v14553_v57 = vadd.f32 %v14325_v7, %v6029_v30  ;;  %v6031_v46 = vpop.f32.mrb[109].mxu0  ;;  %v17812_v7 = vld [vmem:[#allocation99_spill] sm:$0xff] }
 0x5bc   : > { %v6032_v22 = vpop.f32.mrb[110].mxu0  ;;  %v6623_v27 = vpop.f32.mrb[172].mxu1  ;;  %v17813_v46 = vld [vmem:[#allocation56_spill] sm:$0xff] }
 0x5bd   : > { %v14556_v47 = vadd.f32 %v14332_v28, %v6032_v22  ;;  %v14559_v11 = vadd.f32 %v6623_v27, %v17809_v62  ;;  %v6034_v10 = vpop.f32.mrb[111].mxu0  ;;  %v6625_v50 = vpop.f32.mrb[173].mxu1 }
 0x5be   : > { %v6626_v18 = vpop.f32.mrb[174].mxu1  ;;  %v17816_v50 = vld [vmem:[#allocation67_spill] sm:$0xff] }
 0x5bf   : > { %17808 = vst [vmem:[#allocation5_spill] sm:$0xff] %v14556_v47  ;;  %v14562_v31 = vadd.f32 %v6626_v18, %v17810_v61  ;;  %v6628_v21 = vpop.f32.mrb[175].mxu1  ;;  %7449 = vmatmul.mubr.bf16.gmra.mrb[216].mxu0 %v17811_v49 }
 0x5c0   : > { %7456 = vmatprep.mubr.bf16.mxu0 %v17812_v7  ;;  %v17817_v7 = vld [vmem:[#allocation68_spill] sm:$0xff] }
 0x5c1   : > { %9942 = vmatmul.mubr.bf16.gmra.mrb[24].mxu1 %v17732_v60 }
 0x5c2   : > { %v6037_v30 = vpop.f32.mrb[112].mxu0  ;;  %9945 = vmatprep.mubr.bf16.mxu1 %v17813_v46  ;;  %v17818_v46 = vld [vmem:[#allocation50_spill] sm:$0xff] }
 0x5c3   : > { %v14569_v28 = vadd.f32 %v14345_v51, %v6037_v30  ;;  %v6039_v22 = vpop.f32.mrb[113].mxu0  ;;  %v17819_v51 = vld [vmem:[#allocation10_spill] sm:$0xff] }
 0x5c4   : > { %v6040_v27 = vpop.f32.mrb[114].mxu0  ;;  %v6631_v62 = vpop.f32.mrb[176].mxu1 }
 0x5c5   : > { %17814 = vst [vmem:[#allocation63_spill] sm:$0xff] %v14569_v28  ;;  %v14572_v10 = vadd.f32 %v14352_v13, %v6040_v27  ;;  %v14575_v21 = vadd.f32 %v6631_v62, %v17816_v50  ;;  %v6042_v18 = vpop.f32.mrb[115].mxu0  ;;  %v6633_v61 = vpop.f32.mrb[177].mxu1  ;;  %v17820_v13 = vld [vmem:[#allocation79_spill] sm:$0xff] }
 0x5c6   : > { %v6634_v49 = vpop.f32.mrb[178].mxu1  ;;  %v17821_v18 = vld [vmem:[#allocation95_spill] sm:$0xff] }
 0x5c7   : > { %17815 = vst [vmem:[#allocation59_spill] sm:$0xff] %v14572_v10  ;;  %v14578_v60 = vadd.f32 %v6634_v49, %v17817_v7  ;;  %v6636_v47 = vpop.f32.mrb[179].mxu1  ;;  %7457 = vmatmul.mubr.bf16.gmra.mrb[220].mxu0 %v17818_v46  ;;  %v17823_v49 = vld [vmem:[#allocation9_spill] sm:$0xff]  ;;  %v17824_v10 = vld [vmem:[#allocation34_spill] sm:$0xff] }
 0x5c8   : > { %7464 = vmatprep.mubr.bf16.mxu0 %v17819_v51 }
 0x5c9   : > { %9946 = vmatmul.mubr.bf16.gmra.mrb[28].mxu1 %v17738_v45 }
 0x5ca   : > { %v6045_v30 = vpop.f32.mrb[116].mxu0  ;;  %9949 = vmatprep.mubr.bf16.mxu1 %v17739_v15  ;;  %v17825_v15 = vld [vmem:[#allocation104_spill] sm:$0xff] }
 0x5cb   : > { %v14585_v22 = vadd.f32 %v17820_v13, %v6045_v30  ;;  %v6047_v27 = vpop.f32.mrb[117].mxu0  ;;  %v17826_v30 = vld [vmem:[#allocation44_spill] sm:$0xff] }
 0x5cc   : > { %v6048_v62 = vpop.f32.mrb[118].mxu0  ;;  %v6639_v50 = vpop.f32.mrb[180].mxu1 }
 0x5cd   : > { %v14588_v61 = vadd.f32 %v17821_v18, %v6048_v62  ;;  %v14591_v47 = vadd.f32 %v6639_v50, %v17823_v49  ;;  %v6050_v7 = vpop.f32.mrb[119].mxu0  ;;  %v6641_v46 = vpop.f32.mrb[181].mxu1  ;;  %v17828_v49 = vld [vmem:[#allocation84_spill] sm:$0xff] }
 0x5ce   : > { %v6642_v51 = vpop.f32.mrb[182].mxu1 }
 0x5cf   : > { %17822 = vst [vmem:[#allocation60_spill] sm:$0xff] %v14588_v61  ;;  %v14594_v45 = vadd.f32 %v6642_v51, %v17824_v10  ;;  %v6644_v28 = vpop.f32.mrb[183].mxu1  ;;  %7465 = vmatmul.mubr.bf16.gmra.mrb[224].mxu0 %v17825_v15  ;;  %v17830_v10 = vld [vmem:[#allocation75_spill] sm:$0xff] }
 0x5d0   : > { %7472 = vmatprep.mubr.bf16.mxu0 %v17826_v30  ;;  %v17831_v30 = vld [vmem:[#allocation87_spill] sm:$0xff] }
 0x5d1   : > { %9950 = vmatmul.mubr.bf16.gmra.mrb[32].mxu1 %v17745_v4 }
 0x5d2   : > { %v6053_v13 = vpop.f32.mrb[120].mxu0  ;;  %9953 = vmatprep.mubr.bf16.mxu1 %v17746_v1  ;;  %v17832_v1 = vld [vmem:[#allocation55_spill] sm:$0xff] }
 0x5d3   : > { %v14601_v27 = vadd.f32 %v14363_v41, %v6053_v13  ;;  %v6055_v62 = vpop.f32.mrb[121].mxu0  ;;  %v17833_v41 = vld [vmem:[#allocation110_spill] sm:$0xff] }
 0x5d4   : > { %v6056_v50 = vpop.f32.mrb[122].mxu0  ;;  %v6647_v18 = vpop.f32.mrb[184].mxu1  ;;  %v17834_v62 = vld [vmem:[#allocation4_spill] sm:$0xff] }
 0x5d5   : > { %17827 = vst [vmem:[#allocation26_spill] sm:$0xff] %v14601_v27  ;;  %v14604_v7 = vadd.f32 %v17828_v49, %v6056_v50  ;;  %v14607_v28 = vadd.f32 %v6647_v18, %v17830_v10  ;;  %v6058_v46 = vpop.f32.mrb[123].mxu0  ;;  %v6649_v51 = vpop.f32.mrb[185].mxu1 }
 0x5d6   : > { %v6650_v15 = vpop.f32.mrb[186].mxu1  ;;  %v17835_v46 = vld [vmem:[#allocation108_spill] sm:$0xff] }
 0x5d7   : > { %17829 = vst [vmem:[#allocation97_spill] sm:$0xff] %v14604_v7  ;;  %v14610_v4 = vadd.f32 %v6650_v15, %v17831_v30  ;;  %v6652_v61 = vpop.f32.mrb[187].mxu1  ;;  %7473 = vmatmul.mubr.bf16.gmra.mrb[228].mxu0 %v17832_v1  ;;  %v17837_v15 = vld [vmem:[#allocation29_spill] sm:$0xff]  ;;  %v17838_v7 = vld [vmem:[#allocation58_spill] sm:$0xff] }
 0x5d8   : > { %7480 = vmatprep.mubr.bf16.mxu0 %v17833_v41 }
 0x5d9   : > { %9954 = vmatmul.mubr.bf16.gmra.mrb[36].mxu1 %v17751_v56 }
 0x5da   : > { %v6061_v13 = vpop.f32.mrb[124].mxu0  ;;  %9957 = vmatprep.mubr.bf16.mxu1 %v17752_v34  ;;  %v17839_v34 = vld [vmem:[#allocation89_spill] sm:$0xff] }
 0x5db   : > { %v14617_v50 = vadd.f32 %v17834_v62, %v6061_v13  ;;  %v6063_v18 = vpop.f32.mrb[125].mxu0  ;;  %v17840_v13 = vld [vmem:[#allocation11_spill] sm:$0xff] }
 0x5dc   : > { %v6064_v49 = vpop.f32.mrb[126].mxu0  ;;  %v6655_v10 = vpop.f32.mrb[188].mxu1 }
 0x5dd   : > { %v14620_v51 = vadd.f32 %v17835_v46, %v6064_v49  ;;  %v14623_v61 = vadd.f32 %v6655_v10, %v17837_v15  ;;  %v6066_v30 = vpop.f32.mrb[127].mxu0  ;;  %v6657_v1 = vpop.f32.mrb[189].mxu1  ;;  %v17842_v10 = vld [vmem:[#allocation102_spill] sm:$0xff] }
 0x5de   : > { %v6658_v41 = vpop.f32.mrb[190].mxu1  ;;  %v17843_v30 = vld [vmem:[#allocation80_spill] sm:$0xff]  ;;  %v17844_v1 = vld [vmem:[#allocation43_spill] sm:$0xff] }
 0x5df   : > { %17836 = vst [vmem:[#allocation103_spill] sm:$0xff] %v14620_v51  ;;  %v14626_v56 = vadd.f32 %v6658_v41, %v17838_v7  ;;  %v6660_v27 = vpop.f32.mrb[191].mxu1  ;;  %7481 = vmatmul.mubr.bf16.gmra.mrb[232].mxu0 %v17839_v34 }
 0x5e0   : > { %7488 = vmatprep.mubr.bf16.mxu0 %v17840_v13  ;;  %v17846_v13 = vld [vmem:[#allocation111_spill] sm:$0xff] }
 0x5e1   : > { %9958 = vmatmul.mubr.bf16.gmra.mrb[40].mxu1 %v17759_v37 }
 0x5e2   : > { %v9839_v62 = vpop.f32.mrb[128].mxu0  ;;  %9961 = vmatprep.mubr.bf16.mxu1 %v17760_v16 }
 0x5e3   : > { %v14633_v18 = vadd.f32 %v9839_v62, %v14399_v25  ;;  %v6824_v49 = vpop.f32.mrb[129].mxu0  ;;  %v17847_v25 = vld [vmem:[#allocation49_spill] sm:$0xff] }
 0x5e4   : > { %v14636_v46 = vadd.f32 %v6824_v49, %v17842_v10  ;;  %v6663_v15 = vpop.f32.mrb[192].mxu1  ;;  %v9840_v7 = vpop.f32.mrb[130].mxu0  ;;  %v17848_v49 = vld [vmem:[#allocation88_spill] sm:$0xff]  ;;  %v17849_v10 = vld [vmem:[#allocation91_spill] sm:$0xff] }
 0x5e5   : > { %17841 = vst [vmem:[#allocation7_spill] sm:$0xff] %v14633_v18  ;;  %v14639_v27 = vadd.f32 %v6663_v15, %v17843_v30  ;;  %v14642_v41 = vadd.f32 %v9840_v7, %v17844_v1  ;;  %v6665_v34 = vpop.f32.mrb[193].mxu1  ;;  %v6827_v37 = vpop.f32.mrb[131].mxu0  ;;  %v17851_v1 = vld [vmem:[#allocation57_spill] sm:$0xff] }
 0x5e6   : > { %v14645_v51 = vadd.f32 %v6827_v37, %v17846_v13  ;;  %v6666_v16 = vpop.f32.mrb[194].mxu1 }
 0x5e7   : > { %17845 = vst [vmem:[#allocation18_spill] sm:$0xff] %v14642_v41  ;;  %v14648_v62 = vadd.f32 %v6666_v16, %v17847_v25  ;;  %v6668_v18 = vpop.f32.mrb[195].mxu1  ;;  %7489 = vmatmul.mubr.bf16.gmra.mrb[236].mxu0 %v17848_v49  ;;  %v17852_v16 = vld [vmem:[#allocation51_spill] sm:$0xff] }
 0x5e8   : > { %7496 = vmatprep.mubr.bf16.mxu0 %v17849_v10  ;;  %v17853_v10 = vld [vmem:[#allocation27_spill] sm:$0xff] }
 0x5e9   : > { %9962 = vmatmul.mubr.bf16.gmra.mrb[44].mxu1 %v17769_v5 }
 0x5ea   : > { %v9843_v15 = vpop.f32.mrb[132].mxu0  ;;  %9965 = vmatprep.mubr.bf16.mxu1 %v17770_v12 }
 0x5eb   : > { %v14655_v7 = vadd.f32 %v9843_v15, %v14431_v48  ;;  %v6840_v30 = vpop.f32.mrb[133].mxu0  ;;  %v17854_v48 = vld [vmem:[#allocation106_spill] sm:$0xff] }
 0x5ec   : > { %v14658_v34 = vadd.f32 %v6840_v30, %v17851_v1  ;;  %v6671_v37 = vpop.f32.mrb[196].mxu1  ;;  %v9844_v13 = vpop.f32.mrb[134].mxu0  ;;  %v17855_v30 = vld [vmem:[#allocation23_spill] sm:$0xff]  ;;  %v17856_v1 = vld [vmem:[#allocation45_spill] sm:$0xff] }
 0x5ed   : > { %17850 = vst [vmem:[#allocation96_spill] sm:$0xff] %v14655_v7  ;;  %v14661_v18 = vadd.f32 %v6671_v37, %v17852_v16  ;;  %v14664_v25 = vadd.f32 %v9844_v13, %v14434_v14  ;;  %v6673_v49 = vpop.f32.mrb[197].mxu1  ;;  %v6843_v5 = vpop.f32.mrb[135].mxu0 }
 0x5ee   : > { %v14667_v41 = vadd.f32 %v6843_v5, %v17853_v10  ;;  %v6674_v12 = vpop.f32.mrb[198].mxu1  ;;  %v17857_v10 = vld [vmem:[#allocation28_spill] sm:$0xff] }
 0x5ef   : > { %v14670_v15 = vadd.f32 %v6674_v12, %v17854_v48  ;;  %v6676_v7 = vpop.f32.mrb[199].mxu1  ;;  %7497 = vmatmul.mubr.bf16.gmra.mrb[240].mxu0 %v17855_v30 }
 0x5f0   : > { %7504 = vmatprep.mubr.bf16.mxu0 %v17856_v1 }
 0x5f1   : > { %9966 = vmatmul.mubr.bf16.gmra.mrb[48].mxu1 %v17777_v55 }
 0x5f2   : > { %v9847_v37 = vpop.f32.mrb[136].mxu0  ;;  %9969 = vmatprep.mubr.bf16.mxu1 %v17778_v63 }
 0x5f3   : > { %v14677_v14 = vadd.f32 %v9847_v37, %v14463_v3  ;;  %v6856_v13 = vpop.f32.mrb[137].mxu0  ;;  %v17858_v3 = vld [vmem:[#allocation81_spill] sm:$0xff] }
 0x5f4   : > { %v14680_v16 = vadd.f32 %v6856_v13, %v14447_v44  ;;  %v6679_v49 = vpop.f32.mrb[200].mxu1  ;;  %v9848_v5 = vpop.f32.mrb[138].mxu0  ;;  %v17859_v44 = vld [vmem:[#allocation61_spill] sm:$0xff]  ;;  %v17860_v13 = vld [vmem:[#allocation98_spill] sm:$0xff] }
 0x5f5   : > { %v14683_v7 = vadd.f32 %v6679_v49, %v17857_v10  ;;  %v14686_v12 = vadd.f32 %v9848_v5, %v14466_v8  ;;  %v6681_v48 = vpop.f32.mrb[201].mxu1  ;;  %v6859_v55 = vpop.f32.mrb[139].mxu0  ;;  %v17861_v10 = vld [vmem:[#allocation22_spill] sm:$0xff] }
 0x5f6   : > { %v14689_v30 = vadd.f32 %v6859_v55, %v14450_v32  ;;  %v6682_v63 = vpop.f32.mrb[202].mxu1 }
 0x5f7   : > { %v14692_v1 = vadd.f32 %v6682_v63, %v17858_v3  ;;  %v6684_v37 = vpop.f32.mrb[203].mxu1  ;;  %7505 = vmatmul.mubr.bf16.gmra.mrb[244].mxu0 %v17859_v44  ;;  %v17864_v63 = vld [vmem:[#allocation30_spill] sm:$0xff] }
 0x5f8   : > { %7512 = vmatprep.mubr.bf16.mxu0 %v17860_v13 }
 0x5f9   : > { %9970 = vmatmul.mubr.bf16.gmra.mrb[52].mxu1 %v17781_v40 }
 0x5fa   : > { %v9851_v49 = vpop.f32.mrb[140].mxu0  ;;  %9973 = vmatprep.mubr.bf16.mxu1 %v17861_v10 }
 0x5fb   : > { %v14699_v8 = vadd.f32 %v9851_v49, %v14495_v19  ;;  %v6872_v5 = vpop.f32.mrb[141].mxu0  ;;  %v17865_v19 = vld [vmem:[#allocation85_spill] sm:$0xff] }
 0x5fc   : > { %v14702_v32 = vadd.f32 %v6872_v5, %v14479_v9  ;;  %v6687_v48 = vpop.f32.mrb[204].mxu1  ;;  %v9852_v55 = vpop.f32.mrb[142].mxu0  ;;  %v17866_v9 = vld [vmem:[#allocation8_spill] sm:$0xff]  ;;  %v17867_v5 = vld [vmem:[#allocation14_spill] sm:$0xff] }
 0x5fd   : > { %17862 = vst [vmem:[#allocation69_spill] sm:$0xff] %v14699_v8  ;;  %v14705_v3 = vadd.f32 %v6687_v48, %v17864_v63  ;;  %v14708_v37 = vadd.f32 %v9852_v55, %v14498_v6  ;;  %v6689_v44 = vpop.f32.mrb[205].mxu1  ;;  %v6875_v40 = vpop.f32.mrb[143].mxu0 }
 0x5fe   : > { %17863 = vst [vmem:[#allocation48_spill] sm:$0xff] %v14702_v32  ;;  %v14711_v13 = vadd.f32 %v6875_v40, %v14482_v52  ;;  %v6690_v10 = vpop.f32.mrb[206].mxu1  ;;  %v17868_v32 = vld [vmem:[#allocation62_spill] sm:$0xff] }
 0x5ff   : > { %v14714_v49 = vadd.f32 %v6690_v10, %v17865_v19  ;;  %v6692_v8 = vpop.f32.mrb[207].mxu1  ;;  %7513 = vmatmul.mubr.bf16.gmra.mrb[248].mxu0 %v17866_v9  ;;  %v5360_v9 = vld [vmem:[#allocation2 + $0x241] sm:$0xff] }
 0x600   : > { %7520 = vmatprep.mubr.bf16.mxu0 %v17867_v5  ;;  %v5362_v5 = vld [vmem:[#allocation2 + $0x251] sm:$0xff] }
 0x601   : > { %9974 = vmatmul.mubr.bf16.gmra.mrb[56].mxu1 %v17868_v32  ;;  %v5361_v32 = vld [vmem:[#allocation2 + $0x249] sm:$0xff] }
 0x602   : > { %v9855_v48 = vpop.f32.mrb[144].mxu0 }
 0x603   : > { %v14720_v6 = vadd.f32 %v9855_v48, %v14527_v38  ;;  %v6888_v55 = vpop.f32.mrb[145].mxu0 }
 0x604   : > { %v14723_v63 = vadd.f32 %v6888_v55, %v14511_v2  ;;  %v6695_v52 = vpop.f32.mrb[208].mxu1  ;;  %v9856_v44 = vpop.f32.mrb[146].mxu0  ;;  %v5363_v2 = vld [vmem:[#allocation2 + $0x259] sm:$0xff] }
 0x605   : > { %17869 = vst [vmem:[#allocation6_spill] sm:$0xff] %v14720_v6  ;;  %v14726_v40 = vadd.f32 %v6695_v52, %v14441_v54  ;;  %v14729_v8 = vadd.f32 %v9856_v44, %v14530_v35  ;;  %v6697_v10 = vpop.f32.mrb[209].mxu1  ;;  %v6891_v19 = vpop.f32.mrb[147].mxu0  ;;  %v5398_v6 = vpack.c.bf16 %v5361_v32, %v5360_v9  ;;  %v17871_v54 = vld [vmem:[#allocation31_spill] sm:$0xff]  ;;  %v5399_v52 = vpack.c.bf16 %v5363_v2, %v5362_v5 }
 0x606   : > { %17870 = vst [vmem:[#allocation70_spill] sm:$0xff] %v14723_v63  ;;  %v14732_v38 = vadd.f32 %v6891_v19, %v14514_v26  ;;  %v6698_v48 = vpop.f32.mrb[210].mxu1  ;;  %v17872_v35 = vld [vmem:[#allocation47_spill] sm:$0xff] }
 0x607   : > { %v14735_v55 = vadd.f32 %v6698_v48, %v14444_v59  ;;  %v6700_v63 = vpop.f32.mrb[211].mxu1  ;;  %7521 = vmatmul.mubr.bf16.gmra.mrb[252].mxu0 %v17871_v54  ;;  %9977 = vmatprep.mubr.bf16.mxu1 %v5398_v6 }
 0x608   : > { %7528 = vmatprep.mubr.bf16.mxu0 %v17872_v35 }
 0x609   : > { %9978 = vmatmul.mubr.bf16.gmra.mrb[60].mxu1 %v5399_v52  ;;  %v17874_v52 = vld [vmem:[#allocation100_spill] sm:$0xff] }
 0x60a   : > { %v9859_v44 = vpop.f32.mrb[148].mxu0 }
 0x60b   : > { %v14740_v10 = vadd.f32 %v9859_v44, %v14559_v11  ;;  %v6904_v26 = vpop.f32.mrb[149].mxu0 }
 0x60c   : > { %v14743_v19 = vadd.f32 %v6904_v26, %v14543_v17  ;;  %v6703_v9 = vpop.f32.mrb[212].mxu1  ;;  %v9860_v32 = vpop.f32.mrb[150].mxu0  ;;  %v17873_v17 = vld [vmem:[#allocation65_spill] sm:$0xff] }
 0x60d   : > { %v14746_v59 = vadd.f32 %v6703_v9, %v14457_v0  ;;  %v14749_v63 = vadd.f32 %v9860_v32, %v14562_v31  ;;  %v6705_v5 = vpop.f32.mrb[213].mxu1  ;;  %v6907_v48 = vpop.f32.mrb[151].mxu0 }
 0x60e   : > { %v14752_v6 = vadd.f32 %v6907_v48, %v14546_v29  ;;  %v6706_v2 = vpop.f32.mrb[214].mxu1 }
 0x60f   : > { %v14755_v11 = vadd.f32 %v6706_v2, %v14460_v39  ;;  %v6708_v54 = vpop.f32.mrb[215].mxu1  ;;  %7529 = vmatmul.mubr.bf16.gmra.mrb[0].mxu0 %v17873_v17  ;;  %v17876_v17 = vld [vmem:[#allocation15_spill] sm:$0xff] }
 0x610   : > { %7536 = vmatprep.mubr.bf16.mxu0 %v17874_v52 }
 0x612   : > { %v9863_v35 = vpop.f32.mrb[152].mxu0 }
 0x613   : > { %v14760_v0 = vadd.f32 %v9863_v35, %v14591_v47  ;;  %v6920_v31 = vpop.f32.mrb[153].mxu0 }
 0x614   : > { %v14763_v44 = vadd.f32 %v6920_v31, %v14575_v21  ;;  %v6711_v26 = vpop.f32.mrb[216].mxu1  ;;  %v9864_v29 = vpop.f32.mrb[154].mxu0  ;;  %v17875_v21 = vld [vmem:[#allocation71_spill] sm:$0xff] }
 0x615   : > { %v14766_v9 = vadd.f32 %v6711_v26, %v14473_v20  ;;  %v14769_v39 = vadd.f32 %v9864_v29, %v14594_v45  ;;  %v6713_v32 = vpop.f32.mrb[217].mxu1  ;;  %v6923_v5 = vpop.f32.mrb[155].mxu0 }
 0x616   : > { %v14772_v48 = vadd.f32 %v6923_v5, %v14578_v60  ;;  %v6714_v2 = vpop.f32.mrb[218].mxu1 }
 0x617   : > { %v14775_v47 = vadd.f32 %v6714_v2, %v14476_v43  ;;  %v6716_v54 = vpop.f32.mrb[219].mxu1  ;;  %7537 = vmatmul.mubr.bf16.gmra.mrb[4].mxu0 %v17875_v21  ;;  %v17879_v21 = vld [vmem:[#allocation72_spill] sm:$0xff] }
 0x618   : > { %7544 = vmatprep.mubr.bf16.mxu0 %v17876_v17 }
 0x61a   : > { %v9867_v52 = vpop.f32.mrb[156].mxu0 }
 0x61b   : > { %v14780_v20 = vadd.f32 %v9867_v52, %v14623_v61  ;;  %v6936_v45 = vpop.f32.mrb[157].mxu0 }
 0x61c   : > { %v14783_v35 = vadd.f32 %v6936_v45, %v14607_v28  ;;  %v6719_v31 = vpop.f32.mrb[220].mxu1  ;;  %v9868_v60 = vpop.f32.mrb[158].mxu0  ;;  %v17880_v28 = vld [vmem:[#allocation35_spill] sm:$0xff] }
 0x61d   : > { %17877 = vst [vmem:[#allocation73_spill] sm:$0xff] %v14780_v20  ;;  %v6720_v26 = vadd.f32 %v6719_v31, %v14489_v42  ;;  %v14787_v43 = vadd.f32 %v9868_v60, %v14626_v56  ;;  %v6721_v29 = vpop.f32.mrb[221].mxu1  ;;  %v6939_v32 = vpop.f32.mrb[159].mxu0 }
 0x61e   : > { %v14790_v5 = vadd.f32 %v6939_v32, %v14610_v4  ;;  %v6722_v2 = vpop.f32.mrb[222].mxu1 }
 0x61f   : > { %17878 = vst [vmem:[#allocation105_spill] sm:$0xff] %v14787_v43  ;;  %v6723_v61 = vadd.f32 %v6722_v2, %v14492_v58  ;;  %v6724_v54 = vpop.f32.mrb[223].mxu1  ;;  %7545 = vmatmul.mubr.bf16.gmra.mrb[8].mxu0 %v17879_v21  ;;  %v17885_v21 = vld [vmem:[#allocation76_spill] sm:$0xff] }
 0x620   : > { %7552 = vmatprep.mubr.bf16.mxu0 %v17880_v28 }
 0x622   : > { %v9871_v17 = vpop.f32.mrb[160].mxu0 }
 0x623   : > { %v14796_v52 = vadd.f32 %v9871_v17, %v14661_v18  ;;  %v6952_v42 = vpop.f32.mrb[161].mxu0 }
 0x624   : > { %v14799_v56 = vadd.f32 %v6952_v42, %v14639_v27  ;;  %v6727_v45 = vpop.f32.mrb[224].mxu1  ;;  %v9872_v31 = vpop.f32.mrb[162].mxu0  ;;  %v17886_v27 = vld [vmem:[#allocation78_spill] sm:$0xff] }
 0x625   : > { %17881 = vst [vmem:[#allocation41_spill] sm:$0xff] %v14796_v52  ;;  %v6728_v4 = vadd.f32 %v6727_v45, %v14505_v33  ;;  %v14803_v60 = vadd.f32 %v9872_v31, %v14670_v15  ;;  %v6729_v58 = vpop.f32.mrb[225].mxu1  ;;  %v6955_v29 = vpop.f32.mrb[163].mxu0 }
 0x626   : > { %17882 = vst [vmem:[#allocation74_spill] sm:$0xff] %v14799_v56  ;;  %v14806_v32 = vadd.f32 %v6955_v29, %v14648_v62  ;;  %v6730_v2 = vpop.f32.mrb[226].mxu1 }
 0x627   : > { %17883 = vst [vmem:[#allocation82_spill] sm:$0xff] %v14803_v60  ;;  %v6731_v18 = vadd.f32 %v6730_v2, %v14508_v36  ;;  %v6732_v54 = vpop.f32.mrb[227].mxu1  ;;  %7553 = vmatmul.mubr.bf16.gmra.mrb[12].mxu0 %v17885_v21  ;;  %v17891_v21 = vld [vmem:[#allocation12_spill] sm:$0xff]  ;;  %v17961_v60 = vld [vmem:[#allocation70_spill] sm:$0xff] }
 0x628   : > { %17884 = vst [vmem:[#allocation107_spill] sm:$0xff] %v14806_v32  ;;  %7560 = vmatprep.mubr.bf16.mxu0 %v17886_v27 }
 0x62a   : > { %v9875_v28 = vpop.f32.mrb[164].mxu0 }
 0x62b   : > { %v14812_v17 = vadd.f32 %v9875_v28, %v14705_v3  ;;  %v6968_v33 = vpop.f32.mrb[165].mxu0 }
 0x62c   : > { %v14815_v15 = vadd.f32 %v6968_v33, %v14683_v7  ;;  %v6735_v42 = vpop.f32.mrb[228].mxu1  ;;  %v9876_v45 = vpop.f32.mrb[166].mxu0  ;;  %v17892_v7 = vld [vmem:[#allocation86_spill] sm:$0xff] }
 0x62d   : > { %17887 = vst [vmem:[#allocation101_spill] sm:$0xff] %v14812_v17  ;;  %v6736_v62 = vadd.f32 %v6735_v42, %v14521_v24  ;;  %v14819_v31 = vadd.f32 %v9876_v45, %v14714_v49  ;;  %v6737_v36 = vpop.f32.mrb[229].mxu1  ;;  %v6971_v58 = vpop.f32.mrb[167].mxu0 }
 0x62e   : > { %17888 = vst [vmem:[#allocation19_spill] sm:$0xff] %v14815_v15  ;;  %v14822_v29 = vadd.f32 %v6971_v58, %v14692_v1  ;;  %v6738_v2 = vpop.f32.mrb[230].mxu1 }
 0x62f   : > { %17889 = vst [vmem:[#allocation52_spill] sm:$0xff] %v14819_v31  ;;  %v6739_v3 = vadd.f32 %v6738_v2, %v14524_v23  ;;  %v6740_v54 = vpop.f32.mrb[231].mxu1  ;;  %7561 = vmatmul.mubr.bf16.gmra.mrb[16].mxu0 %v17891_v21 }
 0x630   : > { %17890 = vst [vmem:[#allocation83_spill] sm:$0xff] %v14822_v29  ;;  %7568 = vmatprep.mubr.bf16.mxu0 %v17892_v7  ;;  %v17897_v54 = vld [vmem:[#allocation94_spill] sm:$0xff] }
 0x631   : > { %v17898_v7 = vld [vmem:[#allocation90_spill] sm:$0xff] }
 0x632   : > { %v9879_v27 = vpop.f32.mrb[168].mxu0 }
 0x633   : > { %v14828_v28 = vadd.f32 %v9879_v27, %v14746_v59  ;;  %v6984_v24 = vpop.f32.mrb[169].mxu0 }
 0x634   : > { %v14831_v49 = vadd.f32 %v6984_v24, %v14726_v40  ;;  %v6743_v33 = vpop.f32.mrb[232].mxu1  ;;  %v9880_v42 = vpop.f32.mrb[170].mxu0  ;;  %v17899_v40 = vld [vmem:[#allocation92_spill] sm:$0xff] }
 0x635   : > { %17893 = vst [vmem:[#allocation16_spill] sm:$0xff] %v14828_v28  ;;  %v6744_v1 = vadd.f32 %v6743_v33, %v14537_v53  ;;  %v14835_v45 = vadd.f32 %v9880_v42, %v14755_v11  ;;  %v6745_v23 = vpop.f32.mrb[233].mxu1  ;;  %v6987_v36 = vpop.f32.mrb[171].mxu0 }
 0x636   : > { %17894 = vst [vmem:[#allocation54_spill] sm:$0xff] %v14831_v49  ;;  %v14838_v58 = vadd.f32 %v6987_v36, %v14735_v55  ;;  %v6746_v2 = vpop.f32.mrb[234].mxu1  ;;  %v17957_v49 = vld [vmem:[#allocation69_spill] sm:$0xff] }
 0x637   : > { %17895 = vst [vmem:[#allocation40_spill] sm:$0xff] %v14835_v45  ;;  %v6747_v59 = vadd.f32 %v6746_v2, %v17897_v54  ;;  %v6748_v21 = vpop.f32.mrb[235].mxu1  ;;  %7569 = vmatmul.mubr.bf16.gmra.mrb[20].mxu0 %v17898_v7  ;;  %v17904_v7 = vld [vmem:[#allocation5_spill] sm:$0xff] }
 0x638   : > { %17896 = vst [vmem:[#allocation109_spill] sm:$0xff] %v14838_v58  ;;  %7576 = vmatprep.mubr.bf16.mxu0 %v17899_v40 }
 0x63a   : > { %v9883_v27 = vpop.f32.mrb[172].mxu0 }
 0x63b   : > { %v14843_v24 = vadd.f32 %v9883_v27, %v6720_v26  ;;  %v7000_v53 = vpop.f32.mrb[173].mxu0  ;;  %v17905_v27 = vld [vmem:[#allocation13_spill] sm:$0xff] }
 0x63c   : > { %v14846_v11 = vadd.f32 %v7000_v53, %v14766_v9  ;;  %v6751_v33 = vpop.f32.mrb[236].mxu1  ;;  %v9884_v42 = vpop.f32.mrb[174].mxu0 }
 0x63d   : > { %17900 = vst [vmem:[#allocation53_spill] sm:$0xff] %v14843_v24  ;;  %v6752_v55 = vadd.f32 %v6751_v33, %v14553_v57  ;;  %v14849_v23 = vadd.f32 %v9884_v42, %v6723_v61  ;;  %v6753_v36 = vpop.f32.mrb[237].mxu1  ;;  %v7003_v2 = vpop.f32.mrb[175].mxu0  ;;  %v17906_v24 = vld [vmem:[#allocation38_spill] sm:$0xff]  ;;  %v17909_v42 = vld [vmem:[#allocation63_spill] sm:$0xff] }
 0x63e   : > { %17901 = vst [vmem:[#allocation21_spill] sm:$0xff] %v14846_v11  ;;  %v14852_v54 = vadd.f32 %v7003_v2, %v14775_v47  ;;  %v6754_v21 = vpop.f32.mrb[238].mxu1 }
 0x63f   : > { %17902 = vst [vmem:[#allocation36_spill] sm:$0xff] %v14849_v23  ;;  %v6755_v40 = vadd.f32 %v6754_v21, %v17904_v7  ;;  %v6756_v26 = vpop.f32.mrb[239].mxu1  ;;  %7577 = vmatmul.mubr.bf16.gmra.mrb[24].mxu0 %v17905_v27 }
 0x640   : > { %17903 = vst [vmem:[#allocation77_spill] sm:$0xff] %v14852_v54  ;;  %7584 = vmatprep.mubr.bf16.mxu0 %v17906_v24  ;;  %v17912_v26 = vld [vmem:[#allocation59_spill] sm:$0xff] }
 0x641   : > { %v17913_v54 = vld [vmem:[#allocation39_spill] sm:$0xff] }
 0x642   : > { %v9887_v9 = vpop.f32.mrb[176].mxu0 }
 0x643   : > { %v14857_v53 = vadd.f32 %v9887_v9, %v6736_v62  ;;  %v7016_v11 = vpop.f32.mrb[177].mxu0  ;;  %v17914_v62 = vld [vmem:[#allocation93_spill] sm:$0xff] }
 0x644   : > { %v14859_v57 = vadd.f32 %v7016_v11, %v6728_v4  ;;  %v6759_v61 = vpop.f32.mrb[240].mxu1  ;;  %v9888_v33 = vpop.f32.mrb[178].mxu0 }
 0x645   : > { %17907 = vst [vmem:[#allocation99_spill] sm:$0xff] %v14857_v53  ;;  %v6760_v36 = vadd.f32 %v6759_v61, %v17909_v42  ;;  %v14862_v47 = vadd.f32 %v9888_v33, %v6739_v3  ;;  %v6761_v2 = vpop.f32.mrb[241].mxu1  ;;  %v7019_v23 = vpop.f32.mrb[179].mxu0 }
 0x646   : > { %17908 = vst [vmem:[#allocation56_spill] sm:$0xff] %v14859_v57  ;;  %v14864_v21 = vadd.f32 %v7019_v23, %v6731_v18  ;;  %v6762_v7 = vpop.f32.mrb[242].mxu1  ;;  %v5075_v57 = vld [vmem:[#allocation2 + $0x257] sm:$0xff] }
 0x647   : > { %17910 = vst [vmem:[#allocation67_spill] sm:$0xff] %v14862_v47  ;;  %v6763_v27 = vadd.f32 %v6762_v7, %v17912_v26  ;;  %v6764_v24 = vpop.f32.mrb[243].mxu1  ;;  %7585 = vmatmul.mubr.bf16.gmra.mrb[28].mxu0 %v17913_v54  ;;  %v17919_v54 = vld [vmem:[#allocation60_spill] sm:$0xff] }
 0x648   : > { %17911 = vst [vmem:[#allocation68_spill] sm:$0xff] %v14864_v21  ;;  %7592 = vmatprep.mubr.bf16.mxu0 %v17914_v62  ;;  %v17920_v62 = vld [vmem:[#allocation17_spill] sm:$0xff] }
 0x649   : > { %v5074_v21 = vld [vmem:[#allocation2 + $0x24f] sm:$0xff] }
 0x64a   : > { %v9891_v4 = vpop.f32.mrb[180].mxu0  ;;  %v5111_v45 = vpack.c.bf16 %v5075_v57, %v5074_v21 }
 0x64b   : > { %v14869_v11 = vadd.f32 %v9891_v4, %v6752_v55  ;;  %v7032_v9 = vpop.f32.mrb[181].mxu0  ;;  %v17921_v55 = vld [vmem:[#allocation42_spill] sm:$0xff] }
 0x64c   : > { %v14871_v53 = vadd.f32 %v7032_v9, %v6744_v1  ;;  %v6767_v3 = vpop.f32.mrb[244].mxu1  ;;  %v9892_v61 = vpop.f32.mrb[182].mxu0 }
 0x64d   : > { %17915 = vst [vmem:[#allocation50_spill] sm:$0xff] %v14869_v11  ;;  %v6768_v33 = vadd.f32 %v6767_v3, %v14585_v22  ;;  %v14874_v18 = vadd.f32 %v9892_v61, %v6755_v40  ;;  %v6769_v23 = vpop.f32.mrb[245].mxu1  ;;  %v7035_v42 = vpop.f32.mrb[183].mxu0  ;;  %v17924_v3 = vld [vmem:[#allocation26_spill] sm:$0xff] }
 0x64e   : > { %17916 = vst [vmem:[#allocation10_spill] sm:$0xff] %v14871_v53  ;;  %v14876_v2 = vadd.f32 %v7035_v42, %v6747_v59  ;;  %v6770_v7 = vpop.f32.mrb[246].mxu1 }
 0x64f   : > { %17917 = vst [vmem:[#allocation79_spill] sm:$0xff] %v14874_v18  ;;  %v6771_v26 = vadd.f32 %v6770_v7, %v17919_v54  ;;  %v6772_v24 = vpop.f32.mrb[247].mxu1  ;;  %7593 = vmatmul.mubr.bf16.gmra.mrb[32].mxu0 %v17920_v62  ;;  %v17928_v18 = vld [vmem:[#allocation20_spill] sm:$0xff] }
 0x650   : > { %17918 = vst [vmem:[#allocation95_spill] sm:$0xff] %v14876_v2  ;;  %7600 = vmatprep.mubr.bf16.mxu0 %v17921_v55  ;;  %v17927_v24 = vld [vmem:[#allocation97_spill] sm:$0xff] }
 0x652   : > { %v9895_v1 = vpop.f32.mrb[184].mxu0 }
 0x653   : > { %v14881_v4 = vadd.f32 %v9895_v1, %v6768_v33  ;;  %v7048_v9 = vpop.f32.mrb[185].mxu0  ;;  %v17929_v33 = vld [vmem:[#allocation24_spill] sm:$0xff] }
 0x654   : > { %v14883_v11 = vadd.f32 %v7048_v9, %v6760_v36  ;;  %v6775_v22 = vpop.f32.mrb[248].mxu1  ;;  %v9896_v40 = vpop.f32.mrb[186].mxu0 }
 0x655   : > { %17922 = vst [vmem:[#allocation9_spill] sm:$0xff] %v14881_v4  ;;  %v6776_v61 = vadd.f32 %v6775_v22, %v17924_v3  ;;  %v14886_v59 = vadd.f32 %v9896_v40, %v6771_v26  ;;  %v6777_v23 = vpop.f32.mrb[249].mxu1  ;;  %v7051_v42 = vpop.f32.mrb[187].mxu0 }
 0x656   : > { %17923 = vst [vmem:[#allocation34_spill] sm:$0xff] %v14883_v11  ;;  %v14888_v7 = vadd.f32 %v7051_v42, %v6763_v27  ;;  %v6778_v54 = vpop.f32.mrb[250].mxu1 }
 0x657   : > { %17925 = vst [vmem:[#allocation104_spill] sm:$0xff] %v14886_v59  ;;  %v6779_v62 = vadd.f32 %v6778_v54, %v17927_v24  ;;  %v6780_v55 = vpop.f32.mrb[251].mxu1  ;;  %7601 = vmatmul.mubr.bf16.gmra.mrb[36].mxu0 %v17928_v18  ;;  %v17933_v54 = vld [vmem:[#allocation103_spill] sm:$0xff] }
 0x658   : > { %17926 = vst [vmem:[#allocation44_spill] sm:$0xff] %v14888_v7  ;;  %7608 = vmatprep.mubr.bf16.mxu0 %v17929_v33  ;;  %v17934_v55 = vld [vmem:[#allocation25_spill] sm:$0xff]  ;;  %v17935_v33 = vld [vmem:[#allocation32_spill] sm:$0xff] }
 0x659   : > { %v10141_v7 = vld [vmem:[#allocation2] sm:$0xff] }
 0x65a   : > { %v9899_v36 = vpop.f32.mrb[188].mxu0 }
 0x65b   : > { %v7064_v1 = vpop.f32.mrb[189].mxu0 }
 0x65c   : > { %v14893_v9 = vadd.f32 %v7064_v1, %v6776_v61  ;;  %v6783_v4 = vpop.f32.mrb[252].mxu1  ;;  %v9900_v22 = vpop.f32.mrb[190].mxu0 }
 0x65d   : > { %v6784_v26 = vadd.f32 %v6783_v4, %v14617_v50  ;;  %v6785_v40 = vpop.f32.mrb[253].mxu1  ;;  %v7067_v3 = vpop.f32.mrb[191].mxu0 }
 0x65e   : > { %17930 = vst [vmem:[#allocation84_spill] sm:$0xff] %v14893_v9  ;;  %v14896_v27 = vadd.f32 %v7067_v3, %v6779_v62  ;;  %v6786_v23 = vpop.f32.mrb[254].mxu1 }
 0x65f   : > { %v14898_v42 = vadd.f32 %v9899_v36, %v6784_v26  ;;  %v6787_v24 = vadd.f32 %v6786_v23, %v17933_v54  ;;  %v6788_v18 = vpop.f32.mrb[255].mxu1  ;;  %7609 = vmatmul.mubr.bf16.gmra.mrb[40].mxu0 %v17934_v55  ;;  %v17938_v54 = vld [vmem:[#allocation37_spill] sm:$0xff] }
 0x660   : > { %17931 = vst [vmem:[#allocation75_spill] sm:$0xff] %v14896_v27  ;;  %7616 = vmatprep.mubr.bf16.mxu0 %v17935_v33  ;;  %v17937_v27 = vld [vmem:[#allocation33_spill] sm:$0xff] }
 0x661   : > { %17932 = vst [vmem:[#allocation87_spill] sm:$0xff] %v14898_v42  ;;  %v14903_v61 = vadd.f32 %v9900_v22, %v6787_v24 }
 0x662   : > { %v7402_v1 = vpop.f32.mrb[192].mxu0 }
 0x663   : > { %17936 = vst [vmem:[#allocation55_spill] sm:$0xff] %v14903_v61  ;;  %v7404_v9 = vpop.f32.mrb[193].mxu0 }
 0x664   : > { %v7405_v59 = vpop.f32.mrb[194].mxu0  ;;  %v9919_v50 = vpop.f32.mrb[0].mxu1 }
 0x665   : > { %v7407_v4 = vpop.f32.mrb[195].mxu0  ;;  %v7691_v40 = vpop.f32.mrb[1].mxu1 }
 0x666   : > { %v7692_v62 = vadd.f32 %v7691_v40, %v7402_v1  ;;  %v9920_v3 = vpop.f32.mrb[2].mxu1  ;;  %v17939_v4 = vld [vmem:[#allocation7_spill] sm:$0xff] }
 0x667   : > { %7617 = vmatmul.mubr.bf16.gmra.mrb[44].mxu0 %v17937_v27  ;;  %v7694_v36 = vpop.f32.mrb[3].mxu1 }
 0x668   : > { %v14907_v26 = vadd.f32 %v7692_v62, %v14636_v46  ;;  %v7695_v23 = vadd.f32 %v7694_v36, %v7405_v59  ;;  %7624 = vmatprep.mubr.bf16.mxu0 %v17938_v54  ;;  %v17941_v46 = vld [vmem:[#allocation18_spill] sm:$0xff] }
 0x669   : > { %v17943_v59 = vld [vmem:[#allocation46_spill] sm:$0xff] }
 0x66a   : > { %v14911_v22 = vadd.f32 %v7695_v23, %v14645_v51  ;;  %v7410_v24 = vpop.f32.mrb[196].mxu0  ;;  %v17944_v51 = vld [vmem:[#allocation64_spill] sm:$0xff] }
 0x66b   : > { %v7700_v9 = vadd.f32 %v9919_v50, %v7410_v24  ;;  %v7412_v18 = vpop.f32.mrb[197].mxu0 }
 0x66c   : > { %v7413_v55 = vpop.f32.mrb[198].mxu0  ;;  %v9923_v33 = vpop.f32.mrb[4].mxu1 }
 0x66d   : > { %v14914_v1 = vadd.f32 %v7700_v9, %v17939_v4  ;;  %v7703_v40 = vadd.f32 %v9920_v3, %v7413_v55  ;;  %v7415_v27 = vpop.f32.mrb[199].mxu0  ;;  %v7707_v61 = vpop.f32.mrb[5].mxu1  ;;  %v5254_v9 = vpack.c.bf16 %v10141_v7, %v10141_v7 }
 0x66e   : > { %v9924_v42 = vpop.f32.mrb[6].mxu1 }
 0x66f   : > { %17940 = vst [vmem:[#allocation110_spill] sm:$0xff] %v14914_v1  ;;  %v14917_v62 = vadd.f32 %v7703_v40, %v17941_v46  ;;  %7625 = vmatmul.mubr.bf16.gmra.mrb[48].mxu0 %v17943_v59  ;;  %v7710_v36 = vpop.f32.mrb[7].mxu1  ;;  %v17946_v59 = vld [vmem:[#allocation66_spill] sm:$0xff] }
 0x670   : > { %7632 = vmatprep.mubr.bf16.mxu0 %v17944_v51 }
 0x671   : > { %17942 = vst [vmem:[#allocation4_spill] sm:$0xff] %v14917_v62 }
 0x672   : > { %v7418_v23 = vpop.f32.mrb[200].mxu0 }
 0x673   : > { %v7708_v50 = vadd.f32 %v7707_v61, %v7418_v23  ;;  %v7420_v54 = vpop.f32.mrb[201].mxu0  ;;  %v5072_v23 = vld [vmem:[#allocation2 + $0x23f] sm:$0xff] }
 0x674   : > { %v7421_v24 = vpop.f32.mrb[202].mxu0  ;;  %v9927_v18 = vpop.f32.mrb[8].mxu1  ;;  %v5073_v54 = vld [vmem:[#allocation2 + $0x247] sm:$0xff] }
 0x675   : > { %v14922_v3 = vadd.f32 %v7708_v50, %v14658_v34  ;;  %v7711_v55 = vadd.f32 %v7710_v36, %v7421_v24  ;;  %v7423_v4 = vpop.f32.mrb[203].mxu0  ;;  %v7723_v27 = vpop.f32.mrb[9].mxu1  ;;  %v17947_v34 = vld [vmem:[#allocation96_spill] sm:$0xff]  ;;  %v5110_v47 = vpack.c.bf16 %v5073_v54, %v5072_v23 }
 0x676   : > { %v9928_v40 = vpop.f32.mrb[10].mxu1 }
 0x677   : > { %17945 = vst [vmem:[#allocation108_spill] sm:$0xff] %v14922_v3  ;;  %v14925_v46 = vadd.f32 %v7711_v55, %v14667_v41  ;;  %7633 = vmatmul.mubr.bf16.gmra.mrb[52].mxu0 %v17946_v59  ;;  %v7726_v51 = vpop.f32.mrb[11].mxu1 }
 0x678   : > { %7640 = vmatprep.mubr.bf16.mxu0 %v5254_v9 }
 0x67a   : > { %v7426_v61 = vpop.f32.mrb[204].mxu0 }
 0x67b   : > { %v7716_v11 = vadd.f32 %v9923_v33, %v7426_v61  ;;  %v7428_v2 = vpop.f32.mrb[205].mxu0 }
 0x67c   : > { %v7429_v7 = vpop.f32.mrb[206].mxu0  ;;  %v9931_v53 = vpop.f32.mrb[12].mxu1 }
 0x67d   : > { %v14929_v50 = vadd.f32 %v7716_v11, %v17947_v34  ;;  %v7719_v36 = vadd.f32 %v9924_v42, %v7429_v7  ;;  %v7431_v24 = vpop.f32.mrb[207].mxu0  ;;  %v7739_v4 = vpop.f32.mrb[13].mxu1 }
 0x67e   : > { %v9932_v41 = vpop.f32.mrb[14].mxu1 }
 0x67f   : > { %17948 = vst [vmem:[#allocation29_spill] sm:$0xff] %v14929_v50  ;;  %v14932_v55 = vadd.f32 %v7719_v36, %v14664_v25  ;;  %7641 = vmatmul.mubr.bf16.gmra.mrb[56].mxu0 %v5110_v47  ;;  %v7742_v59 = vpop.f32.mrb[15].mxu1 }
 0x680   : > { %7648 = vmatprep.mubr.bf16.mxu0 %v5254_v9 }
 0x681   : > { %17949 = vst [vmem:[#allocation58_spill] sm:$0xff] %v14932_v55 }
 0x682   : > { %v7434_v33 = vpop.f32.mrb[208].mxu0 }
 0x683   : > { %v7724_v2 = vadd.f32 %v7723_v27, %v7434_v33  ;;  %v7436_v61 = vpop.f32.mrb[209].mxu0 }
 0x684   : > { %v7437_v28 = vpop.f32.mrb[210].mxu0  ;;  %v14934_v11 = vpop.f32.mrb[16].mxu1 }
 0x685   : > { %v14937_v42 = vadd.f32 %v7724_v2, %v14680_v16  ;;  %v7727_v23 = vadd.f32 %v7726_v51, %v7437_v28  ;;  %v7439_v54 = vpop.f32.mrb[211].mxu0  ;;  %v7755_v7 = vpop.f32.mrb[17].mxu1 }
 0x686   : > { %v14939_v25 = vpop.f32.mrb[18].mxu1 }
 0x687   : > { %17950 = vst [vmem:[#allocation89_spill] sm:$0xff] %v14937_v42  ;;  %v14942_v47 = vadd.f32 %v7727_v23, %v14689_v30  ;;  %7649 = vmatmul.mubr.bf16.gmra.mrb[60].mxu0 %v5111_v45  ;;  %v7758_v9 = vpop.f32.mrb[19].mxu1 }
 0x689   : > { %17951 = vst [vmem:[#allocation11_spill] sm:$0xff] %v14942_v47 }
 0x68a   : > { %v7442_v34 = vpop.f32.mrb[212].mxu0 }
 0x68b   : > { %v7732_v27 = vadd.f32 %v9927_v18, %v7442_v34  ;;  %v7444_v36 = vpop.f32.mrb[213].mxu0  ;;  %v17954_v34 = vld [vmem:[#allocation48_spill] sm:$0xff] }
 0x68c   : > { %v7445_v57 = vpop.f32.mrb[214].mxu0  ;;  %v14944_v21 = vpop.f32.mrb[20].mxu1 }
 0x68d   : > { %v14947_v24 = vadd.f32 %v7732_v27, %v14677_v14  ;;  %v7735_v16 = vadd.f32 %v9928_v40, %v7445_v57  ;;  %v7447_v28 = vpop.f32.mrb[215].mxu0  ;;  %v14949_v51 = vpop.f32.mrb[21].mxu1 }
 0x68e   : > { %v14951_v33 = vpop.f32.mrb[22].mxu1 }
 0x68f   : > { %17952 = vst [vmem:[#allocation102_spill] sm:$0xff] %v14947_v24  ;;  %v14954_v30 = vadd.f32 %v7735_v16, %v14686_v12  ;;  %v14956_v45 = vpop.f32.mrb[23].mxu1 }
 0x691   : > { %17953 = vst [vmem:[#allocation80_spill] sm:$0xff] %v14954_v30 }
 0x692   : > { %v7450_v2 = vpop.f32.mrb[216].mxu0 }
 0x693   : > { %v7740_v18 = vadd.f32 %v7739_v4, %v7450_v2  ;;  %v7452_v61 = vpop.f32.mrb[217].mxu0 }
 0x694   : > { %v7453_v23 = vpop.f32.mrb[218].mxu0  ;;  %v14958_v54 = vpop.f32.mrb[24].mxu1 }
 0x695   : > { %v14961_v14 = vadd.f32 %v7740_v18, %v17954_v34  ;;  %v7743_v40 = vadd.f32 %v7742_v59, %v7453_v23  ;;  %v7455_v27 = vpop.f32.mrb[219].mxu0  ;;  %v14963_v36 = vpop.f32.mrb[25].mxu1 }
 0x696   : > { %v14965_v57 = vpop.f32.mrb[26].mxu1  ;;  %v8145_v27 = vmul.f32 %v14914_v1, %v14914_v1 }
 0x697   : > { %17955 = vst [vmem:[#allocation43_spill] sm:$0xff] %v14961_v14  ;;  %v14968_v12 = vadd.f32 %v7743_v40, %v14711_v13  ;;  %v14970_v16 = vpop.f32.mrb[27].mxu1 }
 0x699   : > { %17956 = vst [vmem:[#allocation111_spill] sm:$0xff] %v14968_v12 }
 0x69a   : > { %v7458_v28 = vpop.f32.mrb[220].mxu0 }
 0x69b   : > { %v7748_v4 = vadd.f32 %v9931_v53, %v7458_v28  ;;  %v7460_v2 = vpop.f32.mrb[221].mxu0  ;;  %v8144_v28 = vmul.f32 %v14911_v22, %v14911_v22 }
 0x69c   : > { %v7461_v61 = vpop.f32.mrb[222].mxu0  ;;  %v14972_v58 = vpop.f32.mrb[28].mxu1  ;;  %v8146_v2 = vmul.f32 %v14917_v62, %v14917_v62 }
 0x69d   : > { %v14975_v18 = vadd.f32 %v7748_v4, %v17957_v49  ;;  %v7751_v59 = vadd.f32 %v9932_v41, %v7461_v61  ;;  %v7463_v23 = vpop.f32.mrb[223].mxu0  ;;  %v14977_v34 = vpop.f32.mrb[29].mxu1  ;;  %v8012_v49 = vmul.f32 0.0, %v14914_v1  ;;  %v8143_v41 = vmul.f32 %v14907_v26, %v14907_v26 }
 0x69e   : > { %v14981_v13 = vpop.f32.mrb[30].mxu1  ;;  %v8209_v4 = vmul.f32 0.0, %v8145_v27  ;;  %v8074_v23 = vadd.f32 %v14911_v22, %v14907_v26  ;;  %v8013_v1 = vmul.f32 0.0, %v14917_v62 }
 0x69f   : > { %17958 = vst [vmem:[#allocation49_spill] sm:$0xff] %v14975_v18  ;;  %17959 = vst [vmem:[#allocation88_spill] sm:$0xff] %v14981_v13  ;;  %v14984_v40 = vadd.f32 %v7751_v59, %v14708_v37  ;;  %v14986_v53 = vpop.f32.mrb[31].mxu1  ;;  %v8271_v31 = vadd.f32 %v8144_v28, %v8143_v41  ;;  %v8210_v13 = vmul.f32 0.0, %v8146_v2 }
 0x6a0   : > { %v8075_v15 = vadd.f32 %v8074_v23, %v8012_v49  ;;  %v8147_v49 = vmul.f32 %v14922_v3, %v14922_v3 }
 0x6a1   : > { %17960 = vst [vmem:[#allocation91_spill] sm:$0xff] %v14984_v40  ;;  %v8272_v43 = vadd.f32 %v8271_v31, %v8209_v4 }
 0x6a2   : > { %v7466_v61 = vpop.f32.mrb[224].mxu0  ;;  %v8076_v41 = vadd.f32 %v8075_v15, %v8013_v1  ;;  %v17964_v15 = vld [vmem:[#allocation6_spill] sm:$0xff] }
 0x6a3   : > { %v7756_v37 = vadd.f32 %v7755_v7, %v7466_v61  ;;  %v7468_v59 = vpop.f32.mrb[225].mxu0  ;;  %v8273_v61 = vadd.f32 %v8272_v43, %v8210_v13 }
 0x6a4   : > { %v7469_v17 = vpop.f32.mrb[226].mxu0  ;;  %v14997_v29 = vpop.f32.mrb[32].mxu1 }
 0x6a5   : > { %v15001_v52 = vadd.f32 %v7756_v37, %v17961_v60  ;;  %v7759_v27 = vadd.f32 %v7758_v9, %v7469_v17  ;;  %v7471_v32 = vpop.f32.mrb[227].mxu0  ;;  %v15003_v56 = vpop.f32.mrb[33].mxu1  ;;  %v8149_v60 = vmul.f32 %v14929_v50, %v14929_v50  ;;  %v8077_v17 = vadd.f32 %v8076_v41, %v14922_v3 }
 0x6a6   : > { %v15005_v20 = vpop.f32.mrb[34].mxu1  ;;  %v8274_v4 = vadd.f32 %v8273_v61, %v8147_v49  ;;  %v8016_v37 = vmul.f32 0.0, %v14929_v50  ;;  %v8151_v3 = vmul.f32 %v14937_v42, %v14937_v42 }
 0x6a7   : > { %17962 = vst [vmem:[#allocation57_spill] sm:$0xff] %v15001_v52  ;;  %v15008_v7 = vadd.f32 %v7759_v27, %v14732_v38  ;;  %v15010_v28 = vpop.f32.mrb[35].mxu1  ;;  %v8148_v38 = vmul.f32 %v14925_v46, %v14925_v46  ;;  %v8213_v27 = vmul.f32 0.0, %v8149_v60  ;;  %v8078_v41 = vadd.f32 %v8077_v17, %v14925_v46 }
 0x6a9   : > { %17963 = vst [vmem:[#allocation51_spill] sm:$0xff] %v15008_v7 }
 0x6aa   : > { %v7474_v32 = vpop.f32.mrb[228].mxu0 }
 0x6ab   : > { %v7764_v31 = vadd.f32 %v14934_v11, %v7474_v32  ;;  %v7476_v9 = vpop.f32.mrb[229].mxu0  ;;  %v8150_v11 = vmul.f32 %v14932_v55, %v14932_v55 }
 0x6ac   : > { %v7477_v2 = vpop.f32.mrb[230].mxu0  ;;  %v15020_v23 = vpop.f32.mrb[36].mxu1  ;;  %v8079_v9 = vadd.f32 %v8078_v41, %v8016_v37 }
 0x6ad   : > { %v15024_v43 = vadd.f32 %v7764_v31, %v17964_v15  ;;  %v7767_v1 = vadd.f32 %v14939_v25, %v7477_v2  ;;  %v7479_v13 = vpop.f32.mrb[231].mxu0  ;;  %v15027_v59 = vpop.f32.mrb[37].mxu1  ;;  %v8275_v31 = vadd.f32 %v8274_v4, %v8148_v38  ;;  %v8017_v25 = vmul.f32 0.0, %v14932_v55 }
 0x6ae   : > { %v15031_v49 = vpop.f32.mrb[38].mxu1  ;;  %v8214_v15 = vmul.f32 0.0, %v8150_v11 }
 0x6af   : > { %17965 = vst [vmem:[#allocation27_spill] sm:$0xff] %v15024_v43  ;;  %v15035_v61 = vadd.f32 %v7767_v1, %v14729_v8  ;;  %v15037_v32 = vpop.f32.mrb[39].mxu1  ;;  %v8276_v2 = vadd.f32 %v8275_v31, %v8213_v27  ;;  %v8080_v8 = vadd.f32 %v8079_v9, %v8017_v25  ;;  %v8154_v25 = vmul.f32 %v14954_v30, %v14954_v30 }
 0x6b1   : > { %17966 = vst [vmem:[#allocation106_spill] sm:$0xff] %v15035_v61  ;;  %v8277_v27 = vadd.f32 %v8276_v2, %v8214_v15  ;;  %v8081_v11 = vadd.f32 %v8080_v8, %v14937_v42 }
 0x6b2   : > { %v7482_v13 = vpop.f32.mrb[232].mxu0 }
 0x6b3   : > { %v7772_v60 = vadd.f32 %v14949_v51, %v7482_v13  ;;  %v7484_v50 = vpop.f32.mrb[233].mxu0  ;;  %v8153_v51 = vmul.f32 %v14947_v24, %v14947_v24  ;;  %v8082_v15 = vadd.f32 %v8081_v11, %v14942_v47  ;;  %v8218_v11 = vmul.f32 0.0, %v8154_v25 }
 0x6b4   : > { %v7485_v62 = vpop.f32.mrb[234].mxu0  ;;  %v15043_v17 = vpop.f32.mrb[40].mxu1 }
 0x6b5   : > { %v15046_v1 = vadd.f32 %v7772_v60, %v14743_v19  ;;  %v7775_v4 = vadd.f32 %v14956_v45, %v7485_v62  ;;  %v7487_v38 = vpop.f32.mrb[235].mxu0  ;;  %v15049_v37 = vpop.f32.mrb[41].mxu1  ;;  %v8278_v19 = vadd.f32 %v8277_v27, %v8151_v3  ;;  %v8152_v62 = vmul.f32 %v14942_v47, %v14942_v47 }
 0x6b6   : > { %v15053_v50 = vpop.f32.mrb[42].mxu1  ;;  %v8020_v45 = vmul.f32 0.0, %v14947_v24  ;;  %v8217_v9 = vmul.f32 0.0, %v8153_v51  ;;  %v8021_v38 = vmul.f32 0.0, %v14954_v30 }
 0x6b7   : > { %17967 = vst [vmem:[#allocation23_spill] sm:$0xff] %v15046_v1  ;;  %v15057_v41 = vadd.f32 %v7775_v4, %v14752_v6  ;;  %v15059_v31 = vpop.f32.mrb[43].mxu1  ;;  %v8279_v6 = vadd.f32 %v8278_v19, %v8152_v62  ;;  %v8155_v62 = vmul.f32 %v14961_v14, %v14961_v14 }
 0x6b8   : > { %v8083_v3 = vadd.f32 %v8082_v15, %v8020_v45 }
 0x6b9   : > { %17968 = vst [vmem:[#allocation45_spill] sm:$0xff] %v15057_v41  ;;  %v8280_v55 = vadd.f32 %v8279_v6, %v8217_v9  ;;  %v8024_v6 = vmul.f32 0.0, %v14975_v18 }
 0x6ba   : > { %v7490_v2 = vpop.f32.mrb[236].mxu0  ;;  %v8084_v45 = vadd.f32 %v8083_v3, %v8021_v38 }
 0x6bb   : > { %v7780_v13 = vadd.f32 %v14944_v21, %v7490_v2  ;;  %v7492_v60 = vpop.f32.mrb[237].mxu0 }
 0x6bc   : > { %v7493_v8 = vpop.f32.mrb[238].mxu0  ;;  %v15068_v4 = vpop.f32.mrb[44].mxu1  ;;  %v8085_v2 = vadd.f32 %v8084_v45, %v14961_v14 }
 0x6bd   : > { %v15072_v27 = vadd.f32 %v7780_v13, %v14740_v10  ;;  %v7783_v51 = vadd.f32 %v14951_v33, %v7493_v8  ;;  %v7495_v24 = vpop.f32.mrb[239].mxu0  ;;  %v15075_v42 = vpop.f32.mrb[45].mxu1  ;;  %v8281_v10 = vadd.f32 %v8280_v55, %v8218_v11  ;;  %v8157_v33 = vmul.f32 %v14975_v18, %v14975_v18 }
 0x6be   : > { %v15077_v47 = vpop.f32.mrb[46].mxu1  ;;  %v8159_v18 = vmul.f32 %v15001_v52, %v15001_v52 }
 0x6bf   : > { %17969 = vst [vmem:[#allocation28_spill] sm:$0xff] %v15072_v27  ;;  %v15080_v21 = vadd.f32 %v7783_v51, %v14749_v63  ;;  %v15082_v19 = vpop.f32.mrb[47].mxu1  ;;  %v8282_v15 = vadd.f32 %v8281_v10, %v8155_v62  ;;  %v8156_v63 = vmul.f32 %v14968_v12, %v14968_v12  ;;  %v8221_v51 = vmul.f32 0.0, %v8157_v33 }
 0x6c0   : > { %v8086_v62 = vadd.f32 %v8085_v2, %v14968_v12 }
 0x6c2   : > { %v7498_v24 = vpop.f32.mrb[240].mxu0 }
 0x6c3   : > { %v7788_v9 = vadd.f32 %v14963_v36, %v7498_v24  ;;  %v7500_v25 = vpop.f32.mrb[241].mxu0  ;;  %v8158_v36 = vmul.f32 %v14984_v40, %v14984_v40  ;;  %v8087_v24 = vadd.f32 %v8086_v62, %v8024_v6 }
 0x6c4   : > { %v7501_v13 = vpop.f32.mrb[242].mxu0  ;;  %v15092_v60 = vpop.f32.mrb[48].mxu1 }
 0x6c5   : > { %v15096_v55 = vadd.f32 %v7788_v9, %v14763_v44  ;;  %v7791_v8 = vadd.f32 %v14970_v16, %v7501_v13  ;;  %v7503_v3 = vpop.f32.mrb[243].mxu0  ;;  %v15099_v38 = vpop.f32.mrb[49].mxu1  ;;  %v8283_v44 = vadd.f32 %v8282_v15, %v8156_v63  ;;  %v8025_v16 = vmul.f32 0.0, %v14984_v40 }
 0x6c6   : > { %v15103_v11 = vpop.f32.mrb[50].mxu1  ;;  %v8222_v25 = vmul.f32 0.0, %v8158_v36 }
 0x6c7   : > { %17970 = vst [vmem:[#allocation81_spill] sm:$0xff] %v15096_v55  ;;  %v15107_v45 = vadd.f32 %v7791_v8, %v14772_v48  ;;  %v15109_v10 = vpop.f32.mrb[51].mxu1  ;;  %v8284_v9 = vadd.f32 %v8283_v44, %v8221_v51  ;;  %v8088_v48 = vadd.f32 %v8087_v24, %v8025_v16  ;;  %v8167_v12 = vmul.f32 %v15096_v55, %v15096_v55 }
 0x6c9   : > { %v8285_v51 = vadd.f32 %v8284_v9, %v8222_v25  ;;  %v8089_v62 = vadd.f32 %v8088_v48, %v15001_v52  ;;  %v8162_v9 = vmul.f32 %v15035_v61, %v15035_v61 }
 0x6ca   : > { %v7506_v13 = vpop.f32.mrb[244].mxu0 }
 0x6cb   : > { %v7796_v33 = vadd.f32 %v14958_v54, %v7506_v13  ;;  %v7508_v3 = vpop.f32.mrb[245].mxu0  ;;  %v8161_v54 = vmul.f32 %v15024_v43, %v15024_v43  ;;  %v8090_v13 = vadd.f32 %v8089_v62, %v15008_v7  ;;  %v8226_v62 = vmul.f32 0.0, %v8162_v9 }
 0x6cc   : > { %v7509_v14 = vpop.f32.mrb[246].mxu0  ;;  %v15115_v2 = vpop.f32.mrb[52].mxu1 }
 0x6cd   : > { %v15118_v8 = vadd.f32 %v7796_v33, %v14760_v0  ;;  %v7799_v15 = vadd.f32 %v14965_v57, %v7509_v14  ;;  %v7511_v63 = vpop.f32.mrb[247].mxu0  ;;  %v15121_v6 = vpop.f32.mrb[53].mxu1  ;;  %v8286_v0 = vadd.f32 %v8285_v51, %v8159_v18  ;;  %v8160_v14 = vmul.f32 %v15008_v7, %v15008_v7 }
 0x6ce   : > { %v15125_v36 = vpop.f32.mrb[54].mxu1  ;;  %v8028_v57 = vmul.f32 0.0, %v15024_v43  ;;  %v8225_v16 = vmul.f32 0.0, %v8161_v54  ;;  %v8029_v63 = vmul.f32 0.0, %v15035_v61 }
 0x6cf   : > { %17971 = vst [vmem:[#allocation61_spill] sm:$0xff] %v15118_v8  ;;  %v15129_v44 = vadd.f32 %v7799_v15, %v14769_v39  ;;  %v15131_v24 = vpop.f32.mrb[55].mxu1  ;;  %v8287_v39 = vadd.f32 %v8286_v0, %v8160_v14  ;;  %v8163_v14 = vmul.f32 %v15046_v1, %v15046_v1 }
 0x6d0   : > { %v8091_v18 = vadd.f32 %v8090_v13, %v8028_v57 }
 0x6d1   : > { %v8288_v40 = vadd.f32 %v8287_v39, %v8225_v16  ;;  %v8032_v39 = vmul.f32 0.0, %v15072_v27 }
 0x6d2   : > { %v7514_v25 = vpop.f32.mrb[248].mxu0  ;;  %v8092_v57 = vadd.f32 %v8091_v18, %v8029_v63  ;;  %v17973_v18 = vld [vmem:[#allocation88_spill] sm:$0xff] }
 0x6d3   : > { %v7804_v33 = vadd.f32 %v14977_v34, %v7514_v25  ;;  %v7516_v3 = vpop.f32.mrb[249].mxu0 }
 0x6d4   : > { %v7517_v48 = vpop.f32.mrb[250].mxu0  ;;  %v15140_v15 = vpop.f32.mrb[56].mxu1  ;;  %v8093_v25 = vadd.f32 %v8092_v57, %v15046_v1 }
 0x6d5   : > { %v15144_v51 = vadd.f32 %v7804_v33, %v14783_v35  ;;  %v7807_v54 = vadd.f32 %v14986_v53, %v7517_v48  ;;  %v7519_v43 = vpop.f32.mrb[251].mxu0  ;;  %v15147_v52 = vpop.f32.mrb[57].mxu1  ;;  %v8289_v35 = vadd.f32 %v8288_v40, %v8226_v62  ;;  %v8165_v53 = vmul.f32 %v15072_v27, %v15072_v27  ;;  %v17972_v48 = vld [vmem:[#allocation73_spill] sm:$0xff] }
 0x6d6   : > { %v15149_v7 = vpop.f32.mrb[58].mxu1 }
 0x6d7   : > { %v15152_v34 = vadd.f32 %v7807_v54, %v14790_v5  ;;  %v15154_v0 = vpop.f32.mrb[59].mxu1  ;;  %v8290_v13 = vadd.f32 %v8289_v35, %v8163_v14  ;;  %v8164_v5 = vmul.f32 %v15057_v41, %v15057_v41  ;;  %v8229_v57 = vmul.f32 0.0, %v8165_v53 }
 0x6d8   : > { %v8094_v35 = vadd.f32 %v8093_v25, %v15057_v41  ;;  %v17975_v41 = vld [vmem:[#allocation74_spill] sm:$0xff] }
 0x6da   : > { %v7522_v43 = vpop.f32.mrb[252].mxu0 }
 0x6db   : > { %v7812_v16 = vadd.f32 %v14972_v58, %v7522_v43  ;;  %v7524_v9 = vpop.f32.mrb[253].mxu0  ;;  %v8166_v58 = vmul.f32 %v15080_v21, %v15080_v21  ;;  %v17974_v43 = vld [vmem:[#allocation105_spill] sm:$0xff] }
 0x6dc   : > { %v7525_v33 = vpop.f32.mrb[254].mxu0  ;;  %v15164_v3 = vpop.f32.mrb[60].mxu1 }
 0x6dd   : > { %v15168_v40 = vadd.f32 %v7812_v16, %v17972_v48  ;;  %v7815_v63 = vadd.f32 %v17973_v18, %v7525_v33  ;;  %v7527_v54 = vpop.f32.mrb[255].mxu0  ;;  %v15171_v62 = vpop.f32.mrb[61].mxu1  ;;  %v8291_v16 = vadd.f32 %v8290_v13, %v8164_v5  ;;  %v8095_v48 = vadd.f32 %v8094_v35, %v8032_v39 }
 0x6de   : > { %v15175_v14 = vpop.f32.mrb[62].mxu1  ;;  %v8033_v33 = vmul.f32 0.0, %v15080_v21  ;;  %v8230_v54 = vmul.f32 0.0, %v8166_v58  ;;  %v8169_v39 = vmul.f32 %v15118_v8, %v15118_v8  ;;  %v17976_v58 = vld [vmem:[#allocation107_spill] sm:$0xff]  ;;  %v8036_v35 = vmul.f32 0.0, %v15118_v8  ;;  %v17978_v8 = vld [vmem:[#allocation82_spill] sm:$0xff] }
 0x6df   : > { %v15179_v9 = vadd.f32 %v7815_v63, %v17974_v43  ;;  %v15181_v27 = vpop.f32.mrb[63].mxu1  ;;  %v8292_v18 = vadd.f32 %v8291_v16, %v8229_v57 }
 0x6e0   : > { %v8096_v25 = vadd.f32 %v8095_v48, %v8033_v33 }
 0x6e1   : > { %v8293_v5 = vadd.f32 %v8292_v18, %v8230_v54 }
 0x6e2   : > { %v7530_v1 = vpop.f32.mrb[0].mxu0  ;;  %v8097_v57 = vadd.f32 %v8096_v25, %v15096_v55  ;;  %v17977_v25 = vld [vmem:[#allocation41_spill] sm:$0xff] }
 0x6e3   : > { %v7820_v53 = vadd.f32 %v15003_v56, %v7530_v1  ;;  %v7532_v61 = vpop.f32.mrb[1].mxu0  ;;  %v8168_v1 = vmul.f32 %v15107_v45, %v15107_v45 }
 0x6e4   : > { %v7533_v30 = vpop.f32.mrb[2].mxu0  ;;  %v8294_v61 = vadd.f32 %v8293_v5, %v8167_v12  ;;  %v8098_v16 = vadd.f32 %v8097_v57, %v15107_v45  ;;  %v8037_v12 = vmul.f32 0.0, %v15129_v44 }
 0x6e5   : > { %v15188_v63 = vadd.f32 %v7820_v53, %v17975_v41  ;;  %v7823_v43 = vadd.f32 %v15010_v28, %v7533_v30  ;;  %v7535_v13 = vpop.f32.mrb[3].mxu0  ;;  %v8233_v41 = vmul.f32 0.0, %v8169_v39  ;;  %v8170_v30 = vmul.f32 %v15129_v44, %v15129_v44 }
 0x6e6   : > { %v8295_v18 = vadd.f32 %v8294_v61, %v8168_v1  ;;  %v8099_v53 = vadd.f32 %v8098_v16, %v8036_v35  ;;  %v8173_v1 = vmul.f32 %v15168_v40, %v15168_v40 }
 0x6e7   : > { %v15195_v56 = vadd.f32 %v7823_v43, %v17976_v58  ;;  %v8234_v58 = vmul.f32 0.0, %v8170_v30  ;;  %v8040_v30 = vmul.f32 0.0, %v15168_v40 }
 0x6e8   : > { %v8296_v39 = vadd.f32 %v8295_v18, %v8233_v41  ;;  %v8100_v57 = vadd.f32 %v8099_v53, %v8037_v12  ;;  %v8172_v41 = vmul.f32 %v15152_v34, %v15152_v34  ;;  %v8237_v12 = vmul.f32 0.0, %v8173_v1 }
 0x6e9   : > { %v8175_v1 = vmul.f32 %v15188_v63, %v15188_v63 }
 0x6ea   : > { %v7538_v28 = vpop.f32.mrb[4].mxu0  ;;  %v8297_v61 = vadd.f32 %v8296_v39, %v8234_v58 }
 0x6eb   : > { %v7828_v48 = vadd.f32 %v14997_v29, %v7538_v28  ;;  %v7540_v33 = vpop.f32.mrb[5].mxu0  ;;  %v8171_v29 = vmul.f32 %v15144_v51, %v15144_v51  ;;  %v8101_v28 = vadd.f32 %v8100_v57, %v15144_v51 }
 0x6ec   : > { %v7541_v54 = vpop.f32.mrb[6].mxu0  ;;  %v17979_v33 = vld [vmem:[#allocation19_spill] sm:$0xff] }
 0x6ed   : > { %v15206_v43 = vadd.f32 %v7828_v48, %v17977_v25  ;;  %v7831_v13 = vadd.f32 %v15005_v20, %v7541_v54  ;;  %v7543_v5 = vpop.f32.mrb[7].mxu0  ;;  %v8298_v48 = vadd.f32 %v8297_v61, %v8171_v29  ;;  %v8174_v25 = vmul.f32 %v15179_v9, %v15179_v9 }
 0x6ee   : > { %v8041_v29 = vmul.f32 0.0, %v15179_v9 }
 0x6ef   : > { %v15210_v55 = vadd.f32 %v7831_v13, %v17978_v8  ;;  %v17980_v13 = vld [vmem:[#allocation83_spill] sm:$0xff]  ;;  %v8299_v39 = vadd.f32 %v8298_v48, %v8172_v41  ;;  %v8238_v61 = vmul.f32 0.0, %v8174_v25 }
 0x6f1   : > { %v8300_v57 = vadd.f32 %v8299_v39, %v8237_v12  ;;  %v17982_v12 = vld [vmem:[#allocation52_spill] sm:$0xff] }
 0x6f2   : > { %v7546_v35 = vpop.f32.mrb[8].mxu0 }
 0x6f3   : > { %v7836_v16 = vadd.f32 %v15027_v59, %v7546_v35  ;;  %v7548_v20 = vpop.f32.mrb[9].mxu0  ;;  %v8102_v59 = vadd.f32 %v8101_v28, %v15152_v34  ;;  %v8301_v41 = vadd.f32 %v8300_v57, %v8238_v61 }
 0x6f4   : > { %v7549_v8 = vpop.f32.mrb[10].mxu0 }
 0x6f5   : > { %v15222_v18 = vadd.f32 %v7836_v16, %v17979_v33  ;;  %v7839_v54 = vadd.f32 %v15037_v32, %v7549_v8  ;;  %v7551_v53 = vpop.f32.mrb[11].mxu0  ;;  %v8103_v58 = vadd.f32 %v8102_v59, %v8040_v30  ;;  %v17981_v33 = vld [vmem:[#allocation101_spill] sm:$0xff]  ;;  %v8177_v30 = vmul.f32 %v15206_v43, %v15206_v43 }
 0x6f6   : > { %v8302_v25 = vadd.f32 %v8301_v41, %v8175_v1  ;;  %v8176_v59 = vmul.f32 %v15195_v56, %v15195_v56  ;;  %v8045_v1 = vmul.f32 0.0, %v15210_v55 }
 0x6f7   : > { %v15229_v5 = vadd.f32 %v7839_v54, %v17980_v13  ;;  %v8104_v8 = vadd.f32 %v8103_v58, %v8041_v29  ;;  %v8044_v13 = vmul.f32 0.0, %v15206_v43  ;;  %v8241_v39 = vmul.f32 0.0, %v8177_v30  ;;  %v17984_v30 = vld [vmem:[#allocation109_spill] sm:$0xff] }
 0x6f9   : > { %v8105_v53 = vadd.f32 %v8104_v8, %v15188_v63 }
 0x6fa   : > { %v7554_v35 = vpop.f32.mrb[12].mxu0 }
 0x6fb   : > { %v7844_v16 = vadd.f32 %v15020_v23, %v7554_v35  ;;  %v7556_v32 = vpop.f32.mrb[13].mxu0  ;;  %v8106_v29 = vadd.f32 %v8105_v53, %v15195_v56  ;;  %v8303_v35 = vadd.f32 %v8302_v25, %v8176_v59 }
 0x6fc   : > { %v7557_v20 = vpop.f32.mrb[14].mxu0 }
 0x6fd   : > { %v15236_v28 = vadd.f32 %v7844_v16, %v17981_v33  ;;  %v7847_v54 = vadd.f32 %v15031_v49, %v7557_v20  ;;  %v7559_v48 = vpop.f32.mrb[15].mxu0  ;;  %v8178_v49 = vmul.f32 %v15210_v55, %v15210_v55  ;;  %v8107_v32 = vadd.f32 %v8106_v29, %v8044_v13  ;;  %v17983_v20 = vld [vmem:[#allocation54_spill] sm:$0xff] }
 0x6fe   : > { %v8304_v48 = vadd.f32 %v8303_v35, %v8241_v39  ;;  %v8180_v39 = vmul.f32 %v15229_v5, %v15229_v5  ;;  %v17985_v35 = vld [vmem:[#allocation16_spill] sm:$0xff] }
 0x6ff   : > { %v15243_v23 = vadd.f32 %v7847_v54, %v17982_v12  ;;  %v8242_v41 = vmul.f32 0.0, %v8178_v49  ;;  %v8108_v53 = vadd.f32 %v8107_v32, %v8045_v1  ;;  %v8181_v59 = vmul.f32 %v15236_v28, %v15236_v28 }
 0x701   : > { %v8305_v25 = vadd.f32 %v8304_v48, %v8242_v41 }
 0x702   : > { %v7562_v58 = vpop.f32.mrb[16].mxu0 }
 0x703   : > { %v7852_v57 = vadd.f32 %v15049_v37, %v7562_v58  ;;  %v7564_v61 = vpop.f32.mrb[17].mxu0  ;;  %v8179_v37 = vmul.f32 %v15222_v18, %v15222_v18  ;;  %v8109_v58 = vadd.f32 %v8108_v53, %v15222_v18 }
 0x704   : > { %v7565_v16 = vpop.f32.mrb[18].mxu0  ;;  %v8048_v61 = vmul.f32 0.0, %v15236_v28 }
 0x705   : > { %v15254_v8 = vadd.f32 %v7852_v57, %v17983_v20  ;;  %v7855_v33 = vadd.f32 %v15059_v31, %v7565_v16  ;;  %v7567_v54 = vpop.f32.mrb[19].mxu0  ;;  %v8306_v57 = vadd.f32 %v8305_v25, %v8179_v37  ;;  %v8245_v20 = vmul.f32 0.0, %v8181_v59 }
 0x706   : > { %v17986_v54 = vld [vmem:[#allocation40_spill] sm:$0xff]  ;;  %v8049_v37 = vmul.f32 0.0, %v15243_v23 }
 0x707   : > { %v15258_v12 = vadd.f32 %v7855_v33, %v17984_v30  ;;  %v8182_v33 = vmul.f32 %v15243_v23, %v15243_v23  ;;  %v8307_v41 = vadd.f32 %v8306_v57, %v8180_v39  ;;  %v8183_v59 = vmul.f32 %v15254_v8, %v15254_v8 }
 0x709   : > { %v8308_v53 = vadd.f32 %v8307_v41, %v8245_v20  ;;  %v8246_v25 = vmul.f32 0.0, %v8182_v33  ;;  %v17988_v20 = vld [vmem:[#allocation77_spill] sm:$0xff] }
 0x70a   : > { %v7570_v13 = vpop.f32.mrb[20].mxu0 }
 0x70b   : > { %v7860_v29 = vadd.f32 %v15043_v17, %v7570_v13  ;;  %v7572_v31 = vpop.f32.mrb[21].mxu0  ;;  %v8110_v17 = vadd.f32 %v8109_v58, %v15229_v5  ;;  %v8309_v39 = vadd.f32 %v8308_v53, %v8246_v25 }
 0x70c   : > { %v7573_v49 = vpop.f32.mrb[22].mxu0 }
 0x70d   : > { %v15270_v16 = vadd.f32 %v7860_v29, %v17985_v35  ;;  %v7863_v32 = vadd.f32 %v15053_v50, %v7573_v49  ;;  %v7575_v1 = vpop.f32.mrb[23].mxu0  ;;  %v8111_v30 = vadd.f32 %v8110_v17, %v8048_v61  ;;  %v17987_v35 = vld [vmem:[#allocation21_spill] sm:$0xff]  ;;  %v8310_v33 = vadd.f32 %v8309_v39, %v8183_v59 }
 0x70e   : > { %v8184_v17 = vmul.f32 %v15258_v12, %v15258_v12 }
 0x70f   : > { %v15277_v48 = vadd.f32 %v7863_v32, %v17986_v54  ;;  %v8112_v49 = vadd.f32 %v8111_v30, %v8049_v37  ;;  %v8185_v61 = vmul.f32 %v15270_v16, %v15270_v16  ;;  %v8052_v54 = vmul.f32 0.0, %v15270_v16 }
 0x711   : > { %v8113_v1 = vadd.f32 %v8112_v49, %v15254_v8  ;;  %v8249_v41 = vmul.f32 0.0, %v8185_v61  ;;  %v8053_v59 = vmul.f32 0.0, %v15277_v48  ;;  %v17990_v61 = vld [vmem:[#allocation36_spill] sm:$0xff] }
 0x712   : > { %v7578_v13 = vpop.f32.mrb[24].mxu0 }
 0x713   : > { %v7868_v29 = vadd.f32 %v15075_v42, %v7578_v13  ;;  %v7580_v50 = vpop.f32.mrb[25].mxu0  ;;  %v8114_v37 = vadd.f32 %v8113_v1, %v15258_v12  ;;  %v8311_v13 = vadd.f32 %v8310_v33, %v8184_v17 }
 0x714   : > { %v7581_v31 = vpop.f32.mrb[26].mxu0 }
 0x715   : > { %v15284_v58 = vadd.f32 %v7868_v29, %v17987_v35  ;;  %v7871_v32 = vadd.f32 %v15082_v19, %v7581_v31  ;;  %v7583_v57 = vpop.f32.mrb[27].mxu0  ;;  %v8186_v19 = vmul.f32 %v15277_v48, %v15277_v48  ;;  %v8115_v50 = vadd.f32 %v8114_v37, %v8052_v54  ;;  %v17989_v31 = vld [vmem:[#allocation53_spill] sm:$0xff] }
 0x716   : > { %v8312_v57 = vadd.f32 %v8311_v13, %v8249_v41  ;;  %v17991_v13 = vld [vmem:[#allocation56_spill] sm:$0xff] }
 0x717   : > { %v15291_v42 = vadd.f32 %v7871_v32, %v17988_v20  ;;  %v8250_v39 = vmul.f32 0.0, %v8186_v19  ;;  %v8116_v1 = vadd.f32 %v8115_v50, %v8053_v59 }
 0x719   : > { %v8313_v33 = vadd.f32 %v8312_v57, %v8250_v39  ;;  %v8188_v41 = vmul.f32 %v15291_v42, %v15291_v42 }
 0x71a   : > { %v7586_v30 = vpop.f32.mrb[28].mxu0 }
 0x71b   : > { %v7876_v53 = vadd.f32 %v15068_v4, %v7586_v30  ;;  %v7588_v25 = vpop.f32.mrb[29].mxu0  ;;  %v8187_v4 = vmul.f32 %v15284_v58, %v15284_v58  ;;  %v8117_v30 = vadd.f32 %v8116_v1, %v15284_v58 }
 0x71c   : > { %v7589_v29 = vpop.f32.mrb[30].mxu0 }
 0x71d   : > { %v15302_v49 = vadd.f32 %v7876_v53, %v17989_v31  ;;  %v7879_v35 = vadd.f32 %v15077_v47, %v7589_v29  ;;  %v7591_v32 = vpop.f32.mrb[31].mxu0  ;;  %v8314_v53 = vadd.f32 %v8313_v33, %v8187_v4 }
 0x71e   : > { %v17992_v32 = vld [vmem:[#allocation68_spill] sm:$0xff] }
 0x71f   : > { %v15306_v20 = vadd.f32 %v7879_v35, %v17990_v61  ;;  %v8189_v17 = vmul.f32 %v15302_v49, %v15302_v49  ;;  %v8056_v25 = vmul.f32 0.0, %v15302_v49  ;;  %v8315_v39 = vadd.f32 %v8314_v53, %v8188_v41 }
 0x721   : > { %v8253_v31 = vmul.f32 0.0, %v8189_v17  ;;  %v8190_v35 = vmul.f32 %v15306_v20, %v15306_v20  ;;  %v8057_v4 = vmul.f32 0.0, %v15306_v20 }
 0x722   : > { %v7594_v54 = vpop.f32.mrb[32].mxu0 }
 0x723   : > { %v7884_v37 = vadd.f32 %v15099_v38, %v7594_v54  ;;  %v7596_v47 = vpop.f32.mrb[33].mxu0  ;;  %v8118_v38 = vadd.f32 %v8117_v30, %v15291_v42  ;;  %v8316_v1 = vadd.f32 %v8315_v39, %v8253_v31  ;;  %v8254_v33 = vmul.f32 0.0, %v8190_v35  ;;  %v17994_v31 = vld [vmem:[#allocation67_spill] sm:$0xff] }
 0x724   : > { %v7597_v19 = vpop.f32.mrb[34].mxu0 }
 0x725   : > { %v15318_v29 = vadd.f32 %v7884_v37, %v17991_v13  ;;  %v7887_v50 = vadd.f32 %v15109_v10, %v7597_v19  ;;  %v7599_v59 = vpop.f32.mrb[35].mxu0  ;;  %v8119_v61 = vadd.f32 %v8118_v38, %v8056_v25  ;;  %v17993_v13 = vld [vmem:[#allocation99_spill] sm:$0xff]  ;;  %v8317_v41 = vadd.f32 %v8316_v1, %v8254_v33 }
 0x727   : > { %v15325_v57 = vadd.f32 %v7887_v50, %v17992_v32  ;;  %v8191_v17 = vmul.f32 %v15318_v29, %v15318_v29  ;;  %v8120_v19 = vadd.f32 %v8119_v61, %v8057_v4 }
 0x729   : > { %v8121_v25 = vadd.f32 %v8120_v19, %v15318_v29  ;;  %v8318_v35 = vadd.f32 %v8317_v41, %v8191_v17  ;;  %v8192_v38 = vmul.f32 %v15325_v57, %v15325_v57 }
 0x72a   : > { %v7602_v54 = vpop.f32.mrb[36].mxu0 }
 0x72b   : > { %v7892_v37 = vadd.f32 %v15092_v60, %v7602_v54  ;;  %v7604_v10 = vpop.f32.mrb[37].mxu0  ;;  %v8122_v4 = vadd.f32 %v8121_v25, %v15325_v57  ;;  %v8319_v54 = vadd.f32 %v8318_v35, %v8192_v38 }
 0x72c   : > { %v7605_v47 = vpop.f32.mrb[38].mxu0 }
 0x72d   : > { %v15332_v30 = vadd.f32 %v7892_v37, %v17993_v13  ;;  %v7895_v50 = vadd.f32 %v15103_v11, %v7605_v47  ;;  %v7607_v53 = vpop.f32.mrb[39].mxu0  ;;  %v17995_v47 = vld [vmem:[#allocation10_spill] sm:$0xff] }
 0x72f   : > { %v8193_v59 = vmul.f32 %v15332_v30, %v15332_v30  ;;  %v15339_v60 = vadd.f32 %v7895_v50, %v17994_v31  ;;  %v8060_v32 = vmul.f32 0.0, %v15332_v30 }
 0x731   : > { %v8257_v39 = vmul.f32 0.0, %v8193_v59  ;;  %v8194_v11 = vmul.f32 %v15339_v60, %v15339_v60  ;;  %v8123_v10 = vadd.f32 %v8122_v4, %v8060_v32  ;;  %v8061_v17 = vmul.f32 0.0, %v15339_v60  ;;  %v17996_v59 = vld [vmem:[#allocation95_spill] sm:$0xff] }
 0x732   : > { %v7610_v61 = vpop.f32.mrb[40].mxu0 }
 0x733   : > { %v7900_v1 = vadd.f32 %v15121_v6, %v7610_v61  ;;  %v7612_v33 = vpop.f32.mrb[41].mxu0  ;;  %v8320_v53 = vadd.f32 %v8319_v54, %v8257_v39  ;;  %v8258_v41 = vmul.f32 0.0, %v8194_v11  ;;  %v8124_v25 = vadd.f32 %v8123_v10, %v8061_v17  ;;  %v17997_v11 = vld [vmem:[#allocation50_spill] sm:$0xff] }
 0x734   : > { %v7613_v37 = vpop.f32.mrb[42].mxu0 }
 0x735   : > { %v15350_v19 = vadd.f32 %v7900_v1, %v17995_v47  ;;  %v7903_v13 = vadd.f32 %v15131_v24, %v7613_v37  ;;  %v7615_v50 = vpop.f32.mrb[43].mxu0  ;;  %v8321_v35 = vadd.f32 %v8320_v53, %v8258_v41 }
 0x737   : > { %v15354_v31 = vadd.f32 %v7903_v13, %v17996_v59  ;;  %v8195_v6 = vmul.f32 %v15350_v19, %v15350_v19  ;;  %v8125_v32 = vadd.f32 %v8124_v25, %v15350_v19 }
 0x739   : > { %v8322_v1 = vadd.f32 %v8321_v35, %v8195_v6  ;;  %v8196_v24 = vmul.f32 %v15354_v31, %v15354_v31  ;;  %v8126_v10 = vadd.f32 %v8125_v32, %v15354_v31 }
 0x73a   : > { %v7618_v38 = vpop.f32.mrb[44].mxu0 }
 0x73b   : > { %v7908_v61 = vadd.f32 %v15115_v2, %v7618_v38  ;;  %v7620_v4 = vpop.f32.mrb[45].mxu0  ;;  %v17999_v2 = vld [vmem:[#allocation79_spill] sm:$0xff]  ;;  %v8323_v50 = vadd.f32 %v8322_v1, %v8196_v24 }
 0x73c   : > { %v7621_v39 = vpop.f32.mrb[46].mxu0  ;;  %v18001_v4 = vld [vmem:[#allocation34_spill] sm:$0xff] }
 0x73d   : > { %v15363_v33 = vadd.f32 %v7908_v61, %v17997_v11  ;;  %v7911_v54 = vadd.f32 %v15125_v36, %v7621_v39  ;;  %v7623_v37 = vpop.f32.mrb[47].mxu0 }
 0x73f   : > { %17998 = vst [vmem:[#allocation98_spill] sm:$0xff] %v15363_v33  ;;  %v8064_v17 = vmul.f32 0.0, %v15363_v33  ;;  %v8197_v47 = vmul.f32 %v15363_v33, %v15363_v33  ;;  %v15371_v13 = vadd.f32 %v7911_v54, %v17999_v2 }
 0x741   : > { %18000 = vst [vmem:[#allocation22_spill] sm:$0xff] %v15371_v13  ;;  %v8127_v53 = vadd.f32 %v8126_v10, %v8064_v17  ;;  %v8261_v41 = vmul.f32 0.0, %v8197_v47  ;;  %v8065_v59 = vmul.f32 0.0, %v15371_v13  ;;  %v8198_v6 = vmul.f32 %v15371_v13, %v15371_v13  ;;  %v18003_v17 = vld [vmem:[#allocation44_spill] sm:$0xff] }
 0x742   : > { %v7626_v36 = vpop.f32.mrb[48].mxu0 }
 0x743   : > { %v8324_v25 = vadd.f32 %v8323_v50, %v8261_v41  ;;  %v8262_v35 = vmul.f32 0.0, %v8198_v6  ;;  %v7916_v38 = vadd.f32 %v15147_v52, %v7626_v36  ;;  %v7628_v32 = vpop.f32.mrb[49].mxu0  ;;  %v8128_v11 = vadd.f32 %v8127_v53, %v8065_v59  ;;  %v18005_v36 = vld [vmem:[#allocation9_spill] sm:$0xff] }
 0x744   : > { %v7629_v61 = vpop.f32.mrb[50].mxu0 }
 0x745   : > { %v15378_v39 = vadd.f32 %v7916_v38, %v18001_v4  ;;  %v7919_v1 = vadd.f32 %v15154_v0, %v7629_v61  ;;  %v7631_v24 = vpop.f32.mrb[51].mxu0  ;;  %v8325_v54 = vadd.f32 %v8324_v25, %v8262_v35  ;;  %v18007_v4 = vld [vmem:[#allocation104_spill] sm:$0xff] }
 0x747   : > { %18002 = vst [vmem:[#allocation30_spill] sm:$0xff] %v15378_v39  ;;  %v8129_v37 = vadd.f32 %v8128_v11, %v15378_v39  ;;  %v8199_v10 = vmul.f32 %v15378_v39, %v15378_v39  ;;  %v15385_v47 = vadd.f32 %v7919_v1, %v18003_v17 }
 0x749   : > { %18004 = vst [vmem:[#allocation85_spill] sm:$0xff] %v15385_v47  ;;  %v8326_v2 = vadd.f32 %v8325_v54, %v8199_v10  ;;  %v8130_v52 = vadd.f32 %v8129_v37, %v15385_v47  ;;  %v8200_v50 = vmul.f32 %v15385_v47, %v15385_v47 }
 0x74a   : > { %v7634_v41 = vpop.f32.mrb[52].mxu0 }
 0x74b   : > { %v8327_v53 = vadd.f32 %v8326_v2, %v8200_v50  ;;  %v7924_v0 = vadd.f32 %v15140_v15, %v7634_v41  ;;  %v7636_v59 = vpop.f32.mrb[53].mxu0 }
 0x74c   : > { %v7637_v6 = vpop.f32.mrb[54].mxu0  ;;  %v18009_v59 = vld [vmem:[#allocation84_spill] sm:$0xff] }
 0x74d   : > { %v15392_v25 = vadd.f32 %v7924_v0, %v18005_v36  ;;  %v7927_v35 = vadd.f32 %v15149_v7, %v7637_v6  ;;  %v7639_v38 = vpop.f32.mrb[55].mxu0 }
 0x74f   : > { %18006 = vst [vmem:[#allocation8_spill] sm:$0xff] %v15392_v25  ;;  %v8068_v32 = vmul.f32 0.0, %v15392_v25  ;;  %v8201_v61 = vmul.f32 %v15392_v25, %v15392_v25  ;;  %v15399_v11 = vadd.f32 %v7927_v35, %v18007_v4 }
 0x751   : > { %18008 = vst [vmem:[#allocation14_spill] sm:$0xff] %v15399_v11  ;;  %v8131_v1 = vadd.f32 %v8130_v52, %v8068_v32  ;;  %v8265_v24 = vmul.f32 0.0, %v8201_v61  ;;  %v8069_v15 = vmul.f32 0.0, %v15399_v11  ;;  %v8202_v54 = vmul.f32 %v15399_v11, %v15399_v11  ;;  %v18011_v32 = vld [vmem:[#allocation75_spill] sm:$0xff] }
 0x752   : > { %v7642_v37 = vpop.f32.mrb[56].mxu0 }
 0x753   : > { %v8328_v10 = vadd.f32 %v8327_v53, %v8265_v24  ;;  %v8266_v17 = vmul.f32 0.0, %v8202_v54  ;;  %v7932_v7 = vadd.f32 %v15171_v62, %v7642_v37  ;;  %v8132_v2 = vadd.f32 %v8131_v1, %v8069_v15  ;;  %v7644_v50 = vpop.f32.mrb[57].mxu0  ;;  %v18013_v37 = vld [vmem:[#allocation87_spill] sm:$0xff] }
 0x754   : > { %v7645_v41 = vpop.f32.mrb[58].mxu0 }
 0x755   : > { %v8329_v0 = vadd.f32 %v8328_v10, %v8266_v17  ;;  %v15406_v6 = vadd.f32 %v7932_v7, %v18009_v59  ;;  %v7935_v52 = vadd.f32 %v15181_v27, %v7645_v41  ;;  %v7647_v36 = vpop.f32.mrb[59].mxu0  ;;  %v18015_v41 = vld [vmem:[#allocation55_spill] sm:$0xff] }
 0x757   : > { %18010 = vst [vmem:[#allocation62_spill] sm:$0xff] %v15406_v6  ;;  %v8133_v35 = vadd.f32 %v8132_v2, %v15406_v6  ;;  %v8203_v38 = vmul.f32 %v15406_v6, %v15406_v6  ;;  %v15413_v53 = vadd.f32 %v7935_v52, %v18011_v32 }
 0x759   : > { %18012 = vst [vmem:[#allocation31_spill] sm:$0xff] %v15413_v53  ;;  %v8330_v61 = vadd.f32 %v8329_v0, %v8203_v38  ;;  %v8134_v62 = vadd.f32 %v8133_v35, %v15413_v53  ;;  %v8204_v4 = vmul.f32 %v15413_v53, %v15413_v53 }
 0x75a   : > { %v7650_v1 = vpop.f32.mrb[60].mxu0 }
 0x75b   : > { %v8331_v24 = vadd.f32 %v8330_v61, %v8204_v4  ;;  %v7940_v15 = vadd.f32 %v15164_v3, %v7650_v1  ;;  %v7652_v27 = vpop.f32.mrb[61].mxu0 }
 0x75c   : > { %v7653_v54 = vpop.f32.mrb[62].mxu0 }
 0x75d   : > { %v15420_v10 = vadd.f32 %v7940_v15, %v18013_v37  ;;  %v7943_v17 = vadd.f32 %v15175_v14, %v7653_v54  ;;  %v7655_v7 = vpop.f32.mrb[63].mxu0 }
 0x75f   : > { %18014 = vst [vmem:[#allocation47_spill] sm:$0xff] %v15420_v10  ;;  %v8072_v2 = vmul.f32 0.0, %v15420_v10  ;;  %v8205_v50 = vmul.f32 %v15420_v10, %v15420_v10  ;;  %v15427_v0 = vadd.f32 %v7943_v17, %v18015_v41 }
 0x761   : > { %18016 = vst [vmem:[#allocation65_spill] sm:$0xff] %v15427_v0  ;;  %v8135_v59 = vadd.f32 %v8134_v62, %v8072_v2  ;;  %v8269_v52 = vmul.f32 0.0, %v8205_v50  ;;  %v8073_v3 = vmul.f32 0.0, %v15427_v0  ;;  %v8206_v36 = vmul.f32 %v15427_v0, %v15427_v0 }
 0x763   : > { %v8332_v35 = vadd.f32 %v8331_v24, %v8269_v52  ;;  %v8136_v38 = vadd.f32 %v8135_v59, %v8073_v3  ;;  %v8270_v32 = vmul.f32 0.0, %v8206_v36 }
 0x765   : > { %v8137_v14 = vrot.slane %v8136_v38, 4  ;;  %v8333_v61 = vadd.f32 %v8332_v35, %v8270_v32  ;;  %v18017_v35 = vld [vmem:[#allocation110_spill] sm:$0xff]  ;;  %v18018_v32 = vld [vmem:[#allocation4_spill] sm:$0xff] }
 0x767   : > { %v8138_v4 = vadd.f32 %v8137_v14, %v8136_v38  ;;  %v8334_v1 = vrot.slane %v8333_v61, 4 }
 0x769   : > { %v8139_v15 = vrot.slane %v8138_v4, 2  ;;  %v8335_v27 = vadd.f32 %v8334_v1, %v8333_v61  ;;  %v18019_v61 = vld [vmem:[#allocation108_spill] sm:$0xff] }
 0x76b   : > { %v8140_v54 = vadd.f32 %v8139_v15, %v8138_v4  ;;  %v8336_v37 = vrot.slane %v8335_v27, 2 }
 0x76d   : > { %v8141_v17 = vrot.slane %v8140_v54, 1  ;;  %v8337_v7 = vadd.f32 %v8336_v37, %v8335_v27  ;;  %v18022_v37 = vld [vmem:[#allocation89_spill] sm:$0xff] }
 0x76f   : > { %v8142_v62 = vadd.f32 %v8141_v17, %v8140_v54  ;;  %v8338_v2 = vrot.slane %v8337_v7, 1  ;;  %v18023_v17 = vld [vmem:[#allocation11_spill] sm:$0xff] }
 0x771   : > { %v8339_v50 = vadd.f32 %v8338_v2, %v8337_v7  ;;  %v15432_v41 = vmul.f32 0.00390625, %v8142_v62  ;;  %v18024_v7 = vld [vmem:[#allocation102_spill] sm:$0xff]  ;;  %v18025_v62 = vld [vmem:[#allocation80_spill] sm:$0xff] }
 0x773   : > { %v8341_v33 = vmul.f32 0.00390625, %v8339_v50  ;;  %v8342_v24 = vmul.f32 %v15432_v41, %v15432_v41  ;;  %v8350_v2 = vsub.f32 %v14925_v46, %v15432_v41  ;;  %v18020_v50 = vld [vmem:[#allocation29_spill] sm:$0xff]  ;;  %v8353_v15 = vsub.f32 %v18022_v37, %v15432_v41  ;;  %v18026_v46 = vld [vmem:[#allocation43_spill] sm:$0xff] }
 0x774   : > { %v8355_v1 = vsub.f32 %v18024_v7, %v15432_v41  ;;  %v8356_v4 = vsub.f32 %v18025_v62, %v15432_v41  ;;  %v8357_v14 = vsub.f32 %v18026_v46, %v15432_v41  ;;  %v18029_v37 = vld [vmem:[#allocation91_spill] sm:$0xff]  ;;  %v18033_v46 = vld [vmem:[#allocation106_spill] sm:$0xff] }
 0x775   : > { %v8343_v59 = vsub.f32 %v8341_v33, %v8342_v24  ;;  %v8351_v24 = vsub.f32 %v18020_v50, %v15432_v41  ;;  %v8354_v33 = vsub.f32 %v18023_v17, %v15432_v41  ;;  %v18027_v50 = vld [vmem:[#allocation111_spill] sm:$0xff]  ;;  %v8360_v36 = vsub.f32 %v18029_v37, %v15432_v41  ;;  %v18030_v17 = vld [vmem:[#allocation57_spill] sm:$0xff]  ;;  %v18036_v37 = vld [vmem:[#allocation28_spill] sm:$0xff] }
 0x776   : > { %v8358_v38 = vsub.f32 %v18027_v50, %v15432_v41  ;;  %v8361_v3 = vsub.f32 %v18030_v17, %v15432_v41  ;;  %v18031_v7 = vld [vmem:[#allocation51_spill] sm:$0xff]  ;;  %v8364_v53 = vsub.f32 %v18033_v46, %v15432_v41  ;;  %v8367_v11 = vsub.f32 %v18036_v37, %v15432_v41  ;;  %v18038_v46 = vld [vmem:[#allocation61_spill] sm:$0xff] }
 0x777   : > { %v8344_v52 = vmax.f32 %v8343_v59, 0.0  ;;  %v18021_v59 = vld [vmem:[#allocation58_spill] sm:$0xff]  ;;  %v8362_v0 = vsub.f32 %v18031_v7, %v15432_v41  ;;  %v18032_v62 = vld [vmem:[#allocation27_spill] sm:$0xff]  ;;  %v8368_v17 = vsub.f32 %v15080_v21, %v15432_v41  ;;  %v18037_v7 = vld [vmem:[#allocation81_spill] sm:$0xff]  ;;  %v8371_v47 = vsub.f32 %v18038_v46, %v15432_v41 }
 0x778   : > { %v8352_v54 = vsub.f32 %v18021_v59, %v15432_v41  ;;  %v8363_v10 = vsub.f32 %v18032_v62, %v15432_v41  ;;  %v18034_v50 = vld [vmem:[#allocation23_spill] sm:$0xff]  ;;  %v8369_v25 = vsub.f32 %v18037_v7, %v15432_v41  ;;  %v8370_v62 = vsub.f32 %v15107_v45, %v15432_v41 }
 0x779   : > { %v8409_v27 = vadd.f32 1e-05, %v8344_v52  ;;  %v18028_v52 = vld [vmem:[#allocation49_spill] sm:$0xff]  ;;  %v8365_v6 = vsub.f32 %v18034_v50, %v15432_v41  ;;  %v8372_v50 = vsub.f32 %v15129_v44, %v15432_v41  ;;  %v8374_v37 = vsub.f32 %v15152_v34, %v15432_v41 }
 0x77a   : > { %v8359_v59 = vsub.f32 %v18028_v52, %v15432_v41  ;;  %v8375_v21 = vsub.f32 %v15168_v40, %v15432_v41  ;;  %v8376_v7 = vsub.f32 %v15179_v9, %v15432_v41  ;;  %v8377_v45 = vsub.f32 %v15188_v63, %v15432_v41 }
 0x77b   : > { %10138 = vrsqrt.f32 %v8409_v27  ;;  %v18035_v27 = vld [vmem:[#allocation45_spill] sm:$0xff]  ;;  %v8378_v46 = vsub.f32 %v15195_v56, %v15432_v41  ;;  %v8379_v44 = vsub.f32 %v15206_v43, %v15432_v41  ;;  %v8381_v34 = vsub.f32 %v15222_v18, %v15432_v41 }
 0x77c   : > { %v8366_v52 = vsub.f32 %v18035_v27, %v15432_v41  ;;  %v8373_v27 = vsub.f32 %v15144_v51, %v15432_v41  ;;  %v8380_v51 = vsub.f32 %v15210_v55, %v15432_v41  ;;  %v8382_v40 = vsub.f32 %v15229_v5, %v15432_v41 }
 0x77d   : > { %v8383_v9 = vsub.f32 %v15236_v28, %v15432_v41  ;;  %v8384_v63 = vsub.f32 %v15243_v23, %v15432_v41  ;;  %v8385_v56 = vsub.f32 %v15254_v8, %v15432_v41  ;;  %v8386_v43 = vsub.f32 %v15258_v12, %v15432_v41 }
 0x77e   : > { %v8387_v55 = vsub.f32 %v15270_v16, %v15432_v41  ;;  %v8388_v18 = vsub.f32 %v15277_v48, %v15432_v41  ;;  %v8389_v5 = vsub.f32 %v15284_v58, %v15432_v41  ;;  %v8390_v28 = vsub.f32 %v15291_v42, %v15432_v41 }
 0x77f   : > { %v8391_v23 = vsub.f32 %v15302_v49, %v15432_v41  ;;  %v8392_v8 = vsub.f32 %v15306_v20, %v15432_v41  ;;  %v8393_v12 = vsub.f32 %v15318_v29, %v15432_v41  ;;  %v8394_v16 = vsub.f32 %v15325_v57, %v15432_v41  ;;  %v18039_v20 = vld [vmem:[#allocation98_spill] sm:$0xff] }
 0x780   : > { %v8395_v48 = vsub.f32 %v15332_v30, %v15432_v41  ;;  %v8396_v58 = vsub.f32 %v15339_v60, %v15432_v41  ;;  %v8397_v42 = vsub.f32 %v15350_v19, %v15432_v41  ;;  %v8398_v49 = vsub.f32 %v15354_v31, %v15432_v41 }
 0x781   : > { %v8399_v29 = vsub.f32 %v18039_v20, %v15432_v41  ;;  %v18040_v57 = vsub.f32 %v14907_v26, %v15432_v41  ;;  %v18041_v30 = vsub.f32 %v14911_v22, %v15432_v41  ;;  %v18042_v19 = vsub.f32 %v18017_v35, %v15432_v41 }
 0x782   : > { %v18043_v20 = vsub.f32 %v18018_v32, %v15432_v41 }
 0x785   : > { %v15556_v39 = vpop.eup %10138 }
 0x786   : > { %v15570_v13 = vmul.f32 %v15556_v39, %v18040_v57  ;;  %v15576_v60 = vmul.f32 %v15556_v39, %v18041_v30  ;;  %v15582_v31 = vmul.f32 %v15556_v39, %v18042_v19  ;;  %v15588_v26 = vmul.f32 %v15556_v39, %v18043_v20 }
 0x787   : > { %v18044_v57 = vsub.f32 %v18019_v61, %v15432_v41  ;;  %v15597_v30 = vmul.f32 %v15556_v39, %v8350_v2  ;;  %v15600_v35 = vmul.f32 %v15556_v39, %v8351_v24  ;;  %v15603_v19 = vmul.f32 %v15556_v39, %v8352_v54 }
 0x788   : > { %v15606_v32 = vmul.f32 %v15556_v39, %v8353_v15  ;;  %v15609_v20 = vmul.f32 %v15556_v39, %v8354_v33  ;;  %v15612_v61 = vmul.f32 %v15556_v39, %v8355_v1  ;;  %v15618_v2 = vmul.f32 %v15556_v39, %v8357_v14 }
 0x789   : > { %v15594_v22 = vmul.f32 %v15556_v39, %v18044_v57  ;;  %v15615_v57 = vmul.f32 %v15556_v39, %v8356_v4  ;;  %v15621_v24 = vmul.f32 %v15556_v39, %v8358_v38  ;;  %v15624_v54 = vmul.f32 %v15556_v39, %v8359_v59 }
 0x78a   : > { %v15627_v15 = vmul.f32 %v15556_v39, %v8360_v36  ;;  %v15630_v33 = vmul.f32 %v15556_v39, %v8361_v3  ;;  %v15633_v1 = vmul.f32 %v15556_v39, %v8362_v0  ;;  %v15636_v4 = vmul.f32 %v15556_v39, %v8363_v10 }
 0x78b   : > { %v15639_v14 = vmul.f32 %v15556_v39, %v8364_v53  ;;  %v15642_v38 = vmul.f32 %v15556_v39, %v8365_v6  ;;  %v15645_v59 = vmul.f32 %v15556_v39, %v8366_v52  ;;  %v15648_v36 = vmul.f32 %v15556_v39, %v8367_v11 }
 0x78c   : > { %v15651_v3 = vmul.f32 %v15556_v39, %v8368_v17  ;;  %v15654_v0 = vmul.f32 %v15556_v39, %v8369_v25  ;;  %v15657_v10 = vmul.f32 %v15556_v39, %v8370_v62  ;;  %v15660_v53 = vmul.f32 %v15556_v39, %v8371_v47 }
 0x78d   : > { %v15663_v6 = vmul.f32 %v15556_v39, %v8372_v50  ;;  %v15666_v52 = vmul.f32 %v15556_v39, %v8373_v27  ;;  %v15669_v11 = vmul.f32 %v15556_v39, %v8374_v37  ;;  %v15672_v17 = vmul.f32 %v15556_v39, %v8375_v21 }
 0x78e   : > { %v15675_v25 = vmul.f32 %v15556_v39, %v8376_v7  ;;  %v15678_v62 = vmul.f32 %v15556_v39, %v8377_v45  ;;  %v15681_v47 = vmul.f32 %v15556_v39, %v8378_v46  ;;  %v15684_v50 = vmul.f32 %v15556_v39, %v8379_v44 }
 0x78f   : > { %v15687_v27 = vmul.f32 %v15556_v39, %v8380_v51  ;;  %v15690_v37 = vmul.f32 %v15556_v39, %v8381_v34  ;;  %v15693_v21 = vmul.f32 %v15556_v39, %v8382_v40  ;;  %v15696_v7 = vmul.f32 %v15556_v39, %v8383_v9 }
 0x790   : > { %v15699_v45 = vmul.f32 %v15556_v39, %v8384_v63  ;;  %v15702_v46 = vmul.f32 %v15556_v39, %v8385_v56  ;;  %v15705_v44 = vmul.f32 %v15556_v39, %v8386_v43  ;;  %v15708_v51 = vmul.f32 %v15556_v39, %v8387_v55 }
 0x791   : > { %v15711_v34 = vmul.f32 %v15556_v39, %v8388_v18  ;;  %v15714_v40 = vmul.f32 %v15556_v39, %v8389_v5  ;;  %v15717_v9 = vmul.f32 %v15556_v39, %v8390_v28  ;;  %v15720_v63 = vmul.f32 %v15556_v39, %v8391_v23 }
 0x792   : > { %v15723_v56 = vmul.f32 %v15556_v39, %v8392_v8  ;;  %v15726_v43 = vmul.f32 %v15556_v39, %v8393_v12  ;;  %v15729_v55 = vmul.f32 %v15556_v39, %v8394_v16  ;;  %v15732_v18 = vmul.f32 %v15556_v39, %v8395_v48  ;;  %v18053_v12 = vld [vmem:[#allocation22_spill] sm:$0xff] }
 0x793   : > { %18045 = vst [vmem:[#allocation100_spill] sm:$0xff] %v15717_v9  ;;  %v15735_v5 = vmul.f32 %v15556_v39, %v8396_v58  ;;  %v15738_v28 = vmul.f32 %v15556_v39, %v8397_v42  ;;  %v15741_v23 = vmul.f32 %v15556_v39, %v8398_v49  ;;  %v15744_v8 = vmul.f32 %v15556_v39, %v8399_v29  ;;  %v18056_v48 = vld [vmem:[#allocation30_spill] sm:$0xff]  ;;  %v18059_v42 = vld [vmem:[#allocation85_spill] sm:$0xff]  ;;  %v18062_v29 = vld [vmem:[#allocation8_spill] sm:$0xff] }
 0x794   : > { %18046 = vst [vmem:[#allocation71_spill] sm:$0xff] %v15726_v43  ;;  %18047 = vst [vmem:[#allocation15_spill] sm:$0xff] %v15729_v55  ;;  %v18054_v43 = vsub.f32 %v18053_v12, %v15432_v41  ;;  %vm8475_vm5 = vcmp.gt.f32.partialorder %v15570_v13, 0.0  ;;  %vm8476_vm1 = vcmp.gt.f32.partialorder %v15576_v60, 0.0  ;;  %vm8477_vm2 = vcmp.gt.f32.partialorder %v15582_v31, 0.0 }
 0x795   : > { %18048 = vst [vmem:[#allocation72_spill] sm:$0xff] %v15732_v18  ;;  %18049 = vst [vmem:[#allocation35_spill] sm:$0xff] %v15735_v5  ;;  %v18057_v18 = vsub.f32 %v18056_v48, %v15432_v41  ;;  %vm8478_vm6 = vcmp.gt.f32.partialorder %v15588_v26, 0.0  ;;  %vm8479_vm10 = vcmp.gt.f32.partialorder %v15594_v22, 0.0  ;;  %vm8480_vm13 = vcmp.gt.f32.partialorder %v15597_v30, 0.0 }
 0x796   : > { %18050 = vst [vmem:[#allocation76_spill] sm:$0xff] %v15738_v28  ;;  %18051 = vst [vmem:[#allocation78_spill] sm:$0xff] %v15741_v23  ;;  %v15750_v16 = vmul.f32 %v15556_v39, %v18054_v43  ;;  %v18060_v28 = vsub.f32 %v18059_v42, %v15432_v41  ;;  %v18065_v43 = vld [vmem:[#allocation14_spill] sm:$0xff]  ;;  %vm8481_vm8 = vcmp.gt.f32.partialorder %v15600_v35, 0.0  ;;  %vm8482_vm4 = vcmp.gt.f32.partialorder %v15603_v19, 0.0 }
 0x797   : > { %18052 = vst [vmem:[#allocation12_spill] sm:$0xff] %v15744_v8  ;;  %v15756_v58 = vmul.f32 %v15556_v39, %v18057_v18  ;;  %v18063_v8 = vsub.f32 %v18062_v29, %v15432_v41  ;;  %v18068_v18 = vld [vmem:[#allocation62_spill] sm:$0xff]  ;;  %vm8483_vm14 = vcmp.gt.f32.partialorder %v15606_v32, 0.0  ;;  %vm8484_vm11 = vcmp.gt.f32.partialorder %v15609_v20, 0.0 }
 0x798   : > { %18055 = vst [vmem:[#allocation86_spill] sm:$0xff] %v15750_v16  ;;  %v15762_v49 = vmul.f32 %v15556_v39, %v18060_v28  ;;  %v18066_v16 = vsub.f32 %v18065_v43, %v15432_v41  ;;  %v18071_v28 = vld [vmem:[#allocation31_spill] sm:$0xff]  ;;  %vm8485_vm9 = vcmp.gt.f32.partialorder %v15612_v61, 0.0  ;;  %vm8486_vm15 = vcmp.gt.f32.partialorder %v15615_v57, 0.0 }
 0x799   : > { %18058 = vst [vmem:[#allocation94_spill] sm:$0xff] %v15756_v58  ;;  %v15768_v12 = vmul.f32 %v15556_v39, %v18063_v8  ;;  %v18069_v58 = vsub.f32 %v18068_v18, %v15432_v41  ;;  %v18074_v8 = vld [vmem:[#allocation47_spill] sm:$0xff]  ;;  %vm8487_vm3 = vcmp.gt.f32.partialorder %v15618_v2, 0.0  ;;  %vm8488_vm12 = vcmp.gt.f32.partialorder %v15621_v24, 0.0 }
 0x79a   : > { %18061 = vst [vmem:[#allocation90_spill] sm:$0xff] %v15762_v49  ;;  %v15774_v48 = vmul.f32 %v15556_v39, %v18066_v16  ;;  %v18072_v49 = vsub.f32 %v18071_v28, %v15432_v41  ;;  %v18077_v16 = vld [vmem:[#allocation65_spill] sm:$0xff]  ;;  %v8545_v28 = vmul.f32 0.2, %v15600_v35  ;;  %v15839_v5 = vmul.f32 0.2, %v15618_v2 }
 0x79b   : > { %18064 = vst [vmem:[#allocation92_spill] sm:$0xff] %v15768_v12  ;;  %v15780_v42 = vmul.f32 %v15556_v39, %v18069_v58  ;;  %v18075_v12 = vsub.f32 %v18074_v8, %v15432_v41  ;;  %v8541_v58 = vmul.f32 0.2, %v15582_v31  ;;  %v8546_v8 = vmul.f32 0.2, %v15603_v19 }
 0x79c   : > { %18067 = vst [vmem:[#allocation5_spill] sm:$0xff] %v15774_v48  ;;  %v15786_v29 = vmul.f32 %v15556_v39, %v18072_v49  ;;  %v18078_v48 = vsub.f32 %v18077_v16, %v15432_v41  ;;  %v8540_v41 = vmul.f32 0.2, %v15576_v60  ;;  %v8542_v49 = vmul.f32 0.2, %v15588_v26 }
 0x79d   : > { %18070 = vst [vmem:[#allocation13_spill] sm:$0xff] %v15780_v42  ;;  %v15792_v43 = vmul.f32 %v15556_v39, %v18075_v12  ;;  %v8543_v12 = vmul.f32 0.2, %v15594_v22  ;;  %v8547_v16 = vmul.f32 0.2, %v15606_v32  ;;  %vm8489_vm0 = vcmp.gt.f32.partialorder %v15624_v54, 0.0 }
 0x79e   : > { %18073 = vst [vmem:[#allocation38_spill] sm:$0xff] %v15786_v29  ;;  %v15798_v18 = vmul.f32 %v15556_v39, %v18078_v48  ;;  %v8539_v39 = vmul.f32 0.2, %v15570_v13  ;;  %v8544_v48 = vmul.f32 0.2, %v15597_v30  ;;  %v15835_v23 = vsel %vm8476_vm1, %v15576_v60, %v8540_v41 }
 0x79f   : > { %18076 = vst [vmem:[#allocation63_spill] sm:$0xff] %v15792_v43  ;;  %v8548_v43 = vmul.f32 0.2, %v15609_v20  ;;  %v8549_v29 = vmul.f32 0.2, %v15612_v61  ;;  %18081 = vst [vmem:[#allocation93_spill] sm:$0xff] %v15835_v23 }
 0x7a0   : > { %18079 = vst [vmem:[#allocation59_spill] sm:$0xff] %v15798_v18  ;;  %v15824_v18 = vsel %vm8475_vm5, %v15570_v13, %v8539_v39  ;;  %v15830_v42 = vmul.f32 0.2, %v15615_v57  ;;  %v15842_v13 = vmul.f32 0.2, %v15621_v24  ;;  %vm8490_vm7 = vcmp.gt.f32.partialorder %v15627_v15, 0.0 }
 0x7a1   : > { %18080 = vst [vmem:[#allocation39_spill] sm:$0xff] %v15824_v18  ;;  %v15845_v39 = vmul.f32 0.2, %v15624_v54  ;;  %v15850_v18 = vsel %vm8477_vm2, %v15582_v31, %v8541_v58  ;;  %v15854_v60 = vmul.f32 0.2, %v15627_v15  ;;  %vm8491_vm5 = vcmp.gt.f32.partialorder %v15630_v33, 0.0 }
 0x7a2   : > { %18083 = vst [vmem:[#allocation17_spill] sm:$0xff] %v15850_v18  ;;  %v15857_v41 = vmul.f32 0.2, %v15630_v33  ;;  %v15860_v23 = vmul.f32 0.2, %v15633_v1  ;;  %vm8492_vm1 = vcmp.gt.f32.partialorder %v15633_v1, 0.0 }
 0x7a3   : > { %18082 = vst [vmem:[#allocation60_spill] sm:$0xff] %v15845_v39  ;;  %v15865_v39 = vsel %vm8478_vm6, %v15588_v26, %v8542_v49  ;;  %v15869_v31 = vmul.f32 0.2, %v15636_v4  ;;  %v15872_v58 = vmul.f32 0.2, %v15639_v14  ;;  %vm8493_vm2 = vcmp.gt.f32.partialorder %v15636_v4, 0.0 }
 0x7a4   : > { %18084 = vst [vmem:[#allocation42_spill] sm:$0xff] %v15860_v23  ;;  %18085 = vst [vmem:[#allocation26_spill] sm:$0xff] %v15865_v39  ;;  %v15875_v18 = vmul.f32 0.2, %v15642_v38  ;;  %v15880_v23 = vsel %vm8479_vm10, %v15594_v22, %v8543_v12  ;;  %v15884_v26 = vmul.f32 0.2, %v15645_v59 }
 0x7a5   : > { %18087 = vst [vmem:[#allocation20_spill] sm:$0xff] %v15880_v23  ;;  %v15887_v49 = vmul.f32 0.2, %v15648_v36  ;;  %v15890_v39 = vmul.f32 0.2, %v15651_v3  ;;  %vm8494_vm6 = vcmp.gt.f32.partialorder %v15639_v14, 0.0 }
 0x7a6   : > { %18086 = vst [vmem:[#allocation97_spill] sm:$0xff] %v15875_v18  ;;  %v15895_v18 = vsel %vm8480_vm13, %v15597_v30, %v8544_v48  ;;  %v15899_v22 = vmul.f32 0.2, %v15654_v0  ;;  %v15902_v12 = vmul.f32 0.2, %v15657_v10  ;;  %vm18144_vm10 = vcmp.gt.f32.partialorder %v15642_v38, 0.0 }
 0x7a7   : > { %18088 = vst [vmem:[#allocation24_spill] sm:$0xff] %v15890_v39  ;;  %18089 = vst [vmem:[#allocation103_spill] sm:$0xff] %v15895_v18  ;;  %v15905_v23 = vmul.f32 0.2, %v15660_v53  ;;  %v15910_v39 = vsel %vm8481_vm8, %v15600_v35, %v8545_v28  ;;  %v15914_v30 = vmul.f32 0.2, %v15663_v6 }
 0x7a8   : > { %18091 = vst [vmem:[#allocation32_spill] sm:$0xff] %v15910_v39  ;;  %v15917_v48 = vmul.f32 0.2, %v15666_v52  ;;  %v15920_v18 = vmul.f32 0.2, %v15669_v11  ;;  %vm8497_vm8 = vcmp.gt.f32.partialorder %v15648_v36, 0.0 }
 0x7a9   : > { %18090 = vst [vmem:[#allocation25_spill] sm:$0xff] %v15905_v23  ;;  %v15925_v23 = vsel %vm8482_vm4, %v15603_v19, %v8546_v8  ;;  %v15931_v35 = vmul.f32 0.2, %v15672_v17  ;;  %v15934_v28 = vmul.f32 0.2, %v15675_v25  ;;  %v15942_v19 = vsel %vm8483_vm14, %v15606_v32, %v8547_v16 }
 0x7aa   : > { %18092 = vst [vmem:[#allocation33_spill] sm:$0xff] %v15925_v23  ;;  %v15937_v39 = vmul.f32 0.2, %v15678_v62  ;;  %18094 = vst [vmem:[#allocation7_spill] sm:$0xff] %v15942_v19  ;;  %v15949_v8 = vmul.f32 0.2, %v15681_v47  ;;  %v15960_v32 = vsel %vm8484_vm11, %v15609_v20, %v8548_v43  ;;  %v15978_v20 = vsel %vm8485_vm9, %v15612_v61, %v8549_v29 }
 0x7ab   : > { %v15952_v23 = vmul.f32 0.2, %v15684_v50  ;;  %18096 = vst [vmem:[#allocation46_spill] sm:$0xff] %v15960_v32  ;;  %vm8501_vm14 = vcmp.gt.f32.partialorder %v15660_v53, 0.0  ;;  %v15967_v16 = vmul.f32 0.2, %v15690_v37  ;;  %v15997_v61 = vsel %vm8486_vm15, %v15615_v57, %v15830_v42 }
 0x7ac   : > { %18093 = vst [vmem:[#allocation37_spill] sm:$0xff] %v15937_v39  ;;  %v15955_v39 = vmul.f32 0.2, %v15687_v27  ;;  %v15970_v19 = vmul.f32 0.2, %v15693_v21  ;;  %18098 = vst [vmem:[#allocation66_spill] sm:$0xff] %v15978_v20  ;;  %v16016_v57 = vsel %vm8487_vm3, %v15618_v2, %v15839_v5  ;;  %v16035_v2 = vsel %vm8488_vm12, %v15621_v24, %v15842_v13 }
 0x7ad   : > { %vm8505_vm11 = vcmp.gt.f32.partialorder %v15672_v17, 0.0  ;;  %v15985_v43 = vmul.f32 0.2, %v15699_v45  ;;  %v15988_v32 = vmul.f32 0.2, %v15702_v46  ;;  %18100 = vst [vmem:[#allocation48_spill] sm:$0xff] %v15997_v61 }
 0x7ae   : > { %18095 = vst [vmem:[#allocation18_spill] sm:$0xff] %v15955_v39  ;;  %v15973_v39 = vmul.f32 0.2, %v15696_v7  ;;  %vm8509_vm9 = vcmp.gt.f32.partialorder %v15684_v50, 0.0  ;;  %v16004_v29 = vmul.f32 0.2, %v15708_v51 }
 0x7af   : > { %v16007_v20 = vmul.f32 0.2, %v15711_v34  ;;  %18103 = vst [vmem:[#allocation6_spill] sm:$0xff] %v16016_v57  ;;  %vm8513_vm15 = vcmp.gt.f32.partialorder %v15696_v7, 0.0  ;;  %v16023_v42 = vmul.f32 0.2, %v15717_v9 }
 0x7b0   : > { %18097 = vst [vmem:[#allocation64_spill] sm:$0xff] %v15973_v39  ;;  %v15991_v39 = vmul.f32 0.2, %v15705_v44  ;;  %v16026_v61 = vmul.f32 0.2, %v15720_v63  ;;  %18107 = vst [vmem:[#allocation74_spill] sm:$0xff] %v16035_v2 }
 0x7b1   : > { %18101 = vst [vmem:[#allocation69_spill] sm:$0xff] %v16007_v20  ;;  %18104 = vst [vmem:[#allocation73_spill] sm:$0xff] %v16023_v42  ;;  %vm8517_vm3 = vcmp.gt.f32.partialorder %v15708_v51, 0.0  ;;  %v18108_v5 = vld [vmem:[#allocation71_spill] sm:$0xff]  ;;  %v18113_v20 = vld [vmem:[#allocation60_spill] sm:$0xff]  ;;  %vm8521_vm12 = vcmp.gt.f32.partialorder %v15720_v63, 0.0 }
 0x7b2   : > { %18099 = vst [vmem:[#allocation96_spill] sm:$0xff] %v15991_v39  ;;  %v16010_v39 = vmul.f32 0.2, %v15714_v40  ;;  %18105 = vst [vmem:[#allocation88_spill] sm:$0xff] %v16026_v61  ;;  %v16042_v57 = vmul.f32 0.2, %v18108_v5  ;;  %v16054_v24 = vsel %vm8489_vm0, %v15624_v54, %v18113_v20  ;;  %v16073_v54 = vsel %vm8490_vm7, %v15627_v15, %v15854_v60 }
 0x7b3   : > { %v16045_v61 = vmul.f32 0.2, %v15729_v55  ;;  %18114 = vst [vmem:[#allocation19_spill] sm:$0xff] %v16054_v24  ;;  %v18115_v13 = vld [vmem:[#allocation35_spill] sm:$0xff]  ;;  %18121 = vst [vmem:[#allocation54_spill] sm:$0xff] %v16073_v54  ;;  %v18122_v20 = vld [vmem:[#allocation12_spill] sm:$0xff]  ;;  %v16092_v15 = vsel %vm8491_vm5, %v15630_v33, %v15857_v41 }
 0x7b4   : > { %18102 = vst [vmem:[#allocation70_spill] sm:$0xff] %v16010_v39  ;;  %v16029_v39 = vmul.f32 0.2, %v15723_v56  ;;  %18109 = vst [vmem:[#allocation107_spill] sm:$0xff] %v16042_v57  ;;  %v16061_v2 = vmul.f32 0.2, %v18115_v13 }
 0x7b5   : > { %18110 = vst [vmem:[#allocation41_spill] sm:$0xff] %v16045_v61  ;;  %v18117_v61 = vld [vmem:[#allocation76_spill] sm:$0xff]  ;;  %v16080_v24 = vmul.f32 0.2, %v18122_v20  ;;  %18128 = vst [vmem:[#allocation21_spill] sm:$0xff] %v16092_v15  ;;  %vm8529_vm7 = vcmp.gt.f32.partialorder %v18122_v20, 0.0 }
 0x7b6   : > { %18106 = vst [vmem:[#allocation105_spill] sm:$0xff] %v16029_v39  ;;  %v18111_v39 = vld [vmem:[#allocation72_spill] sm:$0xff]  ;;  %18116 = vst [vmem:[#allocation83_spill] sm:$0xff] %v16061_v2  ;;  %v16064_v57 = vmul.f32 0.2, %v18117_v61  ;;  %v18129_v60 = vld [vmem:[#allocation90_spill] sm:$0xff] }
 0x7b7   : > { %v16048_v42 = vmul.f32 0.2, %v18111_v39  ;;  %vm8525_vm0 = vcmp.gt.f32.partialorder %v18111_v39, 0.0  ;;  %18123 = vst [vmem:[#allocation109_spill] sm:$0xff] %v16080_v24  ;;  %v16099_v54 = vmul.f32 0.2, %v18129_v60 }
 0x7b8   : > { %18118 = vst [vmem:[#allocation101_spill] sm:$0xff] %v16064_v57  ;;  %v18124_v57 = vld [vmem:[#allocation86_spill] sm:$0xff]  ;;  %v18137_v41 = vld [vmem:[#allocation13_spill] sm:$0xff] }
 0x7b9   : > { %18112 = vst [vmem:[#allocation82_spill] sm:$0xff] %v16048_v42  ;;  %v18119_v42 = vld [vmem:[#allocation78_spill] sm:$0xff]  ;;  %v16083_v2 = vmul.f32 0.2, %v18124_v57  ;;  %18130 = vst [vmem:[#allocation77_spill] sm:$0xff] %v16099_v54 }
 0x7ba   : > { %v16067_v9 = vmul.f32 0.2, %v18119_v42  ;;  %v18135_v61 = vld [vmem:[#allocation42_spill] sm:$0xff]  ;;  %v16118_v60 = vmul.f32 0.2, %v18137_v41 }
 0x7bb   : > { %18125 = vst [vmem:[#allocation16_spill] sm:$0xff] %v16083_v2  ;;  %v18131_v2 = vld [vmem:[#allocation92_spill] sm:$0xff]  ;;  %v16111_v33 = vsel %vm8492_vm1, %v15633_v1, %v18135_v61  ;;  %v18138_v15 = vld [vmem:[#allocation38_spill] sm:$0xff]  ;;  %v16130_v1 = vsel %vm8493_vm2, %v15636_v4, %v15869_v31  ;;  %v18142_v61 = vld [vmem:[#allocation59_spill] sm:$0xff]  ;;  %vm18145_vm2 = vcmp.gt.f32.partialorder %v15645_v59, 0.0  ;;  %v16159_v31 = vsel %vm8497_vm8, %v15648_v36, %v15887_v49 }
 0x7bc   : > { %18120 = vst [vmem:[#allocation52_spill] sm:$0xff] %v16067_v9  ;;  %v18126_v9 = vld [vmem:[#allocation94_spill] sm:$0xff]  ;;  %v16102_v24 = vmul.f32 0.2, %v18131_v2  ;;  %18136 = vst [vmem:[#allocation56_spill] sm:$0xff] %v16111_v33  ;;  %vm8533_vm5 = vcmp.gt.f32.partialorder %v18131_v2, 0.0  ;;  %v16153_v4 = vsel %vm18145_vm2, %v15645_v59, %v15884_v26 }
 0x7bd   : > { %v16086_v55 = vmul.f32 0.2, %v18126_v9  ;;  %vm8538_vm13 = vcmp.gt.f32.partialorder %v18142_v61, 0.0  ;;  %v16135_v33 = vmul.f32 0.2, %v18142_v61  ;;  %vm18149_vm2 = vcmp.gt.f32.partialorder %v15657_v10, 0.0 }
 0x7be   : > { %18132 = vst [vmem:[#allocation53_spill] sm:$0xff] %v16102_v24  ;;  %v16121_v24 = vmul.f32 0.2, %v18138_v15  ;;  %v16141_v15 = vsel %vm8494_vm6, %v15639_v14, %v15872_v58  ;;  %v18146_v14 = vld [vmem:[#allocation24_spill] sm:$0xff]  ;;  %vm18147_vm6 = vcmp.gt.f32.partialorder %v15651_v3, 0.0  ;;  %v16177_v59 = vsel %vm18149_vm2, %v15657_v10, %v15902_v12  ;;  %v18150_v36 = vld [vmem:[#allocation25_spill] sm:$0xff] }
 0x7bf   : > { %18127 = vst [vmem:[#allocation40_spill] sm:$0xff] %v16086_v55  ;;  %v18133_v55 = vld [vmem:[#allocation5_spill] sm:$0xff]  ;;  %v16165_v58 = vsel %vm18147_vm6, %v15651_v3, %v18146_v14  ;;  %v16183_v26 = vsel %vm8501_vm14, %v15660_v53, %v18150_v36  ;;  %vm18151_vm8 = vcmp.gt.f32.partialorder %v15663_v6, 0.0  ;;  %vm18152_vm6 = vcmp.gt.f32.partialorder %v15666_v52, 0.0  ;;  %v8670_v14 = vld [vmem:[%s10217_s8 + $0x58] sm:$0xff]  ;;  %v8671_v36 = vld [vmem:[%s10217_s8 + $0x60] sm:$0xff] }
 0x7c0   : > { %v16105_v42 = vmul.f32 0.2, %v18133_v55  ;;  %vm8534_vm4 = vcmp.gt.f32.partialorder %v18133_v55, 0.0  ;;  %18139 = vst [vmem:[#allocation68_spill] sm:$0xff] %v16121_v24  ;;  %v16189_v3 = vsel %vm18151_vm8, %v15663_v6, %v15914_v30  ;;  %v16207_v53 = vsel %vm8505_vm11, %v15672_v17, %v15931_v35 }
 0x7c1   : > { %vm18154_vm14 = vcmp.gt.f32.partialorder %v15675_v25, 0.0  ;;  %vm18156_vm2 = vcmp.gt.f32.partialorder %v15678_v62, 0.0  ;;  %vm18157_vm8 = vcmp.gt.f32.partialorder %v15681_v47, 0.0  ;;  %vm18159_vm11 = vcmp.gt.f32.partialorder %v15687_v27, 0.0 }
 0x7c2   : > { %18134 = vst [vmem:[#allocation36_spill] sm:$0xff] %v16105_v42  ;;  %v18140_v42 = vld [vmem:[#allocation63_spill] sm:$0xff]  ;;  %v16213_v6 = vsel %vm18154_vm14, %v15675_v25, %v15934_v28  ;;  %v16225_v17 = vsel %vm18157_vm8, %v15681_v47, %v15949_v8  ;;  %v16231_v25 = vsel %vm8509_vm9, %v15684_v50, %v15952_v23  ;;  %v18162_v50 = vld [vmem:[#allocation64_spill] sm:$0xff]  ;;  %vm18163_vm9 = vcmp.gt.f32.partialorder %v15699_v45, 0.0  ;;  %v8668_v28 = vld [vmem:[%s10217_s8 + $0x48] sm:$0xff] }
 0x7c3   : > { %v16124_v54 = vmul.f32 0.2, %v18140_v42  ;;  %vm8537_vm1 = vcmp.gt.f32.partialorder %v18140_v42, 0.0  ;;  %v16255_v23 = vsel %vm8513_vm15, %v15696_v7, %v18162_v50  ;;  %vm18165_vm14 = vcmp.gt.f32.partialorder %v15702_v46, 0.0 }
 0x7c4   : > { %vm18172_vm15 = vcmp.gt.f32.partialorder %v15711_v34, 0.0  ;;  %vm18175_vm8 = vcmp.gt.f32.partialorder %v15714_v40, 0.0 }
 0x7c5   : > { %18141 = vst [vmem:[#allocation99_spill] sm:$0xff] %v16124_v54  ;;  %v18143_v54 = vld [vmem:[#allocation97_spill] sm:$0xff] }
 0x7c6   : > { %v16147_v24 = vsel %vm18144_vm10, %v15642_v38, %v18143_v54  ;;  %vm18148_vm10 = vcmp.gt.f32.partialorder %v15654_v0, 0.0 }
 0x7c7   : > { %v16171_v38 = vsel %vm18148_vm10, %v15654_v0, %v15899_v22  ;;  %v16195_v0 = vsel %vm18152_vm6, %v15666_v52, %v15917_v48  ;;  %vm18153_vm10 = vcmp.gt.f32.partialorder %v15669_v11, 0.0  ;;  %v18155_v52 = vld [vmem:[#allocation37_spill] sm:$0xff]  ;;  %vm18160_vm6 = vcmp.gt.f32.partialorder %v15690_v37, 0.0  ;;  %v18178_v48 = vld [vmem:[#allocation100_spill] sm:$0xff] }
 0x7c8   : > { %v16201_v10 = vsel %vm18153_vm10, %v15669_v11, %v15920_v18  ;;  %v16219_v11 = vsel %vm18156_vm2, %v15678_v62, %v18155_v52  ;;  %v18158_v18 = vld [vmem:[#allocation18_spill] sm:$0xff]  ;;  %v16243_v62 = vsel %vm18160_vm6, %v15690_v37, %v15967_v16  ;;  %vm18161_vm10 = vcmp.gt.f32.partialorder %v15693_v21, 0.0  ;;  %v18171_v22 = vld [vmem:[#allocation69_spill] sm:$0xff] }
 0x7c9   : > { %v16237_v49 = vsel %vm18159_vm11, %v15687_v27, %v18158_v18  ;;  %v16249_v47 = vsel %vm18161_vm10, %v15693_v21, %v15970_v19  ;;  %v16261_v27 = vsel %vm18163_vm9, %v15699_v45, %v15985_v43  ;;  %v16267_v37 = vsel %vm18165_vm14, %v15702_v46, %v15988_v32  ;;  %v18167_v21 = vld [vmem:[#allocation96_spill] sm:$0xff]  ;;  %v18174_v46 = vld [vmem:[#allocation70_spill] sm:$0xff]  ;;  %v18186_v32 = vld [vmem:[#allocation107_spill] sm:$0xff] }
 0x7ca   : > { %18164 = vst [vmem:[#allocation67_spill] sm:$0xff] %v16261_v27  ;;  %18166 = vst [vmem:[#allocation10_spill] sm:$0xff] %v16267_v37  ;;  %vm18168_vm2 = vcmp.gt.f32.partialorder %v15705_v44, 0.0  ;;  %v16279_v45 = vsel %vm8517_vm3, %v15708_v51, %v16004_v29  ;;  %v16285_v12 = vsel %vm18172_vm15, %v15711_v34, %v18171_v22  ;;  %v16291_v30 = vsel %vm18175_vm8, %v15714_v40, %v18174_v46  ;;  %v8667_v51 = vld [vmem:[%s10217_s8 + $0x40] sm:$0xff]  ;;  %v18183_v40 = vld [vmem:[#allocation105_spill] sm:$0xff] }
 0x7cb   : > { %v16273_v7 = vsel %vm18168_vm2, %v15705_v44, %v18167_v21  ;;  %18170 = vst [vmem:[#allocation50_spill] sm:$0xff] %v16279_v45  ;;  %18173 = vst [vmem:[#allocation79_spill] sm:$0xff] %v16285_v12  ;;  %v18177_v44 = vld [vmem:[#allocation73_spill] sm:$0xff]  ;;  %vm18179_vm11 = vcmp.gt.f32.partialorder %v18178_v48, 0.0  ;;  %v18181_v34 = vld [vmem:[#allocation88_spill] sm:$0xff]  ;;  %vm18184_vm3 = vcmp.gt.f32.partialorder %v15723_v56, 0.0 }
 0x7cc   : > { %18169 = vst [vmem:[#allocation95_spill] sm:$0xff] %v16273_v7  ;;  %18176 = vst [vmem:[#allocation34_spill] sm:$0xff] %v16291_v30  ;;  %v16297_v35 = vsel %vm18179_vm11, %v18178_v48, %v18177_v44  ;;  %v16306_v19 = vsel %vm8521_vm12, %v15720_v63, %v18181_v34  ;;  %v16312_v8 = vsel %vm18184_vm3, %v15723_v56, %v18183_v40  ;;  %vm18187_vm6 = vcmp.gt.f32.partialorder %v18108_v5, 0.0  ;;  %v18189_v43 = vld [vmem:[#allocation41_spill] sm:$0xff]  ;;  %v18190_v29 = vld [vmem:[#allocation15_spill] sm:$0xff] }
 0x7cd   : > { %18180 = vst [vmem:[#allocation44_spill] sm:$0xff] %v16297_v35  ;;  %18182 = vst [vmem:[#allocation9_spill] sm:$0xff] %v16306_v19  ;;  %v16318_v16 = vsel %vm18187_vm6, %v18108_v5, %v18186_v32  ;;  %vm18191_vm10 = vcmp.gt.f32.partialorder %v18190_v29, 0.0  ;;  %v8669_v63 = vld [vmem:[%s10217_s8 + $0x50] sm:$0xff]  ;;  %v8672_v56 = vld [vmem:[%s10217_s8 + $0x68] sm:$0xff]  ;;  %vm18196_vm12 = vcmp.gt.f32.partialorder %v18115_v13, 0.0 }
 0x7ce   : > { %18185 = vst [vmem:[#allocation104_spill] sm:$0xff] %v16312_v8  ;;  %18188 = vst [vmem:[#allocation84_spill] sm:$0xff] %v16318_v16  ;;  %v16324_v54 = vsel %vm18191_vm10, %v18190_v29, %v18189_v43  ;;  %v18193_v52 = vld [vmem:[#allocation82_spill] sm:$0xff]  ;;  %v18195_v18 = vld [vmem:[#allocation83_spill] sm:$0xff]  ;;  %vm18212_vm2 = vcmp.gt.f32.partialorder %v18126_v9, 0.0 }
 0x7cf   : > { %18192 = vst [vmem:[#allocation75_spill] sm:$0xff] %v16324_v54  ;;  %v16334_v5 = vsel %vm8525_vm0, %v18111_v39, %v18193_v52  ;;  %v16340_v50 = vsel %vm18196_vm12, %v18115_v13, %v18195_v18  ;;  %v18198_v21 = vld [vmem:[#allocation101_spill] sm:$0xff]  ;;  %v18199_v22 = vld [vmem:[#allocation76_spill] sm:$0xff]  ;;  %v18203_v48 = vld [vmem:[#allocation78_spill] sm:$0xff]  ;;  %vm18209_vm0 = vcmp.gt.f32.partialorder %v18124_v57, 0.0 }
 0x7d0   : > { %18194 = vst [vmem:[#allocation87_spill] sm:$0xff] %v16334_v5  ;;  %18197 = vst [vmem:[#allocation55_spill] sm:$0xff] %v16340_v50  ;;  %vm18200_vm9 = vcmp.gt.f32.partialorder %v18199_v22, 0.0  ;;  %v18202_v44 = vld [vmem:[#allocation52_spill] sm:$0xff]  ;;  %vm18204_vm14 = vcmp.gt.f32.partialorder %v18203_v48, 0.0  ;;  %v8673_v39 = vld [vmem:[%s10217_s8 + $0x70] sm:$0xff] }
 0x7d1   : > { %v16346_v46 = vsel %vm18200_vm9, %v18199_v22, %v18198_v21  ;;  %v16352_v34 = vsel %vm18204_vm14, %v18203_v48, %v18202_v44  ;;  %v8674_v40 = vld [vmem:[%s10217_s8 + $0x78] sm:$0xff]  ;;  %v8675_v32 = vld [vmem:[%s10217_s8 + $0x80] sm:$0xff]  ;;  %v8676_v43 = vld [vmem:[%s10217_s8 + $0x88] sm:$0xff] }
 0x7d2   : > { %18201 = vst [vmem:[#allocation110_spill] sm:$0xff] %v16346_v46  ;;  %18205 = vst [vmem:[#allocation4_spill] sm:$0xff] %v16352_v34  ;;  %v18206_v13 = vld [vmem:[#allocation109_spill] sm:$0xff]  ;;  %v18208_v52 = vld [vmem:[#allocation16_spill] sm:$0xff] }
 0x7d3   : > { %v16362_v29 = vsel %vm8529_vm7, %v18122_v20, %v18206_v13  ;;  %v16368_v18 = vsel %vm18209_vm0, %v18124_v57, %v18208_v52  ;;  %v18211_v21 = vld [vmem:[#allocation40_spill] sm:$0xff]  ;;  %v18214_v44 = vld [vmem:[#allocation77_spill] sm:$0xff]  ;;  %v18215_v48 = vld [vmem:[#allocation90_spill] sm:$0xff]  ;;  %vm18222_vm7 = vcmp.gt.f32.partialorder %v18137_v41, 0.0 }
 0x7d4   : > { %18207 = vst [vmem:[#allocation108_spill] sm:$0xff] %v16362_v29  ;;  %18210 = vst [vmem:[#allocation29_spill] sm:$0xff] %v16368_v18  ;;  %v16374_v22 = vsel %vm18212_vm2, %v18126_v9, %v18211_v21  ;;  %vm18216_vm15 = vcmp.gt.f32.partialorder %v18215_v48, 0.0  ;;  %v8677_v20 = vld [vmem:[%s10217_s8 + $0x90] sm:$0xff]  ;;  %v8678_v13 = vld [vmem:[%s10217_s8 + $0x98] sm:$0xff] }
 0x7d5   : > { %18213 = vst [vmem:[#allocation58_spill] sm:$0xff] %v16374_v22  ;;  %v16380_v34 = vsel %vm18216_vm15, %v18215_v48, %v18214_v44  ;;  %v8679_v29 = vld [vmem:[%s10217_s8 + $0xa0] sm:$0xff]  ;;  %v8680_v57 = vld [vmem:[%s10217_s8 + $0xa8] sm:$0xff]  ;;  %v16407_v48 = vsel %vm18222_vm7, %v18137_v41, %v16118_v60  ;;  %v18225_v22 = vld [vmem:[#allocation38_spill] sm:$0xff]  ;;  %v16429_v60 = vsel %vm8538_vm13, %v18142_v61, %v16135_v33 }
 0x7d6   : > { %18217 = vst [vmem:[#allocation89_spill] sm:$0xff] %v16380_v34  ;;  %v18218_v9 = vld [vmem:[#allocation53_spill] sm:$0xff]  ;;  %v18220_v21 = vld [vmem:[#allocation36_spill] sm:$0xff]  ;;  %18223 = vst [vmem:[#allocation80_spill] sm:$0xff] %v16407_v48  ;;  %vm18226_vm8 = vcmp.gt.f32.partialorder %v18225_v22, 0.0 }
 0x7d7   : > { %v16395_v52 = vsel %vm8533_vm5, %v18131_v2, %v18218_v9  ;;  %v16401_v44 = vsel %vm8534_vm4, %v18133_v55, %v18220_v21  ;;  %v18224_v34 = vld [vmem:[#allocation68_spill] sm:$0xff]  ;;  %v8681_v9 = vld [vmem:[%s10217_s8 + $0xb0] sm:$0xff]  ;;  %v8684_v55 = vld [vmem:[%s10217_s8 + $0xc8] sm:$0xff]  ;;  %18230 = vst [vmem:[#allocation49_spill] sm:$0xff] %v16429_v60 }
 0x7d8   : > { %18219 = vst [vmem:[#allocation11_spill] sm:$0xff] %v16395_v52  ;;  %18221 = vst [vmem:[#allocation102_spill] sm:$0xff] %v16401_v44  ;;  %v16413_v2 = vsel %vm18226_vm8, %v18225_v22, %v18224_v34  ;;  %v8682_v52 = vld [vmem:[%s10217_s8 + $0xb8] sm:$0xff]  ;;  %v8683_v18 = vld [vmem:[%s10217_s8 + $0xc0] sm:$0xff] }
 0x7d9   : > { %18227 = vst [vmem:[#allocation43_spill] sm:$0xff] %v16413_v2  ;;  %v18228_v21 = vld [vmem:[#allocation99_spill] sm:$0xff]  ;;  %v8685_v41 = vld [vmem:[%s10217_s8 + $0xd0] sm:$0xff]  ;;  %v8687_v22 = vld [vmem:[%s10217_s8 + $0xe0] sm:$0xff] }
 0x7da   : > { %v16423_v44 = vsel %vm8537_vm1, %v18140_v42, %v18228_v21  ;;  %v8686_v34 = vld [vmem:[%s10217_s8 + $0xd8] sm:$0xff]  ;;  %v8688_v2 = vld [vmem:[%s10217_s8 + $0xe8] sm:$0xff]  ;;  %v8689_v42 = vld [vmem:[%s10217_s8 + $0xf0] sm:$0xff] }
 0x7db   : > { %18229 = vst [vmem:[#allocation111_spill] sm:$0xff] %v16423_v44  ;;  %v18231_v48 = vld [vmem:[#allocation39_spill] sm:$0xff]  ;;  %v18232_v50 = vld [vmem:[#allocation93_spill] sm:$0xff]  ;;  %v8691_v44 = vld [vmem:[%s10217_s8 + $0x100] sm:$0xff] }
 0x7dc   : > { %v8731_v46 = vadd.f32 %v8667_v51, %v18231_v48  ;;  %v8732_v5 = vadd.f32 %v8668_v28, %v18232_v50  ;;  %v8690_v21 = vld [vmem:[%s10217_s8 + $0xf8] sm:$0xff]  ;;  %v8692_v54 = vld [vmem:[%s10217_s8 + $0x108] sm:$0xff]  ;;  %v18234_v60 = vld [vmem:[#allocation26_spill] sm:$0xff] }
 0x7dd   : > { %v18233_v33 = vld [vmem:[#allocation17_spill] sm:$0xff]  ;;  %v8734_v16 = vadd.f32 %v8670_v14, %v18234_v60  ;;  %v18235_v8 = vld [vmem:[#allocation20_spill] sm:$0xff]  ;;  %v18236_v35 = vld [vmem:[#allocation103_spill] sm:$0xff] }
 0x7de   : > { %v8733_v61 = vadd.f32 %v8669_v63, %v18233_v33  ;;  %v8735_v19 = vadd.f32 %v8671_v36, %v18235_v8  ;;  %v8736_v51 = vadd.f32 %v8672_v56, %v18236_v35  ;;  %v8693_v48 = vld [vmem:[%s10217_s8 + $0x110] sm:$0xff]  ;;  %v8694_v28 = vld [vmem:[%s10217_s8 + $0x118] sm:$0xff]  ;;  %v8695_v50 = vld [vmem:[%s10217_s8 + $0x120] sm:$0xff]  ;;  %8795 = vst [vmem:[%s16389_s19] sm:$0xff] %v8731_v46 }
 0x7df   : > { %v8696_v30 = vld [vmem:[%s10217_s8 + $0x128] sm:$0xff]  ;;  %v18237_v12 = vld [vmem:[#allocation32_spill] sm:$0xff]  ;;  %v18239_v63 = vld [vmem:[#allocation7_spill] sm:$0xff]  ;;  %8796 = vst [vmem:[%s16389_s19 + $0x8] sm:$0xff] %v8732_v5 }
 0x7e0   : > { %v8737_v45 = vadd.f32 %v8673_v39, %v18237_v12  ;;  %v18238_v7 = vld [vmem:[#allocation33_spill] sm:$0xff]  ;;  %v8739_v33 = vadd.f32 %v8675_v32, %v18239_v63  ;;  %v18240_v14 = vld [vmem:[#allocation46_spill] sm:$0xff]  ;;  %v8698_v8 = vld [vmem:[%s10217_s8 + $0x138] sm:$0xff]  ;;  %8797 = vst [vmem:[%s16389_s19 + $0x10] sm:$0xff] %v8733_v61 }
 0x7e1   : > { %v8738_v37 = vadd.f32 %v8674_v40, %v18238_v7  ;;  %v8740_v60 = vadd.f32 %v8676_v43, %v18240_v14  ;;  %v8697_v35 = vld [vmem:[%s10217_s8 + $0x130] sm:$0xff]  ;;  %v8699_v36 = vld [vmem:[%s10217_s8 + $0x140] sm:$0xff]  ;;  %v8700_v56 = vld [vmem:[%s10217_s8 + $0x148] sm:$0xff]  ;;  %8798 = vst [vmem:[%s16389_s19 + $0x18] sm:$0xff] %v8734_v16 }
 0x7e2   : > { %v18241_v27 = vld [vmem:[#allocation66_spill] sm:$0xff]  ;;  %v18242_v39 = vld [vmem:[#allocation48_spill] sm:$0xff]  ;;  %8799 = vst [vmem:[%s16389_s19 + $0x20] sm:$0xff] %v8735_v19  ;;  %8800 = vst [vmem:[%s16389_s19 + $0x28] sm:$0xff] %v8736_v51 }
 0x7e3   : > { %v8741_v12 = vadd.f32 %v8677_v20, %v18241_v27  ;;  %v8742_v7 = vadd.f32 %v8678_v13, %v18242_v39  ;;  %v18243_v40 = vld [vmem:[#allocation6_spill] sm:$0xff]  ;;  %v8702_v46 = vld [vmem:[%s10217_s8 + $0x158] sm:$0xff]  ;;  %v8703_v27 = vld [vmem:[%s10217_s8 + $0x160] sm:$0xff]  ;;  %8801 = vst [vmem:[%s16389_s19 + $0x30] sm:$0xff] %v8737_v45  ;;  %v8752_v45 = vadd.f32 %v8688_v2, %v16153_v4  ;;  %v8756_v4 = vadd.f32 %v8692_v54, %v16177_v59 }
 0x7e4   : > { %v8743_v32 = vadd.f32 %v8679_v29, %v18243_v40  ;;  %v18244_v63 = vld [vmem:[#allocation74_spill] sm:$0xff]  ;;  %v8704_v20 = vld [vmem:[%s10217_s8 + $0x168] sm:$0xff]  ;;  %v18245_v14 = vld [vmem:[#allocation19_spill] sm:$0xff]  ;;  %8802 = vst [vmem:[%s16389_s19 + $0x38] sm:$0xff] %v8738_v37  ;;  %v8760_v59 = vadd.f32 %v8696_v30, %v16201_v10  ;;  %v8764_v10 = vadd.f32 %v8700_v56, %v16225_v17 }
 0x7e5   : > { %v8744_v43 = vadd.f32 %v8680_v57, %v18244_v63  ;;  %v8701_v5 = vld [vmem:[%s10217_s8 + $0x150] sm:$0xff]  ;;  %v8745_v13 = vadd.f32 %v8681_v9, %v18245_v14  ;;  %v18247_v40 = vld [vmem:[#allocation21_spill] sm:$0xff]  ;;  %v18248_v61 = vld [vmem:[#allocation56_spill] sm:$0xff]  ;;  %8803 = vst [vmem:[%s16389_s19 + $0x40] sm:$0xff] %v8739_v33  ;;  %v8749_v9 = vadd.f32 %v8685_v41, %v16130_v1  ;;  %v8753_v1 = vadd.f32 %v8689_v42, %v16159_v31 }
 0x7e6   : > { %v18246_v39 = vld [vmem:[#allocation54_spill] sm:$0xff]  ;;  %v8747_v57 = vadd.f32 %v8683_v18, %v18247_v40  ;;  %v8748_v16 = vadd.f32 %v8684_v55, %v18248_v61  ;;  %8804 = vst [vmem:[%s16389_s19 + $0x48] sm:$0xff] %v8740_v60  ;;  %v8706_v51 = vld [vmem:[%s10217_s8 + $0x178] sm:$0xff]  ;;  %v8707_v63 = vld [vmem:[%s10217_s8 + $0x180] sm:$0xff]  ;;  %v8751_v18 = vadd.f32 %v8687_v22, %v16147_v24  ;;  %v8755_v24 = vadd.f32 %v8691_v44, %v16171_v38 }
 0x7e7   : > { %v8746_v29 = vadd.f32 %v8682_v52, %v18246_v39  ;;  %v8705_v19 = vld [vmem:[%s10217_s8 + $0x170] sm:$0xff]  ;;  %v8750_v52 = vadd.f32 %v8686_v34, %v16141_v15  ;;  %8805 = vst [vmem:[%s16389_s19 + $0x50] sm:$0xff] %v8741_v12  ;;  %8806 = vst [vmem:[%s16389_s19 + $0x58] sm:$0xff] %v8742_v7  ;;  %v8708_v37 = vld [vmem:[%s10217_s8 + $0x188] sm:$0xff]  ;;  %v8754_v15 = vadd.f32 %v8690_v21, %v16165_v58 }
 0x7e8   : > { %8807 = vst [vmem:[%s16389_s19 + $0x60] sm:$0xff] %v8743_v32  ;;  %8808 = vst [vmem:[%s16389_s19 + $0x68] sm:$0xff] %v8744_v43  ;;  %v8709_v55 = vld [vmem:[%s10217_s8 + $0x190] sm:$0xff]  ;;  %v8710_v33 = vld [vmem:[%s10217_s8 + $0x198] sm:$0xff]  ;;  %v8757_v31 = vadd.f32 %v8693_v48, %v16183_v26  ;;  %v8758_v58 = vadd.f32 %v8694_v28, %v16189_v3  ;;  %v8759_v38 = vadd.f32 %v8695_v50, %v16195_v0 }
 0x7e9   : > { %8809 = vst [vmem:[%s16389_s19 + $0x70] sm:$0xff] %v8745_v13  ;;  %8810 = vst [vmem:[%s16389_s19 + $0x78] sm:$0xff] %v8746_v29  ;;  %v8711_v2 = vld [vmem:[%s10217_s8 + $0x1a0] sm:$0xff]  ;;  %v8712_v41 = vld [vmem:[%s10217_s8 + $0x1a8] sm:$0xff]  ;;  %v8761_v26 = vadd.f32 %v8697_v35, %v16207_v53  ;;  %v8762_v3 = vadd.f32 %v8698_v8, %v16213_v6  ;;  %v8763_v0 = vadd.f32 %v8699_v36, %v16219_v11 }
 0x7ea   : > { %8811 = vst [vmem:[%s16389_s19 + $0x80] sm:$0xff] %v8747_v57  ;;  %8812 = vst [vmem:[%s16389_s19 + $0x88] sm:$0xff] %v8748_v16  ;;  %v8713_v34 = vld [vmem:[%s10217_s8 + $0x1b0] sm:$0xff]  ;;  %v8714_v54 = vld [vmem:[%s10217_s8 + $0x1b8] sm:$0xff]  ;;  %v8765_v53 = vadd.f32 %v8701_v5, %v16231_v25  ;;  %v8766_v6 = vadd.f32 %v8702_v46, %v16237_v49  ;;  %v8767_v11 = vadd.f32 %v8703_v27, %v16243_v62 }
 0x7eb   : > { %8813 = vst [vmem:[%s16389_s19 + $0x90] sm:$0xff] %v8749_v9  ;;  %8814 = vst [vmem:[%s16389_s19 + $0x98] sm:$0xff] %v8750_v52  ;;  %v8715_v44 = vld [vmem:[%s10217_s8 + $0x1c0] sm:$0xff]  ;;  %v8716_v22 = vld [vmem:[%s10217_s8 + $0x1c8] sm:$0xff]  ;;  %v8768_v17 = vadd.f32 %v8704_v20, %v16249_v47  ;;  %v8769_v25 = vadd.f32 %v8705_v19, %v16255_v23 }
 0x7ec   : > { %8815 = vst [vmem:[%s16389_s19 + $0xa0] sm:$0xff] %v8751_v18  ;;  %8816 = vst [vmem:[%s16389_s19 + $0xa8] sm:$0xff] %v8752_v45  ;;  %v8717_v30 = vld [vmem:[%s10217_s8 + $0x1d0] sm:$0xff]  ;;  %v8718_v42 = vld [vmem:[%s10217_s8 + $0x1d8] sm:$0xff] }
 0x7ed   : > { %8817 = vst [vmem:[%s16389_s19 + $0xb0] sm:$0xff] %v8753_v1  ;;  %8818 = vst [vmem:[%s16389_s19 + $0xb8] sm:$0xff] %v8754_v15  ;;  %v8719_v21 = vld [vmem:[%s10217_s8 + $0x1e0] sm:$0xff]  ;;  %v8720_v48 = vld [vmem:[%s10217_s8 + $0x1e8] sm:$0xff] }
 0x7ee   : > { %8819 = vst [vmem:[%s16389_s19 + $0xc0] sm:$0xff] %v8755_v24  ;;  %8820 = vst [vmem:[%s16389_s19 + $0xc8] sm:$0xff] %v8756_v4  ;;  %v8721_v28 = vld [vmem:[%s10217_s8 + $0x1f0] sm:$0xff]  ;;  %v8722_v50 = vld [vmem:[%s10217_s8 + $0x1f8] sm:$0xff] }
 0x7ef   : > { %8821 = vst [vmem:[%s16389_s19 + $0xd0] sm:$0xff] %v8757_v31  ;;  %8822 = vst [vmem:[%s16389_s19 + $0xd8] sm:$0xff] %v8758_v58  ;;  %v18249_v49 = vld [vmem:[#allocation67_spill] sm:$0xff]  ;;  %v18250_v62 = vld [vmem:[#allocation10_spill] sm:$0xff] }
 0x7f0   : > { %8823 = vst [vmem:[%s16389_s19 + $0xe0] sm:$0xff] %v8759_v38  ;;  %8824 = vst [vmem:[%s16389_s19 + $0xe8] sm:$0xff] %v8760_v59  ;;  %v8770_v60 = vadd.f32 %v8706_v51, %v18249_v49  ;;  %v8771_v35 = vadd.f32 %v8707_v63, %v18250_v62  ;;  %v18251_v47 = vld [vmem:[#allocation95_spill] sm:$0xff]  ;;  %v8723_v36 = vld [vmem:[%s10217_s8 + $0x200] sm:$0xff] }
 0x7f1   : > { %v8772_v8 = vadd.f32 %v8708_v37, %v18251_v47  ;;  %8825 = vst [vmem:[%s16389_s19 + $0xf0] sm:$0xff] %v8761_v26  ;;  %8826 = vst [vmem:[%s16389_s19 + $0xf8] sm:$0xff] %v8762_v3  ;;  %v8724_v56 = vld [vmem:[%s10217_s8 + $0x208] sm:$0xff]  ;;  %v8725_v12 = vld [vmem:[%s10217_s8 + $0x210] sm:$0xff] }
 0x7f2   : > { %8827 = vst [vmem:[%s16389_s19 + $0x100] sm:$0xff] %v8763_v0  ;;  %8828 = vst [vmem:[%s16389_s19 + $0x108] sm:$0xff] %v8764_v10  ;;  %v18252_v23 = vld [vmem:[#allocation50_spill] sm:$0xff]  ;;  %v18253_v32 = vld [vmem:[#allocation79_spill] sm:$0xff] }
 0x7f3   : > { %v8773_v7 = vadd.f32 %v8709_v55, %v18252_v23  ;;  %v8774_v43 = vadd.f32 %v8710_v33, %v18253_v32  ;;  %v18254_v5 = vld [vmem:[#allocation34_spill] sm:$0xff]  ;;  %v18255_v27 = vld [vmem:[#allocation44_spill] sm:$0xff]  ;;  %8829 = vst [vmem:[%s16389_s19 + $0x110] sm:$0xff] %v8765_v53  ;;  %8830 = vst [vmem:[%s16389_s19 + $0x118] sm:$0xff] %v8766_v6 }
 0x7f4   : > { %v8775_v46 = vadd.f32 %v8711_v2, %v18254_v5  ;;  %v8776_v20 = vadd.f32 %v8712_v41, %v18255_v27  ;;  %8831 = vst [vmem:[%s16389_s19 + $0x120] sm:$0xff] %v8767_v11  ;;  %8832 = vst [vmem:[%s16389_s19 + $0x128] sm:$0xff] %v8768_v17  ;;  %v8726_v14 = vld [vmem:[%s10217_s8 + $0x218] sm:$0xff]  ;;  %v8727_v13 = vld [vmem:[%s10217_s8 + $0x220] sm:$0xff] }
 0x7f5   : > { %v8728_v39 = vld [vmem:[%s10217_s8 + $0x228] sm:$0xff]  ;;  %v18257_v57 = vld [vmem:[#allocation104_spill] sm:$0xff]  ;;  %v18259_v51 = vld [vmem:[#allocation75_spill] sm:$0xff]  ;;  %8833 = vst [vmem:[%s16389_s19 + $0x130] sm:$0xff] %v8769_v25 }
 0x7f6   : > { %v18256_v29 = vld [vmem:[#allocation9_spill] sm:$0xff]  ;;  %v8778_v61 = vadd.f32 %v8714_v54, %v18257_v57  ;;  %v18258_v16 = vld [vmem:[#allocation84_spill] sm:$0xff]  ;;  %v8780_v63 = vadd.f32 %v8716_v22, %v18259_v51  ;;  %8834 = vst [vmem:[%s16389_s19 + $0x138] sm:$0xff] %v8770_v60  ;;  %8835 = vst [vmem:[%s16389_s19 + $0x140] sm:$0xff] %v8771_v35 }
 0x7f7   : > { %v8777_v40 = vadd.f32 %v8713_v34, %v18256_v29  ;;  %v8779_v19 = vadd.f32 %v8715_v44, %v18258_v16  ;;  %8836 = vst [vmem:[%s16389_s19 + $0x148] sm:$0xff] %v8772_v8  ;;  %v8729_v9 = vld [vmem:[%s10217_s8 + $0x230] sm:$0xff]  ;;  %v8730_v52 = vld [vmem:[%s10217_s8 + $0x238] sm:$0xff]  ;;  %v18263_v15 = vld [vmem:[#allocation4_spill] sm:$0xff] }
 0x7f8   : > { %v18260_v18 = vld [vmem:[#allocation87_spill] sm:$0xff]  ;;  %v18262_v33 = vld [vmem:[#allocation110_spill] sm:$0xff]  ;;  %v8784_v24 = vadd.f32 %v8720_v48, %v18263_v15  ;;  %8837 = vst [vmem:[%s16389_s19 + $0x150] sm:$0xff] %v8773_v7  ;;  %8838 = vst [vmem:[%s16389_s19 + $0x158] sm:$0xff] %v8774_v43 }
 0x7f9   : > { %v8781_v45 = vadd.f32 %v8717_v30, %v18260_v18  ;;  %v18261_v37 = vld [vmem:[#allocation55_spill] sm:$0xff]  ;;  %v8783_v1 = vadd.f32 %v8719_v21, %v18262_v33  ;;  %8839 = vst [vmem:[%s16389_s19 + $0x160] sm:$0xff] %v8775_v46  ;;  %8840 = vst [vmem:[%s16389_s19 + $0x168] sm:$0xff] %v8776_v20  ;;  %v18264_v4 = vld [vmem:[#allocation108_spill] sm:$0xff] }
 0x7fa   : > { %v8782_v55 = vadd.f32 %v8718_v42, %v18261_v37  ;;  %v8785_v2 = vadd.f32 %v8721_v28, %v18264_v4  ;;  %v18265_v41 = vld [vmem:[#allocation29_spill] sm:$0xff]  ;;  %v18266_v31 = vld [vmem:[#allocation58_spill] sm:$0xff]  ;;  %8841 = vst [vmem:[%s16389_s19 + $0x170] sm:$0xff] %v8777_v40  ;;  %8842 = vst [vmem:[%s16389_s19 + $0x178] sm:$0xff] %v8778_v61 }
 0x7fb   : > { %v8786_v34 = vadd.f32 %v8722_v50, %v18265_v41  ;;  %v8787_v58 = vadd.f32 %v8723_v36, %v18266_v31  ;;  %v18267_v38 = vld [vmem:[#allocation89_spill] sm:$0xff]  ;;  %8843 = vst [vmem:[%s16389_s19 + $0x180] sm:$0xff] %v8779_v19  ;;  %8844 = vst [vmem:[%s16389_s19 + $0x188] sm:$0xff] %v8780_v63  ;;  %v18268_v54 = vld [vmem:[#allocation11_spill] sm:$0xff] }
 0x7fc   : > { %v8788_v59 = vadd.f32 %v8724_v56, %v18267_v38  ;;  %v8789_v44 = vadd.f32 %v8725_v12, %v18268_v54  ;;  %v18269_v22 = vld [vmem:[#allocation102_spill] sm:$0xff]  ;;  %v18270_v3 = vld [vmem:[#allocation80_spill] sm:$0xff]  ;;  %v18271_v10 = vld [vmem:[#allocation43_spill] sm:$0xff]  ;;  %8845 = vst [vmem:[%s16389_s19 + $0x190] sm:$0xff] %v8781_v45 }
 0x7fd   : > { %v8790_v26 = vadd.f32 %v8726_v14, %v18269_v22  ;;  %v8791_v0 = vadd.f32 %v8727_v13, %v18270_v3  ;;  %v8792_v30 = vadd.f32 %v8728_v39, %v18271_v10  ;;  %8846 = vst [vmem:[%s16389_s19 + $0x198] sm:$0xff] %v8782_v55  ;;  %8847 = vst [vmem:[%s16389_s19 + $0x1a0] sm:$0xff] %v8783_v1  ;;  %v18272_v42 = vld [vmem:[#allocation111_spill] sm:$0xff]  ;;  %v18273_v53 = vld [vmem:[#allocation49_spill] sm:$0xff] }
 0x7fe   : > { %8848 = vst [vmem:[%s16389_s19 + $0x1a8] sm:$0xff] %v8784_v24  ;;  %v8793_v21 = vadd.f32 %v8729_v9, %v18272_v42  ;;  %v8794_v6 = vadd.f32 %v8730_v52, %v18273_v53  ;;  %8849 = vst [vmem:[%s16389_s19 + $0x1b0] sm:$0xff] %v8785_v2 }
 0x7ff   : > { %8850 = vst [vmem:[%s16389_s19 + $0x1b8] sm:$0xff] %v8786_v34  ;;  %8851 = vst [vmem:[%s16389_s19 + $0x1c0] sm:$0xff] %v8787_v58 }
 0x800   : > { %8852 = vst [vmem:[%s16389_s19 + $0x1c8] sm:$0xff] %v8788_v59  ;;  %8853 = vst [vmem:[%s16389_s19 + $0x1d0] sm:$0xff] %v8789_v44 }
 0x801   : > { %8854 = vst [vmem:[%s16389_s19 + $0x1d8] sm:$0xff] %v8790_v26  ;;  %8855 = vst [vmem:[%s16389_s19 + $0x1e0] sm:$0xff] %v8791_v0 }
 0x802   : > { %8856 = vst [vmem:[%s16389_s19 + $0x1e8] sm:$0xff] %v8792_v30  ;;  %8857 = vst [vmem:[%s16389_s19 + $0x1f0] sm:$0xff] %v8793_v21 }
 0x803   : > { %8858 = vst [vmem:[%s16389_s19 + $0x1f8] sm:$0xff] %v8794_v6 }
 0x804 PF: > { %s13_s12 = sadd.s32 1, %s10148_s12  }
 0x805   : > { %p10_p4 = scmp.ge.s32.totalorder %s13_s12, 4  }
 0x807   :  { %12 = sbr.rel (!%p10_p4) target bundleno = 1 (0x1), region = 66 }

</bundles_post_ra>
